<compile_context>
chip_gen: v5e
topology: v5e:2x2
jax: 0.10.0
libtpu: 0.0.40
codegen_flags: <defaults>
</compile_context>

<pallas_src>
import functools

import jax
import jax.numpy as jnp
import numpy as np
from jax.experimental import pallas as pl
from jax.experimental.pallas import tpu as pltpu


# ----------------------------------------------------------------------------
# Fused kernel: folded PreConv (= per-view 3x3 pad-1 conv) for one view-row.
# ----------------------------------------------------------------------------
def _recon_kernel(w_ref, x_ref, o_ref, *, a, r2, cin, hq, wq):
    """w_ref : (r2*cin*9,)              f32 SMEM  folded PreConv∘FinalConv wts
       x_ref : (a, N, cin, hq+2, wq+2)  f32 VMEM  the `a` zero-padded sub-views
       o_ref : (1, a*r2, N, hq, wq)     f32 VMEM  per-view conv output
    """
    for j in range(a):                              # view column within row i
        accs = [None] * r2
        for ci in range(cin):
            ch = x_ref[j, :, ci]                    # (N, hq+2, wq+2)
            for kh in range(3):
                for kw in range(3):
                    tap = ch[:, kh:kh + hq, kw:kw + wq]        # (N, hq, wq)
                    for oc in range(r2):
                        wv = w_ref[((oc * cin + ci) * 3 + kh) * 3 + kw]
                        t = wv * tap                # scalar-broadcast VPU FMA
                        accs[oc] = t if accs[oc] is None else accs[oc] + t
        for oc in range(r2):
            o_ref[0, j * r2 + oc, :, :, :] = accs[oc].astype(o_ref.dtype)


# ----------------------------------------------------------------------------
# Forward pass
# ----------------------------------------------------------------------------
def recon_block_forward(x, w_pre, w_final, ang_res, upscale_factor):
    n, cin, h, w = x.shape
    a = int(ang_res)
    r = int(upscale_factor)
    r2 = r * r
    c = w_final.shape[1]
    assert h % a == 0 and w % a == 0
    assert w_pre.shape == (c * r2, cin, 3, 3)
    hq, wq = h // a, w // a

    # (1) Fold FinalConv through PixelShuffle / MacPI2SAI into PreConv weights:
    #     W_fold[p] = sum_c w_final[0,c] * w_pre[c*r^2 + p],  p in [0, r^2).
    wf = w_final[0, :, 0, 0].astype(jnp.float32)                       # (C,)
    w_fold = jnp.einsum(
        'c,cpqkl->pqkl', wf,
        w_pre.astype(jnp.float32).reshape(c, r2, cin, 3, 3))           # (r2,Cin,3,3)
    w_flat = w_fold.reshape(-1)                                        # (r2*Cin*9,)

    # (2) MacPI -> per-view layout (folds MacPI2SAI into the input layout):
    #     view (i, j) = x[:, :, i::a, j::a], zero-padded by 1.  The dilated
    #     conv (dilation = padding = a) on the MacPI image is exactly a 3x3
    #     pad-1 conv on each view.
    xv = x.astype(jnp.float32).reshape(n, cin, hq, a, wq, a)
    xv = jnp.transpose(xv, (3, 5, 0, 1, 2, 4))            # (i, j, n, ci, hh, ww)
    xv = xv.reshape(a * a, n, cin, hq, wq)
    xv = jnp.pad(xv, ((0, 0), (0, 0), (0, 0), (1, 1), (1, 1)))

    kernel = functools.partial(_recon_kernel, a=a, r2=r2, cin=cin, hq=hq, wq=wq)
    out_raw = pl.pallas_call(
        kernel,
        out_shape=jax.ShapeDtypeStruct((a, a * r2, n, hq, wq), jnp.float32),
        grid=(a,),
        in_specs=[
            pl.BlockSpec(memory_space=pltpu.MemorySpace.SMEM),     # folded weights
            pl.BlockSpec((a, n, cin, hq + 2, wq + 2),
                         lambda i: (i, 0, 0, 0, 0)),               # view-row i
        ],
        out_specs=pl.BlockSpec((1, a * r2, n, hq, wq),
                               lambda i: (i, 0, 0, 0, 0)),
        compiler_params=pltpu.CompilerParams(
            dimension_semantics=("parallel",)),
    )(w_flat, xv)

    # (3) PixelShuffle + SAI tiling: pure index permutation of the final-size
    # tensor, done once.
    # TODO(synk): the stride-r sub-pixel interleave is not expressible as a
    # contiguous BlockSpec store, so it remains one cheap wrapper transpose.
    out = out_raw.reshape(a, a, r, r, n, hq, wq)          # (i, j, ii, jj, n, hh, ww)
    out = jnp.transpose(out, (4, 0, 5, 2, 1, 6, 3))       # (n, i, hh, ii, j, ww, jj)
    return out.reshape(n, 1, h * r, w * r).astype(x.dtype)


# ----------------------------------------------------------------------------
# Pure-JAX reference (XLA convs, literal translation of the PyTorch module)
# ----------------------------------------------------------------------------
def macpi2sai(x, a):
    n, c, h, w = x.shape
    x = x.reshape(n, c, h // a, a, w // a, a)
    x = jnp.transpose(x, (0, 1, 3, 2, 5, 4))
    return x.reshape(n, c, h, w)


def pixel_shuffle(x, r):
    n, cr2, h, w = x.shape
    c = cr2 // (r * r)
    x = x.reshape(n, c, r, r, h, w)
    x = jnp.transpose(x, (0, 1, 4, 2, 5, 3))
    return x.reshape(n, c, h * r, w * r)


def recon_block_reference(x, w_pre, w_final, ang_res, upscale_factor):
    buf = jax.lax.conv_general_dilated(
        x, w_pre, window_strides=(1, 1),
        padding=((ang_res, ang_res), (ang_res, ang_res)),
        rhs_dilation=(ang_res, ang_res),
        dimension_numbers=("NCHW", "OIHW", "NCHW"))
    sai = macpi2sai(buf, ang_res)
    hr = pixel_shuffle(sai, upscale_factor)
    out = jax.lax.conv_general_dilated(
        hr, w_final, window_strides=(1, 1), padding="VALID",
        dimension_numbers=("NCHW", "OIHW", "NCHW"))
    return out


if __name__ == "__main__":
    # ReconBlock(angRes=2, channels=4, upscale_factor=2), batch=2, 16x16 input.
    ang_res = 2
    channels = 4
    upscale = 2
    batch, H, W = 2, 16, 16
    cout = channels * upscale ** 2

    key = jax.random.PRNGKey(0)
    kx, kw1, kw2 = jax.random.split(key, 3)
    x = jax.random.normal(kx, (batch, channels, H, W), dtype=jnp.float32)
    w_pre = 0.1 * jax.random.normal(kw1, (cout, channels, 3, 3), dtype=jnp.float32)
    w_final = 0.1 * jax.random.normal(kw2, (1, channels, 1, 1), dtype=jnp.float32)

    fwd = jax.jit(functools.partial(
        recon_block_forward, ang_res=ang_res, upscale_factor=upscale))
    out = fwd(x, w_pre, w_final)
    out = jax.block_until_ready(out)

    ref = recon_block_reference(x, w_pre, w_final, ang_res, upscale)
    ref = jax.block_until_ready(ref)

    assert out.shape == (batch, 1, H * upscale, W * upscale), out.shape
    np.testing.assert_allclose(np.asarray(out), np.asarray(ref),
                               rtol=2e-3, atol=2e-3)
    print("KERNEL_OK")
</pallas_src>

<mosaic_0001>
module attributes {stable_mosaic.version = 11 : i64} {
  func.func @_recon_kernel(%arg0: i32, %arg1: memref<144xf32, #tpu.memory_space<smem>>, %arg2: memref<2x2x4x10x10xf32, #tpu.memory_space<vmem>>, %arg3: memref<1x8x2x8x8xf32, #tpu.memory_space<vmem>>) attributes {dimension_semantics = [#tpu.dimension_semantics<parallel>], iteration_bounds = array<i64: 2>, scalar_prefetch = 0 : i64, scratch_operands = 0 : i64, tpu.core_type = #tpu.core_type<tc>, window_params = [{transform_indices = @transform_0, window_bounds = array<i64: 144>}, {transform_indices = @transform_1, window_bounds = array<i64: 2, 2, 4, 10, 10>}, {transform_indices = @transform_2, window_bounds = array<i64: 1, 8, 2, 8, 8>}]} {
    %c0 = arith.constant 0 : index
    %c0_0 = arith.constant 0 : index
    %c0_1 = arith.constant 0 : index
    %c0_2 = arith.constant 0 : index
    %c0_3 = arith.constant 0 : index
    %0 = vector.load %arg2[%c0, %c0_0, %c0_1, %c0_2, %c0_3] : memref<2x2x4x10x10xf32, #tpu.memory_space<vmem>>, vector<1x2x1x10x10xf32>
    %1 = vector.shape_cast %0 : vector<1x2x1x10x10xf32> to vector<2x10x10xf32>
    %2 = vector.extract_strided_slice %1 {offsets = [0, 0, 0], sizes = [2, 8, 8], strides = [1, 1, 1]} : vector<2x10x10xf32> to vector<2x8x8xf32>
    %c0_4 = arith.constant 0 : index
    %3 = memref.load %arg1[%c0_4] : memref<144xf32, #tpu.memory_space<smem>>
    %4 = vector.broadcast %3 : f32 to vector<2x8x8xf32>
    %5 = arith.mulf %4, %2 : vector<2x8x8xf32>
    %c36 = arith.constant 36 : index
    %6 = memref.load %arg1[%c36] : memref<144xf32, #tpu.memory_space<smem>>
    %7 = vector.broadcast %6 : f32 to vector<2x8x8xf32>
    %8 = arith.mulf %7, %2 : vector<2x8x8xf32>
    %c72 = arith.constant 72 : index
    %9 = memref.load %arg1[%c72] : memref<144xf32, #tpu.memory_space<smem>>
    %10 = vector.broadcast %9 : f32 to vector<2x8x8xf32>
    %11 = arith.mulf %10, %2 : vector<2x8x8xf32>
    %c108 = arith.constant 108 : index
    %12 = memref.load %arg1[%c108] : memref<144xf32, #tpu.memory_space<smem>>
    %13 = vector.broadcast %12 : f32 to vector<2x8x8xf32>
    %14 = arith.mulf %13, %2 : vector<2x8x8xf32>
    %15 = vector.extract_strided_slice %1 {offsets = [0, 0, 1], sizes = [2, 8, 8], strides = [1, 1, 1]} : vector<2x10x10xf32> to vector<2x8x8xf32>
    %c1 = arith.constant 1 : index
    %16 = memref.load %arg1[%c1] : memref<144xf32, #tpu.memory_space<smem>>
    %17 = vector.broadcast %16 : f32 to vector<2x8x8xf32>
    %18 = arith.mulf %17, %15 : vector<2x8x8xf32>
    %19 = arith.addf %5, %18 : vector<2x8x8xf32>
    %c37 = arith.constant 37 : index
    %20 = memref.load %arg1[%c37] : memref<144xf32, #tpu.memory_space<smem>>
    %21 = vector.broadcast %20 : f32 to vector<2x8x8xf32>
    %22 = arith.mulf %21, %15 : vector<2x8x8xf32>
    %23 = arith.addf %8, %22 : vector<2x8x8xf32>
    %c73 = arith.constant 73 : index
    %24 = memref.load %arg1[%c73] : memref<144xf32, #tpu.memory_space<smem>>
    %25 = vector.broadcast %24 : f32 to vector<2x8x8xf32>
    %26 = arith.mulf %25, %15 : vector<2x8x8xf32>
    %27 = arith.addf %11, %26 : vector<2x8x8xf32>
    %c109 = arith.constant 109 : index
    %28 = memref.load %arg1[%c109] : memref<144xf32, #tpu.memory_space<smem>>
    %29 = vector.broadcast %28 : f32 to vector<2x8x8xf32>
    %30 = arith.mulf %29, %15 : vector<2x8x8xf32>
    %31 = arith.addf %14, %30 : vector<2x8x8xf32>
    %32 = vector.extract_strided_slice %1 {offsets = [0, 0, 2], sizes = [2, 8, 8], strides = [1, 1, 1]} : vector<2x10x10xf32> to vector<2x8x8xf32>
    %c2 = arith.constant 2 : index
    %33 = memref.load %arg1[%c2] : memref<144xf32, #tpu.memory_space<smem>>
    %34 = vector.broadcast %33 : f32 to vector<2x8x8xf32>
    %35 = arith.mulf %34, %32 : vector<2x8x8xf32>
    %36 = arith.addf %19, %35 : vector<2x8x8xf32>
    %c38 = arith.constant 38 : index
    %37 = memref.load %arg1[%c38] : memref<144xf32, #tpu.memory_space<smem>>
    %38 = vector.broadcast %37 : f32 to vector<2x8x8xf32>
    %39 = arith.mulf %38, %32 : vector<2x8x8xf32>
    %40 = arith.addf %23, %39 : vector<2x8x8xf32>
    %c74 = arith.constant 74 : index
    %41 = memref.load %arg1[%c74] : memref<144xf32, #tpu.memory_space<smem>>
    %42 = vector.broadcast %41 : f32 to vector<2x8x8xf32>
    %43 = arith.mulf %42, %32 : vector<2x8x8xf32>
    %44 = arith.addf %27, %43 : vector<2x8x8xf32>
    %c110 = arith.constant 110 : index
    %45 = memref.load %arg1[%c110] : memref<144xf32, #tpu.memory_space<smem>>
    %46 = vector.broadcast %45 : f32 to vector<2x8x8xf32>
    %47 = arith.mulf %46, %32 : vector<2x8x8xf32>
    %48 = arith.addf %31, %47 : vector<2x8x8xf32>
    %49 = vector.extract_strided_slice %1 {offsets = [0, 1, 0], sizes = [2, 8, 8], strides = [1, 1, 1]} : vector<2x10x10xf32> to vector<2x8x8xf32>
    %c3 = arith.constant 3 : index
    %50 = memref.load %arg1[%c3] : memref<144xf32, #tpu.memory_space<smem>>
    %51 = vector.broadcast %50 : f32 to vector<2x8x8xf32>
    %52 = arith.mulf %51, %49 : vector<2x8x8xf32>
    %53 = arith.addf %36, %52 : vector<2x8x8xf32>
    %c39 = arith.constant 39 : index
    %54 = memref.load %arg1[%c39] : memref<144xf32, #tpu.memory_space<smem>>
    %55 = vector.broadcast %54 : f32 to vector<2x8x8xf32>
    %56 = arith.mulf %55, %49 : vector<2x8x8xf32>
    %57 = arith.addf %40, %56 : vector<2x8x8xf32>
    %c75 = arith.constant 75 : index
    %58 = memref.load %arg1[%c75] : memref<144xf32, #tpu.memory_space<smem>>
    %59 = vector.broadcast %58 : f32 to vector<2x8x8xf32>
    %60 = arith.mulf %59, %49 : vector<2x8x8xf32>
    %61 = arith.addf %44, %60 : vector<2x8x8xf32>
    %c111 = arith.constant 111 : index
    %62 = memref.load %arg1[%c111] : memref<144xf32, #tpu.memory_space<smem>>
    %63 = vector.broadcast %62 : f32 to vector<2x8x8xf32>
    %64 = arith.mulf %63, %49 : vector<2x8x8xf32>
    %65 = arith.addf %48, %64 : vector<2x8x8xf32>
    %66 = vector.extract_strided_slice %1 {offsets = [0, 1, 1], sizes = [2, 8, 8], strides = [1, 1, 1]} : vector<2x10x10xf32> to vector<2x8x8xf32>
    %c4 = arith.constant 4 : index
    %67 = memref.load %arg1[%c4] : memref<144xf32, #tpu.memory_space<smem>>
    %68 = vector.broadcast %67 : f32 to vector<2x8x8xf32>
    %69 = arith.mulf %68, %66 : vector<2x8x8xf32>
    %70 = arith.addf %53, %69 : vector<2x8x8xf32>
    %c40 = arith.constant 40 : index
    %71 = memref.load %arg1[%c40] : memref<144xf32, #tpu.memory_space<smem>>
    %72 = vector.broadcast %71 : f32 to vector<2x8x8xf32>
    %73 = arith.mulf %72, %66 : vector<2x8x8xf32>
    %74 = arith.addf %57, %73 : vector<2x8x8xf32>
    %c76 = arith.constant 76 : index
    %75 = memref.load %arg1[%c76] : memref<144xf32, #tpu.memory_space<smem>>
    %76 = vector.broadcast %75 : f32 to vector<2x8x8xf32>
    %77 = arith.mulf %76, %66 : vector<2x8x8xf32>
    %78 = arith.addf %61, %77 : vector<2x8x8xf32>
    %c112 = arith.constant 112 : index
    %79 = memref.load %arg1[%c112] : memref<144xf32, #tpu.memory_space<smem>>
    %80 = vector.broadcast %79 : f32 to vector<2x8x8xf32>
    %81 = arith.mulf %80, %66 : vector<2x8x8xf32>
    %82 = arith.addf %65, %81 : vector<2x8x8xf32>
    %83 = vector.extract_strided_slice %1 {offsets = [0, 1, 2], sizes = [2, 8, 8], strides = [1, 1, 1]} : vector<2x10x10xf32> to vector<2x8x8xf32>
    %c5 = arith.constant 5 : index
    %84 = memref.load %arg1[%c5] : memref<144xf32, #tpu.memory_space<smem>>
    %85 = vector.broadcast %84 : f32 to vector<2x8x8xf32>
    %86 = arith.mulf %85, %83 : vector<2x8x8xf32>
    %87 = arith.addf %70, %86 : vector<2x8x8xf32>
    %c41 = arith.constant 41 : index
    %88 = memref.load %arg1[%c41] : memref<144xf32, #tpu.memory_space<smem>>
    %89 = vector.broadcast %88 : f32 to vector<2x8x8xf32>
    %90 = arith.mulf %89, %83 : vector<2x8x8xf32>
    %91 = arith.addf %74, %90 : vector<2x8x8xf32>
    %c77 = arith.constant 77 : index
    %92 = memref.load %arg1[%c77] : memref<144xf32, #tpu.memory_space<smem>>
    %93 = vector.broadcast %92 : f32 to vector<2x8x8xf32>
    %94 = arith.mulf %93, %83 : vector<2x8x8xf32>
    %95 = arith.addf %78, %94 : vector<2x8x8xf32>
    %c113 = arith.constant 113 : index
    %96 = memref.load %arg1[%c113] : memref<144xf32, #tpu.memory_space<smem>>
    %97 = vector.broadcast %96 : f32 to vector<2x8x8xf32>
    %98 = arith.mulf %97, %83 : vector<2x8x8xf32>
    %99 = arith.addf %82, %98 : vector<2x8x8xf32>
    %100 = vector.extract_strided_slice %1 {offsets = [0, 2, 0], sizes = [2, 8, 8], strides = [1, 1, 1]} : vector<2x10x10xf32> to vector<2x8x8xf32>
    %c6 = arith.constant 6 : index
    %101 = memref.load %arg1[%c6] : memref<144xf32, #tpu.memory_space<smem>>
    %102 = vector.broadcast %101 : f32 to vector<2x8x8xf32>
    %103 = arith.mulf %102, %100 : vector<2x8x8xf32>
    %104 = arith.addf %87, %103 : vector<2x8x8xf32>
    %c42 = arith.constant 42 : index
    %105 = memref.load %arg1[%c42] : memref<144xf32, #tpu.memory_space<smem>>
    %106 = vector.broadcast %105 : f32 to vector<2x8x8xf32>
    %107 = arith.mulf %106, %100 : vector<2x8x8xf32>
    %108 = arith.addf %91, %107 : vector<2x8x8xf32>
    %c78 = arith.constant 78 : index
    %109 = memref.load %arg1[%c78] : memref<144xf32, #tpu.memory_space<smem>>
    %110 = vector.broadcast %109 : f32 to vector<2x8x8xf32>
    %111 = arith.mulf %110, %100 : vector<2x8x8xf32>
    %112 = arith.addf %95, %111 : vector<2x8x8xf32>
    %c114 = arith.constant 114 : index
    %113 = memref.load %arg1[%c114] : memref<144xf32, #tpu.memory_space<smem>>
    %114 = vector.broadcast %113 : f32 to vector<2x8x8xf32>
    %115 = arith.mulf %114, %100 : vector<2x8x8xf32>
    %116 = arith.addf %99, %115 : vector<2x8x8xf32>
    %117 = vector.extract_strided_slice %1 {offsets = [0, 2, 1], sizes = [2, 8, 8], strides = [1, 1, 1]} : vector<2x10x10xf32> to vector<2x8x8xf32>
    %c7 = arith.constant 7 : index
    %118 = memref.load %arg1[%c7] : memref<144xf32, #tpu.memory_space<smem>>
    %119 = vector.broadcast %118 : f32 to vector<2x8x8xf32>
    %120 = arith.mulf %119, %117 : vector<2x8x8xf32>
    %121 = arith.addf %104, %120 : vector<2x8x8xf32>
    %c43 = arith.constant 43 : index
    %122 = memref.load %arg1[%c43] : memref<144xf32, #tpu.memory_space<smem>>
    %123 = vector.broadcast %122 : f32 to vector<2x8x8xf32>
    %124 = arith.mulf %123, %117 : vector<2x8x8xf32>
    %125 = arith.addf %108, %124 : vector<2x8x8xf32>
    %c79 = arith.constant 79 : index
    %126 = memref.load %arg1[%c79] : memref<144xf32, #tpu.memory_space<smem>>
    %127 = vector.broadcast %126 : f32 to vector<2x8x8xf32>
    %128 = arith.mulf %127, %117 : vector<2x8x8xf32>
    %129 = arith.addf %112, %128 : vector<2x8x8xf32>
    %c115 = arith.constant 115 : index
    %130 = memref.load %arg1[%c115] : memref<144xf32, #tpu.memory_space<smem>>
    %131 = vector.broadcast %130 : f32 to vector<2x8x8xf32>
    %132 = arith.mulf %131, %117 : vector<2x8x8xf32>
    %133 = arith.addf %116, %132 : vector<2x8x8xf32>
    %134 = vector.extract_strided_slice %1 {offsets = [0, 2, 2], sizes = [2, 8, 8], strides = [1, 1, 1]} : vector<2x10x10xf32> to vector<2x8x8xf32>
    %c8 = arith.constant 8 : index
    %135 = memref.load %arg1[%c8] : memref<144xf32, #tpu.memory_space<smem>>
    %136 = vector.broadcast %135 : f32 to vector<2x8x8xf32>
    %137 = arith.mulf %136, %134 : vector<2x8x8xf32>
    %138 = arith.addf %121, %137 : vector<2x8x8xf32>
    %c44 = arith.constant 44 : index
    %139 = memref.load %arg1[%c44] : memref<144xf32, #tpu.memory_space<smem>>
    %140 = vector.broadcast %139 : f32 to vector<2x8x8xf32>
    %141 = arith.mulf %140, %134 : vector<2x8x8xf32>
    %142 = arith.addf %125, %141 : vector<2x8x8xf32>
    %c80 = arith.constant 80 : index
    %143 = memref.load %arg1[%c80] : memref<144xf32, #tpu.memory_space<smem>>
    %144 = vector.broadcast %143 : f32 to vector<2x8x8xf32>
    %145 = arith.mulf %144, %134 : vector<2x8x8xf32>
    %146 = arith.addf %129, %145 : vector<2x8x8xf32>
    %c116 = arith.constant 116 : index
    %147 = memref.load %arg1[%c116] : memref<144xf32, #tpu.memory_space<smem>>
    %148 = vector.broadcast %147 : f32 to vector<2x8x8xf32>
    %149 = arith.mulf %148, %134 : vector<2x8x8xf32>
    %150 = arith.addf %133, %149 : vector<2x8x8xf32>
    %c0_5 = arith.constant 0 : index
    %c0_6 = arith.constant 0 : index
    %c1_7 = arith.constant 1 : index
    %c0_8 = arith.constant 0 : index
    %c0_9 = arith.constant 0 : index
    %151 = vector.load %arg2[%c0_5, %c0_6, %c1_7, %c0_8, %c0_9] : memref<2x2x4x10x10xf32, #tpu.memory_space<vmem>>, vector<1x2x1x10x10xf32>
    %152 = vector.shape_cast %151 : vector<1x2x1x10x10xf32> to vector<2x10x10xf32>
    %153 = vector.extract_strided_slice %152 {offsets = [0, 0, 0], sizes = [2, 8, 8], strides = [1, 1, 1]} : vector<2x10x10xf32> to vector<2x8x8xf32>
    %c9 = arith.constant 9 : index
    %154 = memref.load %arg1[%c9] : memref<144xf32, #tpu.memory_space<smem>>
    %155 = vector.broadcast %154 : f32 to vector<2x8x8xf32>
    %156 = arith.mulf %155, %153 : vector<2x8x8xf32>
    %157 = arith.addf %138, %156 : vector<2x8x8xf32>
    %c45 = arith.constant 45 : index
    %158 = memref.load %arg1[%c45] : memref<144xf32, #tpu.memory_space<smem>>
    %159 = vector.broadcast %158 : f32 to vector<2x8x8xf32>
    %160 = arith.mulf %159, %153 : vector<2x8x8xf32>
    %161 = arith.addf %142, %160 : vector<2x8x8xf32>
    %c81 = arith.constant 81 : index
    %162 = memref.load %arg1[%c81] : memref<144xf32, #tpu.memory_space<smem>>
    %163 = vector.broadcast %162 : f32 to vector<2x8x8xf32>
    %164 = arith.mulf %163, %153 : vector<2x8x8xf32>
    %165 = arith.addf %146, %164 : vector<2x8x8xf32>
    %c117 = arith.constant 117 : index
    %166 = memref.load %arg1[%c117] : memref<144xf32, #tpu.memory_space<smem>>
    %167 = vector.broadcast %166 : f32 to vector<2x8x8xf32>
    %168 = arith.mulf %167, %153 : vector<2x8x8xf32>
    %169 = arith.addf %150, %168 : vector<2x8x8xf32>
    %170 = vector.extract_strided_slice %152 {offsets = [0, 0, 1], sizes = [2, 8, 8], strides = [1, 1, 1]} : vector<2x10x10xf32> to vector<2x8x8xf32>
    %c10 = arith.constant 10 : index
    %171 = memref.load %arg1[%c10] : memref<144xf32, #tpu.memory_space<smem>>
    %172 = vector.broadcast %171 : f32 to vector<2x8x8xf32>
    %173 = arith.mulf %172, %170 : vector<2x8x8xf32>
    %174 = arith.addf %157, %173 : vector<2x8x8xf32>
    %c46 = arith.constant 46 : index
    %175 = memref.load %arg1[%c46] : memref<144xf32, #tpu.memory_space<smem>>
    %176 = vector.broadcast %175 : f32 to vector<2x8x8xf32>
    %177 = arith.mulf %176, %170 : vector<2x8x8xf32>
    %178 = arith.addf %161, %177 : vector<2x8x8xf32>
    %c82 = arith.constant 82 : index
    %179 = memref.load %arg1[%c82] : memref<144xf32, #tpu.memory_space<smem>>
    %180 = vector.broadcast %179 : f32 to vector<2x8x8xf32>
    %181 = arith.mulf %180, %170 : vector<2x8x8xf32>
    %182 = arith.addf %165, %181 : vector<2x8x8xf32>
    %c118 = arith.constant 118 : index
    %183 = memref.load %arg1[%c118] : memref<144xf32, #tpu.memory_space<smem>>
    %184 = vector.broadcast %183 : f32 to vector<2x8x8xf32>
    %185 = arith.mulf %184, %170 : vector<2x8x8xf32>
    %186 = arith.addf %169, %185 : vector<2x8x8xf32>
    %187 = vector.extract_strided_slice %152 {offsets = [0, 0, 2], sizes = [2, 8, 8], strides = [1, 1, 1]} : vector<2x10x10xf32> to vector<2x8x8xf32>
    %c11 = arith.constant 11 : index
    %188 = memref.load %arg1[%c11] : memref<144xf32, #tpu.memory_space<smem>>
    %189 = vector.broadcast %188 : f32 to vector<2x8x8xf32>
    %190 = arith.mulf %189, %187 : vector<2x8x8xf32>
    %191 = arith.addf %174, %190 : vector<2x8x8xf32>
    %c47 = arith.constant 47 : index
    %192 = memref.load %arg1[%c47] : memref<144xf32, #tpu.memory_space<smem>>
    %193 = vector.broadcast %192 : f32 to vector<2x8x8xf32>
    %194 = arith.mulf %193, %187 : vector<2x8x8xf32>
    %195 = arith.addf %178, %194 : vector<2x8x8xf32>
    %c83 = arith.constant 83 : index
    %196 = memref.load %arg1[%c83] : memref<144xf32, #tpu.memory_space<smem>>
    %197 = vector.broadcast %196 : f32 to vector<2x8x8xf32>
    %198 = arith.mulf %197, %187 : vector<2x8x8xf32>
    %199 = arith.addf %182, %198 : vector<2x8x8xf32>
    %c119 = arith.constant 119 : index
    %200 = memref.load %arg1[%c119] : memref<144xf32, #tpu.memory_space<smem>>
    %201 = vector.broadcast %200 : f32 to vector<2x8x8xf32>
    %202 = arith.mulf %201, %187 : vector<2x8x8xf32>
    %203 = arith.addf %186, %202 : vector<2x8x8xf32>
    %204 = vector.extract_strided_slice %152 {offsets = [0, 1, 0], sizes = [2, 8, 8], strides = [1, 1, 1]} : vector<2x10x10xf32> to vector<2x8x8xf32>
    %c12 = arith.constant 12 : index
    %205 = memref.load %arg1[%c12] : memref<144xf32, #tpu.memory_space<smem>>
    %206 = vector.broadcast %205 : f32 to vector<2x8x8xf32>
    %207 = arith.mulf %206, %204 : vector<2x8x8xf32>
    %208 = arith.addf %191, %207 : vector<2x8x8xf32>
    %c48 = arith.constant 48 : index
    %209 = memref.load %arg1[%c48] : memref<144xf32, #tpu.memory_space<smem>>
    %210 = vector.broadcast %209 : f32 to vector<2x8x8xf32>
    %211 = arith.mulf %210, %204 : vector<2x8x8xf32>
    %212 = arith.addf %195, %211 : vector<2x8x8xf32>
    %c84 = arith.constant 84 : index
    %213 = memref.load %arg1[%c84] : memref<144xf32, #tpu.memory_space<smem>>
    %214 = vector.broadcast %213 : f32 to vector<2x8x8xf32>
    %215 = arith.mulf %214, %204 : vector<2x8x8xf32>
    %216 = arith.addf %199, %215 : vector<2x8x8xf32>
    %c120 = arith.constant 120 : index
    %217 = memref.load %arg1[%c120] : memref<144xf32, #tpu.memory_space<smem>>
    %218 = vector.broadcast %217 : f32 to vector<2x8x8xf32>
    %219 = arith.mulf %218, %204 : vector<2x8x8xf32>
    %220 = arith.addf %203, %219 : vector<2x8x8xf32>
    %221 = vector.extract_strided_slice %152 {offsets = [0, 1, 1], sizes = [2, 8, 8], strides = [1, 1, 1]} : vector<2x10x10xf32> to vector<2x8x8xf32>
    %c13 = arith.constant 13 : index
    %222 = memref.load %arg1[%c13] : memref<144xf32, #tpu.memory_space<smem>>
    %223 = vector.broadcast %222 : f32 to vector<2x8x8xf32>
    %224 = arith.mulf %223, %221 : vector<2x8x8xf32>
    %225 = arith.addf %208, %224 : vector<2x8x8xf32>
    %c49 = arith.constant 49 : index
    %226 = memref.load %arg1[%c49] : memref<144xf32, #tpu.memory_space<smem>>
    %227 = vector.broadcast %226 : f32 to vector<2x8x8xf32>
    %228 = arith.mulf %227, %221 : vector<2x8x8xf32>
    %229 = arith.addf %212, %228 : vector<2x8x8xf32>
    %c85 = arith.constant 85 : index
    %230 = memref.load %arg1[%c85] : memref<144xf32, #tpu.memory_space<smem>>
    %231 = vector.broadcast %230 : f32 to vector<2x8x8xf32>
    %232 = arith.mulf %231, %221 : vector<2x8x8xf32>
    %233 = arith.addf %216, %232 : vector<2x8x8xf32>
    %c121 = arith.constant 121 : index
    %234 = memref.load %arg1[%c121] : memref<144xf32, #tpu.memory_space<smem>>
    %235 = vector.broadcast %234 : f32 to vector<2x8x8xf32>
    %236 = arith.mulf %235, %221 : vector<2x8x8xf32>
    %237 = arith.addf %220, %236 : vector<2x8x8xf32>
    %238 = vector.extract_strided_slice %152 {offsets = [0, 1, 2], sizes = [2, 8, 8], strides = [1, 1, 1]} : vector<2x10x10xf32> to vector<2x8x8xf32>
    %c14 = arith.constant 14 : index
    %239 = memref.load %arg1[%c14] : memref<144xf32, #tpu.memory_space<smem>>
    %240 = vector.broadcast %239 : f32 to vector<2x8x8xf32>
    %241 = arith.mulf %240, %238 : vector<2x8x8xf32>
    %242 = arith.addf %225, %241 : vector<2x8x8xf32>
    %c50 = arith.constant 50 : index
    %243 = memref.load %arg1[%c50] : memref<144xf32, #tpu.memory_space<smem>>
    %244 = vector.broadcast %243 : f32 to vector<2x8x8xf32>
    %245 = arith.mulf %244, %238 : vector<2x8x8xf32>
    %246 = arith.addf %229, %245 : vector<2x8x8xf32>
    %c86 = arith.constant 86 : index
    %247 = memref.load %arg1[%c86] : memref<144xf32, #tpu.memory_space<smem>>
    %248 = vector.broadcast %247 : f32 to vector<2x8x8xf32>
    %249 = arith.mulf %248, %238 : vector<2x8x8xf32>
    %250 = arith.addf %233, %249 : vector<2x8x8xf32>
    %c122 = arith.constant 122 : index
    %251 = memref.load %arg1[%c122] : memref<144xf32, #tpu.memory_space<smem>>
    %252 = vector.broadcast %251 : f32 to vector<2x8x8xf32>
    %253 = arith.mulf %252, %238 : vector<2x8x8xf32>
    %254 = arith.addf %237, %253 : vector<2x8x8xf32>
    %255 = vector.extract_strided_slice %152 {offsets = [0, 2, 0], sizes = [2, 8, 8], strides = [1, 1, 1]} : vector<2x10x10xf32> to vector<2x8x8xf32>
    %c15 = arith.constant 15 : index
    %256 = memref.load %arg1[%c15] : memref<144xf32, #tpu.memory_space<smem>>
    %257 = vector.broadcast %256 : f32 to vector<2x8x8xf32>
    %258 = arith.mulf %257, %255 : vector<2x8x8xf32>
    %259 = arith.addf %242, %258 : vector<2x8x8xf32>
    %c51 = arith.constant 51 : index
    %260 = memref.load %arg1[%c51] : memref<144xf32, #tpu.memory_space<smem>>
    %261 = vector.broadcast %260 : f32 to vector<2x8x8xf32>
    %262 = arith.mulf %261, %255 : vector<2x8x8xf32>
    %263 = arith.addf %246, %262 : vector<2x8x8xf32>
    %c87 = arith.constant 87 : index
    %264 = memref.load %arg1[%c87] : memref<144xf32, #tpu.memory_space<smem>>
    %265 = vector.broadcast %264 : f32 to vector<2x8x8xf32>
    %266 = arith.mulf %265, %255 : vector<2x8x8xf32>
    %267 = arith.addf %250, %266 : vector<2x8x8xf32>
    %c123 = arith.constant 123 : index
    %268 = memref.load %arg1[%c123] : memref<144xf32, #tpu.memory_space<smem>>
    %269 = vector.broadcast %268 : f32 to vector<2x8x8xf32>
    %270 = arith.mulf %269, %255 : vector<2x8x8xf32>
    %271 = arith.addf %254, %270 : vector<2x8x8xf32>
    %272 = vector.extract_strided_slice %152 {offsets = [0, 2, 1], sizes = [2, 8, 8], strides = [1, 1, 1]} : vector<2x10x10xf32> to vector<2x8x8xf32>
    %c16 = arith.constant 16 : index
    %273 = memref.load %arg1[%c16] : memref<144xf32, #tpu.memory_space<smem>>
    %274 = vector.broadcast %273 : f32 to vector<2x8x8xf32>
    %275 = arith.mulf %274, %272 : vector<2x8x8xf32>
    %276 = arith.addf %259, %275 : vector<2x8x8xf32>
    %c52 = arith.constant 52 : index
    %277 = memref.load %arg1[%c52] : memref<144xf32, #tpu.memory_space<smem>>
    %278 = vector.broadcast %277 : f32 to vector<2x8x8xf32>
    %279 = arith.mulf %278, %272 : vector<2x8x8xf32>
    %280 = arith.addf %263, %279 : vector<2x8x8xf32>
    %c88 = arith.constant 88 : index
    %281 = memref.load %arg1[%c88] : memref<144xf32, #tpu.memory_space<smem>>
    %282 = vector.broadcast %281 : f32 to vector<2x8x8xf32>
    %283 = arith.mulf %282, %272 : vector<2x8x8xf32>
    %284 = arith.addf %267, %283 : vector<2x8x8xf32>
    %c124 = arith.constant 124 : index
    %285 = memref.load %arg1[%c124] : memref<144xf32, #tpu.memory_space<smem>>
    %286 = vector.broadcast %285 : f32 to vector<2x8x8xf32>
    %287 = arith.mulf %286, %272 : vector<2x8x8xf32>
    %288 = arith.addf %271, %287 : vector<2x8x8xf32>
    %289 = vector.extract_strided_slice %152 {offsets = [0, 2, 2], sizes = [2, 8, 8], strides = [1, 1, 1]} : vector<2x10x10xf32> to vector<2x8x8xf32>
    %c17 = arith.constant 17 : index
    %290 = memref.load %arg1[%c17] : memref<144xf32, #tpu.memory_space<smem>>
    %291 = vector.broadcast %290 : f32 to vector<2x8x8xf32>
    %292 = arith.mulf %291, %289 : vector<2x8x8xf32>
    %293 = arith.addf %276, %292 : vector<2x8x8xf32>
    %c53 = arith.constant 53 : index
    %294 = memref.load %arg1[%c53] : memref<144xf32, #tpu.memory_space<smem>>
    %295 = vector.broadcast %294 : f32 to vector<2x8x8xf32>
    %296 = arith.mulf %295, %289 : vector<2x8x8xf32>
    %297 = arith.addf %280, %296 : vector<2x8x8xf32>
    %c89 = arith.constant 89 : index
    %298 = memref.load %arg1[%c89] : memref<144xf32, #tpu.memory_space<smem>>
    %299 = vector.broadcast %298 : f32 to vector<2x8x8xf32>
    %300 = arith.mulf %299, %289 : vector<2x8x8xf32>
    %301 = arith.addf %284, %300 : vector<2x8x8xf32>
    %c125 = arith.constant 125 : index
    %302 = memref.load %arg1[%c125] : memref<144xf32, #tpu.memory_space<smem>>
    %303 = vector.broadcast %302 : f32 to vector<2x8x8xf32>
    %304 = arith.mulf %303, %289 : vector<2x8x8xf32>
    %305 = arith.addf %288, %304 : vector<2x8x8xf32>
    %c0_10 = arith.constant 0 : index
    %c0_11 = arith.constant 0 : index
    %c2_12 = arith.constant 2 : index
    %c0_13 = arith.constant 0 : index
    %c0_14 = arith.constant 0 : index
    %306 = vector.load %arg2[%c0_10, %c0_11, %c2_12, %c0_13, %c0_14] : memref<2x2x4x10x10xf32, #tpu.memory_space<vmem>>, vector<1x2x1x10x10xf32>
    %307 = vector.shape_cast %306 : vector<1x2x1x10x10xf32> to vector<2x10x10xf32>
    %308 = vector.extract_strided_slice %307 {offsets = [0, 0, 0], sizes = [2, 8, 8], strides = [1, 1, 1]} : vector<2x10x10xf32> to vector<2x8x8xf32>
    %c18 = arith.constant 18 : index
    %309 = memref.load %arg1[%c18] : memref<144xf32, #tpu.memory_space<smem>>
    %310 = vector.broadcast %309 : f32 to vector<2x8x8xf32>
    %311 = arith.mulf %310, %308 : vector<2x8x8xf32>
    %312 = arith.addf %293, %311 : vector<2x8x8xf32>
    %c54 = arith.constant 54 : index
    %313 = memref.load %arg1[%c54] : memref<144xf32, #tpu.memory_space<smem>>
    %314 = vector.broadcast %313 : f32 to vector<2x8x8xf32>
    %315 = arith.mulf %314, %308 : vector<2x8x8xf32>
    %316 = arith.addf %297, %315 : vector<2x8x8xf32>
    %c90 = arith.constant 90 : index
    %317 = memref.load %arg1[%c90] : memref<144xf32, #tpu.memory_space<smem>>
    %318 = vector.broadcast %317 : f32 to vector<2x8x8xf32>
    %319 = arith.mulf %318, %308 : vector<2x8x8xf32>
    %320 = arith.addf %301, %319 : vector<2x8x8xf32>
    %c126 = arith.constant 126 : index
    %321 = memref.load %arg1[%c126] : memref<144xf32, #tpu.memory_space<smem>>
    %322 = vector.broadcast %321 : f32 to vector<2x8x8xf32>
    %323 = arith.mulf %322, %308 : vector<2x8x8xf32>
    %324 = arith.addf %305, %323 : vector<2x8x8xf32>
    %325 = vector.extract_strided_slice %307 {offsets = [0, 0, 1], sizes = [2, 8, 8], strides = [1, 1, 1]} : vector<2x10x10xf32> to vector<2x8x8xf32>
    %c19 = arith.constant 19 : index
    %326 = memref.load %arg1[%c19] : memref<144xf32, #tpu.memory_space<smem>>
    %327 = vector.broadcast %326 : f32 to vector<2x8x8xf32>
    %328 = arith.mulf %327, %325 : vector<2x8x8xf32>
    %329 = arith.addf %312, %328 : vector<2x8x8xf32>
    %c55 = arith.constant 55 : index
    %330 = memref.load %arg1[%c55] : memref<144xf32, #tpu.memory_space<smem>>
    %331 = vector.broadcast %330 : f32 to vector<2x8x8xf32>
    %332 = arith.mulf %331, %325 : vector<2x8x8xf32>
    %333 = arith.addf %316, %332 : vector<2x8x8xf32>
    %c91 = arith.constant 91 : index
    %334 = memref.load %arg1[%c91] : memref<144xf32, #tpu.memory_space<smem>>
    %335 = vector.broadcast %334 : f32 to vector<2x8x8xf32>
    %336 = arith.mulf %335, %325 : vector<2x8x8xf32>
    %337 = arith.addf %320, %336 : vector<2x8x8xf32>
    %c127 = arith.constant 127 : index
    %338 = memref.load %arg1[%c127] : memref<144xf32, #tpu.memory_space<smem>>
    %339 = vector.broadcast %338 : f32 to vector<2x8x8xf32>
    %340 = arith.mulf %339, %325 : vector<2x8x8xf32>
    %341 = arith.addf %324, %340 : vector<2x8x8xf32>
    %342 = vector.extract_strided_slice %307 {offsets = [0, 0, 2], sizes = [2, 8, 8], strides = [1, 1, 1]} : vector<2x10x10xf32> to vector<2x8x8xf32>
    %c20 = arith.constant 20 : index
    %343 = memref.load %arg1[%c20] : memref<144xf32, #tpu.memory_space<smem>>
    %344 = vector.broadcast %343 : f32 to vector<2x8x8xf32>
    %345 = arith.mulf %344, %342 : vector<2x8x8xf32>
    %346 = arith.addf %329, %345 : vector<2x8x8xf32>
    %c56 = arith.constant 56 : index
    %347 = memref.load %arg1[%c56] : memref<144xf32, #tpu.memory_space<smem>>
    %348 = vector.broadcast %347 : f32 to vector<2x8x8xf32>
    %349 = arith.mulf %348, %342 : vector<2x8x8xf32>
    %350 = arith.addf %333, %349 : vector<2x8x8xf32>
    %c92 = arith.constant 92 : index
    %351 = memref.load %arg1[%c92] : memref<144xf32, #tpu.memory_space<smem>>
    %352 = vector.broadcast %351 : f32 to vector<2x8x8xf32>
    %353 = arith.mulf %352, %342 : vector<2x8x8xf32>
    %354 = arith.addf %337, %353 : vector<2x8x8xf32>
    %c128 = arith.constant 128 : index
    %355 = memref.load %arg1[%c128] : memref<144xf32, #tpu.memory_space<smem>>
    %356 = vector.broadcast %355 : f32 to vector<2x8x8xf32>
    %357 = arith.mulf %356, %342 : vector<2x8x8xf32>
    %358 = arith.addf %341, %357 : vector<2x8x8xf32>
    %359 = vector.extract_strided_slice %307 {offsets = [0, 1, 0], sizes = [2, 8, 8], strides = [1, 1, 1]} : vector<2x10x10xf32> to vector<2x8x8xf32>
    %c21 = arith.constant 21 : index
    %360 = memref.load %arg1[%c21] : memref<144xf32, #tpu.memory_space<smem>>
    %361 = vector.broadcast %360 : f32 to vector<2x8x8xf32>
    %362 = arith.mulf %361, %359 : vector<2x8x8xf32>
    %363 = arith.addf %346, %362 : vector<2x8x8xf32>
    %c57 = arith.constant 57 : index
    %364 = memref.load %arg1[%c57] : memref<144xf32, #tpu.memory_space<smem>>
    %365 = vector.broadcast %364 : f32 to vector<2x8x8xf32>
    %366 = arith.mulf %365, %359 : vector<2x8x8xf32>
    %367 = arith.addf %350, %366 : vector<2x8x8xf32>
    %c93 = arith.constant 93 : index
    %368 = memref.load %arg1[%c93] : memref<144xf32, #tpu.memory_space<smem>>
    %369 = vector.broadcast %368 : f32 to vector<2x8x8xf32>
    %370 = arith.mulf %369, %359 : vector<2x8x8xf32>
    %371 = arith.addf %354, %370 : vector<2x8x8xf32>
    %c129 = arith.constant 129 : index
    %372 = memref.load %arg1[%c129] : memref<144xf32, #tpu.memory_space<smem>>
    %373 = vector.broadcast %372 : f32 to vector<2x8x8xf32>
    %374 = arith.mulf %373, %359 : vector<2x8x8xf32>
    %375 = arith.addf %358, %374 : vector<2x8x8xf32>
    %376 = vector.extract_strided_slice %307 {offsets = [0, 1, 1], sizes = [2, 8, 8], strides = [1, 1, 1]} : vector<2x10x10xf32> to vector<2x8x8xf32>
    %c22 = arith.constant 22 : index
    %377 = memref.load %arg1[%c22] : memref<144xf32, #tpu.memory_space<smem>>
    %378 = vector.broadcast %377 : f32 to vector<2x8x8xf32>
    %379 = arith.mulf %378, %376 : vector<2x8x8xf32>
    %380 = arith.addf %363, %379 : vector<2x8x8xf32>
    %c58 = arith.constant 58 : index
    %381 = memref.load %arg1[%c58] : memref<144xf32, #tpu.memory_space<smem>>
    %382 = vector.broadcast %381 : f32 to vector<2x8x8xf32>
    %383 = arith.mulf %382, %376 : vector<2x8x8xf32>
    %384 = arith.addf %367, %383 : vector<2x8x8xf32>
    %c94 = arith.constant 94 : index
    %385 = memref.load %arg1[%c94] : memref<144xf32, #tpu.memory_space<smem>>
    %386 = vector.broadcast %385 : f32 to vector<2x8x8xf32>
    %387 = arith.mulf %386, %376 : vector<2x8x8xf32>
    %388 = arith.addf %371, %387 : vector<2x8x8xf32>
    %c130 = arith.constant 130 : index
    %389 = memref.load %arg1[%c130] : memref<144xf32, #tpu.memory_space<smem>>
    %390 = vector.broadcast %389 : f32 to vector<2x8x8xf32>
    %391 = arith.mulf %390, %376 : vector<2x8x8xf32>
    %392 = arith.addf %375, %391 : vector<2x8x8xf32>
    %393 = vector.extract_strided_slice %307 {offsets = [0, 1, 2], sizes = [2, 8, 8], strides = [1, 1, 1]} : vector<2x10x10xf32> to vector<2x8x8xf32>
    %c23 = arith.constant 23 : index
    %394 = memref.load %arg1[%c23] : memref<144xf32, #tpu.memory_space<smem>>
    %395 = vector.broadcast %394 : f32 to vector<2x8x8xf32>
    %396 = arith.mulf %395, %393 : vector<2x8x8xf32>
    %397 = arith.addf %380, %396 : vector<2x8x8xf32>
    %c59 = arith.constant 59 : index
    %398 = memref.load %arg1[%c59] : memref<144xf32, #tpu.memory_space<smem>>
    %399 = vector.broadcast %398 : f32 to vector<2x8x8xf32>
    %400 = arith.mulf %399, %393 : vector<2x8x8xf32>
    %401 = arith.addf %384, %400 : vector<2x8x8xf32>
    %c95 = arith.constant 95 : index
    %402 = memref.load %arg1[%c95] : memref<144xf32, #tpu.memory_space<smem>>
    %403 = vector.broadcast %402 : f32 to vector<2x8x8xf32>
    %404 = arith.mulf %403, %393 : vector<2x8x8xf32>
    %405 = arith.addf %388, %404 : vector<2x8x8xf32>
    %c131 = arith.constant 131 : index
    %406 = memref.load %arg1[%c131] : memref<144xf32, #tpu.memory_space<smem>>
    %407 = vector.broadcast %406 : f32 to vector<2x8x8xf32>
    %408 = arith.mulf %407, %393 : vector<2x8x8xf32>
    %409 = arith.addf %392, %408 : vector<2x8x8xf32>
    %410 = vector.extract_strided_slice %307 {offsets = [0, 2, 0], sizes = [2, 8, 8], strides = [1, 1, 1]} : vector<2x10x10xf32> to vector<2x8x8xf32>
    %c24 = arith.constant 24 : index
    %411 = memref.load %arg1[%c24] : memref<144xf32, #tpu.memory_space<smem>>
    %412 = vector.broadcast %411 : f32 to vector<2x8x8xf32>
    %413 = arith.mulf %412, %410 : vector<2x8x8xf32>
    %414 = arith.addf %397, %413 : vector<2x8x8xf32>
    %c60 = arith.constant 60 : index
    %415 = memref.load %arg1[%c60] : memref<144xf32, #tpu.memory_space<smem>>
    %416 = vector.broadcast %415 : f32 to vector<2x8x8xf32>
    %417 = arith.mulf %416, %410 : vector<2x8x8xf32>
    %418 = arith.addf %401, %417 : vector<2x8x8xf32>
    %c96 = arith.constant 96 : index
    %419 = memref.load %arg1[%c96] : memref<144xf32, #tpu.memory_space<smem>>
    %420 = vector.broadcast %419 : f32 to vector<2x8x8xf32>
    %421 = arith.mulf %420, %410 : vector<2x8x8xf32>
    %422 = arith.addf %405, %421 : vector<2x8x8xf32>
    %c132 = arith.constant 132 : index
    %423 = memref.load %arg1[%c132] : memref<144xf32, #tpu.memory_space<smem>>
    %424 = vector.broadcast %423 : f32 to vector<2x8x8xf32>
    %425 = arith.mulf %424, %410 : vector<2x8x8xf32>
    %426 = arith.addf %409, %425 : vector<2x8x8xf32>
    %427 = vector.extract_strided_slice %307 {offsets = [0, 2, 1], sizes = [2, 8, 8], strides = [1, 1, 1]} : vector<2x10x10xf32> to vector<2x8x8xf32>
    %c25 = arith.constant 25 : index
    %428 = memref.load %arg1[%c25] : memref<144xf32, #tpu.memory_space<smem>>
    %429 = vector.broadcast %428 : f32 to vector<2x8x8xf32>
    %430 = arith.mulf %429, %427 : vector<2x8x8xf32>
    %431 = arith.addf %414, %430 : vector<2x8x8xf32>
    %c61 = arith.constant 61 : index
    %432 = memref.load %arg1[%c61] : memref<144xf32, #tpu.memory_space<smem>>
    %433 = vector.broadcast %432 : f32 to vector<2x8x8xf32>
    %434 = arith.mulf %433, %427 : vector<2x8x8xf32>
    %435 = arith.addf %418, %434 : vector<2x8x8xf32>
    %c97 = arith.constant 97 : index
    %436 = memref.load %arg1[%c97] : memref<144xf32, #tpu.memory_space<smem>>
    %437 = vector.broadcast %436 : f32 to vector<2x8x8xf32>
    %438 = arith.mulf %437, %427 : vector<2x8x8xf32>
    %439 = arith.addf %422, %438 : vector<2x8x8xf32>
    %c133 = arith.constant 133 : index
    %440 = memref.load %arg1[%c133] : memref<144xf32, #tpu.memory_space<smem>>
    %441 = vector.broadcast %440 : f32 to vector<2x8x8xf32>
    %442 = arith.mulf %441, %427 : vector<2x8x8xf32>
    %443 = arith.addf %426, %442 : vector<2x8x8xf32>
    %444 = vector.extract_strided_slice %307 {offsets = [0, 2, 2], sizes = [2, 8, 8], strides = [1, 1, 1]} : vector<2x10x10xf32> to vector<2x8x8xf32>
    %c26 = arith.constant 26 : index
    %445 = memref.load %arg1[%c26] : memref<144xf32, #tpu.memory_space<smem>>
    %446 = vector.broadcast %445 : f32 to vector<2x8x8xf32>
    %447 = arith.mulf %446, %444 : vector<2x8x8xf32>
    %448 = arith.addf %431, %447 : vector<2x8x8xf32>
    %c62 = arith.constant 62 : index
    %449 = memref.load %arg1[%c62] : memref<144xf32, #tpu.memory_space<smem>>
    %450 = vector.broadcast %449 : f32 to vector<2x8x8xf32>
    %451 = arith.mulf %450, %444 : vector<2x8x8xf32>
    %452 = arith.addf %435, %451 : vector<2x8x8xf32>
    %c98 = arith.constant 98 : index
    %453 = memref.load %arg1[%c98] : memref<144xf32, #tpu.memory_space<smem>>
    %454 = vector.broadcast %453 : f32 to vector<2x8x8xf32>
    %455 = arith.mulf %454, %444 : vector<2x8x8xf32>
    %456 = arith.addf %439, %455 : vector<2x8x8xf32>
    %c134 = arith.constant 134 : index
    %457 = memref.load %arg1[%c134] : memref<144xf32, #tpu.memory_space<smem>>
    %458 = vector.broadcast %457 : f32 to vector<2x8x8xf32>
    %459 = arith.mulf %458, %444 : vector<2x8x8xf32>
    %460 = arith.addf %443, %459 : vector<2x8x8xf32>
    %c0_15 = arith.constant 0 : index
    %c0_16 = arith.constant 0 : index
    %c3_17 = arith.constant 3 : index
    %c0_18 = arith.constant 0 : index
    %c0_19 = arith.constant 0 : index
    %461 = vector.load %arg2[%c0_15, %c0_16, %c3_17, %c0_18, %c0_19] : memref<2x2x4x10x10xf32, #tpu.memory_space<vmem>>, vector<1x2x1x10x10xf32>
    %462 = vector.shape_cast %461 : vector<1x2x1x10x10xf32> to vector<2x10x10xf32>
    %463 = vector.extract_strided_slice %462 {offsets = [0, 0, 0], sizes = [2, 8, 8], strides = [1, 1, 1]} : vector<2x10x10xf32> to vector<2x8x8xf32>
    %c27 = arith.constant 27 : index
    %464 = memref.load %arg1[%c27] : memref<144xf32, #tpu.memory_space<smem>>
    %465 = vector.broadcast %464 : f32 to vector<2x8x8xf32>
    %466 = arith.mulf %465, %463 : vector<2x8x8xf32>
    %467 = arith.addf %448, %466 : vector<2x8x8xf32>
    %c63 = arith.constant 63 : index
    %468 = memref.load %arg1[%c63] : memref<144xf32, #tpu.memory_space<smem>>
    %469 = vector.broadcast %468 : f32 to vector<2x8x8xf32>
    %470 = arith.mulf %469, %463 : vector<2x8x8xf32>
    %471 = arith.addf %452, %470 : vector<2x8x8xf32>
    %c99 = arith.constant 99 : index
    %472 = memref.load %arg1[%c99] : memref<144xf32, #tpu.memory_space<smem>>
    %473 = vector.broadcast %472 : f32 to vector<2x8x8xf32>
    %474 = arith.mulf %473, %463 : vector<2x8x8xf32>
    %475 = arith.addf %456, %474 : vector<2x8x8xf32>
    %c135 = arith.constant 135 : index
    %476 = memref.load %arg1[%c135] : memref<144xf32, #tpu.memory_space<smem>>
    %477 = vector.broadcast %476 : f32 to vector<2x8x8xf32>
    %478 = arith.mulf %477, %463 : vector<2x8x8xf32>
    %479 = arith.addf %460, %478 : vector<2x8x8xf32>
    %480 = vector.extract_strided_slice %462 {offsets = [0, 0, 1], sizes = [2, 8, 8], strides = [1, 1, 1]} : vector<2x10x10xf32> to vector<2x8x8xf32>
    %c28 = arith.constant 28 : index
    %481 = memref.load %arg1[%c28] : memref<144xf32, #tpu.memory_space<smem>>
    %482 = vector.broadcast %481 : f32 to vector<2x8x8xf32>
    %483 = arith.mulf %482, %480 : vector<2x8x8xf32>
    %484 = arith.addf %467, %483 : vector<2x8x8xf32>
    %c64 = arith.constant 64 : index
    %485 = memref.load %arg1[%c64] : memref<144xf32, #tpu.memory_space<smem>>
    %486 = vector.broadcast %485 : f32 to vector<2x8x8xf32>
    %487 = arith.mulf %486, %480 : vector<2x8x8xf32>
    %488 = arith.addf %471, %487 : vector<2x8x8xf32>
    %c100 = arith.constant 100 : index
    %489 = memref.load %arg1[%c100] : memref<144xf32, #tpu.memory_space<smem>>
    %490 = vector.broadcast %489 : f32 to vector<2x8x8xf32>
    %491 = arith.mulf %490, %480 : vector<2x8x8xf32>
    %492 = arith.addf %475, %491 : vector<2x8x8xf32>
    %c136 = arith.constant 136 : index
    %493 = memref.load %arg1[%c136] : memref<144xf32, #tpu.memory_space<smem>>
    %494 = vector.broadcast %493 : f32 to vector<2x8x8xf32>
    %495 = arith.mulf %494, %480 : vector<2x8x8xf32>
    %496 = arith.addf %479, %495 : vector<2x8x8xf32>
    %497 = vector.extract_strided_slice %462 {offsets = [0, 0, 2], sizes = [2, 8, 8], strides = [1, 1, 1]} : vector<2x10x10xf32> to vector<2x8x8xf32>
    %c29 = arith.constant 29 : index
    %498 = memref.load %arg1[%c29] : memref<144xf32, #tpu.memory_space<smem>>
    %499 = vector.broadcast %498 : f32 to vector<2x8x8xf32>
    %500 = arith.mulf %499, %497 : vector<2x8x8xf32>
    %501 = arith.addf %484, %500 : vector<2x8x8xf32>
    %c65 = arith.constant 65 : index
    %502 = memref.load %arg1[%c65] : memref<144xf32, #tpu.memory_space<smem>>
    %503 = vector.broadcast %502 : f32 to vector<2x8x8xf32>
    %504 = arith.mulf %503, %497 : vector<2x8x8xf32>
    %505 = arith.addf %488, %504 : vector<2x8x8xf32>
    %c101 = arith.constant 101 : index
    %506 = memref.load %arg1[%c101] : memref<144xf32, #tpu.memory_space<smem>>
    %507 = vector.broadcast %506 : f32 to vector<2x8x8xf32>
    %508 = arith.mulf %507, %497 : vector<2x8x8xf32>
    %509 = arith.addf %492, %508 : vector<2x8x8xf32>
    %c137 = arith.constant 137 : index
    %510 = memref.load %arg1[%c137] : memref<144xf32, #tpu.memory_space<smem>>
    %511 = vector.broadcast %510 : f32 to vector<2x8x8xf32>
    %512 = arith.mulf %511, %497 : vector<2x8x8xf32>
    %513 = arith.addf %496, %512 : vector<2x8x8xf32>
    %514 = vector.extract_strided_slice %462 {offsets = [0, 1, 0], sizes = [2, 8, 8], strides = [1, 1, 1]} : vector<2x10x10xf32> to vector<2x8x8xf32>
    %c30 = arith.constant 30 : index
    %515 = memref.load %arg1[%c30] : memref<144xf32, #tpu.memory_space<smem>>
    %516 = vector.broadcast %515 : f32 to vector<2x8x8xf32>
    %517 = arith.mulf %516, %514 : vector<2x8x8xf32>
    %518 = arith.addf %501, %517 : vector<2x8x8xf32>
    %c66 = arith.constant 66 : index
    %519 = memref.load %arg1[%c66] : memref<144xf32, #tpu.memory_space<smem>>
    %520 = vector.broadcast %519 : f32 to vector<2x8x8xf32>
    %521 = arith.mulf %520, %514 : vector<2x8x8xf32>
    %522 = arith.addf %505, %521 : vector<2x8x8xf32>
    %c102 = arith.constant 102 : index
    %523 = memref.load %arg1[%c102] : memref<144xf32, #tpu.memory_space<smem>>
    %524 = vector.broadcast %523 : f32 to vector<2x8x8xf32>
    %525 = arith.mulf %524, %514 : vector<2x8x8xf32>
    %526 = arith.addf %509, %525 : vector<2x8x8xf32>
    %c138 = arith.constant 138 : index
    %527 = memref.load %arg1[%c138] : memref<144xf32, #tpu.memory_space<smem>>
    %528 = vector.broadcast %527 : f32 to vector<2x8x8xf32>
    %529 = arith.mulf %528, %514 : vector<2x8x8xf32>
    %530 = arith.addf %513, %529 : vector<2x8x8xf32>
    %531 = vector.extract_strided_slice %462 {offsets = [0, 1, 1], sizes = [2, 8, 8], strides = [1, 1, 1]} : vector<2x10x10xf32> to vector<2x8x8xf32>
    %c31 = arith.constant 31 : index
    %532 = memref.load %arg1[%c31] : memref<144xf32, #tpu.memory_space<smem>>
    %533 = vector.broadcast %532 : f32 to vector<2x8x8xf32>
    %534 = arith.mulf %533, %531 : vector<2x8x8xf32>
    %535 = arith.addf %518, %534 : vector<2x8x8xf32>
    %c67 = arith.constant 67 : index
    %536 = memref.load %arg1[%c67] : memref<144xf32, #tpu.memory_space<smem>>
    %537 = vector.broadcast %536 : f32 to vector<2x8x8xf32>
    %538 = arith.mulf %537, %531 : vector<2x8x8xf32>
    %539 = arith.addf %522, %538 : vector<2x8x8xf32>
    %c103 = arith.constant 103 : index
    %540 = memref.load %arg1[%c103] : memref<144xf32, #tpu.memory_space<smem>>
    %541 = vector.broadcast %540 : f32 to vector<2x8x8xf32>
    %542 = arith.mulf %541, %531 : vector<2x8x8xf32>
    %543 = arith.addf %526, %542 : vector<2x8x8xf32>
    %c139 = arith.constant 139 : index
    %544 = memref.load %arg1[%c139] : memref<144xf32, #tpu.memory_space<smem>>
    %545 = vector.broadcast %544 : f32 to vector<2x8x8xf32>
    %546 = arith.mulf %545, %531 : vector<2x8x8xf32>
    %547 = arith.addf %530, %546 : vector<2x8x8xf32>
    %548 = vector.extract_strided_slice %462 {offsets = [0, 1, 2], sizes = [2, 8, 8], strides = [1, 1, 1]} : vector<2x10x10xf32> to vector<2x8x8xf32>
    %c32 = arith.constant 32 : index
    %549 = memref.load %arg1[%c32] : memref<144xf32, #tpu.memory_space<smem>>
    %550 = vector.broadcast %549 : f32 to vector<2x8x8xf32>
    %551 = arith.mulf %550, %548 : vector<2x8x8xf32>
    %552 = arith.addf %535, %551 : vector<2x8x8xf32>
    %c68 = arith.constant 68 : index
    %553 = memref.load %arg1[%c68] : memref<144xf32, #tpu.memory_space<smem>>
    %554 = vector.broadcast %553 : f32 to vector<2x8x8xf32>
    %555 = arith.mulf %554, %548 : vector<2x8x8xf32>
    %556 = arith.addf %539, %555 : vector<2x8x8xf32>
    %c104 = arith.constant 104 : index
    %557 = memref.load %arg1[%c104] : memref<144xf32, #tpu.memory_space<smem>>
    %558 = vector.broadcast %557 : f32 to vector<2x8x8xf32>
    %559 = arith.mulf %558, %548 : vector<2x8x8xf32>
    %560 = arith.addf %543, %559 : vector<2x8x8xf32>
    %c140 = arith.constant 140 : index
    %561 = memref.load %arg1[%c140] : memref<144xf32, #tpu.memory_space<smem>>
    %562 = vector.broadcast %561 : f32 to vector<2x8x8xf32>
    %563 = arith.mulf %562, %548 : vector<2x8x8xf32>
    %564 = arith.addf %547, %563 : vector<2x8x8xf32>
    %565 = vector.extract_strided_slice %462 {offsets = [0, 2, 0], sizes = [2, 8, 8], strides = [1, 1, 1]} : vector<2x10x10xf32> to vector<2x8x8xf32>
    %c33 = arith.constant 33 : index
    %566 = memref.load %arg1[%c33] : memref<144xf32, #tpu.memory_space<smem>>
    %567 = vector.broadcast %566 : f32 to vector<2x8x8xf32>
    %568 = arith.mulf %567, %565 : vector<2x8x8xf32>
    %569 = arith.addf %552, %568 : vector<2x8x8xf32>
    %c69 = arith.constant 69 : index
    %570 = memref.load %arg1[%c69] : memref<144xf32, #tpu.memory_space<smem>>
    %571 = vector.broadcast %570 : f32 to vector<2x8x8xf32>
    %572 = arith.mulf %571, %565 : vector<2x8x8xf32>
    %573 = arith.addf %556, %572 : vector<2x8x8xf32>
    %c105 = arith.constant 105 : index
    %574 = memref.load %arg1[%c105] : memref<144xf32, #tpu.memory_space<smem>>
    %575 = vector.broadcast %574 : f32 to vector<2x8x8xf32>
    %576 = arith.mulf %575, %565 : vector<2x8x8xf32>
    %577 = arith.addf %560, %576 : vector<2x8x8xf32>
    %c141 = arith.constant 141 : index
    %578 = memref.load %arg1[%c141] : memref<144xf32, #tpu.memory_space<smem>>
    %579 = vector.broadcast %578 : f32 to vector<2x8x8xf32>
    %580 = arith.mulf %579, %565 : vector<2x8x8xf32>
    %581 = arith.addf %564, %580 : vector<2x8x8xf32>
    %582 = vector.extract_strided_slice %462 {offsets = [0, 2, 1], sizes = [2, 8, 8], strides = [1, 1, 1]} : vector<2x10x10xf32> to vector<2x8x8xf32>
    %c34 = arith.constant 34 : index
    %583 = memref.load %arg1[%c34] : memref<144xf32, #tpu.memory_space<smem>>
    %584 = vector.broadcast %583 : f32 to vector<2x8x8xf32>
    %585 = arith.mulf %584, %582 : vector<2x8x8xf32>
    %586 = arith.addf %569, %585 : vector<2x8x8xf32>
    %c70 = arith.constant 70 : index
    %587 = memref.load %arg1[%c70] : memref<144xf32, #tpu.memory_space<smem>>
    %588 = vector.broadcast %587 : f32 to vector<2x8x8xf32>
    %589 = arith.mulf %588, %582 : vector<2x8x8xf32>
    %590 = arith.addf %573, %589 : vector<2x8x8xf32>
    %c106 = arith.constant 106 : index
    %591 = memref.load %arg1[%c106] : memref<144xf32, #tpu.memory_space<smem>>
    %592 = vector.broadcast %591 : f32 to vector<2x8x8xf32>
    %593 = arith.mulf %592, %582 : vector<2x8x8xf32>
    %594 = arith.addf %577, %593 : vector<2x8x8xf32>
    %c142 = arith.constant 142 : index
    %595 = memref.load %arg1[%c142] : memref<144xf32, #tpu.memory_space<smem>>
    %596 = vector.broadcast %595 : f32 to vector<2x8x8xf32>
    %597 = arith.mulf %596, %582 : vector<2x8x8xf32>
    %598 = arith.addf %581, %597 : vector<2x8x8xf32>
    %599 = vector.extract_strided_slice %462 {offsets = [0, 2, 2], sizes = [2, 8, 8], strides = [1, 1, 1]} : vector<2x10x10xf32> to vector<2x8x8xf32>
    %c35 = arith.constant 35 : index
    %600 = memref.load %arg1[%c35] : memref<144xf32, #tpu.memory_space<smem>>
    %601 = vector.broadcast %600 : f32 to vector<2x8x8xf32>
    %602 = arith.mulf %601, %599 : vector<2x8x8xf32>
    %603 = arith.addf %586, %602 : vector<2x8x8xf32>
    %c71 = arith.constant 71 : index
    %604 = memref.load %arg1[%c71] : memref<144xf32, #tpu.memory_space<smem>>
    %605 = vector.broadcast %604 : f32 to vector<2x8x8xf32>
    %606 = arith.mulf %605, %599 : vector<2x8x8xf32>
    %607 = arith.addf %590, %606 : vector<2x8x8xf32>
    %c107 = arith.constant 107 : index
    %608 = memref.load %arg1[%c107] : memref<144xf32, #tpu.memory_space<smem>>
    %609 = vector.broadcast %608 : f32 to vector<2x8x8xf32>
    %610 = arith.mulf %609, %599 : vector<2x8x8xf32>
    %611 = arith.addf %594, %610 : vector<2x8x8xf32>
    %c143 = arith.constant 143 : index
    %612 = memref.load %arg1[%c143] : memref<144xf32, #tpu.memory_space<smem>>
    %613 = vector.broadcast %612 : f32 to vector<2x8x8xf32>
    %614 = arith.mulf %613, %599 : vector<2x8x8xf32>
    %615 = arith.addf %598, %614 : vector<2x8x8xf32>
    %c0_20 = arith.constant 0 : index
    %c0_21 = arith.constant 0 : index
    %c0_22 = arith.constant 0 : index
    %c0_23 = arith.constant 0 : index
    %c0_24 = arith.constant 0 : index
    %616 = vector.load %arg3[%c0_20, %c0_21, %c0_22, %c0_23, %c0_24] : memref<1x8x2x8x8xf32, #tpu.memory_space<vmem>>, vector<1x1x2x8x8xf32>
    %617 = vector.shape_cast %616 : vector<1x1x2x8x8xf32> to vector<2x8x8xf32>
    %618 = vector.shape_cast %603 : vector<2x8x8xf32> to vector<1x1x2x8x8xf32>
    tpu.vector_store %arg3[%c0_20, %c0_21, %c0_22, %c0_23, %c0_24], %618 {strides = array<i32>} : memref<1x8x2x8x8xf32, #tpu.memory_space<vmem>>, vector<1x1x2x8x8xf32>,
    %c0_25 = arith.constant 0 : index
    %c1_26 = arith.constant 1 : index
    %c0_27 = arith.constant 0 : index
    %c0_28 = arith.constant 0 : index
    %c0_29 = arith.constant 0 : index
    %619 = vector.load %arg3[%c0_25, %c1_26, %c0_27, %c0_28, %c0_29] : memref<1x8x2x8x8xf32, #tpu.memory_space<vmem>>, vector<1x1x2x8x8xf32>
    %620 = vector.shape_cast %619 : vector<1x1x2x8x8xf32> to vector<2x8x8xf32>
    %621 = vector.shape_cast %607 : vector<2x8x8xf32> to vector<1x1x2x8x8xf32>
    tpu.vector_store %arg3[%c0_25, %c1_26, %c0_27, %c0_28, %c0_29], %621 {strides = array<i32>} : memref<1x8x2x8x8xf32, #tpu.memory_space<vmem>>, vector<1x1x2x8x8xf32>,
    %c0_30 = arith.constant 0 : index
    %c2_31 = arith.constant 2 : index
    %c0_32 = arith.constant 0 : index
    %c0_33 = arith.constant 0 : index
    %c0_34 = arith.constant 0 : index
    %622 = vector.load %arg3[%c0_30, %c2_31, %c0_32, %c0_33, %c0_34] : memref<1x8x2x8x8xf32, #tpu.memory_space<vmem>>, vector<1x1x2x8x8xf32>
    %623 = vector.shape_cast %622 : vector<1x1x2x8x8xf32> to vector<2x8x8xf32>
    %624 = vector.shape_cast %611 : vector<2x8x8xf32> to vector<1x1x2x8x8xf32>
    tpu.vector_store %arg3[%c0_30, %c2_31, %c0_32, %c0_33, %c0_34], %624 {strides = array<i32>} : memref<1x8x2x8x8xf32, #tpu.memory_space<vmem>>, vector<1x1x2x8x8xf32>,
    %c0_35 = arith.constant 0 : index
    %c3_36 = arith.constant 3 : index
    %c0_37 = arith.constant 0 : index
    %c0_38 = arith.constant 0 : index
    %c0_39 = arith.constant 0 : index
    %625 = vector.load %arg3[%c0_35, %c3_36, %c0_37, %c0_38, %c0_39] : memref<1x8x2x8x8xf32, #tpu.memory_space<vmem>>, vector<1x1x2x8x8xf32>
    %626 = vector.shape_cast %625 : vector<1x1x2x8x8xf32> to vector<2x8x8xf32>
    %627 = vector.shape_cast %615 : vector<2x8x8xf32> to vector<1x1x2x8x8xf32>
    tpu.vector_store %arg3[%c0_35, %c3_36, %c0_37, %c0_38, %c0_39], %627 {strides = array<i32>} : memref<1x8x2x8x8xf32, #tpu.memory_space<vmem>>, vector<1x1x2x8x8xf32>,
    %c1_40 = arith.constant 1 : index
    %c0_41 = arith.constant 0 : index
    %c0_42 = arith.constant 0 : index
    %c0_43 = arith.constant 0 : index
    %c0_44 = arith.constant 0 : index
    %628 = vector.load %arg2[%c1_40, %c0_41, %c0_42, %c0_43, %c0_44] : memref<2x2x4x10x10xf32, #tpu.memory_space<vmem>>, vector<1x2x1x10x10xf32>
    %629 = vector.shape_cast %628 : vector<1x2x1x10x10xf32> to vector<2x10x10xf32>
    %630 = vector.extract_strided_slice %629 {offsets = [0, 0, 0], sizes = [2, 8, 8], strides = [1, 1, 1]} : vector<2x10x10xf32> to vector<2x8x8xf32>
    %c0_45 = arith.constant 0 : index
    %631 = memref.load %arg1[%c0_45] : memref<144xf32, #tpu.memory_space<smem>>
    %632 = vector.broadcast %631 : f32 to vector<2x8x8xf32>
    %633 = arith.mulf %632, %630 : vector<2x8x8xf32>
    %c36_46 = arith.constant 36 : index
    %634 = memref.load %arg1[%c36_46] : memref<144xf32, #tpu.memory_space<smem>>
    %635 = vector.broadcast %634 : f32 to vector<2x8x8xf32>
    %636 = arith.mulf %635, %630 : vector<2x8x8xf32>
    %c72_47 = arith.constant 72 : index
    %637 = memref.load %arg1[%c72_47] : memref<144xf32, #tpu.memory_space<smem>>
    %638 = vector.broadcast %637 : f32 to vector<2x8x8xf32>
    %639 = arith.mulf %638, %630 : vector<2x8x8xf32>
    %c108_48 = arith.constant 108 : index
    %640 = memref.load %arg1[%c108_48] : memref<144xf32, #tpu.memory_space<smem>>
    %641 = vector.broadcast %640 : f32 to vector<2x8x8xf32>
    %642 = arith.mulf %641, %630 : vector<2x8x8xf32>
    %643 = vector.extract_strided_slice %629 {offsets = [0, 0, 1], sizes = [2, 8, 8], strides = [1, 1, 1]} : vector<2x10x10xf32> to vector<2x8x8xf32>
    %c1_49 = arith.constant 1 : index
    %644 = memref.load %arg1[%c1_49] : memref<144xf32, #tpu.memory_space<smem>>
    %645 = vector.broadcast %644 : f32 to vector<2x8x8xf32>
    %646 = arith.mulf %645, %643 : vector<2x8x8xf32>
    %647 = arith.addf %633, %646 : vector<2x8x8xf32>
    %c37_50 = arith.constant 37 : index
    %648 = memref.load %arg1[%c37_50] : memref<144xf32, #tpu.memory_space<smem>>
    %649 = vector.broadcast %648 : f32 to vector<2x8x8xf32>
    %650 = arith.mulf %649, %643 : vector<2x8x8xf32>
    %651 = arith.addf %636, %650 : vector<2x8x8xf32>
    %c73_51 = arith.constant 73 : index
    %652 = memref.load %arg1[%c73_51] : memref<144xf32, #tpu.memory_space<smem>>
    %653 = vector.broadcast %652 : f32 to vector<2x8x8xf32>
    %654 = arith.mulf %653, %643 : vector<2x8x8xf32>
    %655 = arith.addf %639, %654 : vector<2x8x8xf32>
    %c109_52 = arith.constant 109 : index
    %656 = memref.load %arg1[%c109_52] : memref<144xf32, #tpu.memory_space<smem>>
    %657 = vector.broadcast %656 : f32 to vector<2x8x8xf32>
    %658 = arith.mulf %657, %643 : vector<2x8x8xf32>
    %659 = arith.addf %642, %658 : vector<2x8x8xf32>
    %660 = vector.extract_strided_slice %629 {offsets = [0, 0, 2], sizes = [2, 8, 8], strides = [1, 1, 1]} : vector<2x10x10xf32> to vector<2x8x8xf32>
    %c2_53 = arith.constant 2 : index
    %661 = memref.load %arg1[%c2_53] : memref<144xf32, #tpu.memory_space<smem>>
    %662 = vector.broadcast %661 : f32 to vector<2x8x8xf32>
    %663 = arith.mulf %662, %660 : vector<2x8x8xf32>
    %664 = arith.addf %647, %663 : vector<2x8x8xf32>
    %c38_54 = arith.constant 38 : index
    %665 = memref.load %arg1[%c38_54] : memref<144xf32, #tpu.memory_space<smem>>
    %666 = vector.broadcast %665 : f32 to vector<2x8x8xf32>
    %667 = arith.mulf %666, %660 : vector<2x8x8xf32>
    %668 = arith.addf %651, %667 : vector<2x8x8xf32>
    %c74_55 = arith.constant 74 : index
    %669 = memref.load %arg1[%c74_55] : memref<144xf32, #tpu.memory_space<smem>>
    %670 = vector.broadcast %669 : f32 to vector<2x8x8xf32>
    %671 = arith.mulf %670, %660 : vector<2x8x8xf32>
    %672 = arith.addf %655, %671 : vector<2x8x8xf32>
    %c110_56 = arith.constant 110 : index
    %673 = memref.load %arg1[%c110_56] : memref<144xf32, #tpu.memory_space<smem>>
    %674 = vector.broadcast %673 : f32 to vector<2x8x8xf32>
    %675 = arith.mulf %674, %660 : vector<2x8x8xf32>
    %676 = arith.addf %659, %675 : vector<2x8x8xf32>
    %677 = vector.extract_strided_slice %629 {offsets = [0, 1, 0], sizes = [2, 8, 8], strides = [1, 1, 1]} : vector<2x10x10xf32> to vector<2x8x8xf32>
    %c3_57 = arith.constant 3 : index
    %678 = memref.load %arg1[%c3_57] : memref<144xf32, #tpu.memory_space<smem>>
    %679 = vector.broadcast %678 : f32 to vector<2x8x8xf32>
    %680 = arith.mulf %679, %677 : vector<2x8x8xf32>
    %681 = arith.addf %664, %680 : vector<2x8x8xf32>
    %c39_58 = arith.constant 39 : index
    %682 = memref.load %arg1[%c39_58] : memref<144xf32, #tpu.memory_space<smem>>
    %683 = vector.broadcast %682 : f32 to vector<2x8x8xf32>
    %684 = arith.mulf %683, %677 : vector<2x8x8xf32>
    %685 = arith.addf %668, %684 : vector<2x8x8xf32>
    %c75_59 = arith.constant 75 : index
    %686 = memref.load %arg1[%c75_59] : memref<144xf32, #tpu.memory_space<smem>>
    %687 = vector.broadcast %686 : f32 to vector<2x8x8xf32>
    %688 = arith.mulf %687, %677 : vector<2x8x8xf32>
    %689 = arith.addf %672, %688 : vector<2x8x8xf32>
    %c111_60 = arith.constant 111 : index
    %690 = memref.load %arg1[%c111_60] : memref<144xf32, #tpu.memory_space<smem>>
    %691 = vector.broadcast %690 : f32 to vector<2x8x8xf32>
    %692 = arith.mulf %691, %677 : vector<2x8x8xf32>
    %693 = arith.addf %676, %692 : vector<2x8x8xf32>
    %694 = vector.extract_strided_slice %629 {offsets = [0, 1, 1], sizes = [2, 8, 8], strides = [1, 1, 1]} : vector<2x10x10xf32> to vector<2x8x8xf32>
    %c4_61 = arith.constant 4 : index
    %695 = memref.load %arg1[%c4_61] : memref<144xf32, #tpu.memory_space<smem>>
    %696 = vector.broadcast %695 : f32 to vector<2x8x8xf32>
    %697 = arith.mulf %696, %694 : vector<2x8x8xf32>
    %698 = arith.addf %681, %697 : vector<2x8x8xf32>
    %c40_62 = arith.constant 40 : index
    %699 = memref.load %arg1[%c40_62] : memref<144xf32, #tpu.memory_space<smem>>
    %700 = vector.broadcast %699 : f32 to vector<2x8x8xf32>
    %701 = arith.mulf %700, %694 : vector<2x8x8xf32>
    %702 = arith.addf %685, %701 : vector<2x8x8xf32>
    %c76_63 = arith.constant 76 : index
    %703 = memref.load %arg1[%c76_63] : memref<144xf32, #tpu.memory_space<smem>>
    %704 = vector.broadcast %703 : f32 to vector<2x8x8xf32>
    %705 = arith.mulf %704, %694 : vector<2x8x8xf32>
    %706 = arith.addf %689, %705 : vector<2x8x8xf32>
    %c112_64 = arith.constant 112 : index
    %707 = memref.load %arg1[%c112_64] : memref<144xf32, #tpu.memory_space<smem>>
    %708 = vector.broadcast %707 : f32 to vector<2x8x8xf32>
    %709 = arith.mulf %708, %694 : vector<2x8x8xf32>
    %710 = arith.addf %693, %709 : vector<2x8x8xf32>
    %711 = vector.extract_strided_slice %629 {offsets = [0, 1, 2], sizes = [2, 8, 8], strides = [1, 1, 1]} : vector<2x10x10xf32> to vector<2x8x8xf32>
    %c5_65 = arith.constant 5 : index
    %712 = memref.load %arg1[%c5_65] : memref<144xf32, #tpu.memory_space<smem>>
    %713 = vector.broadcast %712 : f32 to vector<2x8x8xf32>
    %714 = arith.mulf %713, %711 : vector<2x8x8xf32>
    %715 = arith.addf %698, %714 : vector<2x8x8xf32>
    %c41_66 = arith.constant 41 : index
    %716 = memref.load %arg1[%c41_66] : memref<144xf32, #tpu.memory_space<smem>>
    %717 = vector.broadcast %716 : f32 to vector<2x8x8xf32>
    %718 = arith.mulf %717, %711 : vector<2x8x8xf32>
    %719 = arith.addf %702, %718 : vector<2x8x8xf32>
    %c77_67 = arith.constant 77 : index
    %720 = memref.load %arg1[%c77_67] : memref<144xf32, #tpu.memory_space<smem>>
    %721 = vector.broadcast %720 : f32 to vector<2x8x8xf32>
    %722 = arith.mulf %721, %711 : vector<2x8x8xf32>
    %723 = arith.addf %706, %722 : vector<2x8x8xf32>
    %c113_68 = arith.constant 113 : index
    %724 = memref.load %arg1[%c113_68] : memref<144xf32, #tpu.memory_space<smem>>
    %725 = vector.broadcast %724 : f32 to vector<2x8x8xf32>
    %726 = arith.mulf %725, %711 : vector<2x8x8xf32>
    %727 = arith.addf %710, %726 : vector<2x8x8xf32>
    %728 = vector.extract_strided_slice %629 {offsets = [0, 2, 0], sizes = [2, 8, 8], strides = [1, 1, 1]} : vector<2x10x10xf32> to vector<2x8x8xf32>
    %c6_69 = arith.constant 6 : index
    %729 = memref.load %arg1[%c6_69] : memref<144xf32, #tpu.memory_space<smem>>
    %730 = vector.broadcast %729 : f32 to vector<2x8x8xf32>
    %731 = arith.mulf %730, %728 : vector<2x8x8xf32>
    %732 = arith.addf %715, %731 : vector<2x8x8xf32>
    %c42_70 = arith.constant 42 : index
    %733 = memref.load %arg1[%c42_70] : memref<144xf32, #tpu.memory_space<smem>>
    %734 = vector.broadcast %733 : f32 to vector<2x8x8xf32>
    %735 = arith.mulf %734, %728 : vector<2x8x8xf32>
    %736 = arith.addf %719, %735 : vector<2x8x8xf32>
    %c78_71 = arith.constant 78 : index
    %737 = memref.load %arg1[%c78_71] : memref<144xf32, #tpu.memory_space<smem>>
    %738 = vector.broadcast %737 : f32 to vector<2x8x8xf32>
    %739 = arith.mulf %738, %728 : vector<2x8x8xf32>
    %740 = arith.addf %723, %739 : vector<2x8x8xf32>
    %c114_72 = arith.constant 114 : index
    %741 = memref.load %arg1[%c114_72] : memref<144xf32, #tpu.memory_space<smem>>
    %742 = vector.broadcast %741 : f32 to vector<2x8x8xf32>
    %743 = arith.mulf %742, %728 : vector<2x8x8xf32>
    %744 = arith.addf %727, %743 : vector<2x8x8xf32>
    %745 = vector.extract_strided_slice %629 {offsets = [0, 2, 1], sizes = [2, 8, 8], strides = [1, 1, 1]} : vector<2x10x10xf32> to vector<2x8x8xf32>
    %c7_73 = arith.constant 7 : index
    %746 = memref.load %arg1[%c7_73] : memref<144xf32, #tpu.memory_space<smem>>
    %747 = vector.broadcast %746 : f32 to vector<2x8x8xf32>
    %748 = arith.mulf %747, %745 : vector<2x8x8xf32>
    %749 = arith.addf %732, %748 : vector<2x8x8xf32>
    %c43_74 = arith.constant 43 : index
    %750 = memref.load %arg1[%c43_74] : memref<144xf32, #tpu.memory_space<smem>>
    %751 = vector.broadcast %750 : f32 to vector<2x8x8xf32>
    %752 = arith.mulf %751, %745 : vector<2x8x8xf32>
    %753 = arith.addf %736, %752 : vector<2x8x8xf32>
    %c79_75 = arith.constant 79 : index
    %754 = memref.load %arg1[%c79_75] : memref<144xf32, #tpu.memory_space<smem>>
    %755 = vector.broadcast %754 : f32 to vector<2x8x8xf32>
    %756 = arith.mulf %755, %745 : vector<2x8x8xf32>
    %757 = arith.addf %740, %756 : vector<2x8x8xf32>
    %c115_76 = arith.constant 115 : index
    %758 = memref.load %arg1[%c115_76] : memref<144xf32, #tpu.memory_space<smem>>
    %759 = vector.broadcast %758 : f32 to vector<2x8x8xf32>
    %760 = arith.mulf %759, %745 : vector<2x8x8xf32>
    %761 = arith.addf %744, %760 : vector<2x8x8xf32>
    %762 = vector.extract_strided_slice %629 {offsets = [0, 2, 2], sizes = [2, 8, 8], strides = [1, 1, 1]} : vector<2x10x10xf32> to vector<2x8x8xf32>
    %c8_77 = arith.constant 8 : index
    %763 = memref.load %arg1[%c8_77] : memref<144xf32, #tpu.memory_space<smem>>
    %764 = vector.broadcast %763 : f32 to vector<2x8x8xf32>
    %765 = arith.mulf %764, %762 : vector<2x8x8xf32>
    %766 = arith.addf %749, %765 : vector<2x8x8xf32>
    %c44_78 = arith.constant 44 : index
    %767 = memref.load %arg1[%c44_78] : memref<144xf32, #tpu.memory_space<smem>>
    %768 = vector.broadcast %767 : f32 to vector<2x8x8xf32>
    %769 = arith.mulf %768, %762 : vector<2x8x8xf32>
    %770 = arith.addf %753, %769 : vector<2x8x8xf32>
    %c80_79 = arith.constant 80 : index
    %771 = memref.load %arg1[%c80_79] : memref<144xf32, #tpu.memory_space<smem>>
    %772 = vector.broadcast %771 : f32 to vector<2x8x8xf32>
    %773 = arith.mulf %772, %762 : vector<2x8x8xf32>
    %774 = arith.addf %757, %773 : vector<2x8x8xf32>
    %c116_80 = arith.constant 116 : index
    %775 = memref.load %arg1[%c116_80] : memref<144xf32, #tpu.memory_space<smem>>
    %776 = vector.broadcast %775 : f32 to vector<2x8x8xf32>
    %777 = arith.mulf %776, %762 : vector<2x8x8xf32>
    %778 = arith.addf %761, %777 : vector<2x8x8xf32>
    %c1_81 = arith.constant 1 : index
    %c0_82 = arith.constant 0 : index
    %c1_83 = arith.constant 1 : index
    %c0_84 = arith.constant 0 : index
    %c0_85 = arith.constant 0 : index
    %779 = vector.load %arg2[%c1_81, %c0_82, %c1_83, %c0_84, %c0_85] : memref<2x2x4x10x10xf32, #tpu.memory_space<vmem>>, vector<1x2x1x10x10xf32>
    %780 = vector.shape_cast %779 : vector<1x2x1x10x10xf32> to vector<2x10x10xf32>
    %781 = vector.extract_strided_slice %780 {offsets = [0, 0, 0], sizes = [2, 8, 8], strides = [1, 1, 1]} : vector<2x10x10xf32> to vector<2x8x8xf32>
    %c9_86 = arith.constant 9 : index
    %782 = memref.load %arg1[%c9_86] : memref<144xf32, #tpu.memory_space<smem>>
    %783 = vector.broadcast %782 : f32 to vector<2x8x8xf32>
    %784 = arith.mulf %783, %781 : vector<2x8x8xf32>
    %785 = arith.addf %766, %784 : vector<2x8x8xf32>
    %c45_87 = arith.constant 45 : index
    %786 = memref.load %arg1[%c45_87] : memref<144xf32, #tpu.memory_space<smem>>
    %787 = vector.broadcast %786 : f32 to vector<2x8x8xf32>
    %788 = arith.mulf %787, %781 : vector<2x8x8xf32>
    %789 = arith.addf %770, %788 : vector<2x8x8xf32>
    %c81_88 = arith.constant 81 : index
    %790 = memref.load %arg1[%c81_88] : memref<144xf32, #tpu.memory_space<smem>>
    %791 = vector.broadcast %790 : f32 to vector<2x8x8xf32>
    %792 = arith.mulf %791, %781 : vector<2x8x8xf32>
    %793 = arith.addf %774, %792 : vector<2x8x8xf32>
    %c117_89 = arith.constant 117 : index
    %794 = memref.load %arg1[%c117_89] : memref<144xf32, #tpu.memory_space<smem>>
    %795 = vector.broadcast %794 : f32 to vector<2x8x8xf32>
    %796 = arith.mulf %795, %781 : vector<2x8x8xf32>
    %797 = arith.addf %778, %796 : vector<2x8x8xf32>
    %798 = vector.extract_strided_slice %780 {offsets = [0, 0, 1], sizes = [2, 8, 8], strides = [1, 1, 1]} : vector<2x10x10xf32> to vector<2x8x8xf32>
    %c10_90 = arith.constant 10 : index
    %799 = memref.load %arg1[%c10_90] : memref<144xf32, #tpu.memory_space<smem>>
    %800 = vector.broadcast %799 : f32 to vector<2x8x8xf32>
    %801 = arith.mulf %800, %798 : vector<2x8x8xf32>
    %802 = arith.addf %785, %801 : vector<2x8x8xf32>
    %c46_91 = arith.constant 46 : index
    %803 = memref.load %arg1[%c46_91] : memref<144xf32, #tpu.memory_space<smem>>
    %804 = vector.broadcast %803 : f32 to vector<2x8x8xf32>
    %805 = arith.mulf %804, %798 : vector<2x8x8xf32>
    %806 = arith.addf %789, %805 : vector<2x8x8xf32>
    %c82_92 = arith.constant 82 : index
    %807 = memref.load %arg1[%c82_92] : memref<144xf32, #tpu.memory_space<smem>>
    %808 = vector.broadcast %807 : f32 to vector<2x8x8xf32>
    %809 = arith.mulf %808, %798 : vector<2x8x8xf32>
    %810 = arith.addf %793, %809 : vector<2x8x8xf32>
    %c118_93 = arith.constant 118 : index
    %811 = memref.load %arg1[%c118_93] : memref<144xf32, #tpu.memory_space<smem>>
    %812 = vector.broadcast %811 : f32 to vector<2x8x8xf32>
    %813 = arith.mulf %812, %798 : vector<2x8x8xf32>
    %814 = arith.addf %797, %813 : vector<2x8x8xf32>
    %815 = vector.extract_strided_slice %780 {offsets = [0, 0, 2], sizes = [2, 8, 8], strides = [1, 1, 1]} : vector<2x10x10xf32> to vector<2x8x8xf32>
    %c11_94 = arith.constant 11 : index
    %816 = memref.load %arg1[%c11_94] : memref<144xf32, #tpu.memory_space<smem>>
    %817 = vector.broadcast %816 : f32 to vector<2x8x8xf32>
    %818 = arith.mulf %817, %815 : vector<2x8x8xf32>
    %819 = arith.addf %802, %818 : vector<2x8x8xf32>
    %c47_95 = arith.constant 47 : index
    %820 = memref.load %arg1[%c47_95] : memref<144xf32, #tpu.memory_space<smem>>
    %821 = vector.broadcast %820 : f32 to vector<2x8x8xf32>
    %822 = arith.mulf %821, %815 : vector<2x8x8xf32>
    %823 = arith.addf %806, %822 : vector<2x8x8xf32>
    %c83_96 = arith.constant 83 : index
    %824 = memref.load %arg1[%c83_96] : memref<144xf32, #tpu.memory_space<smem>>
    %825 = vector.broadcast %824 : f32 to vector<2x8x8xf32>
    %826 = arith.mulf %825, %815 : vector<2x8x8xf32>
    %827 = arith.addf %810, %826 : vector<2x8x8xf32>
    %c119_97 = arith.constant 119 : index
    %828 = memref.load %arg1[%c119_97] : memref<144xf32, #tpu.memory_space<smem>>
    %829 = vector.broadcast %828 : f32 to vector<2x8x8xf32>
    %830 = arith.mulf %829, %815 : vector<2x8x8xf32>
    %831 = arith.addf %814, %830 : vector<2x8x8xf32>
    %832 = vector.extract_strided_slice %780 {offsets = [0, 1, 0], sizes = [2, 8, 8], strides = [1, 1, 1]} : vector<2x10x10xf32> to vector<2x8x8xf32>
    %c12_98 = arith.constant 12 : index
    %833 = memref.load %arg1[%c12_98] : memref<144xf32, #tpu.memory_space<smem>>
    %834 = vector.broadcast %833 : f32 to vector<2x8x8xf32>
    %835 = arith.mulf %834, %832 : vector<2x8x8xf32>
    %836 = arith.addf %819, %835 : vector<2x8x8xf32>
    %c48_99 = arith.constant 48 : index
    %837 = memref.load %arg1[%c48_99] : memref<144xf32, #tpu.memory_space<smem>>
    %838 = vector.broadcast %837 : f32 to vector<2x8x8xf32>
    %839 = arith.mulf %838, %832 : vector<2x8x8xf32>
    %840 = arith.addf %823, %839 : vector<2x8x8xf32>
    %c84_100 = arith.constant 84 : index
    %841 = memref.load %arg1[%c84_100] : memref<144xf32, #tpu.memory_space<smem>>
    %842 = vector.broadcast %841 : f32 to vector<2x8x8xf32>
    %843 = arith.mulf %842, %832 : vector<2x8x8xf32>
    %844 = arith.addf %827, %843 : vector<2x8x8xf32>
    %c120_101 = arith.constant 120 : index
    %845 = memref.load %arg1[%c120_101] : memref<144xf32, #tpu.memory_space<smem>>
    %846 = vector.broadcast %845 : f32 to vector<2x8x8xf32>
    %847 = arith.mulf %846, %832 : vector<2x8x8xf32>
    %848 = arith.addf %831, %847 : vector<2x8x8xf32>
    %849 = vector.extract_strided_slice %780 {offsets = [0, 1, 1], sizes = [2, 8, 8], strides = [1, 1, 1]} : vector<2x10x10xf32> to vector<2x8x8xf32>
    %c13_102 = arith.constant 13 : index
    %850 = memref.load %arg1[%c13_102] : memref<144xf32, #tpu.memory_space<smem>>
    %851 = vector.broadcast %850 : f32 to vector<2x8x8xf32>
    %852 = arith.mulf %851, %849 : vector<2x8x8xf32>
    %853 = arith.addf %836, %852 : vector<2x8x8xf32>
    %c49_103 = arith.constant 49 : index
    %854 = memref.load %arg1[%c49_103] : memref<144xf32, #tpu.memory_space<smem>>
    %855 = vector.broadcast %854 : f32 to vector<2x8x8xf32>
    %856 = arith.mulf %855, %849 : vector<2x8x8xf32>
    %857 = arith.addf %840, %856 : vector<2x8x8xf32>
    %c85_104 = arith.constant 85 : index
    %858 = memref.load %arg1[%c85_104] : memref<144xf32, #tpu.memory_space<smem>>
    %859 = vector.broadcast %858 : f32 to vector<2x8x8xf32>
    %860 = arith.mulf %859, %849 : vector<2x8x8xf32>
    %861 = arith.addf %844, %860 : vector<2x8x8xf32>
    %c121_105 = arith.constant 121 : index
    %862 = memref.load %arg1[%c121_105] : memref<144xf32, #tpu.memory_space<smem>>
    %863 = vector.broadcast %862 : f32 to vector<2x8x8xf32>
    %864 = arith.mulf %863, %849 : vector<2x8x8xf32>
    %865 = arith.addf %848, %864 : vector<2x8x8xf32>
    %866 = vector.extract_strided_slice %780 {offsets = [0, 1, 2], sizes = [2, 8, 8], strides = [1, 1, 1]} : vector<2x10x10xf32> to vector<2x8x8xf32>
    %c14_106 = arith.constant 14 : index
    %867 = memref.load %arg1[%c14_106] : memref<144xf32, #tpu.memory_space<smem>>
    %868 = vector.broadcast %867 : f32 to vector<2x8x8xf32>
    %869 = arith.mulf %868, %866 : vector<2x8x8xf32>
    %870 = arith.addf %853, %869 : vector<2x8x8xf32>
    %c50_107 = arith.constant 50 : index
    %871 = memref.load %arg1[%c50_107] : memref<144xf32, #tpu.memory_space<smem>>
    %872 = vector.broadcast %871 : f32 to vector<2x8x8xf32>
    %873 = arith.mulf %872, %866 : vector<2x8x8xf32>
    %874 = arith.addf %857, %873 : vector<2x8x8xf32>
    %c86_108 = arith.constant 86 : index
    %875 = memref.load %arg1[%c86_108] : memref<144xf32, #tpu.memory_space<smem>>
    %876 = vector.broadcast %875 : f32 to vector<2x8x8xf32>
    %877 = arith.mulf %876, %866 : vector<2x8x8xf32>
    %878 = arith.addf %861, %877 : vector<2x8x8xf32>
    %c122_109 = arith.constant 122 : index
    %879 = memref.load %arg1[%c122_109] : memref<144xf32, #tpu.memory_space<smem>>
    %880 = vector.broadcast %879 : f32 to vector<2x8x8xf32>
    %881 = arith.mulf %880, %866 : vector<2x8x8xf32>
    %882 = arith.addf %865, %881 : vector<2x8x8xf32>
    %883 = vector.extract_strided_slice %780 {offsets = [0, 2, 0], sizes = [2, 8, 8], strides = [1, 1, 1]} : vector<2x10x10xf32> to vector<2x8x8xf32>
    %c15_110 = arith.constant 15 : index
    %884 = memref.load %arg1[%c15_110] : memref<144xf32, #tpu.memory_space<smem>>
    %885 = vector.broadcast %884 : f32 to vector<2x8x8xf32>
    %886 = arith.mulf %885, %883 : vector<2x8x8xf32>
    %887 = arith.addf %870, %886 : vector<2x8x8xf32>
    %c51_111 = arith.constant 51 : index
    %888 = memref.load %arg1[%c51_111] : memref<144xf32, #tpu.memory_space<smem>>
    %889 = vector.broadcast %888 : f32 to vector<2x8x8xf32>
    %890 = arith.mulf %889, %883 : vector<2x8x8xf32>
    %891 = arith.addf %874, %890 : vector<2x8x8xf32>
    %c87_112 = arith.constant 87 : index
    %892 = memref.load %arg1[%c87_112] : memref<144xf32, #tpu.memory_space<smem>>
    %893 = vector.broadcast %892 : f32 to vector<2x8x8xf32>
    %894 = arith.mulf %893, %883 : vector<2x8x8xf32>
    %895 = arith.addf %878, %894 : vector<2x8x8xf32>
    %c123_113 = arith.constant 123 : index
    %896 = memref.load %arg1[%c123_113] : memref<144xf32, #tpu.memory_space<smem>>
    %897 = vector.broadcast %896 : f32 to vector<2x8x8xf32>
    %898 = arith.mulf %897, %883 : vector<2x8x8xf32>
    %899 = arith.addf %882, %898 : vector<2x8x8xf32>
    %900 = vector.extract_strided_slice %780 {offsets = [0, 2, 1], sizes = [2, 8, 8], strides = [1, 1, 1]} : vector<2x10x10xf32> to vector<2x8x8xf32>
    %c16_114 = arith.constant 16 : index
    %901 = memref.load %arg1[%c16_114] : memref<144xf32, #tpu.memory_space<smem>>
    %902 = vector.broadcast %901 : f32 to vector<2x8x8xf32>
    %903 = arith.mulf %902, %900 : vector<2x8x8xf32>
    %904 = arith.addf %887, %903 : vector<2x8x8xf32>
    %c52_115 = arith.constant 52 : index
    %905 = memref.load %arg1[%c52_115] : memref<144xf32, #tpu.memory_space<smem>>
    %906 = vector.broadcast %905 : f32 to vector<2x8x8xf32>
    %907 = arith.mulf %906, %900 : vector<2x8x8xf32>
    %908 = arith.addf %891, %907 : vector<2x8x8xf32>
    %c88_116 = arith.constant 88 : index
    %909 = memref.load %arg1[%c88_116] : memref<144xf32, #tpu.memory_space<smem>>
    %910 = vector.broadcast %909 : f32 to vector<2x8x8xf32>
    %911 = arith.mulf %910, %900 : vector<2x8x8xf32>
    %912 = arith.addf %895, %911 : vector<2x8x8xf32>
    %c124_117 = arith.constant 124 : index
    %913 = memref.load %arg1[%c124_117] : memref<144xf32, #tpu.memory_space<smem>>
    %914 = vector.broadcast %913 : f32 to vector<2x8x8xf32>
    %915 = arith.mulf %914, %900 : vector<2x8x8xf32>
    %916 = arith.addf %899, %915 : vector<2x8x8xf32>
    %917 = vector.extract_strided_slice %780 {offsets = [0, 2, 2], sizes = [2, 8, 8], strides = [1, 1, 1]} : vector<2x10x10xf32> to vector<2x8x8xf32>
    %c17_118 = arith.constant 17 : index
    %918 = memref.load %arg1[%c17_118] : memref<144xf32, #tpu.memory_space<smem>>
    %919 = vector.broadcast %918 : f32 to vector<2x8x8xf32>
    %920 = arith.mulf %919, %917 : vector<2x8x8xf32>
    %921 = arith.addf %904, %920 : vector<2x8x8xf32>
    %c53_119 = arith.constant 53 : index
    %922 = memref.load %arg1[%c53_119] : memref<144xf32, #tpu.memory_space<smem>>
    %923 = vector.broadcast %922 : f32 to vector<2x8x8xf32>
    %924 = arith.mulf %923, %917 : vector<2x8x8xf32>
    %925 = arith.addf %908, %924 : vector<2x8x8xf32>
    %c89_120 = arith.constant 89 : index
    %926 = memref.load %arg1[%c89_120] : memref<144xf32, #tpu.memory_space<smem>>
    %927 = vector.broadcast %926 : f32 to vector<2x8x8xf32>
    %928 = arith.mulf %927, %917 : vector<2x8x8xf32>
    %929 = arith.addf %912, %928 : vector<2x8x8xf32>
    %c125_121 = arith.constant 125 : index
    %930 = memref.load %arg1[%c125_121] : memref<144xf32, #tpu.memory_space<smem>>
    %931 = vector.broadcast %930 : f32 to vector<2x8x8xf32>
    %932 = arith.mulf %931, %917 : vector<2x8x8xf32>
    %933 = arith.addf %916, %932 : vector<2x8x8xf32>
    %c1_122 = arith.constant 1 : index
    %c0_123 = arith.constant 0 : index
    %c2_124 = arith.constant 2 : index
    %c0_125 = arith.constant 0 : index
    %c0_126 = arith.constant 0 : index
    %934 = vector.load %arg2[%c1_122, %c0_123, %c2_124, %c0_125, %c0_126] : memref<2x2x4x10x10xf32, #tpu.memory_space<vmem>>, vector<1x2x1x10x10xf32>
    %935 = vector.shape_cast %934 : vector<1x2x1x10x10xf32> to vector<2x10x10xf32>
    %936 = vector.extract_strided_slice %935 {offsets = [0, 0, 0], sizes = [2, 8, 8], strides = [1, 1, 1]} : vector<2x10x10xf32> to vector<2x8x8xf32>
    %c18_127 = arith.constant 18 : index
    %937 = memref.load %arg1[%c18_127] : memref<144xf32, #tpu.memory_space<smem>>
    %938 = vector.broadcast %937 : f32 to vector<2x8x8xf32>
    %939 = arith.mulf %938, %936 : vector<2x8x8xf32>
    %940 = arith.addf %921, %939 : vector<2x8x8xf32>
    %c54_128 = arith.constant 54 : index
    %941 = memref.load %arg1[%c54_128] : memref<144xf32, #tpu.memory_space<smem>>
    %942 = vector.broadcast %941 : f32 to vector<2x8x8xf32>
    %943 = arith.mulf %942, %936 : vector<2x8x8xf32>
    %944 = arith.addf %925, %943 : vector<2x8x8xf32>
    %c90_129 = arith.constant 90 : index
    %945 = memref.load %arg1[%c90_129] : memref<144xf32, #tpu.memory_space<smem>>
    %946 = vector.broadcast %945 : f32 to vector<2x8x8xf32>
    %947 = arith.mulf %946, %936 : vector<2x8x8xf32>
    %948 = arith.addf %929, %947 : vector<2x8x8xf32>
    %c126_130 = arith.constant 126 : index
    %949 = memref.load %arg1[%c126_130] : memref<144xf32, #tpu.memory_space<smem>>
    %950 = vector.broadcast %949 : f32 to vector<2x8x8xf32>
    %951 = arith.mulf %950, %936 : vector<2x8x8xf32>
    %952 = arith.addf %933, %951 : vector<2x8x8xf32>
    %953 = vector.extract_strided_slice %935 {offsets = [0, 0, 1], sizes = [2, 8, 8], strides = [1, 1, 1]} : vector<2x10x10xf32> to vector<2x8x8xf32>
    %c19_131 = arith.constant 19 : index
    %954 = memref.load %arg1[%c19_131] : memref<144xf32, #tpu.memory_space<smem>>
    %955 = vector.broadcast %954 : f32 to vector<2x8x8xf32>
    %956 = arith.mulf %955, %953 : vector<2x8x8xf32>
    %957 = arith.addf %940, %956 : vector<2x8x8xf32>
    %c55_132 = arith.constant 55 : index
    %958 = memref.load %arg1[%c55_132] : memref<144xf32, #tpu.memory_space<smem>>
    %959 = vector.broadcast %958 : f32 to vector<2x8x8xf32>
    %960 = arith.mulf %959, %953 : vector<2x8x8xf32>
    %961 = arith.addf %944, %960 : vector<2x8x8xf32>
    %c91_133 = arith.constant 91 : index
    %962 = memref.load %arg1[%c91_133] : memref<144xf32, #tpu.memory_space<smem>>
    %963 = vector.broadcast %962 : f32 to vector<2x8x8xf32>
    %964 = arith.mulf %963, %953 : vector<2x8x8xf32>
    %965 = arith.addf %948, %964 : vector<2x8x8xf32>
    %c127_134 = arith.constant 127 : index
    %966 = memref.load %arg1[%c127_134] : memref<144xf32, #tpu.memory_space<smem>>
    %967 = vector.broadcast %966 : f32 to vector<2x8x8xf32>
    %968 = arith.mulf %967, %953 : vector<2x8x8xf32>
    %969 = arith.addf %952, %968 : vector<2x8x8xf32>
    %970 = vector.extract_strided_slice %935 {offsets = [0, 0, 2], sizes = [2, 8, 8], strides = [1, 1, 1]} : vector<2x10x10xf32> to vector<2x8x8xf32>
    %c20_135 = arith.constant 20 : index
    %971 = memref.load %arg1[%c20_135] : memref<144xf32, #tpu.memory_space<smem>>
    %972 = vector.broadcast %971 : f32 to vector<2x8x8xf32>
    %973 = arith.mulf %972, %970 : vector<2x8x8xf32>
    %974 = arith.addf %957, %973 : vector<2x8x8xf32>
    %c56_136 = arith.constant 56 : index
    %975 = memref.load %arg1[%c56_136] : memref<144xf32, #tpu.memory_space<smem>>
    %976 = vector.broadcast %975 : f32 to vector<2x8x8xf32>
    %977 = arith.mulf %976, %970 : vector<2x8x8xf32>
    %978 = arith.addf %961, %977 : vector<2x8x8xf32>
    %c92_137 = arith.constant 92 : index
    %979 = memref.load %arg1[%c92_137] : memref<144xf32, #tpu.memory_space<smem>>
    %980 = vector.broadcast %979 : f32 to vector<2x8x8xf32>
    %981 = arith.mulf %980, %970 : vector<2x8x8xf32>
    %982 = arith.addf %965, %981 : vector<2x8x8xf32>
    %c128_138 = arith.constant 128 : index
    %983 = memref.load %arg1[%c128_138] : memref<144xf32, #tpu.memory_space<smem>>
    %984 = vector.broadcast %983 : f32 to vector<2x8x8xf32>
    %985 = arith.mulf %984, %970 : vector<2x8x8xf32>
    %986 = arith.addf %969, %985 : vector<2x8x8xf32>
    %987 = vector.extract_strided_slice %935 {offsets = [0, 1, 0], sizes = [2, 8, 8], strides = [1, 1, 1]} : vector<2x10x10xf32> to vector<2x8x8xf32>
    %c21_139 = arith.constant 21 : index
    %988 = memref.load %arg1[%c21_139] : memref<144xf32, #tpu.memory_space<smem>>
    %989 = vector.broadcast %988 : f32 to vector<2x8x8xf32>
    %990 = arith.mulf %989, %987 : vector<2x8x8xf32>
    %991 = arith.addf %974, %990 : vector<2x8x8xf32>
    %c57_140 = arith.constant 57 : index
    %992 = memref.load %arg1[%c57_140] : memref<144xf32, #tpu.memory_space<smem>>
    %993 = vector.broadcast %992 : f32 to vector<2x8x8xf32>
    %994 = arith.mulf %993, %987 : vector<2x8x8xf32>
    %995 = arith.addf %978, %994 : vector<2x8x8xf32>
    %c93_141 = arith.constant 93 : index
    %996 = memref.load %arg1[%c93_141] : memref<144xf32, #tpu.memory_space<smem>>
    %997 = vector.broadcast %996 : f32 to vector<2x8x8xf32>
    %998 = arith.mulf %997, %987 : vector<2x8x8xf32>
    %999 = arith.addf %982, %998 : vector<2x8x8xf32>
    %c129_142 = arith.constant 129 : index
    %1000 = memref.load %arg1[%c129_142] : memref<144xf32, #tpu.memory_space<smem>>
    %1001 = vector.broadcast %1000 : f32 to vector<2x8x8xf32>
    %1002 = arith.mulf %1001, %987 : vector<2x8x8xf32>
    %1003 = arith.addf %986, %1002 : vector<2x8x8xf32>
    %1004 = vector.extract_strided_slice %935 {offsets = [0, 1, 1], sizes = [2, 8, 8], strides = [1, 1, 1]} : vector<2x10x10xf32> to vector<2x8x8xf32>
    %c22_143 = arith.constant 22 : index
    %1005 = memref.load %arg1[%c22_143] : memref<144xf32, #tpu.memory_space<smem>>
    %1006 = vector.broadcast %1005 : f32 to vector<2x8x8xf32>
    %1007 = arith.mulf %1006, %1004 : vector<2x8x8xf32>
    %1008 = arith.addf %991, %1007 : vector<2x8x8xf32>
    %c58_144 = arith.constant 58 : index
    %1009 = memref.load %arg1[%c58_144] : memref<144xf32, #tpu.memory_space<smem>>
    %1010 = vector.broadcast %1009 : f32 to vector<2x8x8xf32>
    %1011 = arith.mulf %1010, %1004 : vector<2x8x8xf32>
    %1012 = arith.addf %995, %1011 : vector<2x8x8xf32>
    %c94_145 = arith.constant 94 : index
    %1013 = memref.load %arg1[%c94_145] : memref<144xf32, #tpu.memory_space<smem>>
    %1014 = vector.broadcast %1013 : f32 to vector<2x8x8xf32>
    %1015 = arith.mulf %1014, %1004 : vector<2x8x8xf32>
    %1016 = arith.addf %999, %1015 : vector<2x8x8xf32>
    %c130_146 = arith.constant 130 : index
    %1017 = memref.load %arg1[%c130_146] : memref<144xf32, #tpu.memory_space<smem>>
    %1018 = vector.broadcast %1017 : f32 to vector<2x8x8xf32>
    %1019 = arith.mulf %1018, %1004 : vector<2x8x8xf32>
    %1020 = arith.addf %1003, %1019 : vector<2x8x8xf32>
    %1021 = vector.extract_strided_slice %935 {offsets = [0, 1, 2], sizes = [2, 8, 8], strides = [1, 1, 1]} : vector<2x10x10xf32> to vector<2x8x8xf32>
    %c23_147 = arith.constant 23 : index
    %1022 = memref.load %arg1[%c23_147] : memref<144xf32, #tpu.memory_space<smem>>
    %1023 = vector.broadcast %1022 : f32 to vector<2x8x8xf32>
    %1024 = arith.mulf %1023, %1021 : vector<2x8x8xf32>
    %1025 = arith.addf %1008, %1024 : vector<2x8x8xf32>
    %c59_148 = arith.constant 59 : index
    %1026 = memref.load %arg1[%c59_148] : memref<144xf32, #tpu.memory_space<smem>>
    %1027 = vector.broadcast %1026 : f32 to vector<2x8x8xf32>
    %1028 = arith.mulf %1027, %1021 : vector<2x8x8xf32>
    %1029 = arith.addf %1012, %1028 : vector<2x8x8xf32>
    %c95_149 = arith.constant 95 : index
    %1030 = memref.load %arg1[%c95_149] : memref<144xf32, #tpu.memory_space<smem>>
    %1031 = vector.broadcast %1030 : f32 to vector<2x8x8xf32>
    %1032 = arith.mulf %1031, %1021 : vector<2x8x8xf32>
    %1033 = arith.addf %1016, %1032 : vector<2x8x8xf32>
    %c131_150 = arith.constant 131 : index
    %1034 = memref.load %arg1[%c131_150] : memref<144xf32, #tpu.memory_space<smem>>
    %1035 = vector.broadcast %1034 : f32 to vector<2x8x8xf32>
    %1036 = arith.mulf %1035, %1021 : vector<2x8x8xf32>
    %1037 = arith.addf %1020, %1036 : vector<2x8x8xf32>
    %1038 = vector.extract_strided_slice %935 {offsets = [0, 2, 0], sizes = [2, 8, 8], strides = [1, 1, 1]} : vector<2x10x10xf32> to vector<2x8x8xf32>
    %c24_151 = arith.constant 24 : index
    %1039 = memref.load %arg1[%c24_151] : memref<144xf32, #tpu.memory_space<smem>>
    %1040 = vector.broadcast %1039 : f32 to vector<2x8x8xf32>
    %1041 = arith.mulf %1040, %1038 : vector<2x8x8xf32>
    %1042 = arith.addf %1025, %1041 : vector<2x8x8xf32>
    %c60_152 = arith.constant 60 : index
    %1043 = memref.load %arg1[%c60_152] : memref<144xf32, #tpu.memory_space<smem>>
    %1044 = vector.broadcast %1043 : f32 to vector<2x8x8xf32>
    %1045 = arith.mulf %1044, %1038 : vector<2x8x8xf32>
    %1046 = arith.addf %1029, %1045 : vector<2x8x8xf32>
    %c96_153 = arith.constant 96 : index
    %1047 = memref.load %arg1[%c96_153] : memref<144xf32, #tpu.memory_space<smem>>
    %1048 = vector.broadcast %1047 : f32 to vector<2x8x8xf32>
    %1049 = arith.mulf %1048, %1038 : vector<2x8x8xf32>
    %1050 = arith.addf %1033, %1049 : vector<2x8x8xf32>
    %c132_154 = arith.constant 132 : index
    %1051 = memref.load %arg1[%c132_154] : memref<144xf32, #tpu.memory_space<smem>>
    %1052 = vector.broadcast %1051 : f32 to vector<2x8x8xf32>
    %1053 = arith.mulf %1052, %1038 : vector<2x8x8xf32>
    %1054 = arith.addf %1037, %1053 : vector<2x8x8xf32>
    %1055 = vector.extract_strided_slice %935 {offsets = [0, 2, 1], sizes = [2, 8, 8], strides = [1, 1, 1]} : vector<2x10x10xf32> to vector<2x8x8xf32>
    %c25_155 = arith.constant 25 : index
    %1056 = memref.load %arg1[%c25_155] : memref<144xf32, #tpu.memory_space<smem>>
    %1057 = vector.broadcast %1056 : f32 to vector<2x8x8xf32>
    %1058 = arith.mulf %1057, %1055 : vector<2x8x8xf32>
    %1059 = arith.addf %1042, %1058 : vector<2x8x8xf32>
    %c61_156 = arith.constant 61 : index
    %1060 = memref.load %arg1[%c61_156] : memref<144xf32, #tpu.memory_space<smem>>
    %1061 = vector.broadcast %1060 : f32 to vector<2x8x8xf32>
    %1062 = arith.mulf %1061, %1055 : vector<2x8x8xf32>
    %1063 = arith.addf %1046, %1062 : vector<2x8x8xf32>
    %c97_157 = arith.constant 97 : index
    %1064 = memref.load %arg1[%c97_157] : memref<144xf32, #tpu.memory_space<smem>>
    %1065 = vector.broadcast %1064 : f32 to vector<2x8x8xf32>
    %1066 = arith.mulf %1065, %1055 : vector<2x8x8xf32>
    %1067 = arith.addf %1050, %1066 : vector<2x8x8xf32>
    %c133_158 = arith.constant 133 : index
    %1068 = memref.load %arg1[%c133_158] : memref<144xf32, #tpu.memory_space<smem>>
    %1069 = vector.broadcast %1068 : f32 to vector<2x8x8xf32>
    %1070 = arith.mulf %1069, %1055 : vector<2x8x8xf32>
    %1071 = arith.addf %1054, %1070 : vector<2x8x8xf32>
    %1072 = vector.extract_strided_slice %935 {offsets = [0, 2, 2], sizes = [2, 8, 8], strides = [1, 1, 1]} : vector<2x10x10xf32> to vector<2x8x8xf32>
    %c26_159 = arith.constant 26 : index
    %1073 = memref.load %arg1[%c26_159] : memref<144xf32, #tpu.memory_space<smem>>
    %1074 = vector.broadcast %1073 : f32 to vector<2x8x8xf32>
    %1075 = arith.mulf %1074, %1072 : vector<2x8x8xf32>
    %1076 = arith.addf %1059, %1075 : vector<2x8x8xf32>
    %c62_160 = arith.constant 62 : index
    %1077 = memref.load %arg1[%c62_160] : memref<144xf32, #tpu.memory_space<smem>>
    %1078 = vector.broadcast %1077 : f32 to vector<2x8x8xf32>
    %1079 = arith.mulf %1078, %1072 : vector<2x8x8xf32>
    %1080 = arith.addf %1063, %1079 : vector<2x8x8xf32>
    %c98_161 = arith.constant 98 : index
    %1081 = memref.load %arg1[%c98_161] : memref<144xf32, #tpu.memory_space<smem>>
    %1082 = vector.broadcast %1081 : f32 to vector<2x8x8xf32>
    %1083 = arith.mulf %1082, %1072 : vector<2x8x8xf32>
    %1084 = arith.addf %1067, %1083 : vector<2x8x8xf32>
    %c134_162 = arith.constant 134 : index
    %1085 = memref.load %arg1[%c134_162] : memref<144xf32, #tpu.memory_space<smem>>
    %1086 = vector.broadcast %1085 : f32 to vector<2x8x8xf32>
    %1087 = arith.mulf %1086, %1072 : vector<2x8x8xf32>
    %1088 = arith.addf %1071, %1087 : vector<2x8x8xf32>
    %c1_163 = arith.constant 1 : index
    %c0_164 = arith.constant 0 : index
    %c3_165 = arith.constant 3 : index
    %c0_166 = arith.constant 0 : index
    %c0_167 = arith.constant 0 : index
    %1089 = vector.load %arg2[%c1_163, %c0_164, %c3_165, %c0_166, %c0_167] : memref<2x2x4x10x10xf32, #tpu.memory_space<vmem>>, vector<1x2x1x10x10xf32>
    %1090 = vector.shape_cast %1089 : vector<1x2x1x10x10xf32> to vector<2x10x10xf32>
    %1091 = vector.extract_strided_slice %1090 {offsets = [0, 0, 0], sizes = [2, 8, 8], strides = [1, 1, 1]} : vector<2x10x10xf32> to vector<2x8x8xf32>
    %c27_168 = arith.constant 27 : index
    %1092 = memref.load %arg1[%c27_168] : memref<144xf32, #tpu.memory_space<smem>>
    %1093 = vector.broadcast %1092 : f32 to vector<2x8x8xf32>
    %1094 = arith.mulf %1093, %1091 : vector<2x8x8xf32>
    %1095 = arith.addf %1076, %1094 : vector<2x8x8xf32>
    %c63_169 = arith.constant 63 : index
    %1096 = memref.load %arg1[%c63_169] : memref<144xf32, #tpu.memory_space<smem>>
    %1097 = vector.broadcast %1096 : f32 to vector<2x8x8xf32>
    %1098 = arith.mulf %1097, %1091 : vector<2x8x8xf32>
    %1099 = arith.addf %1080, %1098 : vector<2x8x8xf32>
    %c99_170 = arith.constant 99 : index
    %1100 = memref.load %arg1[%c99_170] : memref<144xf32, #tpu.memory_space<smem>>
    %1101 = vector.broadcast %1100 : f32 to vector<2x8x8xf32>
    %1102 = arith.mulf %1101, %1091 : vector<2x8x8xf32>
    %1103 = arith.addf %1084, %1102 : vector<2x8x8xf32>
    %c135_171 = arith.constant 135 : index
    %1104 = memref.load %arg1[%c135_171] : memref<144xf32, #tpu.memory_space<smem>>
    %1105 = vector.broadcast %1104 : f32 to vector<2x8x8xf32>
    %1106 = arith.mulf %1105, %1091 : vector<2x8x8xf32>
    %1107 = arith.addf %1088, %1106 : vector<2x8x8xf32>
    %1108 = vector.extract_strided_slice %1090 {offsets = [0, 0, 1], sizes = [2, 8, 8], strides = [1, 1, 1]} : vector<2x10x10xf32> to vector<2x8x8xf32>
    %c28_172 = arith.constant 28 : index
    %1109 = memref.load %arg1[%c28_172] : memref<144xf32, #tpu.memory_space<smem>>
    %1110 = vector.broadcast %1109 : f32 to vector<2x8x8xf32>
    %1111 = arith.mulf %1110, %1108 : vector<2x8x8xf32>
    %1112 = arith.addf %1095, %1111 : vector<2x8x8xf32>
    %c64_173 = arith.constant 64 : index
    %1113 = memref.load %arg1[%c64_173] : memref<144xf32, #tpu.memory_space<smem>>
    %1114 = vector.broadcast %1113 : f32 to vector<2x8x8xf32>
    %1115 = arith.mulf %1114, %1108 : vector<2x8x8xf32>
    %1116 = arith.addf %1099, %1115 : vector<2x8x8xf32>
    %c100_174 = arith.constant 100 : index
    %1117 = memref.load %arg1[%c100_174] : memref<144xf32, #tpu.memory_space<smem>>
    %1118 = vector.broadcast %1117 : f32 to vector<2x8x8xf32>
    %1119 = arith.mulf %1118, %1108 : vector<2x8x8xf32>
    %1120 = arith.addf %1103, %1119 : vector<2x8x8xf32>
    %c136_175 = arith.constant 136 : index
    %1121 = memref.load %arg1[%c136_175] : memref<144xf32, #tpu.memory_space<smem>>
    %1122 = vector.broadcast %1121 : f32 to vector<2x8x8xf32>
    %1123 = arith.mulf %1122, %1108 : vector<2x8x8xf32>
    %1124 = arith.addf %1107, %1123 : vector<2x8x8xf32>
    %1125 = vector.extract_strided_slice %1090 {offsets = [0, 0, 2], sizes = [2, 8, 8], strides = [1, 1, 1]} : vector<2x10x10xf32> to vector<2x8x8xf32>
    %c29_176 = arith.constant 29 : index
    %1126 = memref.load %arg1[%c29_176] : memref<144xf32, #tpu.memory_space<smem>>
    %1127 = vector.broadcast %1126 : f32 to vector<2x8x8xf32>
    %1128 = arith.mulf %1127, %1125 : vector<2x8x8xf32>
    %1129 = arith.addf %1112, %1128 : vector<2x8x8xf32>
    %c65_177 = arith.constant 65 : index
    %1130 = memref.load %arg1[%c65_177] : memref<144xf32, #tpu.memory_space<smem>>
    %1131 = vector.broadcast %1130 : f32 to vector<2x8x8xf32>
    %1132 = arith.mulf %1131, %1125 : vector<2x8x8xf32>
    %1133 = arith.addf %1116, %1132 : vector<2x8x8xf32>
    %c101_178 = arith.constant 101 : index
    %1134 = memref.load %arg1[%c101_178] : memref<144xf32, #tpu.memory_space<smem>>
    %1135 = vector.broadcast %1134 : f32 to vector<2x8x8xf32>
    %1136 = arith.mulf %1135, %1125 : vector<2x8x8xf32>
    %1137 = arith.addf %1120, %1136 : vector<2x8x8xf32>
    %c137_179 = arith.constant 137 : index
    %1138 = memref.load %arg1[%c137_179] : memref<144xf32, #tpu.memory_space<smem>>
    %1139 = vector.broadcast %1138 : f32 to vector<2x8x8xf32>
    %1140 = arith.mulf %1139, %1125 : vector<2x8x8xf32>
    %1141 = arith.addf %1124, %1140 : vector<2x8x8xf32>
    %1142 = vector.extract_strided_slice %1090 {offsets = [0, 1, 0], sizes = [2, 8, 8], strides = [1, 1, 1]} : vector<2x10x10xf32> to vector<2x8x8xf32>
    %c30_180 = arith.constant 30 : index
    %1143 = memref.load %arg1[%c30_180] : memref<144xf32, #tpu.memory_space<smem>>
    %1144 = vector.broadcast %1143 : f32 to vector<2x8x8xf32>
    %1145 = arith.mulf %1144, %1142 : vector<2x8x8xf32>
    %1146 = arith.addf %1129, %1145 : vector<2x8x8xf32>
    %c66_181 = arith.constant 66 : index
    %1147 = memref.load %arg1[%c66_181] : memref<144xf32, #tpu.memory_space<smem>>
    %1148 = vector.broadcast %1147 : f32 to vector<2x8x8xf32>
    %1149 = arith.mulf %1148, %1142 : vector<2x8x8xf32>
    %1150 = arith.addf %1133, %1149 : vector<2x8x8xf32>
    %c102_182 = arith.constant 102 : index
    %1151 = memref.load %arg1[%c102_182] : memref<144xf32, #tpu.memory_space<smem>>
    %1152 = vector.broadcast %1151 : f32 to vector<2x8x8xf32>
    %1153 = arith.mulf %1152, %1142 : vector<2x8x8xf32>
    %1154 = arith.addf %1137, %1153 : vector<2x8x8xf32>
    %c138_183 = arith.constant 138 : index
    %1155 = memref.load %arg1[%c138_183] : memref<144xf32, #tpu.memory_space<smem>>
    %1156 = vector.broadcast %1155 : f32 to vector<2x8x8xf32>
    %1157 = arith.mulf %1156, %1142 : vector<2x8x8xf32>
    %1158 = arith.addf %1141, %1157 : vector<2x8x8xf32>
    %1159 = vector.extract_strided_slice %1090 {offsets = [0, 1, 1], sizes = [2, 8, 8], strides = [1, 1, 1]} : vector<2x10x10xf32> to vector<2x8x8xf32>
    %c31_184 = arith.constant 31 : index
    %1160 = memref.load %arg1[%c31_184] : memref<144xf32, #tpu.memory_space<smem>>
    %1161 = vector.broadcast %1160 : f32 to vector<2x8x8xf32>
    %1162 = arith.mulf %1161, %1159 : vector<2x8x8xf32>
    %1163 = arith.addf %1146, %1162 : vector<2x8x8xf32>
    %c67_185 = arith.constant 67 : index
    %1164 = memref.load %arg1[%c67_185] : memref<144xf32, #tpu.memory_space<smem>>
    %1165 = vector.broadcast %1164 : f32 to vector<2x8x8xf32>
    %1166 = arith.mulf %1165, %1159 : vector<2x8x8xf32>
    %1167 = arith.addf %1150, %1166 : vector<2x8x8xf32>
    %c103_186 = arith.constant 103 : index
    %1168 = memref.load %arg1[%c103_186] : memref<144xf32, #tpu.memory_space<smem>>
    %1169 = vector.broadcast %1168 : f32 to vector<2x8x8xf32>
    %1170 = arith.mulf %1169, %1159 : vector<2x8x8xf32>
    %1171 = arith.addf %1154, %1170 : vector<2x8x8xf32>
    %c139_187 = arith.constant 139 : index
    %1172 = memref.load %arg1[%c139_187] : memref<144xf32, #tpu.memory_space<smem>>
    %1173 = vector.broadcast %1172 : f32 to vector<2x8x8xf32>
    %1174 = arith.mulf %1173, %1159 : vector<2x8x8xf32>
    %1175 = arith.addf %1158, %1174 : vector<2x8x8xf32>
    %1176 = vector.extract_strided_slice %1090 {offsets = [0, 1, 2], sizes = [2, 8, 8], strides = [1, 1, 1]} : vector<2x10x10xf32> to vector<2x8x8xf32>
    %c32_188 = arith.constant 32 : index
    %1177 = memref.load %arg1[%c32_188] : memref<144xf32, #tpu.memory_space<smem>>
    %1178 = vector.broadcast %1177 : f32 to vector<2x8x8xf32>
    %1179 = arith.mulf %1178, %1176 : vector<2x8x8xf32>
    %1180 = arith.addf %1163, %1179 : vector<2x8x8xf32>
    %c68_189 = arith.constant 68 : index
    %1181 = memref.load %arg1[%c68_189] : memref<144xf32, #tpu.memory_space<smem>>
    %1182 = vector.broadcast %1181 : f32 to vector<2x8x8xf32>
    %1183 = arith.mulf %1182, %1176 : vector<2x8x8xf32>
    %1184 = arith.addf %1167, %1183 : vector<2x8x8xf32>
    %c104_190 = arith.constant 104 : index
    %1185 = memref.load %arg1[%c104_190] : memref<144xf32, #tpu.memory_space<smem>>
    %1186 = vector.broadcast %1185 : f32 to vector<2x8x8xf32>
    %1187 = arith.mulf %1186, %1176 : vector<2x8x8xf32>
    %1188 = arith.addf %1171, %1187 : vector<2x8x8xf32>
    %c140_191 = arith.constant 140 : index
    %1189 = memref.load %arg1[%c140_191] : memref<144xf32, #tpu.memory_space<smem>>
    %1190 = vector.broadcast %1189 : f32 to vector<2x8x8xf32>
    %1191 = arith.mulf %1190, %1176 : vector<2x8x8xf32>
    %1192 = arith.addf %1175, %1191 : vector<2x8x8xf32>
    %1193 = vector.extract_strided_slice %1090 {offsets = [0, 2, 0], sizes = [2, 8, 8], strides = [1, 1, 1]} : vector<2x10x10xf32> to vector<2x8x8xf32>
    %c33_192 = arith.constant 33 : index
    %1194 = memref.load %arg1[%c33_192] : memref<144xf32, #tpu.memory_space<smem>>
    %1195 = vector.broadcast %1194 : f32 to vector<2x8x8xf32>
    %1196 = arith.mulf %1195, %1193 : vector<2x8x8xf32>
    %1197 = arith.addf %1180, %1196 : vector<2x8x8xf32>
    %c69_193 = arith.constant 69 : index
    %1198 = memref.load %arg1[%c69_193] : memref<144xf32, #tpu.memory_space<smem>>
    %1199 = vector.broadcast %1198 : f32 to vector<2x8x8xf32>
    %1200 = arith.mulf %1199, %1193 : vector<2x8x8xf32>
    %1201 = arith.addf %1184, %1200 : vector<2x8x8xf32>
    %c105_194 = arith.constant 105 : index
    %1202 = memref.load %arg1[%c105_194] : memref<144xf32, #tpu.memory_space<smem>>
    %1203 = vector.broadcast %1202 : f32 to vector<2x8x8xf32>
    %1204 = arith.mulf %1203, %1193 : vector<2x8x8xf32>
    %1205 = arith.addf %1188, %1204 : vector<2x8x8xf32>
    %c141_195 = arith.constant 141 : index
    %1206 = memref.load %arg1[%c141_195] : memref<144xf32, #tpu.memory_space<smem>>
    %1207 = vector.broadcast %1206 : f32 to vector<2x8x8xf32>
    %1208 = arith.mulf %1207, %1193 : vector<2x8x8xf32>
    %1209 = arith.addf %1192, %1208 : vector<2x8x8xf32>
    %1210 = vector.extract_strided_slice %1090 {offsets = [0, 2, 1], sizes = [2, 8, 8], strides = [1, 1, 1]} : vector<2x10x10xf32> to vector<2x8x8xf32>
    %c34_196 = arith.constant 34 : index
    %1211 = memref.load %arg1[%c34_196] : memref<144xf32, #tpu.memory_space<smem>>
    %1212 = vector.broadcast %1211 : f32 to vector<2x8x8xf32>
    %1213 = arith.mulf %1212, %1210 : vector<2x8x8xf32>
    %1214 = arith.addf %1197, %1213 : vector<2x8x8xf32>
    %c70_197 = arith.constant 70 : index
    %1215 = memref.load %arg1[%c70_197] : memref<144xf32, #tpu.memory_space<smem>>
    %1216 = vector.broadcast %1215 : f32 to vector<2x8x8xf32>
    %1217 = arith.mulf %1216, %1210 : vector<2x8x8xf32>
    %1218 = arith.addf %1201, %1217 : vector<2x8x8xf32>
    %c106_198 = arith.constant 106 : index
    %1219 = memref.load %arg1[%c106_198] : memref<144xf32, #tpu.memory_space<smem>>
    %1220 = vector.broadcast %1219 : f32 to vector<2x8x8xf32>
    %1221 = arith.mulf %1220, %1210 : vector<2x8x8xf32>
    %1222 = arith.addf %1205, %1221 : vector<2x8x8xf32>
    %c142_199 = arith.constant 142 : index
    %1223 = memref.load %arg1[%c142_199] : memref<144xf32, #tpu.memory_space<smem>>
    %1224 = vector.broadcast %1223 : f32 to vector<2x8x8xf32>
    %1225 = arith.mulf %1224, %1210 : vector<2x8x8xf32>
    %1226 = arith.addf %1209, %1225 : vector<2x8x8xf32>
    %1227 = vector.extract_strided_slice %1090 {offsets = [0, 2, 2], sizes = [2, 8, 8], strides = [1, 1, 1]} : vector<2x10x10xf32> to vector<2x8x8xf32>
    %c35_200 = arith.constant 35 : index
    %1228 = memref.load %arg1[%c35_200] : memref<144xf32, #tpu.memory_space<smem>>
    %1229 = vector.broadcast %1228 : f32 to vector<2x8x8xf32>
    %1230 = arith.mulf %1229, %1227 : vector<2x8x8xf32>
    %1231 = arith.addf %1214, %1230 : vector<2x8x8xf32>
    %c71_201 = arith.constant 71 : index
    %1232 = memref.load %arg1[%c71_201] : memref<144xf32, #tpu.memory_space<smem>>
    %1233 = vector.broadcast %1232 : f32 to vector<2x8x8xf32>
    %1234 = arith.mulf %1233, %1227 : vector<2x8x8xf32>
    %1235 = arith.addf %1218, %1234 : vector<2x8x8xf32>
    %c107_202 = arith.constant 107 : index
    %1236 = memref.load %arg1[%c107_202] : memref<144xf32, #tpu.memory_space<smem>>
    %1237 = vector.broadcast %1236 : f32 to vector<2x8x8xf32>
    %1238 = arith.mulf %1237, %1227 : vector<2x8x8xf32>
    %1239 = arith.addf %1222, %1238 : vector<2x8x8xf32>
    %c143_203 = arith.constant 143 : index
    %1240 = memref.load %arg1[%c143_203] : memref<144xf32, #tpu.memory_space<smem>>
    %1241 = vector.broadcast %1240 : f32 to vector<2x8x8xf32>
    %1242 = arith.mulf %1241, %1227 : vector<2x8x8xf32>
    %1243 = arith.addf %1226, %1242 : vector<2x8x8xf32>
    %c0_204 = arith.constant 0 : index
    %c4_205 = arith.constant 4 : index
    %c0_206 = arith.constant 0 : index
    %c0_207 = arith.constant 0 : index
    %c0_208 = arith.constant 0 : index
    %1244 = vector.load %arg3[%c0_204, %c4_205, %c0_206, %c0_207, %c0_208] : memref<1x8x2x8x8xf32, #tpu.memory_space<vmem>>, vector<1x1x2x8x8xf32>
    %1245 = vector.shape_cast %1244 : vector<1x1x2x8x8xf32> to vector<2x8x8xf32>
    %1246 = vector.shape_cast %1231 : vector<2x8x8xf32> to vector<1x1x2x8x8xf32>
    tpu.vector_store %arg3[%c0_204, %c4_205, %c0_206, %c0_207, %c0_208], %1246 {strides = array<i32>} : memref<1x8x2x8x8xf32, #tpu.memory_space<vmem>>, vector<1x1x2x8x8xf32>,
    %c0_209 = arith.constant 0 : index
    %c5_210 = arith.constant 5 : index
    %c0_211 = arith.constant 0 : index
    %c0_212 = arith.constant 0 : index
    %c0_213 = arith.constant 0 : index
    %1247 = vector.load %arg3[%c0_209, %c5_210, %c0_211, %c0_212, %c0_213] : memref<1x8x2x8x8xf32, #tpu.memory_space<vmem>>, vector<1x1x2x8x8xf32>
    %1248 = vector.shape_cast %1247 : vector<1x1x2x8x8xf32> to vector<2x8x8xf32>
    %1249 = vector.shape_cast %1235 : vector<2x8x8xf32> to vector<1x1x2x8x8xf32>
    tpu.vector_store %arg3[%c0_209, %c5_210, %c0_211, %c0_212, %c0_213], %1249 {strides = array<i32>} : memref<1x8x2x8x8xf32, #tpu.memory_space<vmem>>, vector<1x1x2x8x8xf32>,
    %c0_214 = arith.constant 0 : index
    %c6_215 = arith.constant 6 : index
    %c0_216 = arith.constant 0 : index
    %c0_217 = arith.constant 0 : index
    %c0_218 = arith.constant 0 : index
    %1250 = vector.load %arg3[%c0_214, %c6_215, %c0_216, %c0_217, %c0_218] : memref<1x8x2x8x8xf32, #tpu.memory_space<vmem>>, vector<1x1x2x8x8xf32>
    %1251 = vector.shape_cast %1250 : vector<1x1x2x8x8xf32> to vector<2x8x8xf32>
    %1252 = vector.shape_cast %1239 : vector<2x8x8xf32> to vector<1x1x2x8x8xf32>
    tpu.vector_store %arg3[%c0_214, %c6_215, %c0_216, %c0_217, %c0_218], %1252 {strides = array<i32>} : memref<1x8x2x8x8xf32, #tpu.memory_space<vmem>>, vector<1x1x2x8x8xf32>,
    %c0_219 = arith.constant 0 : index
    %c7_220 = arith.constant 7 : index
    %c0_221 = arith.constant 0 : index
    %c0_222 = arith.constant 0 : index
    %c0_223 = arith.constant 0 : index
    %1253 = vector.load %arg3[%c0_219, %c7_220, %c0_221, %c0_222, %c0_223] : memref<1x8x2x8x8xf32, #tpu.memory_space<vmem>>, vector<1x1x2x8x8xf32>
    %1254 = vector.shape_cast %1253 : vector<1x1x2x8x8xf32> to vector<2x8x8xf32>
    %1255 = vector.shape_cast %1243 : vector<2x8x8xf32> to vector<1x1x2x8x8xf32>
    tpu.vector_store %arg3[%c0_219, %c7_220, %c0_221, %c0_222, %c0_223], %1255 {strides = array<i32>} : memref<1x8x2x8x8xf32, #tpu.memory_space<vmem>>, vector<1x1x2x8x8xf32>,
    return
  }
  func.func @transform_0(%arg0: i32) -> i32 {
    %c0_i32 = arith.constant 0 : i32
    %c0_i32_0 = arith.constant 0 : i32
    return %c0_i32 : i32
  }
  func.func @transform_1(%arg0: i32) -> (i32, i32, i32, i32, i32) {
    %c0_i32 = arith.constant 0 : i32
    %c0_i32_0 = arith.constant 0 : i32
    %c0_i32_1 = arith.constant 0 : i32
    %c0_i32_2 = arith.constant 0 : i32
    %c0_i32_3 = arith.constant 0 : i32
    return %arg0, %c0_i32, %c0_i32_0, %c0_i32_1, %c0_i32_2 : i32, i32, i32, i32, i32
  }
  func.func @transform_2(%arg0: i32) -> (i32, i32, i32, i32, i32) {
    %c0_i32 = arith.constant 0 : i32
    %c0_i32_0 = arith.constant 0 : i32
    %c0_i32_1 = arith.constant 0 : i32
    %c0_i32_2 = arith.constant 0 : i32
    %c0_i32_3 = arith.constant 0 : i32
    return %arg0, %c0_i32, %c0_i32_0, %c0_i32_1, %c0_i32_2 : i32, i32, i32, i32, i32
  }
}

</mosaic_0001>

<bundles_post_ra>
// kernel: recon_block_forward.1
= control target key start
LH: loop header
LB: loop body
LE: loop exit
PB: predicated region body
PF: predicated region fallthrough
CT: control target
= control target key end

     0   :  { %7 = vsyncpa [#allocation3], 0  ;;  %s6164_s9 = smov 0   ;;  %s10366_s0 = inlined_call_operand.vmem [shape: f32[144], index: 0, kind: input, shape index: {}]   ;;  %s10367_s1 = inlined_call_operand.vmem [shape: f32[4,2,4,10,10], index: 1, kind: input, shape index: {}]   ;;  %s10368_s2 = inlined_call_operand.vmem [shape: f32[2,8,2,8,8], index: 2, kind: output, shape index: {}]  }
   0x1 LB: > { %s6170_s10 = sadd.s32 4294967295, %s6144_s9   ;;  %p5721_p0 = scmp.ge.s32.totalorder %s6144_s9, 1  ;;  %s6144_s9 = sphi %s6164_s9, %s13_s9  }
   0x2   : > { %p91_p1 = scmp.lt.s32.totalorder %s6144_s9, 3  ;;  %s103_s13 = sshll.u32 %s10366_s0, 4  ;;  %s104_s13 = int_to_ptr.vmem [resolvable:$true] %s103_s13 }
   0x3   : > { %p6071_p3 = scmp.eq.s32.totalorder %s6170_s10, 0  ;;  %s6146_s14 = smov [#allocation2]  }
   0x4   : > { %p92_p2 = pnand %p5721_p0, %p91_p1 }
   0x6   : > { %p6067_p4 = pneg %p92_p2  ;;  %126 = sbr.rel (%p92_p2) target bundleno = 1158 (0x486), region = 28 }
   0x8   : > { %p6068_p5 = pnand %p6071_p3, %p6067_p4 }
   0xa   : > { %6070 = dma.vmem_to_smem (!%p6068_p5), %s104_s13, 32, %s6146_s14, [#allocation3]  }
   0xb   : > { %6139 = dma.done.wait (%p6071_p3), [#allocation3], 32  }
   0xc   : > { %6141 = vsyncadd (%p6071_p3), [#allocation3], 4294967264 }
   0xd   : > { %133 = sfence }
   0xe   : > { %s5726_s15 = sshll.u32 %s6170_s10, 1  ;;  %s5735_s16 = sld [smem:[#allocation2 + $0x25]]  ;;  %vm305_vm0 = vcmask 1046528   ;;  %vm578_vm1 = vcmask 1045504   ;;  %vm2896_vm2 = vcmask 64512  }
   0xf   : > { %p152_p6 = scmp.lt.s32.totalorder %s5726_s15, 3  ;;  %s5734_s17 = sld [smem:[#allocation2 + $0x1]] }
  0x10   : > { %s5736_s18 = sld [smem:[#allocation2 + $0x49]]  ;;  %s6147_s23 = smov 127  }
  0x11   : > { %s10638_s15 = smov (!%p152_p6, %s5726_s15), 3  ;;  %s5737_s24 = sld [smem:[#allocation2 + $0x6d]] }
  0x12   : > { %s6061_s19 = sshll.u32 %s10638_s15, 7  ;;  %s5738_s25 = sld [smem:[#allocation2 + $0x2]] }
  0x13   : > { %s6182_s22 = scalar_lea.vmem %s10367_s1, %s6061_s19  ;;  %s5739_s26 = sld [smem:[#allocation2 + $0x26]] }
  0x14   : > { %v6185_v0 = vld [vmem:[%s6182_s22] sm:$0xff]  ;;  %v198_v1 = vstv %s5735_s16  ;;  %s5740_s27 = sld [smem:[#allocation2 + $0x4a]]  ;;  %s6148_s29 = smov 126   ;;  %v6214_v21 = vld [vmem:[%s6182_s22 + $0x8] sm:$0x3] }
  0x15   : > { %v199_v2 = vmul.f32 %v198_v1, %v6185_v0  ;;  %v184_v3 = vstv %s5734_s17  ;;  %v6191_v6 = vld [vmem:[%s6182_s22 + $0x40] sm:$0xff]  ;;  %s5746_s28 = sld [smem:[#allocation2 + $0x4]]  ;;  %v6223_v29 = vld [vmem:[%s6182_s22 + $0x48] sm:$0x3]  ;;  %p158_p7 = scmp.lt.s32.totalorder %s6170_s10, 1 }
  0x16   : > { %v185_v4 = vmul.f32 %v184_v3, %v6185_v0  ;;  %v212_v5 = vstv %s5736_s18  ;;  %v200_v8 = vmul.f32 %v198_v1, %v6191_v6  ;;  %v186_v9 = vmul.f32 %v184_v3, %v6191_v6  ;;  %s5741_s30 = sld [smem:[#allocation2 + $0x6e]] }
  0x17   : > { %203 = vrot.lane.b32.xlu1 %v199_v2, %s6147_s23  ;;  %v213_v7 = vmul.f32 %v212_v5, %v6185_v0  ;;  %v214_v10 = vmul.f32 %v212_v5, %v6191_v6  ;;  %v226_v11 = vstv %s5737_s24  ;;  %s5747_s3 = sld [smem:[#allocation2 + $0x28]]  ;;  %s10640_s10 = smov (!%p158_p7, %s6170_s10), 1 }
  0x18   : > { %189 = vrot.lane.b32.xlu0 %v185_v4, %s6147_s23  ;;  %v228_v12 = vmul.f32 %v226_v11, %v6191_v6  ;;  %v227_v13 = vmul.f32 %v226_v11, %v6185_v0  ;;  %v240_v14 = vstv %s5738_s25  ;;  %s5748_s4 = sld [smem:[#allocation2 + $0x4c]] }
  0x19   : > { %217 = vrot.lane.b32.xlu2 %v213_v7, %s6147_s23  ;;  %v241_v15 = vmul.f32 %v240_v14, %v6185_v0  ;;  %v254_v16 = vstv %s5739_s26  ;;  %v242_v18 = vmul.f32 %v240_v14, %v6191_v6  ;;  %s5749_s5 = sld [smem:[#allocation2 + $0x70]] }
  0x1a   : > { %v255_v17 = vmul.f32 %v254_v16, %v6185_v0  ;;  %v256_v19 = vmul.f32 %v254_v16, %v6191_v6  ;;  %v268_v20 = vstv %s5740_s27  ;;  %s5750_s6 = sld [smem:[#allocation2 + $0x5]] }
  0x1b   : > { %v377_v22 = vstv %s5746_s28  ;;  %v270_v23 = vmul.f32 %v268_v20, %v6191_v6  ;;  %v269_v24 = vmul.f32 %v268_v20, %v6185_v0  ;;  %s5751_s7 = sld [smem:[#allocation2 + $0x29]] }
  0x1c   : > { %v378_v25 = vmul.f32 %v377_v22, %v6185_v0  ;;  %v379_v26 = vmul.f32 %v377_v22, %v6214_v21  ;;  %v282_v27 = vstv %s5741_s30  ;;  %v380_v30 = vmul.f32 %v377_v22, %v6191_v6  ;;  %s5752_s8 = sld [smem:[#allocation2 + $0x4d]] }
  0x1d   : > { %v283_v28 = vmul.f32 %v282_v27, %v6185_v0  ;;  %v381_v31 = vmul.f32 %v377_v22, %v6223_v29  ;;  %v401_v34 = vstv %s5747_s3  ;;  %v284_v38 = vmul.f32 %v282_v27, %v6191_v6  ;;  %s5753_s11 = sld [smem:[#allocation2 + $0x71]] }
  0x1e   : > { %v386_v32 = vrot.slane %v378_v25, 1  ;;  %v387_v33 = vrot.slane %v379_v26, 1  ;;  %v389_v35 = vrot.slane %v380_v30, 1  ;;  %v404_v39 = vmul.f32 %v401_v34, %v6191_v6  ;;  %s5758_s12 = sld [smem:[#allocation2 + $0x7]] }
  0x1f   : > { %205 = vrot.lane.b32.xlu1 %v200_v8, %s6147_s23  ;;  %v390_v36 = vrot.slane %v381_v31, 1  ;;  %v405_v40 = vmul.f32 %v401_v34, %v6223_v29  ;;  %v402_v41 = vmul.f32 %v401_v34, %v6185_v0  ;;  %v403_v42 = vmul.f32 %v401_v34, %v6214_v21  ;;  %s5759_s13 = sld [smem:[#allocation2 + $0x2b]] }
  0x20   : > { %191 = vrot.lane.b32.xlu0 %v186_v9, %s6147_s23  ;;  %v388_v37 = vsel %vm305_vm0, %v386_v32, %v387_v33  ;;  %v425_v43 = vstv %s5748_s4  ;;  %v413_v47 = vrot.slane %v404_v39, 1  ;;  %v449_v51 = vstv %s5749_s5  ;;  %s5760_s14 = sld [smem:[#allocation2 + $0x4f]] }
  0x21   : > { %219 = vrot.lane.b32.xlu2 %v214_v10, %s6147_s23  ;;  %v391_v44 = vsel %vm305_vm0, %v389_v35, %v390_v36  ;;  %v426_v45 = vmul.f32 %v425_v43, %v6185_v0  ;;  %v427_v46 = vmul.f32 %v425_v43, %v6214_v21  ;;  %v414_v48 = vrot.slane %v405_v40, 1  ;;  %s5761_s15 = sld [smem:[#allocation2 + $0x73]] }
  0x22   : > { %v410_v49 = vrot.slane %v402_v41, 1  ;;  %v411_v50 = vrot.slane %v403_v42, 1  ;;  %v450_v55 = vmul.f32 %v449_v51, %v6185_v0  ;;  %v451_v56 = vmul.f32 %v449_v51, %v6214_v21  ;;  %s5762_s16 = sld [smem:[#allocation2 + $0x8]] }
  0x23   : > { %v434_v52 = vrot.slane %v426_v45, 1  ;;  %v435_v53 = vrot.slane %v427_v46, 1  ;;  %v415_v54 = vsel %vm305_vm0, %v413_v47, %v414_v48  ;;  %v428_v58 = vmul.f32 %v425_v43, %v6191_v6  ;;  %s5763_s17 = sld [smem:[#allocation2 + $0x2c]] }
  0x24   : > { %v412_v57 = vsel %vm305_vm0, %v410_v49, %v411_v50  ;;  %v429_v59 = vmul.f32 %v425_v43, %v6223_v29  ;;  %v452_v61 = vmul.f32 %v449_v51, %v6191_v6  ;;  %v453_v62 = vmul.f32 %v449_v51, %v6223_v29  ;;  %s5764_s18 = sld [smem:[#allocation2 + $0x50]] }
  0x25   : > { %v436_v60 = vsel %vm305_vm0, %v434_v52, %v435_v53  ;;  %v458_v63 = vrot.slane %v450_v55, 1  ;;  %v459_v1 = vrot.slane %v451_v56, 1  ;;  %v437_v2 = vrot.slane %v428_v58, 1  ;;  %s5765_s19 = sld [smem:[#allocation2 + $0x74]] }
  0x26   : > { %v438_v3 = vrot.slane %v429_v59, 1  ;;  %v473_v4 = vstv %s5750_s6  ;;  %v461_v5 = vrot.slane %v452_v61, 1  ;;  %v462_v7 = vrot.slane %v453_v62, 1  ;;  %s5774_s20 = sld [smem:[#allocation2 + $0xa]] }
  0x27   : > { %233 = vrot.lane.b32.xlu1 %v228_v12, %s6147_s23  ;;  %v460_v8 = vsel %vm305_vm0, %v458_v63, %v459_v1  ;;  %v476_v9 = vmul.f32 %v473_v4, %v6191_v6  ;;  %v477_v10 = vmul.f32 %v473_v4, %v6223_v29  ;;  %v474_v12 = vmul.f32 %v473_v4, %v6185_v0  ;;  %s5775_s21 = sld [smem:[#allocation2 + $0x2e]] }
  0x28   : > { %231 = vrot.lane.b32.xlu0 %v227_v13, %s6147_s23  ;;  %v439_v11 = vsel %vm305_vm0, %v437_v2, %v438_v3  ;;  %v475_v13 = vmul.f32 %v473_v4, %v6214_v21  ;;  %v497_v14 = vstv %s5751_s7  ;;  %v545_v40 = vstv %s5753_s11  ;;  %s5776_s24 = sld [smem:[#allocation2 + $0x52]] }
  0x29   : > { %245 = vrot.lane.b32.xlu2 %v241_v15, %s6148_s29  ;;  %v463_v15 = vsel %vm305_vm0, %v461_v5, %v462_v7  ;;  %v498_v16 = vmul.f32 %v497_v14, %v6185_v0  ;;  %v482_v20 = vrot.slane %v474_v12, 1  ;;  %v500_v31 = vmul.f32 %v497_v14, %v6191_v6  ;;  %s5777_s25 = sld [smem:[#allocation2 + $0x76]] }
  0x2a   : > { %v483_v22 = vrot.slane %v475_v13, 1  ;;  %v501_v32 = vmul.f32 %v497_v14, %v6223_v29  ;;  %v549_v45 = vmul.f32 %v545_v40, %v6223_v29  ;;  %v546_v47 = vmul.f32 %v545_v40, %v6185_v0  ;;  %s5778_s26 = sld [smem:[#allocation2 + $0xb]] }
  0x2b   : > { %v547_v48 = vmul.f32 %v545_v40, %v6214_v21  ;;  %v650_v49 = vstv %s5758_s12  ;;  %s5779_s27 = sld [smem:[#allocation2 + $0x2f]] }
  0x2c   : > { %v484_v30 = vsel %vm305_vm0, %v482_v20, %v483_v22  ;;  %v510_v39 = vrot.slane %v501_v32, 1  ;;  %v651_v51 = vmul.f32 %v650_v49, %v6185_v0  ;;  %v652_v52 = vmul.f32 %v650_v49, %v6214_v21  ;;  %s5780_s28 = sld [smem:[#allocation2 + $0x53]] }
  0x2d   : > { %v554_v55 = vrot.slane %v546_v47, 1  ;;  %v555_v56 = vrot.slane %v547_v48, 1  ;;  %v653_v1 = vmul.f32 %v650_v49, %v6191_v6  ;;  %v654_v2 = vmul.f32 %v650_v49, %v6223_v29  ;;  %s5786_s30 = sld [smem:[#allocation2 + $0xd]] }
  0x2e   : > { %v659_v58 = vrot.slane %v651_v51, 2  ;;  %v660_v59 = vrot.slane %v652_v52, 2  ;;  %v722_v20 = vstv %s5761_s15  ;;  %v770_v47 = vstv %s5763_s17  ;;  %s6418_s3 = sld [smem:[#allocation2 + $0x77]] }
  0x2f   : > { %259 = vrot.lane.b32.xlu1 %v255_v17, %s6148_s29  ;;  %v499_v17 = vmul.f32 %v497_v14, %v6214_v21  ;;  %v556_v63 = vsel %vm305_vm0, %v554_v55, %v555_v56  ;;  %v773_v52 = vmul.f32 %v770_v47, %v6191_v6  ;;  %v771_v55 = vmul.f32 %v770_v47, %v6185_v0  ;;  %s5787_s4 = sld [smem:[#allocation2 + $0x31]] }
  0x30   : > { %247 = vrot.lane.b32.xlu0 %v242_v18, %s6148_s29  ;;  %v485_v18 = vrot.slane %v476_v9, 1  ;;  %v661_v3 = vsel %vm578_vm1, %v659_v58, %v660_v59  ;;  %v662_v9 = vrot.slane %v653_v1, 2  ;;  %v772_v56 = vmul.f32 %v770_v47, %v6214_v21  ;;  %s5788_s5 = sld [smem:[#allocation2 + $0x55]] }
  0x31   : > { %261 = vrot.lane.b32.xlu2 %v256_v19, %s6148_s29  ;;  %v486_v19 = vrot.slane %v477_v10, 1  ;;  %v507_v25 = vrot.slane %v499_v17, 1  ;;  %v663_v10 = vrot.slane %v654_v2, 2  ;;  %v818_v2 = vstv %s5765_s19  ;;  %s5789_s6 = sld [smem:[#allocation2 + $0x79]] }
  0x32   : > { %v780_v1 = vrot.slane %v772_v56, 2  ;;  %s5790_s7 = sld [smem:[#allocation2 + $0xe]] }
  0x33   : > { %v487_v26 = vsel %vm305_vm0, %v485_v18, %v486_v19  ;;  %v664_v17 = vsel %vm578_vm1, %v662_v9, %v663_v10  ;;  %v820_v9 = vmul.f32 %v818_v2, %v6214_v21  ;;  %s5792_s11 = sld [smem:[#allocation2 + $0x56]] }
  0x34   : > { %s5793_s12 = sld [smem:[#allocation2 + $0x7a]] }
  0x35   : > { %s5800_s15 = sld [smem:[#allocation2 + $0x58]] }
  0x36   : > { %s5802_s17 = sld [smem:[#allocation2 + $0x11]] }
  0x37   : > { %275 = vrot.lane.b32.xlu1 %v270_v23, %s6148_s29  ;;  %v521_v23 = vstv %s5752_s8  ;;  %s5791_s8 = sld [smem:[#allocation2 + $0x32]] }
  0x38   : > { %273 = vrot.lane.b32.xlu0 %v269_v24, %s6148_s29  ;;  %v506_v24 = vrot.slane %v498_v16, 1  ;;  %v522_v27 = vmul.f32 %v521_v23, %v6185_v0  ;;  %v524_v34 = vmul.f32 %v521_v23, %v6191_v6  ;;  %v525_v35 = vmul.f32 %v521_v23, %v6223_v29  ;;  %s5804_s19 = sld [smem:[#allocation2 + $0x59]] }
  0x39   : > { %287 = vrot.lane.b32.xlu2 %v283_v28, %s6148_s29  ;;  %v523_v28 = vmul.f32 %v521_v23, %v6214_v21  ;;  %v723_v23 = vmul.f32 %v722_v20, %v6185_v0 }
  0x3a   : > { %v508_v33 = vsel %vm305_vm0, %v506_v24, %v507_v25  ;;  %v530_v36 = vrot.slane %v522_v27, 1  ;;  %v533_v41 = vrot.slane %v524_v34, 1  ;;  %v534_v42 = vrot.slane %v525_v35, 1 }
  0x3b   : > { %v724_v24 = vmul.f32 %v722_v20, %v6214_v21 }
  0x3c   : > { %v535_v50 = vsel %vm305_vm0, %v533_v41, %v534_v42 }
  0x3d   : > { %v732_v32 = vrot.slane %v724_v24, 2 }
  0x3f   : > { %392 = vrot.lane.b32.xlu1 %v388_v37, %s6147_s23  ;;  %v531_v37 = vrot.slane %v523_v28, 1 }
  0x40   : > { %289 = vrot.lane.b32.xlu0 %v284_v38, %s6148_s29  ;;  %v509_v38 = vrot.slane %v500_v31, 1  ;;  %v731_v31 = vrot.slane %v723_v23, 2 }
  0x41   : > { %394 = vrot.lane.b32.xlu2 %v391_v44, %s6147_s23  ;;  %v532_v43 = vsel %vm305_vm0, %v530_v36, %v531_v37  ;;  %v548_v44 = vmul.f32 %v545_v40, %v6191_v6 }
  0x42   : > { %v511_v46 = vsel %vm305_vm0, %v509_v38, %v510_v39  ;;  %v725_v38 = vmul.f32 %v722_v20, %v6191_v6  ;;  %v726_v39 = vmul.f32 %v722_v20, %v6223_v29  ;;  %v733_v40 = vsel %vm578_vm1, %v731_v31, %v732_v32 }
  0x43   : > { %v557_v53 = vrot.slane %v548_v44, 1 }
  0x47   : > { %418 = vrot.lane.b32.xlu1 %v415_v54, %s6147_s23  ;;  %v558_v54 = vrot.slane %v549_v45, 1  ;;  %v734_v45 = vrot.slane %v725_v38, 2 }
  0x48   : > { %416 = vrot.lane.b32.xlu0 %v412_v57, %s6147_s23  ;;  %v674_v57 = vstv %s5759_s13  ;;  %s5798_s13 = sld [smem:[#allocation2 + $0x10]] }
  0x49   : > { %440 = vrot.lane.b32.xlu2 %v436_v60, %s6147_s23  ;;  %v559_v60 = vsel %vm305_vm0, %v557_v53, %v558_v54  ;;  %v675_v61 = vmul.f32 %v674_v57, %v6185_v0  ;;  %v676_v62 = vmul.f32 %v674_v57, %v6214_v21  ;;  %v677_v4 = vmul.f32 %v674_v57, %v6191_v6 }
  0x4a   : > { %v678_v5 = vmul.f32 %v674_v57, %v6223_v29  ;;  %v774_v53 = vmul.f32 %v770_v47, %v6223_v29  ;;  %v794_v57 = vstv %s5764_s18  ;;  %s5803_s18 = sld [smem:[#allocation2 + $0x35]] }
  0x4b   : > { %v683_v7 = vrot.slane %v675_v61, 2  ;;  %v686_v12 = vrot.slane %v677_v4, 2  ;;  %v795_v59 = vmul.f32 %v794_v57, %v6185_v0  ;;  %v782_v61 = vrot.slane %v773_v52, 2 }
  0x4c   : > { %v687_v13 = vrot.slane %v678_v5, 2 }
  0x4e   : > { %v688_v22 = vsel %vm578_vm1, %v686_v12, %v687_v13  ;;  %v798_v12 = vmul.f32 %v794_v57, %v6223_v29 }
  0x4f   : > { %464 = vrot.lane.b32.xlu1 %v460_v8, %s6147_s23  ;;  %v684_v8 = vrot.slane %v676_v62, 2  ;;  %v783_v62 = vrot.slane %v774_v53, 2  ;;  %v941_v53 = vstv %s5779_s27  ;;  %s5818_s27 = sld [smem:[#allocation2 + $0x14]] }
  0x50   : > { %442 = vrot.lane.b32.xlu0 %v439_v11, %s6147_s23  ;;  %v698_v11 = vstv %s5760_s14  ;;  %s5799_s14 = sld [smem:[#allocation2 + $0x34]] }
  0x51   : > { %466 = vrot.lane.b32.xlu2 %v463_v15, %s6147_s23  ;;  %v685_v14 = vsel %vm578_vm1, %v683_v7, %v684_v8  ;;  %v701_v15 = vmul.f32 %v698_v11, %v6191_v6  ;;  %v702_v16 = vmul.f32 %v698_v11, %v6223_v29  ;;  %v699_v18 = vmul.f32 %v698_v11, %v6185_v0 }
  0x52   : > { %v700_v19 = vmul.f32 %v698_v11, %v6214_v21  ;;  %v784_v5 = vsel %vm578_vm1, %v782_v61, %v783_v62  ;;  %v819_v8 = vmul.f32 %v818_v2, %v6185_v0  ;;  %v797_v11 = vmul.f32 %v794_v57, %v6191_v6  ;;  %v6426_v62 = vld [vmem:[%s6182_s22 + $0x18] sm:$0x3] }
  0x53   : > { %v710_v25 = vrot.slane %v701_v15, 2  ;;  %v707_v27 = vrot.slane %v699_v18, 2  ;;  %v822_v15 = vmul.f32 %v818_v2, %v6223_v29  ;;  %v807_v18 = vrot.slane %v798_v12, 2 }
  0x54   : > { %v708_v28 = vrot.slane %v700_v19, 2 }
  0x56   : > { %v709_v37 = vsel %vm578_vm1, %v707_v27, %v708_v28  ;;  %v6373_v28 = vld [vmem:[%s6182_s22 + $0x10] sm:$0xff] }
  0x57   : > { %490 = vrot.lane.b32.xlu1 %v487_v26, %s6148_s29  ;;  %v711_v26 = vrot.slane %v702_v16, 2  ;;  %v827_v16 = vrot.slane %v819_v8, 2  ;;  %v942_v56 = vmul.f32 %v6373_v28, %v941_v53 }
  0x58   : > { %488 = vrot.lane.b32.xlu0 %v484_v30, %s6148_s29  ;;  %v746_v30 = vstv %s5762_s16  ;;  %s5801_s16 = sld [smem:[#allocation2 + $0x7c]] }
  0x59   : > { %512 = vrot.lane.b32.xlu2 %v508_v33, %s6148_s29  ;;  %v712_v33 = vsel %vm578_vm1, %v710_v25, %v711_v26  ;;  %v747_v35 = vmul.f32 %v746_v30, %v6185_v0  ;;  %v748_v36 = vmul.f32 %v746_v30, %v6214_v21  ;;  %v749_v41 = vmul.f32 %v746_v30, %v6191_v6  ;;  %v6368_v25 = vld [vmem:[%s6182_s22 + $0x50] sm:$0xff] }
  0x5a   : > { %v750_v42 = vmul.f32 %v746_v30, %v6223_v29  ;;  %v828_v0 = vrot.slane %v820_v9, 2  ;;  %v871_v26 = vstv %s5774_s20  ;;  %v969_v9 = vstv %s6418_s3  ;;  %s5805_s20 = sld [smem:[#allocation2 + $0x7d]] }
  0x5b   : > { %v756_v44 = vrot.slane %v748_v36, 2  ;;  %v758_v48 = vrot.slane %v749_v41, 2  ;;  %v873_v31 = vmul.f32 %v6368_v25, %v871_v26  ;;  %v872_v32 = vmul.f32 %v6373_v28, %v871_v26  ;;  %s5826_s3 = sld [smem:[#allocation2 + $0x16]] }
  0x5c   : > { %v759_v49 = vrot.slane %v750_v42, 2 }
  0x5e   : > { %v760_v58 = vsel %vm578_vm1, %v758_v48, %v759_v49 }
  0x5f   : > { %536 = vrot.lane.b32.xlu1 %v532_v43, %s6148_s29  ;;  %v755_v43 = vrot.slane %v747_v35, 2  ;;  %v885_v35 = vstv %s5775_s21  ;;  %s5814_s21 = sld [smem:[#allocation2 + $0x13]] }
  0x60   : > { %514 = vrot.lane.b32.xlu0 %v511_v46, %s6148_s29  ;;  %v735_v46 = vrot.slane %v726_v39, 2  ;;  %v886_v36 = vmul.f32 %v6373_v28, %v885_v35  ;;  %v887_v41 = vmul.f32 %v6368_v25, %v885_v35  ;;  %v1111_v35 = vstv %s5788_s5  ;;  %s5827_s5 = sld [smem:[#allocation2 + $0x3a]] }
  0x61   : > { %538 = vrot.lane.b32.xlu2 %v535_v50, %s6148_s29  ;;  %v757_v50 = vsel %vm578_vm1, %v755_v43, %v756_v44  ;;  %v913_v44 = vstv %s5777_s25  ;;  %s5816_s25 = sld [smem:[#allocation2 + $0x5b]] }
  0x62   : > { %v736_v54 = vsel %vm578_vm1, %v734_v45, %v735_v46  ;;  %v915_v47 = vmul.f32 %v6368_v25, %v913_v44  ;;  %v914_v48 = vmul.f32 %v6373_v28, %v913_v44 }
  0x67   : > { %562 = vrot.lane.b32.xlu1 %v559_v60, %s6148_s29  ;;  %v796_v60 = vmul.f32 %v794_v57, %v6214_v21 }
  0x68   : > { %560 = vrot.lane.b32.xlu0 %v556_v63, %s6148_s29  ;;  %v779_v63 = vrot.slane %v771_v55, 2 }
  0x69   : > { %665 = vrot.lane.b32.xlu2 %v661_v3, %s6147_s23  ;;  %v803_v3 = vrot.slane %v795_v59, 2  ;;  %v804_v4 = vrot.slane %v796_v60, 2  ;;  %v943_v59 = vmul.f32 %v6368_v25, %v941_v53  ;;  %v955_v60 = vstv %s5780_s28  ;;  %s5819_s28 = sld [smem:[#allocation2 + $0x38]] }
  0x6a   : > { %v781_v10 = vsel %vm578_vm1, %v779_v63, %v780_v1  ;;  %v1063_v63 = vstv %s5786_s30  ;;  %s5820_s30 = sld [smem:[#allocation2 + $0x5c]] }
  0x6b   : > { %v805_v13 = vsel %vm578_vm1, %v803_v3, %v804_v4  ;;  %v956_v3 = vmul.f32 %v6373_v28, %v955_v60  ;;  %v1065_v8 = vmul.f32 %v6426_v62, %v1063_v63  ;;  %v1066_v12 = vmul.f32 %v6368_v25, %v1063_v63 }
  0x6f   : > { %689 = vrot.lane.b32.xlu1 %v685_v14, %s6147_s23  ;;  %v821_v14 = vmul.f32 %v818_v2, %v6191_v6  ;;  %v829_v6 = vsel %vm578_vm1, %v827_v16, %v828_v0  ;;  %v957_v2 = vmul.f32 %v6368_v25, %v955_v60  ;;  %v1087_v0 = vstv %s5787_s4  ;;  %s6689_s4 = sld [smem:[#allocation2 + $0x80]] }
  0x70   : > { %667 = vrot.lane.b32.xlu0 %v664_v17, %s6147_s23  ;;  %v806_v17 = vrot.slane %v797_v11, 2  ;;  %v6440_v11 = vld [vmem:[%s6182_s22 + $0x58] sm:$0x3] }
  0x71   : > { %691 = vrot.lane.b32.xlu2 %v688_v22, %s6147_s23  ;;  %v830_v20 = vrot.slane %v821_v14, 2  ;;  %v831_v22 = vrot.slane %v822_v15, 2  ;;  %v1073_v15 = vrot.slane %v1065_v8, 1  ;;  %v1091_v26 = vmul.f32 %v6440_v11, %v1087_v0 }
  0x72   : > { %v808_v23 = vsel %vm578_vm1, %v806_v17, %v807_v18  ;;  %v1075_v18 = vrot.slane %v1066_v12, 1 }
  0x73   : > { %v6315_v34 = vpop.permute.xlu2 %217  ;;  %v832_v24 = vsel %vm578_vm1, %v830_v20, %v831_v22 }
  0x77   : > { %715 = vrot.lane.b32.xlu1 %v712_v33, %s6147_s23 }
  0x78   : > { %713 = vrot.lane.b32.xlu0 %v709_v37, %s6147_s23  ;;  %v899_v37 = vstv %s5776_s24  ;;  %s5815_s24 = sld [smem:[#allocation2 + $0x37]] }
  0x79   : > { %737 = vrot.lane.b32.xlu2 %v733_v40, %s6147_s23  ;;  %v900_v40 = vmul.f32 %v6373_v28, %v899_v37  ;;  %v901_v43 = vmul.f32 %v6368_v25, %v899_v37  ;;  %v1112_v37 = vmul.f32 %v6373_v28, %v1111_v35 }
  0x7b   : > { %v6329_v51 = vpop.permute.xlu2 %219  ;;  %v1120_v53 = vrot.slane %v1112_v37, 1 }
  0x7f   : > { %761 = vrot.lane.b32.xlu1 %v757_v50, %s6148_s29  ;;  %v927_v50 = vstv %s5778_s26  ;;  %s5817_s26 = sld [smem:[#allocation2 + $0x7f]] }
  0x80   : > { %739 = vrot.lane.b32.xlu0 %v736_v54, %s6147_s23  ;;  %v928_v52 = vmul.f32 %v6373_v28, %v927_v50  ;;  %v929_v57 = vmul.f32 %v6368_v25, %v927_v50  ;;  %v1135_v50 = vstv %s5789_s6  ;;  %s5828_s6 = sld [smem:[#allocation2 + $0x5e]] }
  0x81   : > { %763 = vrot.lane.b32.xlu2 %v760_v58, %s6148_s29  ;;  %v1136_v60 = vmul.f32 %v6373_v28, %v1135_v50 }
  0x83   : > { %v6343_v7 = vpop.permute.xlu2 %245  ;;  %v1144_v12 = vrot.slane %v1136_v60, 1  ;;  %v1207_v60 = vstv %s5792_s11  ;;  %s5831_s11 = sld [smem:[#allocation2 + $0x3b]] }
  0x87   : > { %787 = vrot.lane.b32.xlu1 %v784_v5, %s6148_s29  ;;  %v1064_v5 = vmul.f32 %v6373_v28, %v1063_v63 }
  0x88   : > { %785 = vrot.lane.b32.xlu0 %v781_v10, %s6148_s29  ;;  %v970_v10 = vmul.f32 %v6373_v28, %v969_v9 }
  0x89   : > { %v6355_v21 = vpop.permute.xlu1 %203  ;;  %809 = vrot.lane.b32.xlu2 %v805_v13, %s6148_s29  ;;  %v1067_v13 = vmul.f32 %v6440_v11, %v1063_v63  ;;  %v1072_v14 = vrot.slane %v1064_v5, 1  ;;  %v1137_v63 = vmul.f32 %v6426_v62, %v1135_v50  ;;  %v1115_v5 = vmul.f32 %v6440_v11, %v1111_v35 }
  0x8a   : > { %v6357_v19 = vpop.permute.xlu0 %189 }
  0x8b   : > { %v6361_v29 = vpop.permute.xlu2 %261  ;;  %v1076_v20 = vrot.slane %v1067_v13, 1  ;;  %v1074_v22 = vsel %vm305_vm0, %v1072_v14, %v1073_v15  ;;  %v1145_v13 = vrot.slane %v1137_v63, 1 }
  0x8f   : > { %833 = vrot.lane.b32.xlu1 %v829_v6, %s6148_s29  ;;  %v971_v6 = vmul.f32 %v6368_v25, %v969_v9  ;;  %v1138_v9 = vmul.f32 %v6368_v25, %v1135_v50 }
  0x90   : > { %811 = vrot.lane.b32.xlu0 %v808_v23, %s6148_s29 }
  0x91   : > { %v6370_v27 = vpop.permute.xlu1 %205  ;;  %835 = vrot.lane.b32.xlu2 %v832_v24, %s6148_s29  ;;  %v1090_v24 = vmul.f32 %v6368_v25, %v1087_v0 }
  0x92   : > { %v6375_v30 = vpop.permute.xlu0 %191 }
  0x93   : > { %v6380_v33 = vpop.permute.xlu2 %287 }
  0x97   : > { %878 = vrot.lane.b32.xlu1 %v873_v31, %s6147_s23  ;;  %v1088_v31 = vmul.f32 %v6373_v28, %v1087_v0 }
  0x98   : > { %876 = vrot.lane.b32.xlu0 %v872_v32, %s6147_s23  ;;  %v1089_v32 = vmul.f32 %v6426_v62, %v1087_v0  ;;  %v1124_v0 = vrot.slane %v1115_v5, 1 }
  0x99   : > { %v6385_v38 = vpop.permute.xlu1 %233  ;;  %890 = vrot.lane.b32.xlu2 %v886_v36, %s6147_s23  ;;  %v1077_v36 = vsel %vm305_vm0, %v1075_v18, %v1076_v20  ;;  %v1159_v18 = vstv %s5790_s7  ;;  %s5829_s7 = sld [smem:[#allocation2 + $0x82]] }
  0x9a   : > { %v6387_v39 = vpop.permute.xlu0 %231  ;;  %v1161_v37 = vmul.f32 %v6426_v62, %v1159_v18 }
  0x9b   : > { %v6392_v42 = vpop.permute.xlu2 %394 }
  0x9f   : > { %904 = vrot.lane.b32.xlu1 %v900_v40, %s6147_s23  ;;  %v1113_v40 = vmul.f32 %v6426_v62, %v1111_v35 }
  0xa0   : > { %892 = vrot.lane.b32.xlu0 %v887_v41, %s6147_s23  ;;  %v1099_v41 = vrot.slane %v1090_v24, 1  ;;  %v1146_v24 = vsel %vm305_vm0, %v1144_v12, %v1145_v13 }
  0xa1   : > { %v6397_v45 = vpop.permute.xlu1 %259  ;;  %906 = vrot.lane.b32.xlu2 %v901_v43, %s6147_s23  ;;  %v1100_v43 = vrot.slane %v1091_v26, 1 }
  0xa2   : > { %v6399_v46 = vpop.permute.xlu0 %247 }
  0xa3   : > { %v6404_v49 = vpop.permute.xlu2 %440 }
  0xa7   : > { %920 = vrot.lane.b32.xlu1 %v915_v47, %s6147_s23  ;;  %v1096_v47 = vrot.slane %v1088_v31, 1  ;;  %v1162_v31 = vmul.f32 %v6368_v25, %v1159_v18 }
  0xa8   : > { %918 = vrot.lane.b32.xlu0 %v914_v48, %s6147_s23  ;;  %v1097_v48 = vrot.slane %v1089_v32, 1  ;;  %v1163_v32 = vmul.f32 %v6440_v11, %v1159_v18 }
  0xa9   : > { %v6409_v54 = vpop.permute.xlu1 %275  ;;  %932 = vrot.lane.b32.xlu2 %v928_v52, %s6148_s29 }
  0xaa   : > { %v6411_v55 = vpop.permute.xlu0 %273 }
  0xab   : > { %v6416_v58 = vpop.permute.xlu2 %466 }
  0xac   : > { %10372 = vst [vmem:[#allocation5_spill] sm:$0xff] %v6416_v58 }
  0xaf   : > { %946 = vrot.lane.b32.xlu1 %v942_v56, %s6148_s29  ;;  %v1121_v56 = vrot.slane %v1113_v40, 1  ;;  %v1183_v40 = vstv %s5791_s8  ;;  %s5830_s8 = sld [smem:[#allocation2 + $0x17]] }
  0xb0   : > { %934 = vrot.lane.b32.xlu0 %v929_v57, %s6148_s29  ;;  %v1101_v57 = vsel %vm305_vm0, %v1099_v41, %v1100_v43  ;;  %v1184_v43 = vmul.f32 %v6373_v28, %v1183_v40  ;;  %v1186_v13 = vmul.f32 %v6368_v25, %v1183_v40 }
  0xb1   : > { %v6423_v61 = vpop.permute.xlu1 %392  ;;  %948 = vrot.lane.b32.xlu2 %v943_v59, %s6148_s29  ;;  %v1122_v8 = vsel %vm305_vm0, %v1120_v53, %v1121_v56 }
  0xb2   : > { %10373 = vst [vmem:[#allocation6_spill] sm:$0xff] %v6423_v61  ;;  %v6428_v1 = vpop.permute.xlu0 %289 }
  0xb3   : > { %v6433_v4 = vpop.permute.xlu2 %512 }
  0xb4   : > { %10374 = vst [vmem:[#allocation7_spill] sm:$0xff] %v6433_v4 }
  0xb7   : > { %962 = vrot.lane.b32.xlu1 %v957_v2, %s6148_s29  ;;  %v1098_v2 = vsel %vm305_vm0, %v1096_v47, %v1097_v48  ;;  %v1185_v47 = vmul.f32 %v6426_v62, %v1183_v40  ;;  %v1171_v48 = vrot.slane %v1162_v31, 1 }
  0xb8   : > { %960 = vrot.lane.b32.xlu0 %v956_v3, %s6148_s29  ;;  %v1114_v3 = vmul.f32 %v6368_v25, %v1111_v35 }
  0xb9   : > { %v6446_v16 = vpop.permute.xlu1 %418  ;;  %974 = vrot.lane.b32.xlu2 %v970_v10, %s6148_s29  ;;  %v1139_v10 = vmul.f32 %v6440_v11, %v1135_v50  ;;  %v1172_v50 = vrot.slane %v1163_v32, 1  ;;  %v1195_v32 = vrot.slane %v1186_v13, 1 }
  0xba   : > { %10375 = vst [vmem:[#allocation8_spill] sm:$0xff] %v6446_v16  ;;  %v6448_v17 = vpop.permute.xlu0 %416  ;;  %v1123_v15 = vrot.slane %v1114_v3, 1  ;;  %v1193_v3 = vrot.slane %v1185_v47, 1 }
  0xbb   : > { %10376 = vst [vmem:[#allocation9_spill] sm:$0xff] %v6448_v17  ;;  %v6453_v23 = vpop.permute.xlu2 %538  ;;  %v1173_v5 = vsel %vm305_vm0, %v1171_v48, %v1172_v50 }
  0xbc   : > { %10377 = vst [vmem:[#allocation10_spill] sm:$0xff] %v6453_v23  ;;  %v1125_v35 = vsel %vm305_vm0, %v1123_v15, %v1124_v0  ;;  %v1187_v15 = vmul.f32 %v6440_v11, %v1183_v40 }
  0xbf   : > { %1078 = vrot.lane.b32.xlu1 %v1074_v22, %s6147_s23  ;;  %v1147_v22 = vrot.slane %v1138_v9, 1  ;;  %v1208_v9 = vmul.f32 %v6373_v28, %v1207_v60 }
  0xc0   : > { %976 = vrot.lane.b32.xlu0 %v971_v6, %s6148_s29  ;;  %v1148_v6 = vrot.slane %v1139_v10, 1  ;;  %v1209_v10 = vmul.f32 %v6426_v62, %v1207_v60 }
  0xc1   : > { %v6464_v44 = vpop.permute.xlu1 %464  ;;  %1080 = vrot.lane.b32.xlu2 %v1077_v36, %s6147_s23  ;;  %v1160_v36 = vmul.f32 %v6373_v28, %v1159_v18  ;;  %v1210_v18 = vmul.f32 %v6368_v25, %v1207_v60 }
  0xc2   : > { %10378 = vst [vmem:[#allocation11_spill] sm:$0xff] %v6464_v44  ;;  %v6466_v52 = vpop.permute.xlu0 %442  ;;  %v1149_v41 = vsel %vm305_vm0, %v1147_v22, %v1148_v6  ;;  %v1211_v22 = vmul.f32 %v6440_v11, %v1207_v60  ;;  %v1216_v6 = vrot.slane %v1208_v9, 1 }
  0xc3   : > { %10379 = vst [vmem:[#allocation12_spill] sm:$0xff] %v6466_v52  ;;  %v6470_v59 = vpop.permute.xlu2 %665  ;;  %v1168_v56 = vrot.slane %v1160_v36, 1  ;;  %v1231_v36 = vstv %s5793_s12  ;;  %v1219_v40 = vrot.slane %v1210_v18, 1  ;;  %v1359_v18 = vstv %s5799_s14  ;;  %s5832_s12 = sld [smem:[#allocation2 + $0x5f]] }
  0xc4   : > { %10380 = vst [vmem:[#allocation13_spill] sm:$0xff] %v6470_v59  ;;  %v1234_v48 = vmul.f32 %v6368_v25, %v1231_v36  ;;  %v1235_v50 = vmul.f32 %v6440_v11, %v1231_v36  ;;  %v1233_v60 = vmul.f32 %v6426_v62, %v1231_v36  ;;  %s6781_s14 = sld [smem:[#allocation2 + $0x3]] }
  0xc7   : > { %1104 = vrot.lane.b32.xlu1 %v1101_v57, %s6147_s23  ;;  %v1169_v57 = vrot.slane %v1161_v37, 1 }
  0xc8   : > { %1102 = vrot.lane.b32.xlu0 %v1098_v2, %s6147_s23  ;;  %v1192_v2 = vrot.slane %v1184_v43, 1 }
  0xc9   : > { %v6482_v14 = vpop.permute.xlu1 %490  ;;  %1126 = vrot.lane.b32.xlu2 %v1122_v8, %s6147_s23  ;;  %v1170_v12 = vsel %vm305_vm0, %v1168_v56, %v1169_v57  ;;  %v1232_v57 = vmul.f32 %v6373_v28, %v1231_v36  ;;  %v1360_v36 = vmul.f32 %v6373_v28, %v1359_v18 }
  0xca   : > { %10381 = vst [vmem:[#allocation14_spill] sm:$0xff] %v6482_v14  ;;  %v6484_v20 = vpop.permute.xlu0 %488  ;;  %v1194_v0 = vsel %vm305_vm0, %v1192_v2, %v1193_v3  ;;  %v1335_v2 = vstv %s5798_s13  ;;  %s5833_s13 = sld [smem:[#allocation2 + $0x83]] }
  0xcb   : > { %10382 = vst [vmem:[#allocation15_spill] sm:$0xff] %v6484_v20  ;;  %v6488_v26 = vpop.permute.xlu2 %691  ;;  %v1337_v9 = vmul.f32 %v6426_v62, %v1335_v2 }
  0xcc   : > { %10383 = vst [vmem:[#allocation16_spill] sm:$0xff] %v6488_v26 }
  0xcf   : > { %1150 = vrot.lane.b32.xlu1 %v1146_v24, %s6147_s23  ;;  %v1217_v24 = vrot.slane %v1209_v10, 1  ;;  %v1243_v10 = vrot.slane %v1234_v48, 1  ;;  %v1339_v48 = vmul.f32 %v6440_v11, %v1335_v2 }
  0xd0   : > { %1128 = vrot.lane.b32.xlu0 %v1125_v35, %s6147_s23  ;;  %v1196_v35 = vrot.slane %v1187_v15, 1  ;;  %v1240_v15 = vrot.slane %v1232_v57, 1  ;;  %v1363_v57 = vmul.f32 %v6440_v11, %v1359_v18 }
  0xd1   : > { %v6500_v53 = vpop.permute.xlu1 %536  ;;  %1152 = vrot.lane.b32.xlu2 %v1149_v41, %s6147_s23  ;;  %v1220_v41 = vrot.slane %v1211_v22, 1  ;;  %v1218_v43 = vsel %vm305_vm0, %v1216_v6, %v1217_v24  ;;  %v1345_v24 = vrot.slane %v1337_v9, 2 }
  0xd2   : > { %10384 = vst [vmem:[#allocation17_spill] sm:$0xff] %v6500_v53  ;;  %v6502_v63 = vpop.permute.xlu0 %514  ;;  %v1197_v56 = vsel %vm305_vm0, %v1195_v32, %v1196_v35 }
  0xd3   : > { %10385 = vst [vmem:[#allocation18_spill] sm:$0xff] %v6502_v63  ;;  %v6506_v8 = vpop.permute.xlu2 %737  ;;  %v1221_v3 = vsel %vm305_vm0, %v1219_v40, %v1220_v41  ;;  %v1361_v40 = vmul.f32 %v6426_v62, %v1359_v18 }
  0xd4   : > { %10386 = vst [vmem:[#allocation19_spill] sm:$0xff] %v6506_v8 }
  0xd7   : > { %1176 = vrot.lane.b32.xlu1 %v1173_v5, %s6148_s29  ;;  %v1336_v5 = vmul.f32 %v6373_v28, %v1335_v2 }
  0xd8   : > { %1174 = vrot.lane.b32.xlu0 %v1170_v12, %s6148_s29  ;;  %v1244_v12 = vrot.slane %v1235_v50, 1 }
  0xd9   : > { %v6518_v31 = vpop.permute.xlu1 %562  ;;  %1198 = vrot.lane.b32.xlu2 %v1194_v0, %s6148_s29  ;;  %v1241_v0 = vrot.slane %v1233_v60, 1  ;;  %v1344_v6 = vrot.slane %v1336_v5, 2  ;;  %v1368_v60 = vrot.slane %v1360_v36, 2 }
  0xda   : > { %10387 = vst [vmem:[#allocation20_spill] sm:$0xff] %v6518_v31  ;;  %v6520_v37 = vpop.permute.xlu0 %560  ;;  %v1245_v32 = vsel %vm305_vm0, %v1243_v10, %v1244_v12  ;;  %v1348_v10 = vrot.slane %v1339_v48, 2  ;;  %v1383_v12 = vstv %s5800_s15  ;;  %s5838_s15 = sld [smem:[#allocation2 + $0x19]] }
  0xdb   : > { %10388 = vst [vmem:[#allocation21_spill] sm:$0xff] %v6520_v37  ;;  %v6524_v47 = vpop.permute.xlu2 %763  ;;  %v1242_v41 = vsel %vm305_vm0, %v1240_v15, %v1241_v0  ;;  %v1346_v50 = vsel %vm578_vm1, %v1344_v6, %v1345_v24  ;;  %v1372_v0 = vrot.slane %v1363_v57, 2 }
  0xdc   : > { %10389 = vst [vmem:[#allocation22_spill] sm:$0xff] %v6524_v47 }
  0xdf   : > { %1222 = vrot.lane.b32.xlu1 %v1218_v43, %s6148_s29  ;;  %v1338_v43 = vmul.f32 %v6368_v25, %v1335_v2 }
  0xe0   : > { %1200 = vrot.lane.b32.xlu0 %v1197_v56, %s6148_s29  ;;  %v1362_v56 = vmul.f32 %v6368_v25, %v1359_v18  ;;  %v1386_v18 = vmul.f32 %v6368_v25, %v1383_v12 }
  0xe1   : > { %v6536_v13 = vpop.permute.xlu1 %689  ;;  %1224 = vrot.lane.b32.xlu2 %v1221_v3, %s6148_s29  ;;  %v1369_v3 = vrot.slane %v1361_v40, 2  ;;  %v1347_v9 = vrot.slane %v1338_v43, 2  ;;  %v1384_v40 = vmul.f32 %v6373_v28, %v1383_v12  ;;  %v1407_v43 = vstv %s5801_s16  ;;  %s5743_s16 = sld [smem:[#allocation2 + $0x27]] }
  0xe2   : > { %10390 = vst [vmem:[#allocation23_spill] sm:$0xff] %v6536_v13  ;;  %v6538_v22 = vpop.permute.xlu0 %667  ;;  %v1371_v15 = vrot.slane %v1362_v56, 2  ;;  %v1409_v56 = vmul.f32 %v6426_v62, %v1407_v43  ;;  %v1395_v57 = vrot.slane %v1386_v18, 2 }
  0xe3   : > { %10391 = vst [vmem:[#allocation24_spill] sm:$0xff] %v6538_v22  ;;  %v6542_v35 = vpop.permute.xlu2 %809  ;;  %v1370_v6 = vsel %vm578_vm1, %v1368_v60, %v1369_v3  ;;  %v1349_v36 = vsel %vm578_vm1, %v1347_v9, %v1348_v10  ;;  %v1392_v9 = vrot.slane %v1384_v40, 2  ;;  %v1410_v40 = vmul.f32 %v6368_v25, %v1407_v43 }
  0xe4   : > { %10392 = vst [vmem:[#allocation25_spill] sm:$0xff] %v6542_v35  ;;  %v1373_v48 = vsel %vm578_vm1, %v1371_v15, %v1372_v0  ;;  %v1417_v15 = vrot.slane %v1409_v56, 2 }
  0xe7   : > { %1248 = vrot.lane.b32.xlu1 %v1245_v32, %s6148_s29  ;;  %v1387_v32 = vmul.f32 %v6440_v11, %v1383_v12 }
  0xe8   : > { %1246 = vrot.lane.b32.xlu0 %v1242_v41, %s6148_s29  ;;  %v1385_v41 = vmul.f32 %v6426_v62, %v1383_v12 }
  0xe9   : > { %v6554_v5 = vpop.permute.xlu1 %715  ;;  %1350 = vrot.lane.b32.xlu2 %v1346_v50, %s6147_s23  ;;  %v1408_v50 = vmul.f32 %v6373_v28, %v1407_v43  ;;  %v1396_v60 = vrot.slane %v1387_v32, 2 }
  0xea   : > { %10393 = vst [vmem:[#allocation26_spill] sm:$0xff] %v6554_v5  ;;  %v6556_v2 = vpop.permute.xlu0 %713  ;;  %v1393_v10 = vrot.slane %v1385_v41, 2  ;;  %v1411_v41 = vmul.f32 %v6440_v11, %v1407_v43 }
  0xeb   : > { %10394 = vst [vmem:[#allocation27_spill] sm:$0xff] %v6556_v2  ;;  %v6560_v24 = vpop.permute.xlu2 %835  ;;  %v1397_v0 = vsel %vm578_vm1, %v1395_v57, %v1396_v60 }
  0xec   : > { %10395 = vst [vmem:[#allocation28_spill] sm:$0xff] %v6560_v24  ;;  %v1431_v24 = vstv %s5802_s17  ;;  %v1394_v32 = vsel %vm578_vm1, %v1392_v9, %v1393_v10  ;;  %v1419_v9 = vrot.slane %v1410_v40, 2  ;;  %v1420_v10 = vrot.slane %v1411_v41, 2  ;;  %s6790_s17 = sld [smem:[#allocation2 + $0x48]] }
  0xed   : > { %v1433_v18 = vmul.f32 %v6426_v62, %v1431_v24  ;;  %v1435_v56 = vmul.f32 %v6440_v11, %v1431_v24  ;;  %v1479_v41 = vstv %s5804_s19  ;;  %s6803_s19 = sld [smem:[#allocation2 + $0x24]] }
  0xef   : > { %1374 = vrot.lane.b32.xlu1 %v1370_v6, %s6147_s23  ;;  %v1416_v6 = vrot.slane %v1408_v50, 2  ;;  %v1434_v50 = vmul.f32 %v6368_v25, %v1431_v24  ;;  %v1441_v60 = vrot.slane %v1433_v18, 2  ;;  %v1421_v18 = vsel %vm578_vm1, %v1419_v9, %v1420_v10 }
  0xf0   : > { %1352 = vrot.lane.b32.xlu0 %v1349_v36, %s6147_s23  ;;  %v1432_v36 = vmul.f32 %v6373_v28, %v1431_v24 }
  0xf1   : > { %v6572_v3 = vpop.permute.xlu1 %761  ;;  %1376 = vrot.lane.b32.xlu2 %v1373_v48, %s6147_s23  ;;  %v1418_v48 = vsel %vm578_vm1, %v1416_v6, %v1417_v15  ;;  %v1444_v6 = vrot.slane %v1435_v56, 2  ;;  %v1481_v56 = vmul.f32 %v6426_v62, %v1479_v41 }
  0xf2   : > { %10396 = vst [vmem:[#allocation29_spill] sm:$0xff] %v6572_v3  ;;  %v6574_v12 = vpop.permute.xlu0 %739  ;;  %v1440_v57 = vrot.slane %v1432_v36, 2 }
  0xf3   : > { %10397 = vst [vmem:[#allocation30_spill] sm:$0xff] %v6574_v12  ;;  %v6578_v5 = vpop.permute.xlu2 %890  ;;  %v1455_v12 = vstv %s5803_s18  ;;  %s5839_s18 = sld [smem:[#allocation2 + $0x3d]] }
  0xf4   : > { %10398 = vst [vmem:[#allocation31_spill] sm:$0xff] %v6578_v5  ;;  %v1442_v15 = vsel %vm578_vm1, %v1440_v57, %v1441_v60  ;;  %v1458_v24 = vmul.f32 %v6368_v25, %v1455_v12  ;;  %v1459_v36 = vmul.f32 %v6440_v11, %v1455_v12  ;;  %v1457_v40 = vmul.f32 %v6426_v62, %v1455_v12 }
  0xf6   : > { %v1467_v57 = vrot.slane %v1458_v24, 2  ;;  %v1468_v60 = vrot.slane %v1459_v36, 2  ;;  %v1465_v10 = vrot.slane %v1457_v40, 2 }
  0xf7   : > { %1400 = vrot.lane.b32.xlu1 %v1397_v0, %s6147_s23  ;;  %v1443_v0 = vrot.slane %v1434_v50, 2  ;;  %v1480_v50 = vmul.f32 %v6373_v28, %v1479_v41 }
  0xf8   : > { %1398 = vrot.lane.b32.xlu0 %v1394_v32, %s6147_s23  ;;  %v1456_v32 = vmul.f32 %v6373_v28, %v1455_v12 }
  0xf9   : > { %v6590_v5 = vpop.permute.xlu1 %787  ;;  %1422 = vrot.lane.b32.xlu2 %v1418_v48, %s6147_s23  ;;  %v1445_v48 = vsel %vm578_vm1, %v1443_v0, %v1444_v6  ;;  %v1488_v12 = vrot.slane %v1480_v50, 2  ;;  %v1469_v0 = vsel %vm578_vm1, %v1467_v57, %v1468_v60 }
  0xfa   : > { %10399 = vst [vmem:[#allocation32_spill] sm:$0xff] %v6590_v5  ;;  %v6592_v43 = vpop.permute.xlu0 %785  ;;  %v1464_v9 = vrot.slane %v1456_v32, 2  ;;  %v1503_v5 = vstv %s5805_s20  ;;  %v1483_v32 = vmul.f32 %v6440_v11, %v1479_v41  ;;  %s6808_s20 = sld [smem:[#allocation2]] }
  0xfb   : > { %10400 = vst [vmem:[#allocation33_spill] sm:$0xff] %v6592_v43  ;;  %v6596_v3 = vpop.permute.xlu2 %906  ;;  %v1504_v35 = vmul.f32 %v6373_v28, %v1503_v5  ;;  %v1505_v24 = vmul.f32 %v6426_v62, %v1503_v5  ;;  %v1507_v50 = vmul.f32 %v6440_v11, %v1503_v5 }
  0xfc   : > { %10401 = vst [vmem:[#allocation34_spill] sm:$0xff] %v6596_v3  ;;  %v1466_v36 = vsel %vm578_vm1, %v1464_v9, %v1465_v10  ;;  %v1492_v60 = vrot.slane %v1483_v32, 2 }
  0xfd   : > { %v1513_v28 = vrot.slane %v1505_v24, 2  ;;  %v1516_v10 = vrot.slane %v1507_v50, 2  ;;  %v6644_v24 = vld [vmem:[%s6182_s22 + $0x20] sm:$0xff] }
  0xff   : > { %1446 = vrot.lane.b32.xlu1 %v1442_v15, %s6148_s29  ;;  %v1489_v15 = vrot.slane %v1481_v56, 2  ;;  %v1512_v56 = vrot.slane %v1504_v35, 2 }
 0x100   : > { %1424 = vrot.lane.b32.xlu0 %v1421_v18, %s6147_s23  ;;  %v1482_v18 = vmul.f32 %v6368_v25, %v1479_v41 }
 0x101   : > { %v6608_v3 = vpop.permute.xlu1 %833  ;;  %1448 = vrot.lane.b32.xlu2 %v1445_v48, %s6148_s29  ;;  %v1490_v40 = vsel %vm578_vm1, %v1488_v12, %v1489_v15  ;;  %v1506_v48 = vmul.f32 %v6368_v25, %v1503_v5  ;;  %v1514_v25 = vsel %vm578_vm1, %v1512_v56, %v1513_v28  ;;  %v6639_v12 = vld [vmem:[%s6182_s22 + $0x60] sm:$0xff]  ;;  %v1556_v15 = vstv %s5814_s21  ;;  %s6823_s21 = sld [smem:[#allocation2 + $0x61]] }
 0x102   : > { %10402 = vst [vmem:[#allocation35_spill] sm:$0xff] %v6608_v3  ;;  %v6610_v43 = vpop.permute.xlu0 %811  ;;  %v1491_v57 = vrot.slane %v1482_v18, 2  ;;  %v1558_v18 = vmul.f32 %v6639_v12, %v1556_v15  ;;  %v1557_v32 = vmul.f32 %v6644_v24, %v1556_v15  ;;  %v1584_v56 = vstv %s5816_s25  ;;  %s6851_s25 = sld [smem:[#allocation2 + $0x6c]] }
 0x103   : > { %10403 = vst [vmem:[#allocation36_spill] sm:$0xff] %v6610_v43  ;;  %v6614_v6 = vpop.permute.xlu2 %932  ;;  %v1515_v9 = vrot.slane %v1506_v48, 2  ;;  %v1570_v48 = vstv %s5815_s24  ;;  %v2044_v3 = vstv %s5839_s18  ;;  %s6835_s24 = sld [smem:[#allocation2 + $0x6f]] }
 0x104   : > { %10404 = vst [vmem:[#allocation37_spill] sm:$0xff] %v6614_v6  ;;  %v1493_v35 = vsel %vm578_vm1, %v1491_v57, %v1492_v60  ;;  %v1571_v50 = vmul.f32 %v6644_v24, %v1570_v48  ;;  %v1585_v60 = vmul.f32 %v6644_v24, %v1584_v56  ;;  %s7174_s18 = sld [smem:[#allocation2 + $0x2d]] }
 0x105   : > { %v1517_v5 = vsel %vm578_vm1, %v1515_v9, %v1516_v10  ;;  %v1572_v9 = vmul.f32 %v6639_v12, %v1570_v48 }
 0x107   : > { %1472 = vrot.lane.b32.xlu1 %v1469_v0, %s6148_s29 }
 0x108   : > { %1470 = vrot.lane.b32.xlu0 %v1466_v36, %s6148_s29 }
 0x109   : > { %v6626_v62 = vpop.permute.xlu1 %878  ;;  %1494 = vrot.lane.b32.xlu2 %v1490_v40, %s6148_s29 }
 0x10a   : > { %10405 = vst [vmem:[#allocation38_spill] sm:$0xff] %v6626_v62  ;;  %v6628_v41 = vpop.permute.xlu0 %876 }
 0x10b   : > { %10406 = vst [vmem:[#allocation39_spill] sm:$0xff] %v6628_v41  ;;  %v6632_v11 = vpop.permute.xlu2 %948  ;;  %v1820_v41 = vstv %s5829_s7  ;;  %s7014_s7 = sld [smem:[#allocation2 + $0x6]] }
 0x10c   : > { %10407 = vst [vmem:[#allocation40_spill] sm:$0xff] %v6632_v11 }
 0x10f   : > { %1518 = vrot.lane.b32.xlu1 %v1514_v25, %s6148_s29  ;;  %v1586_v25 = vmul.f32 %v6639_v12, %v1584_v56 }
 0x110   : > { %1496 = vrot.lane.b32.xlu0 %v1493_v35, %s6148_s29  ;;  %v1598_v35 = vstv %s5817_s26  ;;  %s6863_s26 = sld [smem:[#allocation2 + $0x85]] }
 0x111   : > { %v6641_v0 = vpop.permute.xlu1 %904  ;;  %1520 = vrot.lane.b32.xlu2 %v1517_v5, %s6148_s29 }
 0x112   : > { %10408 = vst [vmem:[#allocation41_spill] sm:$0xff] %v6641_v0  ;;  %v6646_v36 = vpop.permute.xlu0 %892  ;;  %v1772_v0 = vstv %s5827_s5  ;;  %s6990_s5 = sld [smem:[#allocation2 + $0x86]] }
 0x113   : > { %10409 = vst [vmem:[#allocation42_spill] sm:$0xff] %v6646_v36  ;;  %v6651_v40 = vpop.permute.xlu2 %974 }
 0x114   : > { %10410 = vst [vmem:[#allocation43_spill] sm:$0xff] %v6651_v40  ;;  %v6711_v40 = vld [vmem:[%s6182_s22 + $0x68] sm:$0x3] }
 0x117   : > { %1563 = vrot.lane.b32.xlu1 %v1558_v18, %s6147_s23  ;;  %v1600_v18 = vmul.f32 %v6639_v12, %v1598_v35 }
 0x118   : > { %1561 = vrot.lane.b32.xlu0 %v1557_v32, %s6147_s23  ;;  %v1599_v32 = vmul.f32 %v6644_v24, %v1598_v35 }
 0x119   : > { %v6656_v28 = vpop.permute.xlu1 %920  ;;  %1575 = vrot.lane.b32.xlu2 %v1571_v50, %s6147_s23  ;;  %v1612_v50 = vstv %s5818_s27  ;;  %s6882_s27 = sld [smem:[#allocation2 + $0x1a]] }
 0x11a   : > { %10411 = vst [vmem:[#allocation44_spill] sm:$0xff] %v6656_v28  ;;  %v6658_v57 = vpop.permute.xlu0 %918  ;;  %v1613_v56 = vmul.f32 %v6644_v24, %v1612_v50 }
 0x11b   : > { %10412 = vst [vmem:[#allocation45_spill] sm:$0xff] %v6658_v57  ;;  %v6663_v10 = vpop.permute.xlu2 %1080 }
 0x11c   : > { %10413 = vst [vmem:[#allocation46_spill] sm:$0xff] %v6663_v10 }
 0x11f   : > { %1589 = vrot.lane.b32.xlu1 %v1585_v60, %s6147_s23  ;;  %v1626_v60 = vstv %s5819_s28  ;;  %s6902_s28 = sld [smem:[#allocation2 + $0x4b]]  ;;  %v2116_v20 = vstv %s6882_s27 }
 0x120   : > { %1577 = vrot.lane.b32.xlu0 %v1572_v9, %s6147_s23  ;;  %v1627_v35 = vmul.f32 %v6644_v24, %v1626_v60  ;;  %s7290_s27 = sld [smem:[#allocation2 + $0x65]] }
 0x121   : > { %v6668_v5 = vpop.permute.xlu1 %946  ;;  %1591 = vrot.lane.b32.xlu2 %v1586_v25, %s6147_s23 }
 0x122   : > { %10414 = vst [vmem:[#allocation47_spill] sm:$0xff] %v6668_v5  ;;  %v6670_v15 = vpop.permute.xlu0 %934  ;;  %v1654_v5 = vstv %s6689_s4  ;;  %s6972_s4 = sld [smem:[#allocation2 + $0x2a]] }
 0x123   : > { %10415 = vst [vmem:[#allocation48_spill] sm:$0xff] %v6670_v15  ;;  %v6675_v48 = vpop.permute.xlu2 %1126  ;;  %v1656_v36 = vmul.f32 %v6639_v12, %v1654_v5 }
 0x124   : > { %10416 = vst [vmem:[#allocation49_spill] sm:$0xff] %v6675_v48  ;;  %v1614_v48 = vmul.f32 %v6639_v12, %v1612_v50 }
 0x127   : > { %1605 = vrot.lane.b32.xlu1 %v1600_v18, %s6147_s23  ;;  %v1628_v18 = vmul.f32 %v6639_v12, %v1626_v60 }
 0x128   : > { %1603 = vrot.lane.b32.xlu0 %v1599_v32, %s6147_s23  ;;  %v1640_v32 = vstv %s5820_s30  ;;  %s6943_s30 = sld [smem:[#allocation2 + $0x3e]] }
 0x129   : > { %v6680_v9 = vpop.permute.xlu1 %962  ;;  %1617 = vrot.lane.b32.xlu2 %v1613_v56, %s6148_s29  ;;  %v6697_v56 = vld [vmem:[%s6182_s22 + $0x28] sm:$0x3]  ;;  %v1641_v60 = vmul.f32 %v6644_v24, %v1640_v32 }
 0x12a   : > { %10417 = vst [vmem:[#allocation50_spill] sm:$0xff] %v6680_v9  ;;  %v6682_v25 = vpop.permute.xlu0 %960  ;;  %v2046_v59 = vmul.f32 %v6697_v56, %v2044_v3 }
 0x12b   : > { %10418 = vst [vmem:[#allocation51_spill] sm:$0xff] %v6682_v25  ;;  %v6687_v10 = vpop.permute.xlu2 %1152  ;;  %v1748_v25 = vstv %s5826_s3  ;;  %s6969_s3 = sld [smem:[#allocation2 + $0x62]] }
 0x12c   : > { %10419 = vst [vmem:[#allocation52_spill] sm:$0xff] %v6687_v10  ;;  %v1642_v10 = vmul.f32 %v6639_v12, %v1640_v32 }
 0x12f   : > { %1631 = vrot.lane.b32.xlu1 %v1627_v35, %s6148_s29  ;;  %v1749_v35 = vmul.f32 %v6644_v24, %v1748_v25 }
 0x130   : > { %1619 = vrot.lane.b32.xlu0 %v1614_v48, %s6148_s29  ;;  %v1750_v48 = vmul.f32 %v6697_v56, %v1748_v25 }
 0x131   : > { %v6694_v9 = vpop.permute.xlu1 %1078  ;;  %1633 = vrot.lane.b32.xlu2 %v1628_v18, %s6148_s29  ;;  %v1751_v18 = vmul.f32 %v6639_v12, %v1748_v25  ;;  %v1757_v32 = vrot.slane %v1749_v35, 1  ;;  %v1773_v35 = vmul.f32 %v6644_v24, %v1772_v0 }
 0x132   : > { %10420 = vst [vmem:[#allocation53_spill] sm:$0xff] %v6694_v9  ;;  %v6699_v50 = vpop.permute.xlu0 %976  ;;  %v1655_v9 = vmul.f32 %v6644_v24, %v1654_v5 }
 0x133   : > { %10421 = vst [vmem:[#allocation54_spill] sm:$0xff] %v6699_v50  ;;  %v6704_v15 = vpop.permute.xlu2 %1198  ;;  %v1752_v50 = vmul.f32 %v6711_v40, %v1748_v25  ;;  %v1760_v11 = vrot.slane %v1751_v18, 1  ;;  %v1775_v25 = vmul.f32 %v6639_v12, %v1772_v0 }
 0x134   : > { %10422 = vst [vmem:[#allocation55_spill] sm:$0xff] %v6704_v15  ;;  %v1758_v15 = vrot.slane %v1750_v48, 1  ;;  %v1774_v48 = vmul.f32 %v6697_v56, %v1772_v0 }
 0x135   : > { %v1761_v62 = vrot.slane %v1752_v50, 1  ;;  %v1784_v5 = vrot.slane %v1775_v25, 1  ;;  %v1822_v25 = vmul.f32 %v6697_v56, %v1820_v41 }
 0x137   : > { %1647 = vrot.lane.b32.xlu1 %v1642_v10, %s6148_s29  ;;  %v1759_v10 = vsel %vm305_vm0, %v1757_v32, %v1758_v15 }
 0x138   : > { %1645 = vrot.lane.b32.xlu0 %v1641_v60, %s6148_s29  ;;  %v1776_v60 = vmul.f32 %v6711_v40, %v1772_v0 }
 0x139   : > { %v6717_v28 = vpop.permute.xlu1 %1104  ;;  %1659 = vrot.lane.b32.xlu2 %v1655_v9, %s6148_s29  ;;  %v1762_v9 = vsel %vm305_vm0, %v1760_v11, %v1761_v62 }
 0x13a   : > { %10423 = vst [vmem:[#allocation56_spill] sm:$0xff] %v6717_v28  ;;  %v6719_v57 = vpop.permute.xlu0 %1102  ;;  %v1796_v28 = vstv %s5828_s6  ;;  %v1785_v18 = vrot.slane %v1776_v60, 1  ;;  %s7001_s6 = sld [smem:[#allocation2 + $0x4e]] }
 0x13b   : > { %10424 = vst [vmem:[#allocation57_spill] sm:$0xff] %v6719_v57  ;;  %v6724_v6 = vpop.permute.xlu2 %1224  ;;  %v1797_v50 = vmul.f32 %v6644_v24, %v1796_v28  ;;  %v1798_v15 = vmul.f32 %v6697_v56, %v1796_v28  ;;  %v1782_v57 = vrot.slane %v1774_v48, 1  ;;  %v1800_v48 = vmul.f32 %v6711_v40, %v1796_v28 }
 0x13c   : > { %10425 = vst [vmem:[#allocation58_spill] sm:$0xff] %v6724_v6  ;;  %v1781_v6 = vrot.slane %v1773_v35, 1  ;;  %v1786_v11 = vsel %vm305_vm0, %v1784_v5, %v1785_v18  ;;  %v1799_v35 = vmul.f32 %v6639_v12, %v1796_v28  ;;  %v1830_v18 = vrot.slane %v1822_v25, 1 }
 0x13d   : > { %v1806_v62 = vrot.slane %v1798_v15, 1  ;;  %v1824_v15 = vmul.f32 %v6711_v40, %v1820_v41 }
 0x13e   : > { %v1783_v60 = vsel %vm305_vm0, %v1781_v6, %v1782_v57  ;;  %v1808_v6 = vrot.slane %v1799_v35, 1  ;;  %v1809_v57 = vrot.slane %v1800_v48, 1  ;;  %v1868_v48 = vstv %s5831_s11  ;;  %s7080_s11 = sld [smem:[#allocation2 + $0x1c]] }
 0x13f   : > { %1763 = vrot.lane.b32.xlu1 %v1759_v10, %s6147_s23  ;;  %v1805_v10 = vrot.slane %v1797_v50, 1  ;;  %v1823_v50 = vmul.f32 %v6639_v12, %v1820_v41 }
 0x140   : > { %1661 = vrot.lane.b32.xlu0 %v1656_v36, %s6148_s29  ;;  %v1821_v36 = vmul.f32 %v6644_v24, %v1820_v41  ;;  %v1810_v25 = vsel %vm305_vm0, %v1808_v6, %v1809_v57 }
 0x141   : > { %v6735_v32 = vpop.permute.xlu1 %1150  ;;  %1765 = vrot.lane.b32.xlu2 %v1762_v9, %s6147_s23  ;;  %v1807_v9 = vsel %vm305_vm0, %v1805_v10, %v1806_v62  ;;  %v1833_v10 = vrot.slane %v1824_v15, 1  ;;  %v1870_v15 = vmul.f32 %v6697_v56, %v1868_v48 }
 0x142   : > { %10426 = vst [vmem:[#allocation59_spill] sm:$0xff] %v6735_v32  ;;  %v6737_v0 = vpop.permute.xlu0 %1128  ;;  %v1829_v5 = vrot.slane %v1821_v36, 1  ;;  %v1844_v32 = vstv %s5830_s8  ;;  %s7071_s8 = sld [smem:[#allocation2 + $0x72]] }
 0x143   : > { %10427 = vst [vmem:[#allocation60_spill] sm:$0xff] %v6737_v0  ;;  %v6741_v43 = vpop.permute.xlu2 %1350  ;;  %v1847_v41 = vmul.f32 %v6639_v12, %v1844_v32  ;;  %v1848_v36 = vmul.f32 %v6711_v40, %v1844_v32  ;;  %v1846_v35 = vmul.f32 %v6697_v56, %v1844_v32 }
 0x144   : > { %10428 = vst [vmem:[#allocation61_spill] sm:$0xff] %v6741_v43  ;;  %v1831_v62 = vsel %vm305_vm0, %v1829_v5, %v1830_v18 }
 0x145   : > { %v1856_v5 = vrot.slane %v1847_v41, 1  ;;  %v1857_v18 = vrot.slane %v1848_v36, 1  ;;  %v1854_v57 = vrot.slane %v1846_v35, 1  ;;  %v1872_v35 = vmul.f32 %v6711_v40, %v1868_v48 }
 0x147   : > { %1789 = vrot.lane.b32.xlu1 %v1786_v11, %s6147_s23  ;;  %v1832_v11 = vrot.slane %v1823_v50, 1  ;;  %v1869_v50 = vmul.f32 %v6644_v24, %v1868_v48 }
 0x148   : > { %1787 = vrot.lane.b32.xlu0 %v1783_v60, %s6147_s23  ;;  %v1845_v60 = vmul.f32 %v6644_v24, %v1844_v32 }
 0x149   : > { %v6753_v43 = vpop.permute.xlu1 %1176  ;;  %1811 = vrot.lane.b32.xlu2 %v1807_v9, %s6147_s23  ;;  %v1834_v9 = vsel %vm305_vm0, %v1832_v11, %v1833_v10  ;;  %v1878_v11 = vrot.slane %v1870_v15, 1  ;;  %v1858_v10 = vsel %vm305_vm0, %v1856_v5, %v1857_v18 }
 0x14a   : > { %10429 = vst [vmem:[#allocation62_spill] sm:$0xff] %v6753_v43  ;;  %v6755_v28 = vpop.permute.xlu0 %1174  ;;  %v1853_v6 = vrot.slane %v1845_v60, 1  ;;  %v1892_v43 = vstv %s5832_s12  ;;  %v1871_v60 = vmul.f32 %v6639_v12, %v1868_v48  ;;  %v1881_v48 = vrot.slane %v1872_v35, 1  ;;  %s7107_s12 = sld [smem:[#allocation2 + $0x40]] }
 0x14b   : > { %10430 = vst [vmem:[#allocation63_spill] sm:$0xff] %v6755_v28  ;;  %v6759_v0 = vpop.permute.xlu2 %1376  ;;  %v1894_v41 = vmul.f32 %v6697_v56, %v1892_v43  ;;  %v1896_v15 = vmul.f32 %v6711_v40, %v1892_v43 }
 0x14c   : > { %10431 = vst [vmem:[#allocation64_spill] sm:$0xff] %v6759_v0  ;;  %v1855_v36 = vsel %vm305_vm0, %v1853_v6, %v1854_v57  ;;  %v1880_v57 = vrot.slane %v1871_v60, 1 }
 0x14d   : > { %v1902_v18 = vrot.slane %v1894_v41, 1 }
 0x14f   : > { %1835 = vrot.lane.b32.xlu1 %v1831_v62, %s6147_s23  ;;  %v1877_v62 = vrot.slane %v1869_v50, 1  ;;  %v1895_v50 = vmul.f32 %v6639_v12, %v1892_v43 }
 0x150   : > { %1813 = vrot.lane.b32.xlu0 %v1810_v25, %s6147_s23  ;;  %v1893_v25 = vmul.f32 %v6644_v24, %v1892_v43 }
 0x151   : > { %v6771_v0 = vpop.permute.xlu1 %1222  ;;  %1837 = vrot.lane.b32.xlu2 %v1834_v9, %s6147_s23  ;;  %v1879_v9 = vsel %vm305_vm0, %v1877_v62, %v1878_v11  ;;  %v1904_v62 = vrot.slane %v1895_v50, 1  ;;  %v1905_v11 = vrot.slane %v1896_v15, 1  ;;  %v2020_v50 = vstv %s5838_s15  ;;  %s7155_s15 = sld [smem:[#allocation2 + $0x51]] }
 0x152   : > { %10432 = vst [vmem:[#allocation65_spill] sm:$0xff] %v6771_v0  ;;  %v6773_v32 = vpop.permute.xlu0 %1200  ;;  %v1901_v5 = vrot.slane %v1893_v25, 1  ;;  %v6813_v15 = vstv %s5743_s16  ;;  %v2023_v31 = vmul.f32 %v6639_v12, %v2020_v50  ;;  %s7163_s16 = sld [smem:[#allocation2 + $0x75]] }
 0x153   : > { %10433 = vst [vmem:[#allocation66_spill] sm:$0xff] %v6773_v32  ;;  %v6777_v28 = vpop.permute.xlu2 %1422 }
 0x154   : > { %10434 = vst [vmem:[#allocation67_spill] sm:$0xff] %v6777_v28  ;;  %v1916_v28 = vstv %s5833_s13  ;;  %v1903_v43 = vsel %vm305_vm0, %v1901_v5, %v1902_v18  ;;  %v1906_v5 = vsel %vm305_vm0, %v1904_v62, %v1905_v11  ;;  %v2021_v18 = vmul.f32 %v6644_v24, %v2020_v50  ;;  %v6831_v11 = vld [vmem:[%s6182_s22 + $0x8] sm:$0x3]  ;;  %s7128_s13 = sld [smem:[#allocation2 + $0x64]] }
 0x155   : > { %v1919_v25 = vmul.f32 %v6639_v12, %v1916_v28  ;;  %v1920_v41 = vmul.f32 %v6711_v40, %v1916_v28  ;;  %v1917_v60 = vmul.f32 %v6644_v24, %v1916_v28  ;;  %v1918_v35 = vmul.f32 %v6697_v56, %v1916_v28 }
 0x156   : > { %v2029_v13 = vrot.slane %v2021_v18, 2  ;;  %v2024_v18 = vmul.f32 %v6711_v40, %v2020_v50 }
 0x157   : > { %1861 = vrot.lane.b32.xlu1 %v1858_v10, %s6148_s29  ;;  %v1928_v28 = vrot.slane %v1919_v25, 1  ;;  %v1926_v0 = vrot.slane %v1918_v35, 1  ;;  %v6846_v35 = vld [vmem:[%s6182_s22 + $0x48] sm:$0x3] }
 0x158   : > { %1859 = vrot.lane.b32.xlu0 %v1855_v36, %s6148_s29  ;;  %v1882_v36 = vsel %vm305_vm0, %v1880_v57, %v1881_v48  ;;  %v2022_v57 = vmul.f32 %v6697_v56, %v2020_v50  ;;  %v1929_v48 = vrot.slane %v1920_v41, 1  ;;  %v6838_v41 = vld [vmem:[%s6182_s22 + $0x40] sm:$0xff] }
 0x159   : > { %v6793_v6 = vpop.permute.xlu1 %1248  ;;  %1883 = vrot.lane.b32.xlu2 %v1879_v9, %s6148_s29  ;;  %v6811_v9 = vstv %s6781_s14  ;;  %s7135_s14 = sld [smem:[#allocation2 + $0x9]] }
 0x15a   : > { %10435 = vst [vmem:[#allocation68_spill] sm:$0xff] %v6793_v6  ;;  %v6795_v10 = vpop.permute.xlu0 %1246  ;;  %v298_v25 = vmul.f32 %v6831_v11, %v6811_v9  ;;  %v2030_v47 = vrot.slane %v2022_v57, 2  ;;  %v1930_v26 = vsel %vm305_vm0, %v1928_v28, %v1929_v48  ;;  %v168_v57 = vstv %s6808_s20  ;;  %s7198_s20 = sld [smem:[#allocation2 + $0x30]] }
 0x15b   : > { %10436 = vst [vmem:[#allocation69_spill] sm:$0xff] %v6795_v10  ;;  %v6799_v32 = vpop.permute.xlu2 %1448  ;;  %v1925_v10 = vrot.slane %v1917_v60, 1 }
 0x15c   : > { %10437 = vst [vmem:[#allocation70_spill] sm:$0xff] %v6799_v32  ;;  %v176_v32 = vstv %s6790_s17  ;;  %v307_v23 = vrot.slane %v298_v25, 1  ;;  %v2031_v48 = vsel %vm578_vm1, %v2029_v13, %v2030_v47  ;;  %v2054_v25 = vrot.slane %v2046_v59, 2  ;;  %s7166_s17 = sld [smem:[#allocation2 + $0xc]] }
 0x15d   : > { %v1927_v22 = vsel %vm305_vm0, %v1925_v10, %v1926_v0  ;;  %v2048_v0 = vmul.f32 %v6711_v40, %v2044_v3  ;;  %v6870_v10 = vmul.f32 %v6838_v41, %v176_v32  ;;  %v2032_v47 = vrot.slane %v2023_v31, 2 }
 0x15e   : > { %v2033_v13 = vrot.slane %v2024_v18, 2  ;;  %v6894_v59 = vstv %s6835_s24  ;;  %s7213_s24 = sld [smem:[#allocation2 + $0x1d]] }
 0x15f   : > { %1907 = vrot.lane.b32.xlu1 %v1903_v43, %s6148_s29  ;;  %v6826_v43 = vld [vmem:[%s6182_s22] sm:$0xff] }
 0x160   : > { %1885 = vrot.lane.b32.xlu0 %v1882_v36, %s6148_s29  ;;  %v297_v62 = vmul.f32 %v6826_v43, %v6811_v9  ;;  %v320_v36 = vmul.f32 %v6838_v41, %v6813_v15  ;;  %v177_v8 = vmul.f32 %v6826_v43, %v176_v32  ;;  %v6888_v32 = vmul.f32 %v6838_v41, %v168_v57 }
 0x161   : > { %v6821_v6 = vpop.permute.xlu1 %1374  ;;  %1909 = vrot.lane.b32.xlu2 %v1906_v5, %s6148_s29  ;;  %v172_v5 = vstv %s6803_s19  ;;  %s7180_s19 = sld [smem:[#allocation2 + $0x88]] }
 0x162   : > { %10438 = vst [vmem:[#allocation71_spill] sm:$0xff] %v6821_v6  ;;  %v6842_v60 = vpop.permute.xlu0 %1352  ;;  %v321_v6 = vmul.f32 %v6846_v35, %v6813_v15  ;;  %v306_v37 = vrot.slane %v297_v62, 1  ;;  %v329_v63 = vrot.slane %v320_v36, 1  ;;  %v6873_v50 = vmul.f32 %v6826_v43, %v172_v5 }
 0x163   : > { %10439 = vst [vmem:[#allocation72_spill] sm:$0xff] %v6842_v60  ;;  %v6854_v2 = vpop.permute.xlu2 %1494  ;;  %v2045_v60 = vmul.f32 %v6644_v24, %v2044_v3  ;;  %v2068_v36 = vstv %s6823_s21  ;;  %v6900_v31 = vadd.f32 %v6315_v34, %v177_v8  ;;  %v358_v34 = vmul.f32 %v6826_v43, %v6894_v59  ;;  %s7206_s21 = sld [smem:[#allocation2 + $0x78]] }
 0x164   : > { %10440 = vst [vmem:[#allocation73_spill] sm:$0xff] %v6854_v2  ;;  %v330_v28 = vrot.slane %v321_v6, 1  ;;  %v2047_v2 = vmul.f32 %v6639_v12, %v2044_v3  ;;  %v6877_v6 = vmul.f32 %v6826_v43, %v168_v57  ;;  %v6885_v3 = vmul.f32 %v6838_v41, %v172_v5 }
 0x165   : > { %v2053_v62 = vrot.slane %v2045_v60, 2  ;;  %v2057_v57 = vrot.slane %v2048_v0, 2  ;;  %v2034_v8 = vsel %vm578_vm1, %v2032_v47, %v2033_v13  ;;  %v2069_v58 = vmul.f32 %v6644_v24, %v2068_v36 }
 0x166   : > { %v6905_v5 = vsel %vm305_vm0, %v329_v63, %v330_v28  ;;  %v2056_v18 = vrot.slane %v2047_v2, 2  ;;  %v2070_v63 = vmul.f32 %v6697_v56, %v2068_v36  ;;  %v299_v2 = vmul.f32 %v6838_v41, %v6811_v9 }
 0x167   : > { %1933 = vrot.lane.b32.xlu1 %v1930_v26, %s6148_s29  ;;  %v300_v28 = vmul.f32 %v6846_v35, %v6811_v9  ;;  %v359_v0 = vmul.f32 %v6831_v11, %v6894_v59  ;;  %v319_v9 = vmul.f32 %v6831_v11, %v6813_v15  ;;  %v366_v16 = vrot.slane %v358_v34, 1 }
 0x168   : > { %1931 = vrot.lane.b32.xlu0 %v1927_v22, %s6148_s29  ;;  %v6891_v22 = vsel %vm305_vm0, %v306_v37, %v307_v23  ;;  %v2055_v23 = vsel %vm578_vm1, %v2053_v62, %v2054_v25  ;;  %v2092_v62 = vstv %s6863_s26  ;;  %v318_v25 = vmul.f32 %v6826_v43, %v6813_v15  ;;  %s7260_s26 = sld [smem:[#allocation2 + $0x54]] }
 0x169   : > { %v6879_v26 = vpop.permute.xlu1 %1400  ;;  %2035 = vrot.lane.b32.xlu2 %v2031_v48, %s6147_s23  ;;  %v2072_v48 = vmul.f32 %v6711_v40, %v2068_v36  ;;  %v2058_v47 = vsel %vm578_vm1, %v2056_v18, %v2057_v57  ;;  %v2093_v13 = vmul.f32 %v6644_v24, %v2092_v62  ;;  %v2077_v18 = vrot.slane %v2069_v58, 2 }
 0x16a   : > { %10441 = vst [vmem:[#allocation74_spill] sm:$0xff] %v6879_v26  ;;  %v6896_v60 = vpop.permute.xlu0 %1398  ;;  %v180_v26 = vstv %s6851_s25  ;;  %v2078_v57 = vrot.slane %v2070_v63, 2  ;;  %v309_v52 = vrot.slane %v299_v2, 1  ;;  %v310_v4 = vrot.slane %v300_v28, 1  ;;  %s7230_s25 = sld [smem:[#allocation2 + $0x41]] }
 0x16b   : > { %10442 = vst [vmem:[#allocation75_spill] sm:$0xff] %v6896_v60  ;;  %v6909_v37 = vpop.permute.xlu2 %1520  ;;  %v2071_v60 = vmul.f32 %v6639_v12, %v2068_v36  ;;  %v2094_v36 = vmul.f32 %v6697_v56, %v2092_v62  ;;  %v2081_v14 = vrot.slane %v2072_v48, 2  ;;  %v6938_v44 = vmul.f32 %v6826_v43, %v180_v26 }
 0x16c   : > { %10443 = vst [vmem:[#allocation76_spill] sm:$0xff] %v6909_v37  ;;  %v6932_v37 = vmul.f32 %v6838_v41, %v180_v26  ;;  %v367_v61 = vrot.slane %v359_v0, 1  ;;  %v326_v48 = vrot.slane %v318_v25, 1  ;;  %v327_v17 = vrot.slane %v319_v9, 1 }
 0x16d   : > { %v2080_v53 = vrot.slane %v2071_v60, 2  ;;  %v337_v60 = vstv %s6902_s28  ;;  %v2102_v26 = vrot.slane %v2094_v36, 2  ;;  %v2117_v63 = vmul.f32 %v6644_v24, %v2116_v20  ;;  %s7300_s28 = sld [smem:[#allocation2 + $0x1f]] }
 0x16e   : > { %v2118_v2 = vmul.f32 %v6697_v56, %v2116_v20  ;;  %v6956_v34 = vadd.f32 %v6329_v51, %v6870_v10  ;;  %v2079_v28 = vsel %vm578_vm1, %v2077_v18, %v2078_v57  ;;  %v2095_v0 = vmul.f32 %v6639_v12, %v2092_v62 }
 0x16f   : > { %2059 = vrot.lane.b32.xlu1 %v2055_v23, %s6147_s23  ;;  %v2096_v25 = vmul.f32 %v6711_v40, %v2092_v62  ;;  %v340_v51 = vmul.f32 %v6838_v41, %v337_v60  ;;  %v6979_v62 = vsel %vm305_vm0, %v326_v48, %v327_v17  ;;  %v6985_v9 = vadd.f32 %v6355_v21, %v6873_v50 }
 0x170   : > { %2037 = vrot.lane.b32.xlu0 %v2034_v8, %s6147_s23  ;;  %v2101_v8 = vrot.slane %v2093_v13, 2  ;;  %v6967_v13 = vsel %vm305_vm0, %v366_v16, %v367_v61  ;;  %v341_v61 = vmul.f32 %v6846_v35, %v337_v60  ;;  %v2125_v16 = vrot.slane %v2117_v63, 2 }
 0x171   : > { %v6940_v23 = vpop.permute.xlu1 %1446  ;;  %2061 = vrot.lane.b32.xlu2 %v2058_v47, %s6147_s23  ;;  %v6962_v47 = vsel %vm305_vm0, %v309_v52, %v310_v4  ;;  %v2119_v4 = vmul.f32 %v6639_v12, %v2116_v20  ;;  %v2120_v52 = vmul.f32 %v6711_v40, %v2116_v20  ;;  %v2126_v36 = vrot.slane %v2118_v2, 2 }
 0x172   : > { %10444 = vst [vmem:[#allocation77_spill] sm:$0xff] %v6940_v23  ;;  %v6945_v15 = vpop.permute.xlu0 %1424  ;;  %v2082_v23 = vsel %vm578_vm1, %v2080_v53, %v2081_v14  ;;  %v338_v14 = vmul.f32 %v6826_v43, %v337_v60  ;;  %v339_v53 = vmul.f32 %v6831_v11, %v337_v60  ;;  %v2103_v10 = vsel %vm578_vm1, %v2101_v8, %v2102_v26 }
 0x173   : > { %v6950_v58 = vpop.permute.xlu2 %1575  ;;  %v2104_v18 = vrot.slane %v2095_v0, 2  ;;  %v2105_v57 = vrot.slane %v2096_v25, 2  ;;  %v2140_v8 = vstv %s6943_s30  ;;  %v195_v17 = vadd.f32 %v6357_v19, %v6877_v6  ;;  %s7309_s30 = sld [smem:[#allocation2 + $0x33]] }
 0x174   : > { %v346_v20 = vrot.slane %v338_v14, 1  ;;  %v360_v60 = vmul.f32 %v6838_v41, %v6894_v59  ;;  %v361_v48 = vmul.f32 %v6846_v35, %v6894_v59  ;;  %v347_v21 = vrot.slane %v339_v53, 1 }
 0x175   : > { %v349_v50 = vrot.slane %v340_v51, 1  ;;  %v2128_v63 = vrot.slane %v2119_v4, 2  ;;  %v2129_v2 = vrot.slane %v2120_v52, 2  ;;  %v350_v19 = vrot.slane %v341_v61, 1 }
 0x176   : > { %v2127_v6 = vsel %vm578_vm1, %v2125_v16, %v2126_v36  ;;  %v2143_v0 = vmul.f32 %v6639_v12, %v2140_v8  ;;  %v2144_v59 = vmul.f32 %v6711_v40, %v2140_v8  ;;  %v210_v25 = vadd.f32 %v6370_v27, %v6885_v3 }
 0x177   : > { %2085 = vrot.lane.b32.xlu1 %v2082_v23, %s6147_s23  ;;  %v2106_v14 = vsel %vm578_vm1, %v2104_v18, %v2105_v57  ;;  %v2141_v53 = vmul.f32 %v6644_v24, %v2140_v8  ;;  %v2142_v51 = vmul.f32 %v6697_v56, %v2140_v8  ;;  %v369_v4 = vrot.slane %v360_v60, 1 }
 0x178   : > { %2083 = vrot.lane.b32.xlu0 %v2079_v28, %s6147_s23  ;;  %v370_v52 = vrot.slane %v361_v48, 1  ;;  %v2164_v61 = vstv %s6969_s3  ;;  %v7018_v16 = vstv %s6972_s4  ;;  %v2130_v27 = vsel %vm578_vm1, %v2128_v63, %v2129_v2  ;;  %s7317_s3 = sld [smem:[#allocation2 + $0x89]] }
 0x179   : > { %v6987_v23 = vpop.permute.xlu1 %1472  ;;  %2107 = vrot.lane.b32.xlu2 %v2103_v10, %s6147_s23  ;;  %v251_v10 = vadd.f32 %v6343_v7, %v195_v17  ;;  %v2165_v3 = vmul.f32 %v6644_v24, %v2164_v61  ;;  %v2166_v36 = vmul.f32 %v6697_v56, %v2164_v61  ;;  %v7025_v18 = vsel %vm305_vm0, %v346_v20, %v347_v21  ;;  %s7347_s4 = sld [smem:[#allocation2 + $0x43]] }
 0x17a   : > { %v6998_v26 = vpop.permute.xlu0 %1470  ;;  %v7028_v7 = vsel %vm305_vm0, %v349_v50, %v350_v19  ;;  %v2152_v57 = vrot.slane %v2143_v0, 2  ;;  %v2153_v8 = vrot.slane %v2144_v59, 2  ;;  %v266_v17 = vadd.f32 %v6361_v29, %v210_v25 }
 0x17b   : > { %v7004_v28 = vpop.permute.xlu2 %1591  ;;  %v2149_v48 = vrot.slane %v2141_v53, 2  ;;  %v2150_v63 = vrot.slane %v2142_v51, 2  ;;  %v2188_v2 = vstv %s6990_s5  ;;  %v7038_v20 = vadd.f32 %v6891_v22, %v251_v10  ;;  %s7363_s5 = sld [smem:[#allocation2 + $0x57]] }
 0x17c   : > { %v7041_v21 = vsel %vm305_vm0, %v369_v4, %v370_v52  ;;  %v591_v50 = vmul.f32 %v6826_v43, %v7018_v16  ;;  %v592_v29 = vmul.f32 %v6831_v11, %v7018_v16  ;;  %v7051_v0 = vstv %s7001_s6  ;;  %s7384_s6 = sld [smem:[#allocation2 + $0x67]] }
 0x17d   : > { %v237_v22 = vadd.f32 %v6387_v39, %v6938_v44  ;;  %v2154_v59 = vsel %vm578_vm1, %v2152_v57, %v2153_v8  ;;  %v2190_v53 = vmul.f32 %v6697_v56, %v2188_v2  ;;  %v7061_v51 = vadd.f32 %v6905_v5, %v266_v17 }
 0x17e   : > { %v2151_v10 = vsel %vm578_vm1, %v2149_v48, %v2150_v63  ;;  %v2167_v4 = vmul.f32 %v6639_v12, %v2164_v61  ;;  %v2168_v52 = vmul.f32 %v6711_v40, %v2164_v61  ;;  %v613_v39 = vmul.f32 %v6838_v41, %v7051_v0 }
 0x17f   : > { %2131 = vrot.lane.b32.xlu1 %v2127_v6, %s6148_s29  ;;  %v196_v6 = vadd.f32 %v6375_v30, %v6888_v32  ;;  %v2173_v30 = vrot.slane %v2165_v3, 2  ;;  %v2174_v32 = vrot.slane %v2166_v36, 2  ;;  %v599_v3 = vrot.slane %v591_v50, 2 }
 0x180   : > { %2109 = vrot.lane.b32.xlu0 %v2106_v14, %s6147_s23  ;;  %v2189_v14 = vmul.f32 %v6644_v24, %v2188_v2  ;;  %v614_v44 = vmul.f32 %v6846_v35, %v7051_v0  ;;  %v600_v24 = vrot.slane %v592_v29, 2  ;;  %v2191_v5 = vmul.f32 %v6639_v12, %v2188_v2 }
 0x181   : > { %v7032_v60 = vpop.permute.xlu1 %1518  ;;  %2133 = vrot.lane.b32.xlu2 %v2130_v27, %s6148_s29  ;;  %v569_v27 = vstv %s7014_s7  ;;  %v2175_v56 = vsel %vm578_vm1, %v2173_v30, %v2174_v32  ;;  %v2192_v36 = vmul.f32 %v6711_v40, %v2188_v2  ;;  %v293_v61 = vadd.f32 %v6380_v33, %v237_v22  ;;  %s7389_s7 = sld [smem:[#allocation2 + $0xf]] }
 0x182   : > { %v7045_v19 = vpop.permute.xlu0 %1496  ;;  %v252_v57 = vadd.f32 %v6399_v46, %v196_v6  ;;  %v2197_v8 = vrot.slane %v2189_v14, 2  ;;  %v2198_v17 = vrot.slane %v2190_v53, 2  ;;  %v570_v48 = vmul.f32 %v6826_v43, %v569_v27 }
 0x183   : > { %v7056_v25 = vpop.permute.xlu2 %1617  ;;  %v571_v63 = vmul.f32 %v6831_v11, %v569_v27  ;;  %v2176_v29 = vrot.slane %v2167_v4, 2  ;;  %v2177_v12 = vrot.slane %v2168_v52, 2  ;;  %v265_v40 = vadd.f32 %v6397_v45, %v6985_v9 }
 0x184   : > { %v279_v33 = vadd.f32 %v6411_v55, %v6900_v31  ;;  %v622_v46 = vrot.slane %v613_v39, 2  ;;  %v623_v2 = vrot.slane %v614_v44, 2  ;;  %v238_v30 = vadd.f32 %v6385_v38, %v6932_v37 }
 0x185   : > { %v7096_v32 = vsel %vm578_vm1, %v599_v3, %v600_v24  ;;  %v2200_v22 = vrot.slane %v2191_v5, 2  ;;  %v315_v14 = vadd.f32 %v6962_v47, %v252_v57  ;;  %v572_v45 = vmul.f32 %v6838_v41, %v569_v27 }
 0x186   : > { %v573_v55 = vmul.f32 %v6846_v35, %v569_v27  ;;  %v2199_v31 = vsel %vm578_vm1, %v2197_v8, %v2198_v17  ;;  %v280_v53 = vadd.f32 %v6409_v54, %v6956_v34  ;;  %v579_v38 = vrot.slane %v570_v48, 2  ;;  %v10447_v48 = vld [vmem:[#allocation9_spill] sm:$0xff] }
 0x187   : > { %2157 = vrot.lane.b32.xlu1 %v2154_v59, %s6148_s29  ;;  %v2201_v59 = vrot.slane %v2192_v36, 2  ;;  %v580_v37 = vrot.slane %v571_v63, 2  ;;  %v354_v47 = vadd.f32 %v7025_v18, %v279_v33  ;;  %v334_v4 = vadd.f32 %v6979_v62, %v265_v40 }
 0x188   : > { %2155 = vrot.lane.b32.xlu0 %v2151_v10, %s6148_s29  ;;  %v2178_v10 = vsel %vm578_vm1, %v2176_v29, %v2177_v12  ;;  %v374_v52 = vadd.f32 %v6967_v13, %v293_v61  ;;  %v7113_v27 = vsel %vm578_vm1, %v622_v46, %v623_v2  ;;  %v593_v54 = vmul.f32 %v6838_v41, %v7018_v16  ;;  %v7125_v13 = vld [vmem:[%s6182_s22 + $0x70] sm:$0xff]  ;;  %v10449_v46 = vld [vmem:[#allocation6_spill] sm:$0xff] }
 0x189   : > { %v7084_v50 = vpop.permute.xlu1 %1563  ;;  %2179 = vrot.lane.b32.xlu2 %v2175_v56, %s6148_s29  ;;  %v594_v34 = vmul.f32 %v6846_v35, %v7018_v16  ;;  %v630_v3 = vstv %s7071_s8  ;;  %v2202_v39 = vsel %vm578_vm1, %v2200_v22, %v2201_v59  ;;  %v399_v18 = vadd.f32 %v6392_v42, %v315_v14  ;;  %v7140_v61 = vld [vmem:[%s6182_s22 + $0x30] sm:$0xff]  ;;  %s7408_s8 = sld [smem:[#allocation2 + $0x8b]] }
 0x18a   : > { %v7090_v6 = vpop.permute.xlu0 %1561  ;;  %v582_v62 = vrot.slane %v572_v45, 2  ;;  %v583_v44 = vrot.slane %v573_v55, 2  ;;  %v2241_v24 = vstv %s7080_s11  ;;  %v294_v56 = vadd.f32 %v6428_v1, %v238_v30  ;;  %v10450_v55 = vld [vmem:[#allocation8_spill] sm:$0xff]  ;;  %s7461_s11 = sld [smem:[#allocation2 + $0x20]] }
 0x18b   : > { %v7102_v9 = vpop.permute.xlu2 %1633  ;;  %v355_v16 = vadd.f32 %v7028_v7, %v280_v53  ;;  %v581_v5 = vsel %vm578_vm1, %v579_v38, %v580_v37  ;;  %v611_v36 = vmul.f32 %v6826_v43, %v7051_v0  ;;  %v446_v57 = vadd.f32 %v6404_v49, %v354_v47  ;;  %v10451_v53 = vld [vmem:[#allocation7_spill] sm:$0xff]  ;;  %v10452_v38 = vld [vmem:[#allocation12_spill] sm:$0xff] }
 0x18c   : > { %10445 = vst [vmem:[#allocation78_spill] sm:$0xff] %v7102_v9  ;;  %v631_v8 = vmul.f32 %v6826_v43, %v630_v3  ;;  %v632_v17 = vmul.f32 %v6831_v11, %v630_v3  ;;  %v612_v1 = vmul.f32 %v6831_v11, %v7051_v0  ;;  %v422_v63 = vadd.f32 %v10447_v48, %v334_v4 }
 0x18d   : > { %v602_v29 = vrot.slane %v593_v54, 2  ;;  %v603_v12 = vrot.slane %v594_v34, 2  ;;  %v2243_v40 = vmul.f32 %v7125_v13, %v2241_v24  ;;  %v584_v49 = vsel %vm578_vm1, %v582_v62, %v583_v44  ;;  %v10456_v44 = vld [vmem:[#allocation17_spill] sm:$0xff] }
 0x18e   : > { %v633_v43 = vmul.f32 %v6838_v41, %v630_v3  ;;  %v634_v33 = vmul.f32 %v6846_v35, %v630_v3  ;;  %v2242_v11 = vmul.f32 %v7140_v61, %v2241_v24  ;;  %v398_v2 = vadd.f32 %v10449_v46, %v7038_v20  ;;  %v7203_v46 = vld [vmem:[%s6182_s22 + $0x50] sm:$0xff] }
 0x18f   : > { %2203 = vrot.lane.b32.xlu1 %v2199_v31, %s6148_s29  ;;  %v375_v30 = vadd.f32 %v7041_v21, %v294_v56  ;;  %v619_v22 = vrot.slane %v611_v36, 2  ;;  %v2255_v59 = vstv %s7107_s12  ;;  %v639_v14 = vrot.slane %v631_v8, 2  ;;  %v10458_v36 = vld [vmem:[#allocation5_spill] sm:$0xff]  ;;  %s7486_s12 = sld [smem:[#allocation2 + $0x44]] }
 0x190   : > { %2181 = vrot.lane.b32.xlu0 %v2178_v10, %s6148_s29  ;;  %v640_v41 = vrot.slane %v632_v17, 2  ;;  %v620_v45 = vrot.slane %v612_v1, 2  ;;  %v2256_v35 = vmul.f32 %v7140_v61, %v2255_v59  ;;  %v423_v31 = vadd.f32 %v10450_v55, %v7061_v51  ;;  %v10453_v10 = vld [vmem:[#allocation15_spill] sm:$0xff]  ;;  %v10459_v17 = vld [vmem:[#allocation18_spill] sm:$0xff] }
 0x191   : > { %v7137_v42 = vpop.permute.xlu1 %1589  ;;  %2205 = vrot.lane.b32.xlu2 %v2202_v39, %s6148_s29  ;;  %v518_v20 = vadd.f32 %v10451_v53, %v422_v63  ;;  %v447_v21 = vadd.f32 %v10452_v38, %v355_v16  ;;  %v604_v37 = vsel %vm578_vm1, %v602_v29, %v603_v12  ;;  %v494_v47 = vadd.f32 %v10453_v10, %v398_v2  ;;  %v10454_v51 = vld [vmem:[#allocation11_spill] sm:$0xff]  ;;  %v10455_v39 = vld [vmem:[#allocation14_spill] sm:$0xff]  ;;  %v10464_v38 = vld [vmem:[#allocation24_spill] sm:$0xff] }
 0x192   : > { %10446 = vst [vmem:[#allocation79_spill] sm:$0xff] %v7137_v42  ;;  %v7147_v7 = vpop.permute.xlu0 %1577  ;;  %v642_v4 = vrot.slane %v633_v43, 2  ;;  %v643_v54 = vrot.slane %v634_v33, 2  ;;  %v2269_v34 = vstv %s7128_s13  ;;  %v470_v3 = vadd.f32 %v10454_v51, %v374_v52  ;;  %v10460_v52 = vld [vmem:[#allocation10_spill] sm:$0xff]  ;;  %v10465_v10 = vld [vmem:[#allocation13_spill] sm:$0xff]  ;;  %v7225_v51 = vld [vmem:[%s6182_s22 + $0x10] sm:$0xff] }
 0x193   : > { %v7158_v0 = vpop.permute.xlu2 %1659  ;;  %v495_v62 = vadd.f32 %v10455_v39, %v399_v18  ;;  %v542_v24 = vadd.f32 %v10456_v44, %v446_v57  ;;  %v847_v56 = vstv %s7135_s14  ;;  %v471_v8 = vadd.f32 %v10458_v36, %v375_v30  ;;  %v10461_v57 = vld [vmem:[#allocation21_spill] sm:$0xff]  ;;  %v10468_v36 = vld [vmem:[#allocation16_spill] sm:$0xff]  ;;  %s7488_s13 = sld [smem:[#allocation2 + $0x7b]] }
 0x194   : > { %10448 = vst [vmem:[#allocation9_spill] sm:$0xff] %v7158_v0  ;;  %v519_v1 = vadd.f32 %v10459_v17, %v423_v31  ;;  %v641_v48 = vsel %vm578_vm1, %v639_v14, %v640_v41  ;;  %v621_v63 = vsel %vm578_vm1, %v619_v22, %v620_v45  ;;  %v543_v18 = vadd.f32 %v10460_v52, %v447_v21  ;;  %v10504_v0 = vld [vmem:[#allocation48_spill] sm:$0xff]  ;;  %s7499_s14 = sld [smem:[#allocation2 + $0x68]] }
 0x195   : > { %v566_v12 = vadd.f32 %v10461_v57, %v470_v3  ;;  %v2270_v43 = vmul.f32 %v7140_v61, %v2269_v34  ;;  %v587_v33 = vadd.f32 %v581_v5, %v494_v47  ;;  %v849_v2 = vmul.f32 %v7203_v46, %v847_v56 }
 0x196   : > { %v2257_v30 = vmul.f32 %v7125_v13, %v2255_v59  ;;  %v627_v14 = vadd.f32 %v621_v63, %v542_v24  ;;  %v859_v41 = vstv %s7155_s15  ;;  %v865_v45 = vstv %s7163_s16  ;;  %v10469_v63 = vld [vmem:[#allocation19_spill] sm:$0xff]  ;;  %s7560_s15 = sld [smem:[#allocation2 + $0x8c]] }
 0x197   : > { %2248 = vrot.lane.b32.xlu1 %v2243_v40, %s6147_s23  ;;  %v607_v40 = vadd.f32 %v7096_v32, %v518_v20  ;;  %v588_v32 = vadd.f32 %v584_v49, %v495_v62  ;;  %v608_v5 = vadd.f32 %v604_v37, %v519_v1  ;;  %v983_v31 = vstv %s7166_s17  ;;  %v7238_v62 = vld [vmem:[%s6182_s22 + $0x18] sm:$0x3]  ;;  %s7580_s16 = sld [smem:[#allocation2 + $0x22]] }
 0x198   : > { %2246 = vrot.lane.b32.xlu0 %v2242_v11, %s6147_s23  ;;  %v644_v11 = vsel %vm578_vm1, %v642_v4, %v643_v54  ;;  %v2271_v53 = vmul.f32 %v7125_v13, %v2269_v34  ;;  %v647_v20 = vadd.f32 %v641_v48, %v566_v12  ;;  %v628_v21 = vadd.f32 %v7113_v27, %v543_v18  ;;  %v10466_v4 = vld [vmem:[#allocation27_spill] sm:$0xff]  ;;  %v10470_v18 = vld [vmem:[#allocation22_spill] sm:$0xff]  ;;  %s7583_s17 = sld [smem:[#allocation2 + $0x12]] }
 0x199   : > { %v7186_v16 = vpop.permute.xlu1 %1605  ;;  %2260 = vrot.lane.b32.xlu2 %v2256_v35, %s6147_s23  ;;  %v10463_v35 = vld [vmem:[#allocation20_spill] sm:$0xff]  ;;  %v672_v59 = vadd.f32 %v10464_v38, %v588_v32  ;;  %v853_v49 = vstv %s7174_s18  ;;  %v671_v47 = vadd.f32 %v10465_v10, %v587_v33  ;;  %v719_v54 = vadd.f32 %v10466_v4, %v627_v14  ;;  %v10471_v33 = vld [vmem:[#allocation23_spill] sm:$0xff]  ;;  %v10475_v4 = vld [vmem:[#allocation26_spill] sm:$0xff]  ;;  %s7592_s18 = sld [smem:[#allocation2 + $0x5a]] }
 0x19a   : > { %10457 = vst [vmem:[#allocation6_spill] sm:$0xff] %v7186_v16  ;;  %v7192_v29 = vpop.permute.xlu0 %1603  ;;  %v567_v55 = vadd.f32 %v10463_v35, %v471_v8  ;;  %v860_v37 = vmul.f32 %v7225_v51, %v859_v41  ;;  %v2283_v34 = vstv %s7180_s19  ;;  %v848_v3 = vmul.f32 %v7225_v51, %v847_v56  ;;  %s7598_s19 = sld [smem:[#allocation2 + $0x46]] }
 0x19b   : > { %v7209_v22 = vpop.permute.xlu2 %1765  ;;  %v7234_v27 = vmul.f32 %v7203_v46, %v865_v45  ;;  %v984_v39 = vmul.f32 %v7225_v51, %v983_v31  ;;  %v985_v44 = vmul.f32 %v7238_v62, %v983_v31  ;;  %v696_v8 = vadd.f32 %v10468_v36, %v608_v5  ;;  %v10476_v36 = vld [vmem:[#allocation30_spill] sm:$0xff] }
 0x19c   : > { %10462 = vst [vmem:[#allocation8_spill] sm:$0xff] %v7209_v22  ;;  %v648_v17 = vadd.f32 %v644_v11, %v567_v55  ;;  %v854_v1 = vmul.f32 %v7225_v51, %v853_v49  ;;  %v7246_v48 = vmul.f32 %v7203_v46, %v853_v49  ;;  %v743_v52 = vadd.f32 %v10469_v63, %v647_v20 }
 0x19d   : > { %v768_v57 = vadd.f32 %v10470_v18, %v672_v59  ;;  %v1003_v12 = vstv %s7198_s20  ;;  %v695_v11 = vadd.f32 %v10471_v33, %v607_v40  ;;  %v7258_v14 = vmul.f32 %v7203_v46, %v859_v41  ;;  %v10474_v59 = vld [vmem:[#allocation29_spill] sm:$0xff]  ;;  %s7625_s20 = sld [smem:[#allocation2 + $0x7e]] }
 0x19e   : > { %v2284_v5 = vmul.f32 %v7140_v61, %v2283_v34  ;;  %v992_v55 = vrot.slane %v984_v39, 1  ;;  %v7266_v20 = vstv %s7206_s21  ;;  %v2297_v38 = vstv %s7213_s24  ;;  %v7278_v39 = vld [vmem:[%s6182_s22 + $0x58] sm:$0x3]  ;;  %s7635_s21 = sld [smem:[#allocation2 + $0x36]] }
 0x19f   : > { %2274 = vrot.lane.b32.xlu1 %v2270_v43, %s6147_s23  ;;  %v2285_v43 = vmul.f32 %v7125_v13, %v2283_v34  ;;  %v767_v40 = vadd.f32 %v10474_v59, %v671_v47  ;;  %v866_v49 = vmul.f32 %v7225_v51, %v865_v45  ;;  %v1006_v10 = vmul.f32 %v7203_v46, %v1003_v12  ;;  %s7651_s24 = sld [smem:[#allocation2 + $0x6a]] }
 0x1a0   : > { %2262 = vrot.lane.b32.xlu0 %v2257_v30, %s6147_s23  ;;  %v10472_v30 = vld [vmem:[#allocation25_spill] sm:$0xff]  ;;  %v2298_v41 = vmul.f32 %v7140_v61, %v2297_v38  ;;  %v744_v34 = vadd.f32 %v10476_v36, %v648_v17  ;;  %v7275_v63 = vadd.f32 %v849_v2, %v768_v57  ;;  %v1044_v45 = vmul.f32 %v7225_v51, %v7266_v20 }
 0x1a1   : > { %v7241_v24 = vpop.permute.xlu1 %1631  ;;  %2276 = vrot.lane.b32.xlu2 %v2271_v53, %s6147_s23  ;;  %v815_v32 = vadd.f32 %v10472_v30, %v719_v54  ;;  %v993_v53 = vrot.slane %v985_v44, 1  ;;  %v720_v54 = vadd.f32 %v10475_v4, %v628_v21  ;;  %v1007_v44 = vmul.f32 %v7278_v39, %v1003_v12  ;;  %v10477_v2 = vld [vmem:[#allocation33_spill] sm:$0xff] }
 0x1a2   : > { %10467 = vst [vmem:[#allocation7_spill] sm:$0xff] %v7241_v24  ;;  %v7248_v56 = vpop.permute.xlu0 %1619  ;;  %v1045_v47 = vmul.f32 %v7238_v62, %v7266_v20  ;;  %v2311_v21 = vstv %s7230_s25  ;;  %v791_v17 = vadd.f32 %v10477_v2, %v695_v11  ;;  %v986_v57 = vmul.f32 %v7203_v46, %v983_v31  ;;  %v10480_v11 = vld [vmem:[#allocation28_spill] sm:$0xff]  ;;  %s7676_s25 = sld [smem:[#allocation2 + $0x15]] }
 0x1a3   : > { %v7263_v35 = vpop.permute.xlu2 %1811  ;;  %v7282_v18 = vadd.f32 %v860_v37, %v815_v32  ;;  %v7296_v37 = vsel %vm305_vm0, %v992_v55, %v993_v53  ;;  %v850_v30 = vadd.f32 %v848_v3, %v767_v40  ;;  %v1015_v32 = vrot.slane %v1006_v10, 1 }
 0x1a4   : > { %10473 = vst [vmem:[#allocation12_spill] sm:$0xff] %v7263_v35  ;;  %v1005_v59 = vmul.f32 %v7238_v62, %v1003_v12  ;;  %v840_v36 = vadd.f32 %v10480_v11, %v744_v34  ;;  %v1016_v55 = vrot.slane %v1007_v44, 1  ;;  %v2312_v53 = vmul.f32 %v7140_v61, %v2311_v21 }
 0x1a5   : > { %v1023_v35 = vstv %s7260_s26  ;;  %v1052_v3 = vrot.slane %v1044_v45, 1  ;;  %v1053_v40 = vrot.slane %v1045_v47, 1  ;;  %v2299_v10 = vmul.f32 %v7125_v13, %v2297_v38  ;;  %s7694_s26 = sld [smem:[#allocation2 + $0x8e]] }
 0x1a6   : > { %v2313_v45 = vmul.f32 %v7125_v13, %v2311_v21  ;;  %v7322_v38 = vadd.f32 %v7234_v27, %v840_v36  ;;  %v7327_v47 = vsel %vm305_vm0, %v1015_v32, %v1016_v55  ;;  %v1026_v21 = vmul.f32 %v7203_v46, %v1023_v35 }
 0x1a7   : > { %2290 = vrot.lane.b32.xlu1 %v2285_v43, %s6147_s23  ;;  %v987_v43 = vmul.f32 %v7278_v39, %v983_v31  ;;  %v10481_v31 = vld [vmem:[#allocation32_spill] sm:$0xff]  ;;  %v2325_v27 = vstv %s7290_s27  ;;  %v1027_v32 = vmul.f32 %v7278_v39, %v1023_v35  ;;  %v2457_v24 = vstv %s7347_s4  ;;  %s7696_s27 = sld [smem:[#allocation2 + $0x39]] }
 0x1a8   : > { %2288 = vrot.lane.b32.xlu0 %v2284_v5, %s6147_s23  ;;  %v1004_v5 = vmul.f32 %v7225_v51, %v1003_v12  ;;  %v792_v2 = vadd.f32 %v10481_v31, %v696_v8  ;;  %v856_v12 = vadd.f32 %v854_v1, %v791_v17  ;;  %v10484_v8 = vld [vmem:[#allocation36_spill] sm:$0xff]  ;;  %v1013_v31 = vrot.slane %v1005_v59, 1  ;;  %s7818_s4 = sld [smem:[#allocation2 + $0x6b]] }
 0x1a9   : > { %v7298_v33 = vpop.permute.xlu1 %1647  ;;  %2302 = vrot.lane.b32.xlu2 %v2298_v41, %s6148_s29  ;;  %v995_v41 = vrot.slane %v986_v57, 1  ;;  %v996_v34 = vrot.slane %v987_v43, 1  ;;  %v816_v44 = vadd.f32 %v10484_v8, %v720_v54  ;;  %v1024_v1 = vmul.f32 %v7225_v51, %v1023_v35  ;;  %v10485_v57 = vld [vmem:[#allocation31_spill] sm:$0xff] }
 0x1aa   : > { %10478 = vst [vmem:[#allocation15_spill] sm:$0xff] %v7298_v33  ;;  %v7304_v4 = vpop.permute.xlu0 %1645  ;;  %v1012_v11 = vrot.slane %v1004_v5, 1  ;;  %v857_v54 = vadd.f32 %v7246_v48, %v792_v2  ;;  %v7332_v17 = vsel %vm305_vm0, %v1052_v3, %v1053_v40  ;;  %v7338_v43 = vadd.f32 %v10485_v57, %v856_v12  ;;  %v10487_v2 = vld [vmem:[#allocation39_spill] sm:$0xff] }
 0x1ab   : > { %10479 = vst [vmem:[#allocation11_spill] sm:$0xff] %v7304_v4  ;;  %v7314_v22 = vpop.permute.xlu2 %1837  ;;  %v10483_v4 = vld [vmem:[#allocation35_spill] sm:$0xff]  ;;  %v2433_v48 = vstv %s7300_s28  ;;  %v863_v36 = vadd.f32 %v7258_v14, %v816_v44  ;;  %v882_v55 = vadd.f32 %v10487_v2, %v850_v30  ;;  %v7361_v40 = vstv %s7309_s30  ;;  %v7382_v2 = vld [vmem:[%s6182_s22 + $0x78] sm:$0x3]  ;;  %s7713_s28 = sld [smem:[#allocation2 + $0x23]] }
 0x1ac   : > { %10482 = vst [vmem:[#allocation14_spill] sm:$0xff] %v7314_v22  ;;  %v839_v33 = vadd.f32 %v10483_v4, %v743_v52  ;;  %v1025_v52 = vmul.f32 %v7238_v62, %v1023_v35  ;;  %v7344_v4 = vld [vmem:[%s6182_s22 + $0x38] sm:$0x3]  ;;  %v7355_v3 = vsel %vm305_vm0, %v1012_v11, %v1013_v31  ;;  %v1032_v35 = vrot.slane %v1024_v1, 1  ;;  %v10492_v22 = vld [vmem:[#allocation34_spill] sm:$0xff]  ;;  %s7735_s30 = sld [smem:[#allocation2 + $0x81]] }
 0x1ad   : > { %v2327_v14 = vmul.f32 %v7125_v13, %v2325_v27  ;;  %v1035_v30 = vrot.slane %v1026_v21, 1  ;;  %v1046_v8 = vmul.f32 %v7203_v46, %v7266_v20  ;;  %v1047_v44 = vmul.f32 %v7278_v39, %v7266_v20 }
 0x1ae   : > { %v868_v5 = vadd.f32 %v866_v49, %v839_v33  ;;  %v1033_v33 = vrot.slane %v1025_v52, 1  ;;  %v1036_v11 = vrot.slane %v1027_v32, 1  ;;  %v2339_v31 = vstv %s7317_s3  ;;  %v10491_v52 = vld [vmem:[#allocation42_spill] sm:$0xff]  ;;  %s7782_s3 = sld [smem:[#allocation2 + $0x47]] }
 0x1af   : > { %2316 = vrot.lane.b32.xlu1 %v2312_v53, %s6148_s29  ;;  %v7352_v53 = vsel %vm305_vm0, %v995_v41, %v996_v34  ;;  %v2434_v41 = vmul.f32 %v7140_v61, %v2433_v48  ;;  %v2435_v34 = vmul.f32 %v7344_v4, %v2433_v48  ;;  %v897_v21 = vadd.f32 %v10491_v52, %v857_v54 }
 0x1b0   : > { %2304 = vrot.lane.b32.xlu0 %v2299_v10, %s6148_s29  ;;  %v2326_v10 = vmul.f32 %v7140_v61, %v2325_v27  ;;  %v1276_v27 = vmul.f32 %v7225_v51, %v7361_v40  ;;  %v2340_v57 = vmul.f32 %v7140_v61, %v2339_v31  ;;  %v1277_v20 = vmul.f32 %v7238_v62, %v7361_v40 }
 0x1b1   : > { %v7341_v59 = vpop.permute.xlu1 %1763  ;;  %2318 = vrot.lane.b32.xlu2 %v2313_v45, %s6148_s29  ;;  %v10490_v45 = vld [vmem:[#allocation37_spill] sm:$0xff]  ;;  %v2436_v54 = vmul.f32 %v7125_v13, %v2433_v48  ;;  %v2437_v32 = vmul.f32 %v7382_v2, %v2433_v48  ;;  %v7399_v52 = vsel %vm305_vm0, %v1032_v35, %v1033_v33  ;;  %v7403_v16 = vsel %vm305_vm0, %v1035_v30, %v1036_v11  ;;  %v10495_v48 = vld [vmem:[#allocation40_spill] sm:$0xff] }
 0x1b2   : > { %10486 = vst [vmem:[#allocation17_spill] sm:$0xff] %v7341_v59  ;;  %v7357_v49 = vpop.permute.xlu0 %1661  ;;  %v938_v1 = vadd.f32 %v10490_v45, %v882_v55  ;;  %v10493_v55 = vld [vmem:[#allocation38_spill] sm:$0xff]  ;;  %v1055_v59 = vrot.slane %v1046_v8, 1  ;;  %v7419_v30 = vstv %s7363_s5  ;;  %s7837_s5 = sld [smem:[#allocation2 + $0x8f]] }
 0x1b3   : > { %10488 = vst [vmem:[#allocation5_spill] sm:$0xff] %v7357_v49  ;;  %v7367_v12 = vpop.permute.xlu2 %1883  ;;  %v883_v45 = vadd.f32 %v10493_v55, %v7275_v63  ;;  %v1056_v49 = vrot.slane %v1047_v44, 1  ;;  %v953_v63 = vadd.f32 %v10495_v48, %v897_v21  ;;  %v10496_v55 = vld [vmem:[#allocation45_spill] sm:$0xff]  ;;  %v2445_v8 = vrot.slane %v2436_v54, 1 }
 0x1b4   : > { %10489 = vst [vmem:[#allocation18_spill] sm:$0xff] %v7367_v12  ;;  %v7387_v12 = vadd.f32 %v10492_v22, %v863_v36  ;;  %v2442_v22 = vrot.slane %v2434_v41, 1  ;;  %v2443_v36 = vrot.slane %v2435_v34, 1  ;;  %v924_v35 = vadd.f32 %v10496_v55, %v868_v5 }
 0x1b5   : > { %v7413_v33 = vadd.f32 %v7296_v37, %v938_v1  ;;  %v1285_v34 = vrot.slane %v1277_v20, 2  ;;  %v2446_v44 = vrot.slane %v2437_v32, 1  ;;  %v2341_v21 = vmul.f32 %v7125_v13, %v2339_v31  ;;  %v10500_v32 = vld [vmem:[#allocation44_spill] sm:$0xff] }
 0x1b6   : > { %v2444_v11 = vsel %vm305_vm0, %v2442_v22, %v2443_v36  ;;  %v2460_v37 = vmul.f32 %v7125_v13, %v2457_v24  ;;  %v2461_v1 = vmul.f32 %v7382_v2, %v2457_v24  ;;  %v7430_v20 = vsel %vm305_vm0, %v1055_v59, %v1056_v49 }
 0x1b7   : > { %2332 = vrot.lane.b32.xlu1 %v2327_v14, %s6148_s29  ;;  %v2458_v48 = vmul.f32 %v7140_v61, %v2457_v24  ;;  %v2459_v54 = vmul.f32 %v7344_v4, %v2457_v24  ;;  %v7436_v22 = vadd.f32 %v10500_v32, %v7322_v38  ;;  %v7439_v31 = vadd.f32 %v7327_v47, %v953_v63  ;;  %v10501_v38 = vld [vmem:[#allocation43_spill] sm:$0xff] }
 0x1b8   : > { %2330 = vrot.lane.b32.xlu0 %v2326_v10, %s6148_s29  ;;  %v1284_v10 = vrot.slane %v1276_v27, 2  ;;  %v10499_v27 = vld [vmem:[#allocation41_spill] sm:$0xff]  ;;  %v7443_v36 = vmul.f32 %v7203_v46, %v7419_v30  ;;  %v1255_v55 = vstv %s7389_s7  ;;  %v2447_v59 = vsel %vm305_vm0, %v2445_v8, %v2446_v44  ;;  %s7900_s7 = sld [smem:[#allocation2 + $0x3c]] }
 0x1b9   : > { %v7405_v14 = vpop.permute.xlu1 %1789  ;;  %2344 = vrot.lane.b32.xlu2 %v2340_v57, %s6148_s29  ;;  %v910_v57 = vadd.f32 %v10499_v27, %v7282_v18  ;;  %v2481_v18 = vstv %s7384_s6  ;;  %v980_v27 = vadd.f32 %v10501_v38, %v924_v35  ;;  %v2469_v63 = vrot.slane %v2460_v37, 1  ;;  %s7856_s6 = sld [smem:[#allocation2 + $0x5d]] }
 0x1ba   : > { %10494 = vst [vmem:[#allocation10_spill] sm:$0xff] %v7405_v14  ;;  %v7415_v41 = vpop.permute.xlu0 %1787  ;;  %v2482_v24 = vmul.f32 %v7140_v61, %v2481_v18  ;;  %v2483_v49 = vmul.f32 %v7344_v4, %v2481_v18  ;;  %v7453_v47 = vsel %vm578_vm1, %v1284_v10, %v1285_v34  ;;  %v2470_v32 = vrot.slane %v2461_v1, 1 }
 0x1bb   : > { %10497 = vst [vmem:[#allocation21_spill] sm:$0xff] %v7415_v41  ;;  %v7423_v5 = vpop.permute.xlu2 %1909  ;;  %v2467_v8 = vrot.slane %v2459_v54, 1  ;;  %v2505_v44 = vstv %s7408_s8  ;;  %v939_v42 = vadd.f32 %v10504_v0, %v883_v45  ;;  %v1256_v35 = vmul.f32 %v7225_v51, %v1255_v55  ;;  %s7906_s8 = sld [smem:[#allocation2 + $0x60]] }
 0x1bc   : > { %10498 = vst [vmem:[#allocation20_spill] sm:$0xff] %v7423_v5  ;;  %v10502_v5 = vld [vmem:[#allocation47_spill] sm:$0xff]  ;;  %v1299_v10 = vmul.f32 %v7278_v39, %v7419_v30  ;;  %v1307_v34 = vrot.slane %v7443_v36, 2  ;;  %v2490_v37 = vrot.slane %v2482_v24, 1  ;;  %v2491_v1 = vrot.slane %v2483_v49, 1 }
 0x1bd   : > { %v952_v14 = vadd.f32 %v10502_v5, %v7338_v43  ;;  %v1257_v43 = vmul.f32 %v7238_v62, %v1255_v55  ;;  %v1258_v5 = vmul.f32 %v7203_v46, %v1255_v55  ;;  %v2471_v0 = vsel %vm305_vm0, %v2469_v63, %v2470_v32 }
 0x1be   : > { %v2506_v38 = vmul.f32 %v7140_v61, %v2505_v44  ;;  %v2507_v36 = vmul.f32 %v7344_v4, %v2505_v44  ;;  %v2485_v9 = vmul.f32 %v7382_v2, %v2481_v18  ;;  %v1001_v24 = vadd.f32 %v7352_v53, %v939_v42 }
 0x1bf   : > { %2448 = vrot.lane.b32.xlu1 %v2444_v11, %s6147_s23  ;;  %v2466_v11 = vrot.slane %v2458_v48, 1  ;;  %v10506_v48 = vld [vmem:[#allocation51_spill] sm:$0xff]  ;;  %v1264_v63 = vrot.slane %v1256_v35, 2  ;;  %v1308_v32 = vrot.slane %v1299_v10, 2  ;;  %v1267_v53 = vrot.slane %v1258_v5, 2 }
 0x1c0   : > { %2346 = vrot.lane.b32.xlu0 %v2341_v21, %s6148_s29  ;;  %v966_v54 = vadd.f32 %v10506_v48, %v910_v57  ;;  %v10508_v57 = vld [vmem:[#allocation50_spill] sm:$0xff]  ;;  %v1265_v48 = vrot.slane %v1257_v43, 2 }
 0x1c1   : > { %v7458_v41 = vpop.permute.xlu1 %1835  ;;  %2450 = vrot.lane.b32.xlu2 %v2447_v59, %s6147_s23  ;;  %v2468_v59 = vsel %vm305_vm0, %v2466_v11, %v2467_v8  ;;  %v967_v49 = vadd.f32 %v10508_v57, %v7387_v12  ;;  %v2508_v11 = vmul.f32 %v7125_v13, %v2505_v44  ;;  %v2514_v12 = vrot.slane %v2506_v38, 1 }
 0x1c2   : > { %10503 = vst [vmem:[#allocation24_spill] sm:$0xff] %v7458_v41  ;;  %v7468_v21 = vpop.permute.xlu0 %1813  ;;  %v1259_v41 = vmul.f32 %v7278_v39, %v1255_v55  ;;  %v2492_v55 = vsel %vm305_vm0, %v2490_v37, %v2491_v1  ;;  %v1040_v42 = vadd.f32 %v7399_v52, %v966_v54  ;;  %v2515_v8 = vrot.slane %v2507_v36, 1  ;;  %v10509_v37 = vld [vmem:[#allocation46_spill] sm:$0xff] }
 0x1c3   : > { %10505 = vst [vmem:[#allocation13_spill] sm:$0xff] %v7468_v21  ;;  %v7475_v45 = vpop.permute.xlu2 %2035  ;;  %v2484_v21 = vmul.f32 %v7125_v13, %v2481_v18  ;;  %v2509_v18 = vmul.f32 %v7382_v2, %v2505_v44  ;;  %v2494_v57 = vrot.slane %v2485_v9, 1  ;;  %v7502_v1 = vadd.f32 %v10509_v37, %v1001_v24 }
 0x1c4   : > { %10507 = vst [vmem:[#allocation27_spill] sm:$0xff] %v7475_v45  ;;  %v1268_v35 = vrot.slane %v1259_v41, 2  ;;  %v2529_v45 = vstv %s7461_s11  ;;  %v1020_v44 = vadd.f32 %v7355_v3, %v952_v14  ;;  %v7506_v52 = vadd.f32 %v7332_v17, %v980_v27  ;;  %v10510_v14 = vld [vmem:[#allocation49_spill] sm:$0xff]  ;;  %s7933_s11 = sld [smem:[#allocation2 + $0x1]] }
 0x1c5   : > { %v2493_v43 = vrot.slane %v2484_v21, 1  ;;  %v7509_v5 = vsel %vm578_vm1, %v1307_v34, %v1308_v32  ;;  %v7515_v9 = vadd.f32 %v7403_v16, %v967_v49  ;;  %v7518_v41 = vsel %vm578_vm1, %v1264_v63, %v1265_v48 }
 0x1c6   : > { %v2517_v21 = vrot.slane %v2508_v11, 1  ;;  %v2518_v3 = vrot.slane %v2509_v18, 1  ;;  %v7521_v17 = vadd.f32 %v10510_v14, %v1040_v42  ;;  %v2516_v27 = vsel %vm305_vm0, %v2514_v12, %v2515_v8  ;;  %v10512_v42 = vld [vmem:[#allocation53_spill] sm:$0xff] }
 0x1c7   : > { %2474 = vrot.lane.b32.xlu1 %v2471_v0, %s6147_s23  ;;  %v2532_v0 = vmul.f32 %v7125_v13, %v2529_v45  ;;  %v2533_v38 = vmul.f32 %v7382_v2, %v2529_v45  ;;  %v7529_v16 = vsel %vm578_vm1, %v1267_v53, %v1268_v35  ;;  %v2495_v36 = vsel %vm305_vm0, %v2493_v43, %v2494_v57  ;;  %v10513_v35 = vld [vmem:[#allocation54_spill] sm:$0xff] }
 0x1c8   : > { %2472 = vrot.lane.b32.xlu0 %v2468_v59, %s6147_s23  ;;  %v2530_v59 = vmul.f32 %v7140_v61, %v2529_v45  ;;  %v2531_v24 = vmul.f32 %v7344_v4, %v2529_v45  ;;  %v1278_v49 = vmul.f32 %v7203_v46, %v7361_v40  ;;  %v1279_v63 = vmul.f32 %v7278_v39, %v7361_v40 }
 0x1c9   : > { %v7496_v10 = vpop.permute.xlu1 %1861  ;;  %2496 = vrot.lane.b32.xlu2 %v2492_v55, %s6147_s23  ;;  %v7540_v32 = vmul.f32 %v7225_v51, %v7419_v30  ;;  %v2553_v48 = vstv %s7486_s12  ;;  %v1315_v55 = vstv %s7488_s13  ;;  %v2519_v11 = vsel %vm305_vm0, %v2517_v21, %v2518_v3  ;;  %s7939_s12 = sld [smem:[#allocation2 + $0x18]] }
 0x1ca   : > { %v7511_v54 = vpop.permute.xlu0 %1859  ;;  %v2554_v18 = vmul.f32 %v7140_v61, %v2553_v48  ;;  %v2555_v45 = vmul.f32 %v7344_v4, %v2553_v48  ;;  %v7550_v53 = vadd.f32 %v10512_v42, %v7413_v33  ;;  %v1297_v40 = vmul.f32 %v7238_v62, %v7419_v30  ;;  %s7967_s13 = sld [smem:[#allocation2 + $0x25]] }
 0x1cb   : > { %v7524_v34 = vpop.permute.xlu2 %2061  ;;  %v2541_v12 = vrot.slane %v2532_v0, 1  ;;  %v2542_v8 = vrot.slane %v2533_v38, 1  ;;  %v981_v43 = vadd.f32 %v10513_v35, %v7436_v22  ;;  %v2538_v37 = vrot.slane %v2530_v59, 1  ;;  %v10515_v0 = vld [vmem:[#allocation57_spill] sm:$0xff] }
 0x1cc   : > { %10511 = vst [vmem:[#allocation16_spill] sm:$0xff] %v7524_v34  ;;  %v2539_v21 = vrot.slane %v2531_v24, 1  ;;  %v2577_v3 = vstv %s7499_s14  ;;  %v1287_v14 = vrot.slane %v1278_v49, 2  ;;  %v1288_v33 = vrot.slane %v1279_v63, 2  ;;  %s7972_s14 = sld [smem:[#allocation2 + $0x84]] }
 0x1cd   : > { %v1317_v30 = vmul.f32 %v7238_v62, %v1315_v55  ;;  %v1108_v38 = vadd.f32 %v10515_v0, %v1020_v44  ;;  %v1304_v22 = vrot.slane %v7540_v32, 2  ;;  %v2563_v59 = vrot.slane %v2555_v45, 1 }
 0x1ce   : > { %v1318_v24 = vmul.f32 %v7203_v46, %v1315_v55  ;;  %v2543_v35 = vsel %vm305_vm0, %v2541_v12, %v2542_v8  ;;  %v2579_v62 = vmul.f32 %v7344_v4, %v2577_v3  ;;  %v1319_v63 = vmul.f32 %v7278_v39, %v1315_v55  ;;  %v10517_v12 = vld [vmem:[#allocation55_spill] sm:$0xff] }
 0x1cf   : > { %2520 = vrot.lane.b32.xlu1 %v2516_v27, %s6147_s23  ;;  %v1316_v27 = vmul.f32 %v7225_v51, %v1315_v55  ;;  %v2578_v51 = vmul.f32 %v7140_v61, %v2577_v3  ;;  %v2556_v44 = vmul.f32 %v7125_v13, %v2553_v48  ;;  %v2557_v32 = vmul.f32 %v7382_v2, %v2553_v48 }
 0x1d0   : > { %2498 = vrot.lane.b32.xlu0 %v2495_v36, %s6147_s23  ;;  %v2562_v36 = vrot.slane %v2554_v18, 1  ;;  %v1061_v18 = vadd.f32 %v7430_v20, %v981_v43  ;;  %v1325_v46 = vrot.slane %v1317_v30, 2  ;;  %v1305_v0 = vrot.slane %v1297_v40, 2 }
 0x1d1   : > { %v7557_v57 = vpop.permute.xlu1 %1907  ;;  %2522 = vrot.lane.b32.xlu2 %v2519_v11, %s6147_s23  ;;  %v2540_v11 = vsel %vm305_vm0, %v2538_v37, %v2539_v21  ;;  %v1324_v45 = vrot.slane %v1316_v27, 2  ;;  %v1204_v8 = vadd.f32 %v10517_v12, %v1108_v38  ;;  %v2580_v55 = vmul.f32 %v7125_v13, %v2577_v3 }
 0x1d2   : > { %v7564_v42 = vpop.permute.xlu0 %1885  ;;  %v2564_v39 = vsel %vm305_vm0, %v2562_v36, %v2563_v59  ;;  %v2581_v48 = vmul.f32 %v7382_v2, %v2577_v3  ;;  %v7590_v20 = vsel %vm578_vm1, %v1287_v14, %v1288_v33  ;;  %v1327_v43 = vrot.slane %v1318_v24, 2  ;;  %v10519_v59 = vld [vmem:[#allocation52_spill] sm:$0xff] }
 0x1d3   : > { %10514 = vst [vmem:[#allocation19_spill] sm:$0xff] %v7564_v42  ;;  %v7571_v49 = vpop.permute.xlu2 %2107  ;;  %v2586_v40 = vrot.slane %v2578_v51, 1  ;;  %v2587_v37 = vrot.slane %v2579_v62, 1  ;;  %v1328_v21 = vrot.slane %v1319_v63, 2  ;;  %v2565_v30 = vrot.slane %v2556_v44, 1  ;;  %v10520_v14 = vld [vmem:[#allocation56_spill] sm:$0xff] }
 0x1d4   : > { %10516 = vst [vmem:[#allocation22_spill] sm:$0xff] %v7571_v49  ;;  %v2566_v38 = vrot.slane %v2557_v32, 1  ;;  %v2601_v36 = vstv %s7560_s15  ;;  %v7601_v3 = vadd.f32 %v10519_v59, %v1061_v18  ;;  %v1109_v33 = vadd.f32 %v10520_v14, %v7439_v31  ;;  %v10521_v24 = vld [vmem:[#allocation60_spill] sm:$0xff]  ;;  %v10523_v18 = vld [vmem:[#allocation63_spill] sm:$0xff]  ;;  %v7775_v49 = vld [vmem:[%s6182_s22 + $0x28] sm:$0x3] }
 0x1d5   : > { %v1306_v51 = vsel %vm578_vm1, %v1304_v22, %v1305_v0  ;;  %v1326_v63 = vsel %vm578_vm1, %v1324_v45, %v1325_v46  ;;  %v2589_v44 = vrot.slane %v2580_v55, 1  ;;  %v2590_v32 = vrot.slane %v2581_v48, 1  ;;  %v10526_v55 = vld [vmem:[#allocation58_spill] sm:$0xff]  ;;  %s7988_s15 = sld [smem:[#allocation2 + $0x49]] }
 0x1d6   : > { %v1180_v31 = vadd.f32 %v10523_v18, %v7550_v53  ;;  %v2604_v22 = vmul.f32 %v7125_v13, %v2601_v36  ;;  %v2605_v0 = vmul.f32 %v7382_v2, %v2601_v36  ;;  %v7623_v45 = vsel %vm578_vm1, %v1327_v43, %v1328_v21 }
 0x1d7   : > { %2546 = vrot.lane.b32.xlu1 %v2543_v35, %s6148_s29  ;;  %v1133_v35 = vadd.f32 %v10521_v24, %v7515_v9  ;;  %v2588_v9 = vsel %vm305_vm0, %v2586_v40, %v2587_v37  ;;  %v2602_v46 = vmul.f32 %v7140_v61, %v2601_v36  ;;  %v2603_v53 = vmul.f32 %v7344_v4, %v2601_v36  ;;  %v10527_v40 = vld [vmem:[#allocation62_spill] sm:$0xff]  ;;  %v10528_v24 = vld [vmem:[#allocation65_spill] sm:$0xff] }
 0x1d8   : > { %2544 = vrot.lane.b32.xlu0 %v2540_v11, %s6148_s29  ;;  %v7613_v11 = vadd.f32 %v7453_v47, %v1204_v8  ;;  %v2567_v47 = vsel %vm305_vm0, %v2565_v30, %v2566_v38  ;;  %v10525_v8 = vld [vmem:[#allocation59_spill] sm:$0xff]  ;;  %v1181_v37 = vadd.f32 %v10527_v40, %v7502_v1  ;;  %v2705_v43 = vstv %s7580_s16  ;;  %s8041_s16 = sld [smem:[#allocation2 + $0x6d]] }
 0x1d9   : > { %v7595_v27 = vpop.permute.xlu1 %1933  ;;  %2568 = vrot.lane.b32.xlu2 %v2564_v39, %s6148_s29  ;;  %v1156_v39 = vadd.f32 %v10525_v8, %v7506_v52  ;;  %v1229_v48 = vadd.f32 %v10526_v55, %v1133_v35  ;;  %v1532_v21 = vstv %s7583_s17  ;;  %v2591_v30 = vsel %vm305_vm0, %v2589_v44, %v2590_v32  ;;  %v10530_v8 = vld [vmem:[#allocation66_spill] sm:$0xff]  ;;  %s8054_s17 = sld [smem:[#allocation2 + $0x1b]] }
 0x1da   : > { %10518 = vst [vmem:[#allocation23_spill] sm:$0xff] %v7595_v27  ;;  %v7608_v62 = vpop.permute.xlu0 %1931  ;;  %v2706_v38 = vmul.f32 %v7140_v61, %v2705_v43  ;;  %v2707_v36 = vmul.f32 %v7344_v4, %v2705_v43  ;;  %v1272_v52 = vadd.f32 %v7518_v41, %v1180_v31  ;;  %v10369_v59 = vstv %s7592_s18 }
 0x1db   : > { %10522 = vst [vmem:[#allocation25_spill] sm:$0xff] %v7608_v62  ;;  %v7618_v12 = vpop.permute.xlu2 %2133  ;;  %v2613_v1 = vrot.slane %v2604_v22, 1  ;;  %v2614_v14 = vrot.slane %v2605_v0, 1  ;;  %v1228_v35 = vadd.f32 %v10528_v24, %v7521_v17  ;;  %v2610_v44 = vrot.slane %v2602_v46, 1  ;;  %v7659_v22 = vld [vmem:[%s6182_s22 + $0x60] sm:$0xff] }
 0x1dc   : > { %10524 = vst [vmem:[#allocation29_spill] sm:$0xff] %v7618_v12  ;;  %v2611_v32 = vrot.slane %v2603_v53, 1  ;;  %v1205_v55 = vadd.f32 %v10530_v8, %v1109_v33  ;;  %v1273_v41 = vadd.f32 %v7529_v16, %v1181_v37  ;;  %v7656_v31 = vadd.f32 %v7509_v5, %v1229_v48  ;;  %v7669_v53 = vld [vmem:[%s6182_s22 + $0x20] sm:$0xff] }
 0x1dd   : > { %v7662_v0 = vmul.f32 %v7659_v22, %v1532_v21  ;;  %v7674_v16 = vmul.f32 %v7669_v53, %v10369_v59  ;;  %v2714_v5 = vrot.slane %v2706_v38, 2  ;;  %v2715_v33 = vrot.slane %v2707_v36, 2  ;;  %v10533_v48 = vld [vmem:[#allocation61_spill] sm:$0xff]  ;;  %v10535_v36 = vld [vmem:[#allocation68_spill] sm:$0xff] }
 0x1de   : > { %v7679_v40 = vadd.f32 %v10533_v48, %v1272_v52  ;;  %v2615_v37 = vsel %vm305_vm0, %v2613_v1, %v2614_v14  ;;  %v1312_v8 = vadd.f32 %v1306_v51, %v1228_v35  ;;  %v2708_v59 = vmul.f32 %v7125_v13, %v2705_v43 }
 0x1df   : > { %2592 = vrot.lane.b32.xlu1 %v2588_v9, %s6148_s29  ;;  %v2729_v9 = vstv %s7598_s19  ;;  %v1293_v38 = vadd.f32 %v7590_v20, %v1205_v55  ;;  %v1253_v52 = vadd.f32 %v10535_v36, %v7601_v3  ;;  %v1538_v48 = vstv %s7635_s21  ;;  %v10536_v20 = vld [vmem:[#allocation72_spill] sm:$0xff]  ;;  %s8067_s19 = sld [smem:[#allocation2 + $0x87]] }
 0x1e0   : > { %2570 = vrot.lane.b32.xlu0 %v2567_v47, %s6148_s29  ;;  %v10532_v47 = vld [vmem:[#allocation69_spill] sm:$0xff]  ;;  %v2731_v24 = vmul.f32 %v7344_v4, %v2729_v9  ;;  %v1550_v1 = vstv %s7625_s20  ;;  %v2716_v51 = vsel %vm578_vm1, %v2714_v5, %v2715_v33  ;;  %v2732_v35 = vmul.f32 %v7125_v13, %v2729_v9  ;;  %s8073_s20 = sld [smem:[#allocation2 + $0x2]] }
 0x1e1   : > { %v7648_v18 = vpop.permute.xlu1 %2059  ;;  %2594 = vrot.lane.b32.xlu2 %v2591_v30, %s6148_s29  ;;  %v1252_v46 = vadd.f32 %v10532_v47, %v1156_v39  ;;  %v2730_v39 = vmul.f32 %v7140_v61, %v2729_v9  ;;  %v2612_v47 = vsel %vm305_vm0, %v2610_v44, %v2611_v32  ;;  %v1357_v44 = vadd.f32 %v10536_v20, %v1273_v41  ;;  %s8076_s21 = sld [smem:[#allocation2 + $0x1e]] }
 0x1e2   : > { %10529 = vst [vmem:[#allocation26_spill] sm:$0xff] %v7648_v18  ;;  %v7664_v17 = vpop.permute.xlu0 %2037  ;;  %v2709_v18 = vmul.f32 %v7382_v2, %v2705_v43  ;;  %v2733_v43 = vmul.f32 %v7382_v2, %v2729_v9  ;;  %v7704_v3 = vmul.f32 %v7669_v53, %v1532_v21  ;;  %v7708_v55 = vmul.f32 %v7659_v22, %v1550_v1  ;;  %v10538_v9 = vld [vmem:[#allocation64_spill] sm:$0xff] }
 0x1e3   : > { %10531 = vst [vmem:[#allocation30_spill] sm:$0xff] %v7664_v17  ;;  %v7682_v30 = vpop.permute.xlu2 %2179  ;;  %v1332_v14 = vadd.f32 %v1326_v63, %v1252_v46  ;;  %v2738_v32 = vrot.slane %v2730_v39, 2  ;;  %v2739_v63 = vrot.slane %v2731_v24, 2  ;;  %v2717_v5 = vrot.slane %v2708_v59, 2  ;;  %v10540_v59 = vld [vmem:[#allocation67_spill] sm:$0xff] }
 0x1e4   : > { %10534 = vst [vmem:[#allocation33_spill] sm:$0xff] %v7682_v30  ;;  %v2718_v33 = vrot.slane %v2709_v18, 2  ;;  %v7716_v41 = vadd.f32 %v10538_v9, %v1293_v38  ;;  %v1333_v21 = vadd.f32 %v7623_v45, %v1253_v52  ;;  %v7723_v39 = vmul.f32 %v7659_v22, %v1538_v48  ;;  %v10541_v52 = vld [vmem:[#allocation70_spill] sm:$0xff] }
 0x1e5   : > { %v7729_v18 = vadd.f32 %v10540_v59, %v1332_v14  ;;  %v7732_v36 = vstv %s7676_s25  ;;  %v2741_v38 = vrot.slane %v2732_v35, 2  ;;  %v2742_v45 = vrot.slane %v2733_v43, 2  ;;  %v10543_v14 = vld [vmem:[#allocation71_spill] sm:$0xff]  ;;  %s8088_s25 = sld [smem:[#allocation2 + $0x26]] }
 0x1e6   : > { %v1453_v20 = vadd.f32 %v10541_v52, %v1357_v44  ;;  %v7744_v59 = vadd.f32 %v10543_v14, %v7613_v11  ;;  %v2719_v35 = vsel %vm578_vm1, %v2717_v5, %v2718_v33  ;;  %v10544_v52 = vld [vmem:[#allocation75_spill] sm:$0xff]  ;;  %v7761_v11 = vstv %s7696_s27  ;;  %s8125_s27 = sld [smem:[#allocation2 + $0x8a]] }
 0x1e7   : > { %2618 = vrot.lane.b32.xlu1 %v2615_v37, %s6148_s29  ;;  %v2753_v37 = vstv %s7651_s24  ;;  %v1404_v30 = vadd.f32 %v10544_v52, %v1312_v8  ;;  %v2743_v5 = vsel %vm578_vm1, %v2741_v38, %v2742_v45  ;;  %v7771_v14 = vmul.f32 %v7669_v53, %v1550_v1  ;;  %s8082_s24 = sld [smem:[#allocation2 + $0x3f]] }
 0x1e8   : > { %2616 = vrot.lane.b32.xlu0 %v2612_v47, %s6148_s29  ;;  %v7720_v47 = vmul.f32 %v7669_v53, %v1538_v48  ;;  %v2740_v48 = vsel %vm578_vm1, %v2738_v32, %v2739_v63  ;;  %v2754_v43 = vmul.f32 %v7140_v61, %v2753_v37  ;;  %v2755_v44 = vmul.f32 %v7344_v4, %v2753_v37 }
 0x1e9   : > { %v7710_v46 = vpop.permute.xlu1 %2085  ;;  %2720 = vrot.lane.b32.xlu2 %v2716_v51, %s6147_s23  ;;  %v2756_v51 = vmul.f32 %v7125_v13, %v2753_v37  ;;  %v10545_v32 = vstv %s7592_s18  ;;  %v7757_v13 = vmul.f32 %v7669_v53, %v7732_v36  ;;  %v1670_v38 = vmul.f32 %v7775_v49, %v7732_v36  ;;  %s8061_s18 = sld [smem:[#allocation2 + $0x63]] }
 0x1ea   : > { %10537 = vst [vmem:[#allocation28_spill] sm:$0xff] %v7710_v46  ;;  %v7725_v24 = vpop.permute.xlu0 %2083  ;;  %v2757_v46 = vmul.f32 %v7382_v2, %v2753_v37  ;;  %v7753_v63 = vmul.f32 %v7659_v22, %v10545_v32  ;;  %v7768_v37 = vadd.f32 %v7662_v0, %v1453_v20  ;;  %v2763_v12 = vrot.slane %v2755_v44, 2  ;;  %v10547_v0 = vld [vmem:[#allocation74_spill] sm:$0xff]  ;;  %v10549_v44 = vld [vmem:[#allocation73_spill] sm:$0xff] }
 0x1eb   : > { %10539 = vst [vmem:[#allocation32_spill] sm:$0xff] %v7725_v24  ;;  %v7738_v9 = vpop.permute.xlu2 %2205  ;;  %v2765_v52 = vrot.slane %v2756_v51, 2  ;;  %v2801_v34 = vstv %s7713_s28  ;;  %v7786_v1 = vadd.f32 %v10547_v0, %v7656_v31  ;;  %v1429_v20 = vadd.f32 %v6945_v15, %v1333_v21  ;;  %v7792_v51 = vld [vmem:[%s6182_s22 + $0x68] sm:$0x3]  ;;  %s8135_s28 = sld [smem:[#allocation2 + $0x4a]] }
 0x1ec   : > { %10542 = vst [vmem:[#allocation35_spill] sm:$0xff] %v7738_v9  ;;  %v2777_v9 = vstv %s7694_s26  ;;  %v2766_v32 = vrot.slane %v2757_v46, 2  ;;  %v1691_v46 = vmul.f32 %v7659_v22, %v7761_v11  ;;  %v1677_v31 = vrot.slane %v7757_v13, 1  ;;  %s8115_s26 = sld [smem:[#allocation2 + $0x42]] }
 0x1ed   : > { %v2778_v33 = vmul.f32 %v7140_v61, %v2777_v9  ;;  %v2779_v8 = vmul.f32 %v7344_v4, %v2777_v9  ;;  %v7802_v15 = vstv %s7735_s30  ;;  %v2802_v27 = vmul.f32 %v7140_v61, %v2801_v34  ;;  %s8143_s30 = sld [smem:[#allocation2 + $0x4]] }
 0x1ee   : > { %v2767_v21 = vsel %vm578_vm1, %v2765_v52, %v2766_v32  ;;  %v2803_v62 = vmul.f32 %v7344_v4, %v2801_v34  ;;  %v1678_v42 = vrot.slane %v1670_v38, 1  ;;  %v2781_v13 = vmul.f32 %v7382_v2, %v2777_v9 }
 0x1ef   : > { %2744 = vrot.lane.b32.xlu1 %v2740_v48, %s6147_s23  ;;  %v2762_v48 = vrot.slane %v2754_v43, 2  ;;  %v2786_v0 = vrot.slane %v2778_v33, 2  ;;  %v2787_v24 = vrot.slane %v2779_v8, 2  ;;  %v10551_v33 = vld [vmem:[#allocation77_spill] sm:$0xff]  ;;  %v1700_v32 = vrot.slane %v1691_v46, 1 }
 0x1f0   : > { %2722 = vrot.lane.b32.xlu0 %v2719_v35, %s6147_s23  ;;  %v1692_v35 = vmul.f32 %v7792_v51, %v7761_v11  ;;  %v1452_v8 = vadd.f32 %v10551_v33, %v7679_v40  ;;  %v1729_v61 = vmul.f32 %v7669_v53, %v7802_v15  ;;  %v2811_v46 = vrot.slane %v2803_v62, 2 }
 0x1f1   : > { %v7779_v45 = vpop.permute.xlu1 %2131  ;;  %2746 = vrot.lane.b32.xlu2 %v2743_v5, %s6147_s23  ;;  %v7811_v5 = vld [vmem:[%s6182_s22 + $0x70] sm:$0xff]  ;;  %v2825_v33 = vstv %s7782_s3  ;;  %s8172_s3 = sld [smem:[#allocation2 + $0x6e]] }
 0x1f2   : > { %10546 = vst [vmem:[#allocation36_spill] sm:$0xff] %v7779_v45  ;;  %v7796_v43 = vpop.permute.xlu0 %2109  ;;  %v1500_v45 = vadd.f32 %v10549_v44, %v1404_v30  ;;  %v2780_v30 = vmul.f32 %v7811_v5, %v2777_v9  ;;  %v10552_v44 = vld [vmem:[#allocation76_spill] sm:$0xff]  ;;  %v2804_v38 = vmul.f32 %v7811_v5, %v2801_v34  ;;  %v2805_v9 = vmul.f32 %v7382_v2, %v2801_v34 }
 0x1f3   : > { %10548 = vst [vmem:[#allocation31_spill] sm:$0xff] %v7796_v43  ;;  %v7805_v17 = vpop.permute.xlu2 %2260  ;;  %v2764_v43 = vsel %vm578_vm1, %v2762_v48, %v2763_v12  ;;  %v1525_v52 = vadd.f32 %v10552_v44, %v1429_v20  ;;  %v2788_v12 = vsel %vm578_vm1, %v2786_v0, %v2787_v24  ;;  %v1730_v48 = vmul.f32 %v7775_v49, %v7802_v15 }
 0x1f4   : > { %10550 = vst [vmem:[#allocation39_spill] sm:$0xff] %v7805_v17  ;;  %v1701_v17 = vrot.slane %v1692_v35, 1  ;;  %v7827_v40 = vadd.f32 %v7674_v16, %v1500_v45  ;;  %v2810_v20 = vrot.slane %v2802_v27, 2  ;;  %v1477_v35 = vadd.f32 %v6987_v23, %v7716_v41 }
 0x1f5   : > { %v2789_v24 = vrot.slane %v2780_v30, 2  ;;  %v2790_v0 = vrot.slane %v2781_v13, 2  ;;  %v1476_v34 = vadd.f32 %v6998_v26, %v7744_v59  ;;  %v7842_v16 = vadd.f32 %v7704_v3, %v1452_v8  ;;  %v7868_v13 = vld [vmem:[%s6182_s22 + $0x30] sm:$0xff] }
 0x1f6   : > { %v7845_v45 = vsel %vm305_vm0, %v1677_v31, %v1678_v42  ;;  %v7848_v27 = vsel %vm305_vm0, %v1700_v32, %v1701_v17  ;;  %v7854_v62 = vadd.f32 %v7708_v55, %v1525_v52  ;;  %v1737_v26 = vrot.slane %v1729_v61, 1 }
 0x1f7   : > { %2770 = vrot.lane.b32.xlu1 %v2767_v21, %s6147_s23  ;;  %v2813_v3 = vrot.slane %v2804_v38, 2  ;;  %v2814_v41 = vrot.slane %v2805_v9, 2  ;;  %v1738_v59 = vrot.slane %v1730_v48, 1  ;;  %v2812_v42 = vsel %vm578_vm1, %v2810_v20, %v2811_v46 }
 0x1f8   : > { %2768 = vrot.lane.b32.xlu0 %v2764_v43, %s6147_s23  ;;  %v2828_v17 = vmul.f32 %v7811_v5, %v2825_v33  ;;  %v2829_v31 = vmul.f32 %v7382_v2, %v2825_v33  ;;  %v7864_v30 = vadd.f32 %v7723_v39, %v1477_v35  ;;  %v2791_v55 = vsel %vm578_vm1, %v2789_v24, %v2790_v0 }
 0x1f9   : > { %v7834_v21 = vpop.permute.xlu1 %2157  ;;  %2792 = vrot.lane.b32.xlu2 %v2788_v12, %s6147_s23  ;;  %v2826_v8 = vmul.f32 %v7868_v13, %v2825_v33  ;;  %v2827_v44 = vmul.f32 %v7344_v4, %v2825_v33  ;;  %v1541_v52 = vadd.f32 %v7720_v47, %v1476_v34  ;;  %v1671_v32 = vmul.f32 %v7659_v22, %v7732_v36 }
 0x1fa   : > { %v7850_v23 = vpop.permute.xlu0 %2155  ;;  %v1672_v61 = vmul.f32 %v7792_v51, %v7732_v36  ;;  %v2849_v12 = vstv %s7818_s4  ;;  %v1689_v39 = vmul.f32 %v7669_v53, %v7761_v11  ;;  %v2815_v38 = vsel %vm578_vm1, %v2813_v3, %v2814_v41  ;;  %s8208_s4 = sld [smem:[#allocation2 + $0x28]] }
 0x1fb   : > { %v7859_v43 = vpop.permute.xlu2 %2276  ;;  %v2850_v9 = vmul.f32 %v7868_v13, %v2849_v12  ;;  %v2851_v48 = vmul.f32 %v7344_v4, %v2849_v12  ;;  %v1690_v47 = vmul.f32 %v7775_v49, %v7761_v11  ;;  %v7887_v20 = vsel %vm305_vm0, %v1737_v26, %v1738_v59 }
 0x1fc   : > { %v2837_v36 = vrot.slane %v2828_v17, 2  ;;  %v2838_v46 = vrot.slane %v2829_v31, 2  ;;  %v1524_v35 = vadd.f32 %v7032_v60, %v7729_v18  ;;  %v2834_v0 = vrot.slane %v2826_v8, 2 }
 0x1fd   : > { %v2835_v33 = vrot.slane %v2827_v44, 2  ;;  %v2873_v34 = vstv %s7837_s5  ;;  %v7896_v3 = vadd.f32 %v6950_v58, %v1541_v52  ;;  %v1501_v11 = vadd.f32 %v7045_v19, %v7786_v1  ;;  %s8222_s5 = sld [smem:[#allocation2 + $0x66]] }
 0x1fe   : > { %v1680_v26 = vrot.slane %v1671_v32, 1  ;;  %v1681_v41 = vrot.slane %v1672_v61, 1  ;;  %v1708_v60 = vstv %s7856_s6  ;;  %v1697_v18 = vrot.slane %v1689_v39, 1  ;;  %s8241_s6 = sld [smem:[#allocation2 + $0x4c]] }
 0x1ff   : > { %2816 = vrot.lane.b32.xlu1 %v2812_v42, %s6148_s29  ;;  %v2858_v42 = vrot.slane %v2850_v9, 2  ;;  %v2859_v17 = vrot.slane %v2851_v48, 2  ;;  %v1698_v31 = vrot.slane %v1690_v47, 1  ;;  %v2839_v58 = vsel %vm578_vm1, %v2837_v36, %v2838_v46 }
 0x200   : > { %2794 = vrot.lane.b32.xlu0 %v2791_v55, %s6147_s23  ;;  %v2874_v19 = vmul.f32 %v7868_v13, %v2873_v34  ;;  %v2875_v1 = vmul.f32 %v7344_v4, %v2873_v34  ;;  %v1553_v8 = vadd.f32 %v7771_v14, %v1524_v35  ;;  %v2836_v44 = vsel %vm578_vm1, %v2834_v0, %v2835_v33 }
 0x201   : > { %v7892_v24 = vpop.permute.xlu1 %2203  ;;  %2818 = vrot.lane.b32.xlu2 %v2815_v38, %s6148_s29  ;;  %v2852_v52 = vmul.f32 %v7811_v5, %v2849_v12  ;;  %v2853_v32 = vmul.f32 %v7382_v2, %v2849_v12  ;;  %v1548_v61 = vadd.f32 %v7753_v63, %v1501_v11  ;;  %v7919_v39 = vsel %vm305_vm0, %v1680_v26, %v1681_v41 }
 0x202   : > { %v7902_v59 = vpop.permute.xlu0 %2181  ;;  %v1709_v38 = vmul.f32 %v7669_v53, %v1708_v60  ;;  %v1710_v9 = vmul.f32 %v7775_v49, %v1708_v60  ;;  %v1711_v48 = vmul.f32 %v7659_v22, %v1708_v60  ;;  %v2860_v4 = vsel %vm578_vm1, %v2858_v42, %v2859_v17 }
 0x203   : > { %v7909_v55 = vpop.permute.xlu2 %2302  ;;  %v2876_v14 = vmul.f32 %v7811_v5, %v2873_v34  ;;  %v2877_v47 = vmul.f32 %v7382_v2, %v2873_v34  ;;  %v7929_v63 = vsel %vm305_vm0, %v1697_v18, %v1698_v31  ;;  %v1712_v12 = vmul.f32 %v7792_v51, %v1708_v60 }
 0x204   : > { %v2882_v36 = vrot.slane %v2874_v19, 2  ;;  %v2883_v46 = vrot.slane %v2875_v1, 2  ;;  %v1568_v35 = vadd.f32 %v7084_v50, %v7768_v37  ;;  %v1567_v0 = vadd.f32 %v7090_v6, %v7842_v16 }
 0x205   : > { %v2861_v33 = vrot.slane %v2852_v52, 2  ;;  %v2862_v34 = vrot.slane %v2853_v32, 2  ;;  %v1717_v11 = vrot.slane %v1709_v38, 1  ;;  %v1731_v26 = vmul.f32 %v7659_v22, %v7802_v15 }
 0x206   : > { %v1732_v41 = vmul.f32 %v7792_v51, %v7802_v15  ;;  %v7948_v60 = vstv %s7900_s7  ;;  %v1718_v6 = vrot.slane %v1710_v9, 1  ;;  %v1720_v37 = vrot.slane %v1711_v48, 1  ;;  %s8261_s7 = sld [smem:[#allocation2 + $0x70]] }
 0x207   : > { %2842 = vrot.lane.b32.xlu1 %v2839_v58, %s6148_s29  ;;  %v2885_v16 = vrot.slane %v2876_v14, 2  ;;  %v2886_v18 = vrot.slane %v2877_v47, 2  ;;  %v1582_v42 = vadd.f32 %v7147_v7, %v7864_v30  ;;  %v1721_v17 = vrot.slane %v1712_v12, 1 }
 0x208   : > { %2840 = vrot.lane.b32.xlu0 %v2836_v44, %s6148_s29  ;;  %v7956_v31 = vstv %s7906_s8  ;;  %v2884_v58 = vsel %vm578_vm1, %v2882_v36, %v2883_v46  ;;  %v1623_v15 = vadd.f32 %v7056_v25, %v1567_v0  ;;  %v1961_v1 = vmul.f32 %v7669_v53, %v7948_v60  ;;  %v7997_v0 = vld [vmem:[%s6182_s22 + $0x80] sm:$0xff]  ;;  %s8274_s8 = sld [smem:[#allocation2 + $0x45]] }
 0x209   : > { %v7941_v2 = vpop.permute.xlu1 %2248  ;;  %2864 = vrot.lane.b32.xlu2 %v2860_v4, %s6148_s29  ;;  %v1962_v44 = vmul.f32 %v7775_v49, %v7948_v60  ;;  %v2863_v52 = vsel %vm578_vm1, %v2861_v33, %v2862_v34  ;;  %v1596_v7 = vadd.f32 %v7004_v28, %v1548_v61  ;;  %v1609_v30 = vadd.f32 %v7192_v29, %v1553_v8  ;;  %v10553_v61 = vld [vmem:[#allocation78_spill] sm:$0xff]  ;;  %v10554_v33 = vld [vmem:[#allocation79_spill] sm:$0xff] }
 0x20a   : > { %v7950_v50 = vpop.permute.xlu0 %2246  ;;  %v1740_v32 = vrot.slane %v1731_v26, 1  ;;  %v1741_v38 = vrot.slane %v1732_v41, 1  ;;  %v1624_v25 = vadd.f32 %v7248_v56, %v1568_v35  ;;  %v1983_v9 = vmul.f32 %v7659_v22, %v7956_v31  ;;  %v7985_v56 = vld [vmem:[%s6182_s22 + $0xc0] sm:$0xff]  ;;  %v10556_v41 = vld [vmem:[#allocation7_spill] sm:$0xff] }
 0x20b   : > { %v7959_v19 = vpop.permute.xlu2 %2318  ;;  %v1984_v48 = vmul.f32 %v7792_v51, %v7956_v31  ;;  %v2887_v28 = vsel %vm578_vm1, %v2885_v16, %v2886_v18  ;;  %v1638_v29 = vadd.f32 %v10553_v61, %v1582_v42  ;;  %v1719_v8 = vsel %vm305_vm0, %v1717_v11, %v1718_v6  ;;  %v10555_v11 = vld [vmem:[#allocation9_spill] sm:$0xff]  ;;  %v10560_v61 = vld [vmem:[#allocation8_spill] sm:$0xff] }
 0x20c   : > { %v1722_v4 = vsel %vm305_vm0, %v1720_v37, %v1721_v17  ;;  %v2930_v14 = vstv %s7933_s11  ;;  %v7991_v47 = vadd.f32 %v7845_v45, %v1623_v15  ;;  %v1940_v12 = vstv %s7939_s12  ;;  %s8307_s11 = sld [smem:[#allocation2 + $0x5]] }
 0x20d   : > { %v1969_v36 = vrot.slane %v1961_v1, 2  ;;  %v1970_v46 = vrot.slane %v1962_v44, 2  ;;  %v1595_v34 = vadd.f32 %v10554_v33, %v7827_v40  ;;  %v1665_v26 = vadd.f32 %v10555_v11, %v1609_v30  ;;  %v10557_v44 = vld [vmem:[#allocation6_spill] sm:$0xff]  ;;  %s8337_s12 = sld [smem:[#allocation2 + $0x29]] }
 0x20e   : > { %v1637_v6 = vadd.f32 %v10556_v41, %v7896_v3  ;;  %v1742_v37 = vsel %vm305_vm0, %v1740_v32, %v1741_v38  ;;  %v1686_v16 = vadd.f32 %v7919_v39, %v1624_v25  ;;  %v1992_v18 = vrot.slane %v1983_v9, 2  ;;  %v10558_v39 = vld [vmem:[#allocation15_spill] sm:$0xff] }
 0x20f   : > { %2888 = vrot.lane.b32.xlu1 %v2884_v58, %s6148_s29  ;;  %v1993_v42 = vrot.slane %v1984_v48, 2  ;;  %v2932_v17 = vmul.f32 %v7985_v56, %v2930_v14  ;;  %v8011_v40 = vadd.f32 %v7848_v27, %v1638_v29  ;;  %v1941_v58 = vmul.f32 %v7669_v53, %v1940_v12  ;;  %v10559_v38 = vld [vmem:[#allocation11_spill] sm:$0xff] }
 0x210   : > { %2866 = vrot.lane.b32.xlu0 %v2863_v52, %s6148_s29  ;;  %v1942_v3 = vmul.f32 %v7775_v49, %v1940_v12  ;;  %v2931_v15 = vmul.f32 %v7997_v0, %v2930_v14  ;;  %v1610_v52 = vadd.f32 %v10557_v44, %v7854_v62  ;;  %v1652_v30 = vadd.f32 %v10558_v39, %v1596_v7 }
 0x211   : > { %v7994_v35 = vpop.permute.xlu1 %2274  ;;  %2890 = vrot.lane.b32.xlu2 %v2887_v28, %s6148_s29  ;;  %v8022_v32 = vsel %vm578_vm1, %v1969_v36, %v1970_v46  ;;  %v2944_v27 = vstv %s7967_s13  ;;  %v1651_v25 = vadd.f32 %v10559_v38, %v1595_v34  ;;  %v8027_v9 = vadd.f32 %v7887_v20, %v1665_v26  ;;  %v10561_v34 = vld [vmem:[#allocation5_spill] sm:$0xff]  ;;  %s8342_s13 = sld [smem:[#allocation2 + $0x21]] }
 0x212   : > { %v8005_v45 = vpop.permute.xlu0 %2262  ;;  %v1943_v48 = vmul.f32 %v7659_v22, %v1940_v12  ;;  %v2945_v28 = vmul.f32 %v7997_v0, %v2944_v27  ;;  %v1770_v29 = vadd.f32 %v10560_v61, %v1686_v16  ;;  %v1705_v62 = vadd.f32 %v7929_v63, %v1637_v6 }
 0x213   : > { %v8016_v1 = vpop.permute.xlu2 %2344  ;;  %v1944_v7 = vmul.f32 %v7792_v51, %v1940_v12  ;;  %v8035_v14 = vsel %vm578_vm1, %v1992_v18, %v1993_v42  ;;  %v1949_v36 = vrot.slane %v1941_v58, 2  ;;  %v1950_v46 = vrot.slane %v1942_v3, 2  ;;  %v10562_v3 = vld [vmem:[#allocation21_spill] sm:$0xff] }
 0x214   : > { %v2000_v33 = vstv %s7972_s14  ;;  %v2958_v20 = vstv %s7988_s15  ;;  %v1666_v11 = vadd.f32 %v10561_v34, %v1610_v52  ;;  %v1726_v26 = vadd.f32 %v1722_v4, %v1652_v30  ;;  %s8354_s14 = sld [smem:[#allocation2 + $0x69]] }
 0x215   : > { %v1963_v63 = vmul.f32 %v7659_v22, %v7948_v60  ;;  %v1964_v12 = vmul.f32 %v7792_v51, %v7948_v60  ;;  %v1725_v6 = vadd.f32 %v1719_v8, %v1651_v25  ;;  %v1952_v16 = vrot.slane %v1943_v48, 2  ;;  %v10563_v25 = vld [vmem:[#allocation12_spill] sm:$0xff]  ;;  %s8362_s15 = sld [smem:[#allocation2 + $0x4d]] }
 0x216   : > { %v1981_v18 = vmul.f32 %v7669_v53, %v7956_v31  ;;  %v1982_v42 = vmul.f32 %v7775_v49, %v7956_v31  ;;  %v2001_v4 = vmul.f32 %v7669_v53, %v2000_v33  ;;  %v2002_v60 = vmul.f32 %v7775_v49, %v2000_v33 }
 0x217   : > { %2937 = vrot.lane.b32.xlu1 %v2932_v17, %s6147_s23  ;;  %v1953_v58 = vrot.slane %v1944_v7, 2  ;;  %v2959_v8 = vmul.f32 %v7997_v0, %v2958_v20  ;;  %v2003_v44 = vmul.f32 %v7659_v22, %v2000_v33  ;;  %v2004_v31 = vmul.f32 %v7792_v51, %v2000_v33 }
 0x218   : > { %2935 = vrot.lane.b32.xlu0 %v2931_v15, %s6147_s23  ;;  %v1793_v15 = vadd.f32 %v10562_v3, %v1705_v62  ;;  %v2946_v52 = vmul.f32 %v7985_v56, %v2944_v27  ;;  %v1746_v53 = vadd.f32 %v1742_v37, %v1666_v11  ;;  %v1951_v49 = vsel %vm578_vm1, %v1949_v36, %v1950_v46  ;;  %v10564_v27 = vld [vmem:[#allocation17_spill] sm:$0xff]  ;;  %v10565_v36 = vld [vmem:[#allocation18_spill] sm:$0xff] }
 0x219   : > { %v8048_v41 = vpop.permute.xlu1 %2290  ;;  %2949 = vrot.lane.b32.xlu2 %v2945_v28, %s6147_s23  ;;  %v1972_v30 = vrot.slane %v1963_v63, 2  ;;  %v1973_v38 = vrot.slane %v1964_v12, 2  ;;  %v1817_v48 = vadd.f32 %v10563_v25, %v1725_v6  ;;  %v1989_v28 = vrot.slane %v1981_v18, 2  ;;  %v10567_v63 = vld [vmem:[#allocation10_spill] sm:$0xff]  ;;  %v10568_v6 = vld [vmem:[#allocation13_spill] sm:$0xff] }
 0x21a   : > { %v8056_v17 = vpop.permute.xlu0 %2288  ;;  %v1990_v22 = vrot.slane %v1982_v42, 2  ;;  %v2960_v51 = vmul.f32 %v7985_v56, %v2958_v20  ;;  %v1769_v61 = vadd.f32 %v10564_v27, %v7991_v47  ;;  %v2009_v62 = vrot.slane %v2001_v4, 2  ;;  %v10566_v20 = vld [vmem:[#allocation14_spill] sm:$0xff] }
 0x21b   : > { %v8070_v39 = vpop.permute.xlu2 %2450  ;;  %v2010_v37 = vrot.slane %v2002_v60, 2  ;;  %v1954_v7 = vsel %vm578_vm1, %v1952_v16, %v1953_v58  ;;  %v1889_v46 = vadd.f32 %v10565_v36, %v1793_v15  ;;  %v2012_v33 = vrot.slane %v2003_v44, 2  ;;  %v10570_v44 = vld [vmem:[#allocation19_spill] sm:$0xff] }
 0x21c   : > { %v2013_v34 = vrot.slane %v2004_v31, 2  ;;  %v2972_v11 = vstv %s8041_s16  ;;  %v1842_v47 = vadd.f32 %v10566_v20, %v1746_v53  ;;  %v1794_v12 = vadd.f32 %v10567_v63, %v8011_v40  ;;  %v10569_v40 = vld [vmem:[#allocation24_spill] sm:$0xff]  ;;  %s8398_s16 = sld [smem:[#allocation2 + $0x71]] }
 0x21d   : > { %v1818_v16 = vadd.f32 %v10568_v6, %v1726_v26  ;;  %v1974_v18 = vsel %vm578_vm1, %v1972_v30, %v1973_v38  ;;  %v1866_v4 = vadd.f32 %v7496_v10, %v1770_v29  ;;  %v1865_v60 = vadd.f32 %v7511_v54, %v1769_v61  ;;  %v10572_v38 = vld [vmem:[#allocation25_spill] sm:$0xff] }
 0x21e   : > { %v1991_v58 = vsel %vm578_vm1, %v1989_v28, %v1990_v22  ;;  %v1841_v15 = vadd.f32 %v10569_v40, %v8027_v9  ;;  %v1913_v26 = vadd.f32 %v7557_v57, %v1817_v48  ;;  %v1890_v31 = vadd.f32 %v10570_v44, %v1794_v12  ;;  %v10571_v9 = vld [vmem:[#allocation20_spill] sm:$0xff] }
 0x21f   : > { %2963 = vrot.lane.b32.xlu1 %v2959_v8, %s6147_s23  ;;  %v2217_v8 = vstv %s8054_s17  ;;  %v2974_v10 = vmul.f32 %v7985_v56, %v2972_v11  ;;  %v2011_v54 = vsel %vm578_vm1, %v2009_v62, %v2010_v37  ;;  %v1977_v29 = vadd.f32 %v8022_v32, %v1889_v46  ;;  %v10573_v46 = vld [vmem:[#allocation23_spill] sm:$0xff]  ;;  %v10575_v12 = vld [vmem:[#allocation32_spill] sm:$0xff]  ;;  %s8439_s17 = sld [smem:[#allocation2 + $0x7]] }
 0x220   : > { %2951 = vrot.lane.b32.xlu0 %v2946_v52, %s6147_s23  ;;  %v2014_v52 = vsel %vm578_vm1, %v2012_v33, %v2013_v34  ;;  %v2973_v53 = vmul.f32 %v7997_v0, %v2972_v11  ;;  %v1914_v57 = vadd.f32 %v10571_v9, %v1818_v16  ;;  %v1937_v25 = vadd.f32 %v10572_v38, %v1841_v15  ;;  %v10574_v34 = vld [vmem:[#allocation30_spill] sm:$0xff] }
 0x221   : > { %v8095_v42 = vpop.permute.xlu1 %2316  ;;  %2965 = vrot.lane.b32.xlu2 %v2960_v51, %s6147_s23  ;;  %v2219_v48 = vmul.f32 %v7811_v5, %v2217_v8  ;;  %v2986_v28 = vstv %s8073_s20  ;;  %v1957_v32 = vadd.f32 %v1951_v49, %v1865_v60  ;;  %v1958_v22 = vadd.f32 %v1954_v7, %v1866_v4  ;;  %s6062_s20 = sshll.u32 %s10640_s10, 7 }
 0x222   : > { %v8101_v3 = vpop.permute.xlu0 %2304  ;;  %v8122_v51 = vstv %s8076_s21  ;;  %v2987_v27 = vmul.f32 %v7997_v0, %v2986_v28  ;;  %v1978_v61 = vadd.f32 %v1974_v18, %v1890_v31  ;;  %v1997_v62 = vadd.f32 %v1991_v58, %v1913_v26  ;;  %v10577_v26 = vld [vmem:[#allocation16_spill] sm:$0xff]  ;;  %s8514_s21 = sld [smem:[#allocation2 + $0x4f]]  ;;  %s8522_s10 = scalar_lea.vmem %s10368_s2, %s6062_s20 }
 0x223   : > { %v8113_v30 = vpop.permute.xlu2 %2496  ;;  %v2229_v37 = vstv %s8061_s18  ;;  %v2235_v36 = vstv %s8067_s19  ;;  %v1938_v33 = vadd.f32 %v10573_v46, %v1842_v47  ;;  %v2042_v11 = vadd.f32 %v10574_v34, %v1958_v22  ;;  %v10576_v47 = vld [vmem:[#allocation27_spill] sm:$0xff]  ;;  %v10582_v34 = vld [vmem:[#allocation36_spill] sm:$0xff]  ;;  %s8457_s18 = sld [smem:[#allocation2 + $0x2b]] }
 0x224   : > { %v2223_v20 = vstv %s8082_s24  ;;  %v3000_v49 = vstv %s8088_s25  ;;  %v2017_v7 = vadd.f32 %v2011_v54, %v1937_v25  ;;  %v1998_v63 = vadd.f32 %v8035_v14, %v1914_v57  ;;  %v8152_v14 = vld [vmem:[%s6182_s22 + $0x38] sm:$0x3]  ;;  %v10578_v54 = vld [vmem:[#allocation29_spill] sm:$0xff]  ;;  %s8469_s19 = sld [smem:[#allocation2 + $0x8d]] }
 0x225   : > { %v2089_v6 = vadd.f32 %v10575_v12, %v1997_v62  ;;  %v2354_v18 = vmul.f32 %v7868_v13, %v8122_v51  ;;  %v2041_v4 = vadd.f32 %v10576_v47, %v1957_v32  ;;  %v2218_v60 = vmul.f32 %v7868_v13, %v2217_v8  ;;  %v10580_v32 = vld [vmem:[#allocation22_spill] sm:$0xff]  ;;  %v10584_v47 = vld [vmem:[#allocation31_spill] sm:$0xff]  ;;  %s8777_s20 = sld [smem:[#allocation2 + $0x48]] }
 0x226   : > { %v2230_v58 = vmul.f32 %v7868_v13, %v2229_v37  ;;  %v2355_v15 = vmul.f32 %v8152_v14, %v8122_v51  ;;  %v2066_v44 = vadd.f32 %v10577_v26, %v1978_v61  ;;  %v2224_v31 = vmul.f32 %v7868_v13, %v2223_v20  ;;  %v10583_v12 = vld [vmem:[#allocation26_spill] sm:$0xff]  ;;  %s8785_s24 = sld [smem:[#allocation2 + $0x27]] }
 0x227   : > { %2979 = vrot.lane.b32.xlu1 %v2974_v10, %s6147_s23  ;;  %v8159_v10 = vmul.f32 %v7811_v5, %v2235_v36  ;;  %v3001_v8 = vmul.f32 %v7997_v0, %v3000_v49  ;;  %v2018_v9 = vadd.f32 %v2014_v52, %v1938_v33  ;;  %v2988_v57 = vmul.f32 %v7985_v56, %v2986_v28  ;;  %s8790_s25 = sld [smem:[#allocation2 + $0xe]] }
 0x228   : > { %2977 = vrot.lane.b32.xlu0 %v2973_v53, %s6147_s23  ;;  %v2138_v53 = vadd.f32 %v10578_v54, %v2042_v11  ;;  %v2373_v25 = vstv %s8115_s26  ;;  %v8168_v22 = vadd.f32 %v10580_v32, %v2017_v7  ;;  %v2225_v62 = vmul.f32 %v7811_v5, %v2223_v20  ;;  %v10585_v54 = vld [vmem:[#allocation28_spill] sm:$0xff]  ;;  %s8534_s26 = sld [smem:[#allocation2 + $0x73]] }
 0x229   : > { %v8139_v16 = vpop.permute.xlu1 %2332  ;;  %2991 = vrot.lane.b32.xlu2 %v2987_v27, %s6148_s29  ;;  %v10581_v27 = vld [vmem:[#allocation33_spill] sm:$0xff]  ;;  %v2362_v46 = vrot.slane %v2354_v18, 1  ;;  %v2137_v11 = vadd.f32 %v10582_v34, %v2041_v4  ;;  %v2363_v52 = vrot.slane %v2355_v15, 1  ;;  %v8176_v33 = vstv %s8125_s27  ;;  %s8549_s27 = sld [smem:[#allocation2 + $0x8]] }
 0x22a   : > { %v8148_v40 = vpop.permute.xlu0 %2330  ;;  %v2185_v61 = vadd.f32 %v10581_v27, %v2089_v6  ;;  %v3002_v28 = vmul.f32 %v7985_v56, %v3000_v49  ;;  %v2065_v7 = vadd.f32 %v10583_v12, %v1977_v29  ;;  %v2114_v26 = vadd.f32 %v10584_v47, %v2018_v9  ;;  %v8184_v6 = vld [vmem:[%s6182_s22 + $0x78] sm:$0x3]  ;;  %v8203_v27 = vld [vmem:[%s6182_s22 + $0x88] sm:$0x3] }
 0x22b   : > { %v8164_v38 = vpop.permute.xlu2 %2522  ;;  %v2376_v20 = vmul.f32 %v7811_v5, %v2373_v25  ;;  %v2377_v18 = vmul.f32 %v8184_v6, %v2373_v25  ;;  %v8188_v4 = vmul.f32 %v7811_v5, %v2229_v37  ;;  %v8190_v15 = vadd.f32 %v2219_v48, %v2138_v53 }
 0x22c   : > { %10579 = vst [vmem:[#allocation37_spill] sm:$0xff] %v8164_v38  ;;  %v8193_v49 = vmul.f32 %v7868_v13, %v2235_v36  ;;  %v3014_v29 = vstv %s8135_s28  ;;  %v2090_v9 = vadd.f32 %v10585_v54, %v1998_v63  ;;  %v3122_v34 = vstv %s8143_s30  ;;  %s8583_s28 = sld [smem:[#allocation2 + $0x2c]] }
 0x22d   : > { %v2414_v37 = vmul.f32 %v7868_v13, %v8176_v33  ;;  %v2161_v48 = vadd.f32 %v7850_v23, %v2065_v7  ;;  %v8211_v36 = vadd.f32 %v2218_v60, %v2137_v11  ;;  %v8214_v53 = vsel %vm305_vm0, %v2362_v46, %v2363_v52  ;;  %s8609_s30 = sld [smem:[#allocation2 + $0x50]] }
 0x22e   : > { %v3016_v12 = vmul.f32 %v7985_v56, %v3014_v29  ;;  %v2385_v23 = vrot.slane %v2376_v20, 1  ;;  %v2386_v60 = vrot.slane %v2377_v18, 1  ;;  %v2162_v46 = vadd.f32 %v7834_v21, %v2066_v44 }
 0x22f   : > { %3005 = vrot.lane.b32.xlu1 %v3001_v8, %s6148_s29  ;;  %v8198_v8 = vadd.f32 %v2230_v58, %v2185_v61  ;;  %v2415_v58 = vmul.f32 %v8152_v14, %v8176_v33  ;;  %v3015_v11 = vmul.f32 %v7997_v0, %v3014_v29  ;;  %v3124_v7 = vmul.f32 %v8203_v27, %v3122_v34  ;;  %v8239_v29 = vld [vmem:[%s6182_s22 + $0xc8] sm:$0x3] }
 0x230   : > { %2993 = vrot.lane.b32.xlu0 %v2988_v57, %s6148_s29  ;;  %v10588_v57 = vld [vmem:[#allocation35_spill] sm:$0xff]  ;;  %v2356_v47 = vmul.f32 %v7811_v5, %v8122_v51  ;;  %v3028_v54 = vstv %s8172_s3  ;;  %v2226_v20 = vadd.f32 %v2224_v31, %v2161_v48  ;;  %v2374_v18 = vmul.f32 %v7868_v13, %v2373_v25  ;;  %s8622_s3 = sld [smem:[#allocation2 + $0x74]] }
 0x231   : > { %v8200_v32 = vpop.permute.xlu1 %2448  ;;  %3007 = vrot.lane.b32.xlu2 %v3002_v28, %s6148_s29  ;;  %v2210_v61 = vadd.f32 %v10588_v57, %v2114_v26  ;;  %v3123_v28 = vmul.f32 %v7997_v0, %v3122_v34  ;;  %v2357_v26 = vmul.f32 %v8184_v6, %v8122_v51  ;;  %v2422_v57 = vrot.slane %v2414_v37, 1 }
 0x232   : > { %10586 = vst [vmem:[#allocation42_spill] sm:$0xff] %v8200_v32  ;;  %v8216_v63 = vpop.permute.xlu0 %2346  ;;  %v3029_v21 = vmul.f32 %v7997_v0, %v3028_v54  ;;  %v2423_v44 = vrot.slane %v2415_v58, 1  ;;  %v2375_v51 = vmul.f32 %v8152_v14, %v2373_v25  ;;  %v3125_v37 = vmul.f32 %v7985_v56, %v3122_v34 }
 0x233   : > { %10587 = vst [vmem:[#allocation34_spill] sm:$0xff] %v8216_v63  ;;  %v8227_v52 = vpop.permute.xlu2 %2568  ;;  %v3126_v31 = vmul.f32 %v8239_v29, %v3122_v34  ;;  %v8250_v48 = vadd.f32 %v2225_v62, %v2162_v46  ;;  %v8253_v58 = vadd.f32 %v8159_v10, %v2210_v61  ;;  %v3131_v38 = vrot.slane %v3123_v28, 1  ;;  %v10590_v62 = vld [vmem:[#allocation39_spill] sm:$0xff] }
 0x234   : > { %10589 = vst [vmem:[#allocation38_spill] sm:$0xff] %v8227_v52  ;;  %v8245_v52 = vsel %vm305_vm0, %v2385_v23, %v2386_v60  ;;  %v3132_v63 = vrot.slane %v3124_v7, 1  ;;  %v2365_v23 = vrot.slane %v2356_v47, 1  ;;  %v2366_v60 = vrot.slane %v2357_v26, 1 }
 0x235   : > { %v3146_v32 = vstv %s8208_s4  ;;  %v8264_v34 = vadd.f32 %v10590_v62, %v2226_v20  ;;  %v2186_v10 = vadd.f32 %v7902_v59, %v2090_v9  ;;  %v2382_v61 = vrot.slane %v2374_v18, 1  ;;  %s5939_s4 = sld [smem:[#allocation2 + $0xa]] }
 0x236   : > { %v3134_v28 = vrot.slane %v3125_v37, 1  ;;  %v3135_v7 = vrot.slane %v3126_v31, 1  ;;  %v3133_v47 = vsel %vm305_vm0, %v3131_v38, %v3132_v63  ;;  %v3030_v26 = vmul.f32 %v7985_v56, %v3028_v54 }
 0x237   : > { %3021 = vrot.lane.b32.xlu1 %v3016_v12, %s6148_s29  ;;  %v2209_v12 = vadd.f32 %v7892_v24, %v8168_v22  ;;  %v2393_v24 = vstv %s8222_s5  ;;  %v2383_v22 = vrot.slane %v2375_v51, 1  ;;  %v3149_v9 = vmul.f32 %v7985_v56, %v3146_v32  ;;  %s5940_s5 = sld [smem:[#allocation2 + $0x2e]] }
 0x238   : > { %3019 = vrot.lane.b32.xlu0 %v3015_v11, %s6148_s29  ;;  %v8271_v11 = vsel %vm305_vm0, %v2422_v57, %v2423_v44  ;;  %v3150_v20 = vmul.f32 %v8239_v29, %v3146_v32  ;;  %v8284_v18 = vsel %vm305_vm0, %v2365_v23, %v2366_v60  ;;  %v3148_v44 = vmul.f32 %v8203_v27, %v3146_v32 }
 0x239   : > { %v8258_v25 = vpop.permute.xlu1 %2474  ;;  %3033 = vrot.lane.b32.xlu2 %v3029_v21, %s6148_s29  ;;  %v2238_v57 = vadd.f32 %v8193_v49, %v2209_v12  ;;  %v3147_v21 = vmul.f32 %v7997_v0, %v3146_v32  ;;  %v2233_v51 = vadd.f32 %v8188_v4, %v2186_v10  ;;  %v2394_v38 = vmul.f32 %v7868_v13, %v2393_v24 }
 0x23a   : > { %v8267_v46 = vpop.permute.xlu0 %2472  ;;  %v2395_v63 = vmul.f32 %v8152_v14, %v2393_v24  ;;  %v3170_v54 = vstv %s8241_s6  ;;  %v2396_v37 = vmul.f32 %v7811_v5, %v2393_v24  ;;  %v3136_v49 = vsel %vm305_vm0, %v3134_v28, %v3135_v7  ;;  %s5941_s6 = sld [smem:[#allocation2 + $0x52]] }
 0x23b   : > { %v8278_v59 = vpop.permute.xlu2 %2594  ;;  %v3171_v31 = vmul.f32 %v7997_v0, %v3170_v54  ;;  %v3172_v12 = vmul.f32 %v8203_v27, %v3170_v54  ;;  %v8298_v32 = vsel %vm305_vm0, %v2382_v61, %v2383_v22  ;;  %v2397_v4 = vmul.f32 %v8184_v6, %v2393_v24 }
 0x23c   : > { %10591 = vst [vmem:[#allocation40_spill] sm:$0xff] %v8278_v59  ;;  %v3158_v23 = vrot.slane %v3149_v9, 1  ;;  %v3159_v60 = vrot.slane %v3150_v20, 1  ;;  %v2252_v62 = vadd.f32 %v7950_v50, %v8211_v36  ;;  %v3155_v28 = vrot.slane %v3147_v21, 1 }
 0x23d   : > { %v3156_v7 = vrot.slane %v3148_v44, 1  ;;  %v8310_v61 = vadd.f32 %v7859_v43, %v2233_v51  ;;  %v8314_v22 = vadd.f32 %v7941_v2, %v8190_v15  ;;  %v2402_v24 = vrot.slane %v2394_v38, 1 }
 0x23e   : > { %v2405_v50 = vrot.slane %v2396_v37, 1  ;;  %v3179_v36 = vrot.slane %v3171_v31, 1  ;;  %v3180_v20 = vrot.slane %v3172_v12, 1  ;;  %v8320_v21 = vstv %s8274_s8  ;;  %s5943_s8 = sld [smem:[#allocation2 + $0xb]] }
 0x23f   : > { %3137 = vrot.lane.b32.xlu1 %v3133_v47, %s6147_s23  ;;  %v3194_v47 = vstv %s8261_s7  ;;  %v2406_v44 = vrot.slane %v2397_v4, 1  ;;  %v3160_v59 = vsel %vm305_vm0, %v3158_v23, %v3159_v60  ;;  %v2308_v15 = vadd.f32 %v7909_v55, %v2252_v62  ;;  %s5942_s7 = sld [smem:[#allocation2 + $0x76]] }
 0x240   : > { %3035 = vrot.lane.b32.xlu0 %v3030_v26, %s6148_s29  ;;  %v2403_v26 = vrot.slane %v2395_v63, 1  ;;  %v3195_v51 = vmul.f32 %v7997_v0, %v3194_v47  ;;  %v3196_v2 = vmul.f32 %v8203_v27, %v3194_v47  ;;  %v3157_v38 = vsel %vm305_vm0, %v3155_v28, %v3156_v7 }
 0x241   : > { %v8304_v10 = vpop.permute.xlu1 %2520  ;;  %3139 = vrot.lane.b32.xlu2 %v3136_v49, %s6147_s23  ;;  %v3173_v63 = vmul.f32 %v7985_v56, %v3170_v54  ;;  %v3174_v37 = vmul.f32 %v8239_v29, %v3170_v54  ;;  %v2267_v49 = vadd.f32 %v8005_v45, %v8250_v48  ;;  %v2416_v31 = vmul.f32 %v7811_v5, %v8176_v33 }
 0x242   : > { %v8316_v9 = vpop.permute.xlu0 %2498  ;;  %v2417_v12 = vmul.f32 %v8184_v6, %v8176_v33  ;;  %v2646_v55 = vmul.f32 %v7868_v13, %v8320_v21  ;;  %v3181_v54 = vsel %vm305_vm0, %v3179_v36, %v3180_v20  ;;  %v3197_v45 = vmul.f32 %v7985_v56, %v3194_v47 }
 0x243   : > { %v8323_v43 = vpop.permute.xlu2 %2720  ;;  %v3198_v48 = vmul.f32 %v8239_v29, %v3194_v47  ;;  %v2647_v4 = vmul.f32 %v8152_v14, %v8320_v21  ;;  %v2294_v33 = vadd.f32 %v8056_v17, %v2238_v57  ;;  %v8351_v23 = vsel %vm305_vm0, %v2402_v24, %v2403_v26 }
 0x244   : > { %v3204_v60 = vrot.slane %v3196_v2, 1  ;;  %v8357_v62 = vsel %vm305_vm0, %v2405_v50, %v2406_v44  ;;  %v3182_v7 = vrot.slane %v3173_v63, 1  ;;  %v3183_v47 = vrot.slane %v3174_v37, 1 }
 0x245   : > { %v3218_v36 = vstv %s8307_s11  ;;  %v2323_v17 = vadd.f32 %v7959_v19, %v2267_v49  ;;  %v8366_v57 = vadd.f32 %v8214_v53, %v2308_v15  ;;  %v2425_v24 = vrot.slane %v2416_v31, 1  ;;  %s5944_s11 = sld [smem:[#allocation2 + $0x2f]] }
 0x246   : > { %v2426_v26 = vrot.slane %v2417_v12, 1  ;;  %v3206_v50 = vrot.slane %v3197_v45, 1  ;;  %v3207_v44 = vrot.slane %v3198_v48, 1  ;;  %v2655_v2 = vrot.slane %v2647_v4, 2 }
 0x247   : > { %3163 = vrot.lane.b32.xlu1 %v3160_v59, %s6147_s23  ;;  %v3203_v59 = vrot.slane %v3195_v51, 1  ;;  %v2654_v51 = vrot.slane %v2646_v55, 2  ;;  %v3221_v53 = vmul.f32 %v7985_v56, %v3218_v36  ;;  %v3222_v15 = vmul.f32 %v8239_v29, %v3218_v36 }
 0x248   : > { %3161 = vrot.lane.b32.xlu0 %v3157_v38, %s6147_s23  ;;  %v2350_v38 = vadd.f32 %v8016_v1, %v2294_v33  ;;  %v2280_v37 = vadd.f32 %v7994_v35, %v8198_v8  ;;  %v3184_v49 = vsel %vm305_vm0, %v3182_v7, %v3183_v47  ;;  %v3219_v31 = vmul.f32 %v7997_v0, %v3218_v36 }
 0x249   : > { %v8359_v28 = vpop.permute.xlu1 %2546  ;;  %3185 = vrot.lane.b32.xlu2 %v3181_v54, %s6147_s23  ;;  %v3205_v63 = vsel %vm305_vm0, %v3203_v59, %v3204_v60  ;;  %v3220_v12 = vmul.f32 %v8203_v27, %v3218_v36  ;;  %v8384_v1 = vadd.f32 %v8048_v41, %v8253_v58  ;;  %v8387_v55 = vsel %vm305_vm0, %v2425_v24, %v2426_v26 }
 0x24a   : > { %v8368_v20 = vpop.permute.xlu0 %2544  ;;  %v8390_v54 = vadd.f32 %v8245_v52, %v2323_v17  ;;  %v3242_v45 = vstv %s8337_s12  ;;  %v2625_v35 = vstv %s8342_s13  ;;  %v3208_v8 = vsel %vm305_vm0, %v3206_v50, %v3207_v44  ;;  %s5945_s12 = sld [smem:[#allocation2 + $0x53]] }
 0x24b   : > { %v8373_v19 = vpop.permute.xlu2 %2746  ;;  %v3243_v48 = vmul.f32 %v7997_v0, %v3242_v45  ;;  %v3244_v4 = vmul.f32 %v8203_v27, %v3242_v45  ;;  %v8401_v41 = vadd.f32 %v8271_v11, %v2350_v38  ;;  %v3230_v52 = vrot.slane %v3221_v53, 1  ;;  %s5951_s13 = sld [smem:[#allocation2 + $0xd]] }
 0x24c   : > { %v3231_v58 = vrot.slane %v3222_v15, 1  ;;  %v8405_v33 = vsel %vm578_vm1, %v2654_v51, %v2655_v2  ;;  %v3227_v60 = vrot.slane %v3219_v31, 1  ;;  %v3228_v7 = vrot.slane %v3220_v12, 1 }
 0x24d   : > { %v3266_v47 = vstv %s8362_s15  ;;  %v8411_v36 = vstv %s8354_s14  ;;  %v2309_v17 = vadd.f32 %v8101_v3, %v8314_v22  ;;  %v2336_v11 = vadd.f32 %v8148_v40, %v2280_v37  ;;  %s8734_s14 = sld [smem:[#allocation2 + $0x77]] }
 0x24e   : > { %v2626_v24 = vmul.f32 %v7868_v13, %v2625_v35  ;;  %v2627_v26 = vmul.f32 %v8152_v14, %v2625_v35  ;;  %v2322_v44 = vadd.f32 %v8095_v42, %v8264_v34  ;;  %v3251_v51 = vrot.slane %v3243_v48, 1  ;;  %s5952_s15 = sld [smem:[#allocation2 + $0x31]] }
 0x24f   : > { %3209 = vrot.lane.b32.xlu1 %v3205_v63, %s6147_s23  ;;  %v3252_v2 = vrot.slane %v3244_v4, 1  ;;  %v2628_v38 = vmul.f32 %v7811_v5, %v2625_v35  ;;  %v3232_v63 = vsel %vm305_vm0, %v3230_v52, %v3231_v58  ;;  %v3267_v40 = vmul.f32 %v7997_v0, %v3266_v47 }
 0x250   : > { %3187 = vrot.lane.b32.xlu0 %v3184_v49, %s6147_s23  ;;  %v3268_v22 = vmul.f32 %v8203_v27, %v3266_v47  ;;  %v2629_v53 = vmul.f32 %v8184_v6, %v2625_v35  ;;  %v3229_v15 = vsel %vm305_vm0, %v3227_v60, %v3228_v7  ;;  %v3245_v37 = vmul.f32 %v7985_v56, %v3242_v45 }
 0x251   : > { %v8407_v59 = vpop.permute.xlu1 %2592  ;;  %3211 = vrot.lane.b32.xlu2 %v3208_v8, %s6147_s23  ;;  %v3246_v42 = vmul.f32 %v8239_v29, %v3242_v45  ;;  %v8435_v34 = vmul.f32 %v7811_v5, %v8411_v36  ;;  %v2371_v49 = vadd.f32 %v8284_v18, %v2309_v17  ;;  %v2410_v31 = vadd.f32 %v8351_v23, %v2336_v11 }
 0x252   : > { %v8418_v50 = vpop.permute.xlu0 %2570  ;;  %v2634_v12 = vrot.slane %v2626_v24, 2  ;;  %v2635_v8 = vrot.slane %v2627_v26, 2  ;;  %v3253_v35 = vsel %vm305_vm0, %v3251_v51, %v3252_v2  ;;  %v3290_v48 = vstv %s8398_s16  ;;  %s5953_s16 = sld [smem:[#allocation2 + $0x55]] }
 0x253   : > { %v8425_v3 = vpop.permute.xlu2 %2792  ;;  %v3269_v45 = vmul.f32 %v7985_v56, %v3266_v47  ;;  %v3270_v4 = vmul.f32 %v8239_v29, %v3266_v47  ;;  %v3275_v5 = vrot.slane %v3267_v40, 1  ;;  %v3276_v18 = vrot.slane %v3268_v22, 1 }
 0x254   : > { %v2637_v52 = vrot.slane %v2628_v38, 2  ;;  %v2638_v23 = vrot.slane %v2629_v53, 2  ;;  %v8448_v58 = vadd.f32 %v8298_v32, %v2322_v44  ;;  %v3254_v7 = vrot.slane %v3245_v37, 1 }
 0x255   : > { %v3255_v17 = vrot.slane %v3246_v42, 1  ;;  %v8455_v11 = vmul.f32 %v8184_v6, %v8411_v36  ;;  %v2455_v47 = vadd.f32 %v8070_v39, %v2371_v49  ;;  %v8462_v24 = vadd.f32 %v8139_v16, %v8310_v61  ;;  %v6100_v61 = vld [vmem:[%s6182_s22 + $0x70] sm:$0xff] }
 0x256   : > { %v8465_v32 = vsel %vm578_vm1, %v2634_v12, %v2635_v8  ;;  %v3293_v44 = vmul.f32 %v7985_v56, %v3290_v48  ;;  %v2502_v51 = vadd.f32 %v8113_v30, %v2410_v31  ;;  %v3294_v39 = vmul.f32 %v8239_v29, %v3290_v48 }
 0x257   : > { %3235 = vrot.lane.b32.xlu1 %v3232_v63, %s6148_s29  ;;  %v3278_v2 = vrot.slane %v3269_v45, 1  ;;  %v3279_v16 = vrot.slane %v3270_v4, 1  ;;  %v8477_v38 = vmul.f32 %v6100_v61, %v8320_v21  ;;  %v8481_v63 = vmul.f32 %v8184_v6, %v8320_v21  ;;  %v10592_v45 = vld [vmem:[#allocation42_spill] sm:$0xff] }
 0x258   : > { %3233 = vrot.lane.b32.xlu0 %v3229_v15, %s6148_s29  ;;  %v3277_v40 = vsel %vm305_vm0, %v3275_v5, %v3276_v18  ;;  %v2639_v22 = vsel %vm578_vm1, %v2637_v52, %v2638_v23  ;;  %v2551_v30 = vadd.f32 %v8359_v28, %v2455_v47  ;;  %v3256_v15 = vsel %vm305_vm0, %v3254_v7, %v3255_v17 }
 0x259   : > { %v8450_v60 = vpop.permute.xlu1 %2618  ;;  %3257 = vrot.lane.b32.xlu2 %v3253_v35, %s6148_s29  ;;  %v3291_v37 = vmul.f32 %v7997_v0, %v3290_v48  ;;  %v3292_v42 = vmul.f32 %v8203_v27, %v3290_v48  ;;  %v3302_v49 = vrot.slane %v3293_v44, 1  ;;  %v2666_v21 = vmul.f32 %v7868_v13, %v8411_v36  ;;  %v10593_v13 = vld [vmem:[#allocation34_spill] sm:$0xff] }
 0x25a   : > { %v8467_v26 = vpop.permute.xlu0 %2616  ;;  %v2667_v31 = vmul.f32 %v8152_v14, %v8411_v36  ;;  %v3394_v12 = vstv %s8439_s17  ;;  %v3303_v28 = vrot.slane %v3294_v39, 1  ;;  %v3280_v8 = vsel %vm305_vm0, %v3278_v2, %v3279_v16  ;;  %s5954_s17 = sld [smem:[#allocation2 + $0x79]] }
 0x25b   : > { %v2819_v53 = vpop.permute.xlu2 %2818  ;;  %v3395_v35 = vmul.f32 %v7997_v0, %v3394_v12  ;;  %v3396_v48 = vmul.f32 %v8203_v27, %v3394_v12  ;;  %v2454_v4 = vadd.f32 %v10592_v45, %v8366_v57  ;;  %v2351_v5 = vadd.f32 %v10593_v13, %v8384_v1  ;;  %v10594_v45 = vld [vmem:[#allocation37_spill] sm:$0xff] }
 0x25c   : > { %v2657_v36 = vrot.slane %v8477_v38, 2  ;;  %v2658_v18 = vrot.slane %v8481_v63, 2  ;;  %v2643_v23 = vadd.f32 %v2639_v22, %v2551_v30  ;;  %v3299_v7 = vrot.slane %v3291_v37, 1 }
 0x25d   : > { %v3300_v17 = vrot.slane %v3292_v42, 1  ;;  %v3418_v47 = vstv %s8457_s18  ;;  %v2685_v44 = vstv %s8469_s19  ;;  %v2674_v1 = vrot.slane %v2666_v21, 2  ;;  %s5907_s18 = sld [smem:[#allocation2 + $0x3]] }
 0x25e   : > { %v2675_v39 = vrot.slane %v2667_v31, 2  ;;  %v3304_v16 = vsel %vm305_vm0, %v3302_v49, %v3303_v28  ;;  %v3403_v38 = vrot.slane %v3395_v35, 2  ;;  %v3404_v63 = vrot.slane %v3396_v48, 2  ;;  %s8773_s19 = sld [smem:[#allocation2 + $0x24]] }
 0x25f   : > { %3281 = vrot.lane.b32.xlu1 %v3277_v40, %s6148_s29  ;;  %v3419_v22 = vmul.f32 %v7997_v0, %v3418_v47  ;;  %v3420_v30 = vmul.f32 %v8203_v27, %v3418_v47  ;;  %v3398_v37 = vmul.f32 %v8239_v29, %v3394_v12  ;;  %v2431_v42 = vadd.f32 %v8387_v55, %v2351_v5 }
 0x260   : > { %3259 = vrot.lane.b32.xlu0 %v3256_v15, %s6148_s29  ;;  %v3397_v15 = vmul.f32 %v7985_v56, %v3394_v12  ;;  %v2598_v49 = vadd.f32 %v8407_v59, %v2502_v51  ;;  %v3301_v31 = vsel %vm305_vm0, %v3299_v7, %v3300_v17  ;;  %v2550_v28 = vadd.f32 %v8368_v20, %v2454_v4  ;;  %v6101_v17 = vld [vmem:[%s6182_s22 + $0x30] sm:$0xff] }
 0x261   : > { %v8510_v52 = vpop.permute.xlu1 %2744  ;;  %3283 = vrot.lane.b32.xlu2 %v3280_v8, %s6148_s29  ;;  %v2676_v8 = vsel %vm578_vm1, %v2674_v1, %v2675_v39  ;;  %v2688_v35 = vmul.f32 %v6100_v61, %v2685_v44  ;;  %v2689_v48 = vmul.f32 %v8184_v6, %v2685_v44  ;;  %v2677_v55 = vrot.slane %v8435_v34, 2 }
 0x262   : > { %v2723_v57 = vpop.permute.xlu0 %2722  ;;  %v3405_v59 = vsel %vm578_vm1, %v3403_v38, %v3404_v63  ;;  %v3421_v51 = vmul.f32 %v7985_v56, %v3418_v47  ;;  %v3422_v20 = vmul.f32 %v8239_v29, %v3418_v47  ;;  %v3427_v61 = vrot.slane %v3419_v22, 2 }
 0x263   : > { %v2727_v2 = vadd.f32 %v2723_v57, %v2643_v23  ;;  %v2865_v40 = vpop.permute.xlu2 %2864  ;;  %v3428_v6 = vrot.slane %v3420_v30, 2  ;;  %v3407_v12 = vrot.slane %v3398_v37, 2  ;;  %v2527_v4 = vadd.f32 %v10594_v45, %v2431_v42 }
 0x264   : > { %v2659_v13 = vsel %vm578_vm1, %v2657_v36, %v2658_v18  ;;  %v2682_v23 = vadd.f32 %v2676_v8, %v2598_v49  ;;  %v3442_v7 = vstv %s8514_s21  ;;  %v8552_v57 = vmul.f32 %v6101_v17, %v2685_v44  ;;  %s8779_s21 = sld [smem:[#allocation2]] }
 0x265   : > { %v2823_v21 = vadd.f32 %v2819_v53, %v2727_v2  ;;  %v3406_v53 = vrot.slane %v3397_v15, 2  ;;  %v8555_v47 = vmul.f32 %v8152_v14, %v2685_v44  ;;  %v2697_v39 = vrot.slane %v2688_v35, 2 }
 0x266   : > { %v2698_v2 = vrot.slane %v2689_v48, 2  ;;  %v3430_v18 = vrot.slane %v3421_v51, 2  ;;  %v3431_v38 = vrot.slane %v3422_v20, 2  ;;  %v3429_v63 = vsel %vm578_vm1, %v3427_v61, %v3428_v6  ;;  %v10595_v20 = vld [vmem:[#allocation38_spill] sm:$0xff] }
 0x267   : > { %2898 = vst.msk [vmem:[%s8522_s10 + $0x8] sm:$0xff] %vm2896_vm2, %v2823_v21  ;;  %3307 = vrot.lane.b32.xlu1 %v3304_v16, %s6148_s29  ;;  %v2642_v16 = vadd.f32 %v8465_v32, %v2550_v28  ;;  %v3408_v22 = vsel %vm578_vm1, %v3406_v53, %v3407_v12  ;;  %v3445_v14 = vmul.f32 %v7985_v56, %v3442_v7  ;;  %v3466_v28 = vstv %s8534_s26  ;;  %s8802_s26 = sld [smem:[#allocation2 + $0x6f]] }
 0x268   : > { %3305 = vrot.lane.b32.xlu0 %v3301_v31, %s6148_s29  ;;  %v3446_v44 = vmul.f32 %v8239_v29, %v3442_v7  ;;  %v2623_v15 = vadd.f32 %v8450_v60, %v2527_v4  ;;  %v3443_v42 = vmul.f32 %v7997_v0, %v3442_v7  ;;  %v3444_v32 = vmul.f32 %v8203_v27, %v3442_v7 }
 0x269   : > { %v8546_v5 = vpop.permute.xlu1 %2770  ;;  %3409 = vrot.lane.b32.xlu2 %v3405_v59, %s6147_s23  ;;  %v2479_v49 = vadd.f32 %v8258_v25, %v8390_v54  ;;  %v2478_v21 = vadd.f32 %v8267_v46, %v8448_v58  ;;  %v2699_v31 = vsel %vm578_vm1, %v2697_v39, %v2698_v2  ;;  %v2678_v56 = vrot.slane %v8455_v11, 2 }
 0x26a   : > { %v2769_v1 = vpop.permute.xlu0 %2768  ;;  %v3432_v60 = vsel %vm578_vm1, %v3430_v18, %v3431_v38  ;;  %v3468_v8 = vmul.f32 %v8203_v27, %v3466_v28  ;;  %v2726_v25 = vadd.f32 %v8323_v43, %v2642_v16  ;;  %v3454_v54 = vrot.slane %v3445_v14, 2  ;;  %v8600_v16 = vld [vmem:[%s6182_s22 + $0xc0] sm:$0xff] }
 0x26b   : > { %v2774_v36 = vadd.f32 %v2769_v1, %v2682_v23  ;;  %v2891_v30 = vpop.permute.xlu2 %2890  ;;  %v2575_v46 = vadd.f32 %v8418_v50, %v2479_v49  ;;  %v3455_v58 = vrot.slane %v3446_v44, 2  ;;  %v2703_v11 = vadd.f32 %v2699_v31, %v2623_v15 }
 0x26c   : > { %v3451_v48 = vrot.slane %v3443_v42, 2  ;;  %v3452_v59 = vrot.slane %v3444_v32, 2  ;;  %v3490_v51 = vstv %s8549_s27  ;;  %v2574_v61 = vadd.f32 %v10595_v20, %v2478_v21  ;;  %v10596_v32 = vld [vmem:[#allocation40_spill] sm:$0xff]  ;;  %s8816_s27 = sld [smem:[#allocation2 + $0x32]] }
 0x26d   : > { %v2870_v37 = vadd.f32 %v2865_v40, %v2774_v36  ;;  %v3467_v40 = vmul.f32 %v7997_v0, %v3466_v28  ;;  %v2694_v6 = vrot.slane %v8552_v57, 2  ;;  %v2695_v43 = vrot.slane %v8555_v47, 2 }
 0x26e   : > { %v2411_v12 = vadd.f32 %v8357_v62, %v8462_v24  ;;  %v3476_v23 = vrot.slane %v3468_v8, 2  ;;  %v2663_v7 = vadd.f32 %v2659_v13, %v2575_v46  ;;  %v3456_v17 = vsel %vm578_vm1, %v3454_v54, %v3455_v58  ;;  %v8640_v8 = vld [vmem:[%s6182_s22 + $0x80] sm:$0xff] }
 0x26f   : > { %5888 = vst.msk [vmem:[%s8522_s10 + $0x20] sm:$0xff] %vm2896_vm2, %v2870_v37  ;;  %3433 = vrot.lane.b32.xlu1 %v3429_v63, %s6147_s23  ;;  %v3475_v4 = vrot.slane %v3467_v40, 2  ;;  %v3491_v47 = vmul.f32 %v7997_v0, %v3490_v51  ;;  %v3492_v1 = vmul.f32 %v8203_v27, %v3490_v51  ;;  %v3453_v2 = vsel %vm578_vm1, %v3451_v48, %v3452_v59 }
 0x270   : > { %3411 = vrot.lane.b32.xlu0 %v3408_v22, %s6147_s23  ;;  %v3469_v62 = vmul.f32 %v8600_v16, %v3466_v28  ;;  %v3470_v24 = vmul.f32 %v8239_v29, %v3466_v28  ;;  %v2526_v13 = vadd.f32 %v8304_v10, %v8401_v41  ;;  %v2503_v36 = vadd.f32 %v8316_v9, %v2411_v12 }
 0x271   : > { %v2817_v35 = vpop.permute.xlu1 %2816  ;;  %3435 = vrot.lane.b32.xlu2 %v3432_v60, %s6147_s23  ;;  %v2696_v18 = vsel %vm578_vm1, %v2694_v6, %v2695_v43  ;;  %v2662_v0 = vadd.f32 %v8405_v33, %v2574_v61  ;;  %v3477_v38 = vsel %vm578_vm1, %v3475_v4, %v3476_v23  ;;  %v3493_v63 = vmul.f32 %v8600_v16, %v3490_v51 }
 0x272   : > { %v2822_v50 = vadd.f32 %v2817_v35, %v2726_v25  ;;  %v2795_v53 = vpop.permute.xlu0 %2794  ;;  %v3494_v22 = vmul.f32 %v8239_v29, %v3490_v51  ;;  %v2751_v10 = vadd.f32 %v8373_v19, %v2663_v7  ;;  %v2622_v9 = vadd.f32 %v8467_v26, %v2526_v13 }
 0x273   : > { %v2799_v45 = vadd.f32 %v2795_v53, %v2703_v11  ;;  %v8594_v57 = vpop.permute.xlu2 %2949  ;;  %v3499_v41 = vrot.slane %v3491_v47, 2  ;;  %v3500_v33 = vrot.slane %v3492_v1, 2  ;;  %v3478_v44 = vrot.slane %v3469_v62, 2 }
 0x274   : > { %2897 = vst.msk [vmem:[%s8522_s10] sm:$0xff] %vm2896_vm2, %v2822_v50  ;;  %v3479_v15 = vrot.slane %v3470_v24, 2  ;;  %v3514_v37 = vstv %s8583_s28  ;;  %v2679_v19 = vsel %vm578_vm1, %v2677_v55, %v2678_v56  ;;  %v2599_v49 = vadd.f32 %v10596_v32, %v2503_v36  ;;  %s8829_s28 = sld [smem:[#allocation2 + $0x56]] }
 0x275   : > { %v2895_v39 = vadd.f32 %v2891_v30, %v2799_v45  ;;  %v2750_v30 = vadd.f32 %v8510_v52, %v2662_v0  ;;  %v3502_v21 = vrot.slane %v3493_v63, 2  ;;  %v3503_v31 = vrot.slane %v3494_v22, 2 }
 0x276   : > { %v2702_v28 = vadd.f32 %v2696_v18, %v2622_v9  ;;  %v3501_v60 = vsel %vm578_vm1, %v3499_v41, %v3500_v33  ;;  %v3517_v34 = vmul.f32 %v8600_v16, %v3514_v37  ;;  %v3518_v55 = vmul.f32 %v8239_v29, %v3514_v37 }
 0x277   : > { %5891 = vst.msk [vmem:[%s8522_s10 + $0x38] sm:$0xff] %vm2896_vm2, %v2895_v39  ;;  %3459 = vrot.lane.b32.xlu1 %v3456_v17, %s6147_s23  ;;  %v3480_v56 = vsel %vm578_vm1, %v3478_v44, %v3479_v15  ;;  %v3515_v25 = vmul.f32 %v8640_v8, %v3514_v37  ;;  %v3516_v46 = vmul.f32 %v8203_v27, %v3514_v37  ;;  %v3538_v54 = vstv %s8609_s30  ;;  %v8689_v15 = vld [vmem:[%s6182_s22 + $0x90] sm:$0xff]  ;;  %s8843_s30 = sld [smem:[#allocation2 + $0x6c]] }
 0x278   : > { %3457 = vrot.lane.b32.xlu0 %v3453_v2, %s6147_s23  ;;  %v2683_v58 = vadd.f32 %v2679_v19, %v2599_v49  ;;  %v3504_v35 = vsel %vm578_vm1, %v3502_v21, %v3503_v31  ;;  %v3539_v11 = vmul.f32 %v8640_v8, %v3538_v54  ;;  %v3540_v48 = vmul.f32 %v8203_v27, %v3538_v54 }
 0x279   : > { %v2843_v14 = vpop.permute.xlu1 %2842  ;;  %3481 = vrot.lane.b32.xlu2 %v3477_v38, %s6147_s23  ;;  %v2798_v59 = vadd.f32 %v8425_v3, %v2702_v28  ;;  %v3526_v51 = vrot.slane %v3517_v34, 2  ;;  %v3527_v20 = vrot.slane %v3518_v55, 2  ;;  %v3523_v43 = vrot.slane %v3515_v25, 2 }
 0x27a   : > { %v2847_v26 = vadd.f32 %v2843_v14, %v2751_v10  ;;  %v2841_v42 = vpop.permute.xlu0 %2840  ;;  %v2775_v61 = vadd.f32 %v8546_v5, %v2683_v58  ;;  %v3524_v50 = vrot.slane %v3516_v46, 2  ;;  %v3562_v53 = vstv %s8622_s3  ;;  %s8875_s3 = sld [smem:[#allocation2 + $0x4b]] }
 0x27b   : > { %v2846_v52 = vadd.f32 %v2841_v42, %v2750_v30  ;;  %v8632_v40 = vpop.permute.xlu2 %2965  ;;  %v3547_v23 = vrot.slane %v3539_v11, 2  ;;  %v3548_v7 = vrot.slane %v3540_v48, 2  ;;  %v3528_v3 = vsel %vm578_vm1, %v3526_v51, %v3527_v20  ;;  %v8684_v30 = vld [vmem:[%s6182_s22 + $0xd0] sm:$0xff] }
 0x27c   : > { %5887 = vst.msk [vmem:[%s8522_s10 + $0x18] sm:$0xff] %vm2896_vm2, %v2847_v26  ;;  %v3563_v5 = vmul.f32 %v8640_v8, %v3562_v53  ;;  %v3564_v47 = vmul.f32 %v8203_v27, %v3562_v53  ;;  %v3525_v1 = vsel %vm578_vm1, %v3523_v43, %v3524_v50  ;;  %v3541_v39 = vmul.f32 %v8600_v16, %v3538_v54 }
 0x27d   : > { %5886 = vst.msk [vmem:[%s8522_s10 + $0x10] sm:$0xff] %vm2896_vm2, %v2846_v52  ;;  %v3542_v2 = vmul.f32 %v8239_v29, %v3538_v54  ;;  %v3549_v62 = vsel %vm578_vm1, %v3547_v23, %v3548_v7  ;;  %v3565_v24 = vmul.f32 %v8600_v16, %v3562_v53  ;;  %v3566_v13 = vmul.f32 %v8239_v29, %v3562_v53 }
 0x27e   : > { %v3571_v36 = vrot.slane %v3563_v5, 2  ;;  %v3572_v27 = vrot.slane %v3564_v47, 2  ;;  %v3550_v0 = vrot.slane %v3541_v39, 2  ;;  %v3615_v14 = vstv %s5939_s4  ;;  %s8885_s4 = sld [smem:[#allocation2 + $0x7a]] }
 0x27f   : > { %3505 = vrot.lane.b32.xlu1 %v3501_v60, %s6148_s29  ;;  %v3551_v38 = vrot.slane %v3542_v2, 2  ;;  %v3574_v22 = vrot.slane %v3565_v24, 2  ;;  %v3575_v10 = vrot.slane %v3566_v13, 2  ;;  %v3617_v19 = vmul.f32 %v8684_v30, %v3615_v14 }
 0x280   : > { %3483 = vrot.lane.b32.xlu0 %v3480_v56, %s6147_s23  ;;  %v3573_v9 = vsel %vm578_vm1, %v3571_v36, %v3572_v27  ;;  %v3616_v26 = vmul.f32 %v8689_v15, %v3615_v14  ;;  %v3629_v32 = vstv %s5940_s5  ;;  %v3643_v52 = vstv %s5941_s6  ;;  %s8908_s5 = sld [smem:[#allocation2 + $0x10]] }
 0x281   : > { %v2889_v6 = vpop.permute.xlu1 %2888  ;;  %3507 = vrot.lane.b32.xlu2 %v3504_v35, %s6148_s29  ;;  %v3552_v41 = vsel %vm578_vm1, %v3550_v0, %v3551_v38  ;;  %v3576_v33 = vsel %vm578_vm1, %v3574_v22, %v3575_v10  ;;  %v3630_v49 = vmul.f32 %v8689_v15, %v3629_v32  ;;  %v3644_v28 = vmul.f32 %v8689_v15, %v3643_v52  ;;  %s8926_s6 = sld [smem:[#allocation2 + $0x34]] }
 0x282   : > { %v2894_v12 = vadd.f32 %v2889_v6, %v2798_v59  ;;  %v2867_v45 = vpop.permute.xlu0 %2866  ;;  %v3631_v60 = vmul.f32 %v8684_v30, %v3629_v32  ;;  %v3645_v55 = vmul.f32 %v8684_v30, %v3643_v52  ;;  %v3657_v56 = vstv %s5942_s7  ;;  %s8950_s7 = sld [smem:[#allocation2 + $0x2a]] }
 0x283   : > { %v2871_v4 = vadd.f32 %v2867_v45, %v2775_v61  ;;  %v8657_v17 = vpop.permute.xlu2 %2991  ;;  %v3659_v54 = vmul.f32 %v8684_v30, %v3657_v56  ;;  %v3658_v58 = vmul.f32 %v8689_v15, %v3657_v56  ;;  %v3671_v11 = vstv %s5943_s8  ;;  %v8742_v45 = vld [vmem:[%s6182_s22 + $0x98] sm:$0x3]  ;;  %s8985_s8 = sld [smem:[#allocation2 + $0x58]] }
 0x284   : > { %5890 = vst.msk [vmem:[%s8522_s10 + $0x30] sm:$0xff] %vm2896_vm2, %v2894_v12  ;;  %v3672_v48 = vmul.f32 %v8689_v15, %v3671_v11  ;;  %v3685_v59 = vstv %s5944_s11  ;;  %v3673_v6 = vmul.f32 %v8684_v30, %v3671_v11  ;;  %v3699_v53 = vstv %s5945_s12  ;;  %s8991_s11 = sld [smem:[#allocation2 + $0x4e]] }
 0x285   : > { %5889 = vst.msk [vmem:[%s8522_s10 + $0x28] sm:$0xff] %vm2896_vm2, %v2871_v4  ;;  %v3686_v61 = vmul.f32 %v8689_v15, %v3685_v59  ;;  %v3687_v50 = vmul.f32 %v8684_v30, %v3685_v59  ;;  %v3807_v4 = vstv %s5951_s13  ;;  %v3701_v7 = vmul.f32 %v8684_v30, %v3699_v53  ;;  %s8994_s12 = sld [smem:[#allocation2 + $0x6]] }
 0x286   : > { %v3808_v47 = vmul.f32 %v8689_v15, %v3807_v4  ;;  %v3713_v39 = vstv %s8734_s14  ;;  %v3810_v24 = vmul.f32 %v8684_v30, %v3807_v4  ;;  %v3831_v38 = vstv %s5952_s15  ;;  %s9022_s13 = sld [smem:[#allocation2 + $0x7c]] }
 0x287   : > { %3531 = vrot.lane.b32.xlu1 %v3528_v3, %s6148_s29  ;;  %v3700_v3 = vmul.f32 %v8689_v15, %v3699_v53  ;;  %v3714_v2 = vmul.f32 %v8689_v15, %v3713_v39  ;;  %v3832_v32 = vmul.f32 %v8689_v15, %v3831_v38  ;;  %v3855_v52 = vstv %s5953_s16  ;;  %s9029_s14 = sld [smem:[#allocation2 + $0x11]] }
 0x288   : > { %3529 = vrot.lane.b32.xlu0 %v3525_v1, %s6148_s29  ;;  %v3809_v1 = vmul.f32 %v8742_v45, %v3807_v4  ;;  %v3816_v36 = vrot.slane %v3808_v47, 1  ;;  %v3819_v10 = vrot.slane %v3810_v24, 1  ;;  %v3879_v59 = vstv %s5954_s17  ;;  %s9097_s15 = sld [smem:[#allocation2 + $0x35]] }
 0x289   : > { %v8671_v18 = vpop.permute.xlu1 %2937  ;;  %3553 = vrot.lane.b32.xlu2 %v3549_v62, %s6148_s29  ;;  %v8756_v62 = vld [vmem:[%s6182_s22 + $0xd8] sm:$0x3]  ;;  %v3840_v11 = vrot.slane %v3832_v32, 1  ;;  %v3881_v47 = vmul.f32 %v8742_v45, %v3879_v59  ;;  %v2918_v24 = vstv %s8773_s19  ;;  %s9103_s16 = sld [smem:[#allocation2 + $0x72]] }
 0x28a   : > { %v8673_v63 = vpop.permute.xlu0 %2935  ;;  %v3811_v13 = vmul.f32 %v8756_v62, %v3807_v4  ;;  %v3817_v27 = vrot.slane %v3809_v1, 1  ;;  %s9123_s17 = sld [smem:[#allocation2 + $0x59]] }
 0x28b   : > { %v8677_v29 = vpop.permute.xlu2 %3007  ;;  %v3889_v32 = vrot.slane %v3881_v47, 1  ;;  %v8847_v47 = vld [vmem:[%s6182_s22 + $0xc8] sm:$0x3]  ;;  %s9147_s19 = sld [smem:[#allocation2 + $0x7d]] }
 0x28f   : > { %3577 = vrot.lane.b32.xlu1 %v3573_v9, %s6148_s29  ;;  %v3820_v9 = vrot.slane %v3811_v13, 1  ;;  %v2922_v13 = vstv %s8777_s20  ;;  %s9156_s20 = sld [smem:[#allocation2 + $0x9]] }
 0x290   : > { %3555 = vrot.lane.b32.xlu0 %v3552_v41, %s6148_s29  ;;  %v3818_v41 = vsel %vm305_vm0, %v3816_v36, %v3817_v27  ;;  %v8812_v27 = vld [vmem:[%s6182_s22 + $0x88] sm:$0x3] }
 0x291   : > { %v8686_v44 = vpop.permute.xlu1 %2963  ;;  %3579 = vrot.lane.b32.xlu2 %v3576_v33, %s6148_s29  ;;  %v3715_v33 = vmul.f32 %v8684_v30, %v3713_v39  ;;  %v3858_v39 = vmul.f32 %v8684_v30, %v3855_v52 }
 0x292   : > { %v8691_v37 = vpop.permute.xlu0 %2951 }
 0x293   : > { %v8696_v42 = vpop.permute.xlu2 %3033 }
 0x297   : > { %3622 = vrot.lane.b32.xlu1 %v3617_v19, %s6147_s23  ;;  %v3834_v19 = vmul.f32 %v8684_v30, %v3831_v38 }
 0x298   : > { %3620 = vrot.lane.b32.xlu0 %v3616_v26, %s6147_s23  ;;  %v3835_v26 = vmul.f32 %v8756_v62, %v3831_v38 }
 0x299   : > { %v8701_v21 = vpop.permute.xlu1 %2979  ;;  %3634 = vrot.lane.b32.xlu2 %v3630_v49, %s6147_s23  ;;  %v3833_v49 = vmul.f32 %v8742_v45, %v3831_v38  ;;  %v3843_v56 = vrot.slane %v3834_v19, 1  ;;  %v3062_v19 = vstv %s8785_s24  ;;  %s9219_s24 = sld [smem:[#allocation2 + $0x13]] }
 0x29a   : > { %v8703_v31 = vpop.permute.xlu0 %2977 }
 0x29b   : > { %v8708_v34 = vpop.permute.xlu2 %3139 }
 0x29c   : > { %10597 = vst [vmem:[#allocation45_spill] sm:$0xff] %v8708_v34 }
 0x29f   : > { %3648 = vrot.lane.b32.xlu1 %v3644_v28, %s6147_s23  ;;  %v3821_v28 = vsel %vm305_vm0, %v3819_v10, %v3820_v9  ;;  %v2914_v10 = vstv %s8779_s21  ;;  %s9194_s21 = sld [smem:[#allocation2 + $0x2d]] }
 0x2a0   : > { %3636 = vrot.lane.b32.xlu0 %v3631_v60, %s6147_s23  ;;  %v3856_v60 = vmul.f32 %v8689_v15, %v3855_v52 }
 0x2a1   : > { %v8713_v25 = vpop.permute.xlu1 %3005  ;;  %3650 = vrot.lane.b32.xlu2 %v3645_v55, %s6147_s23  ;;  %v3857_v55 = vmul.f32 %v8742_v45, %v3855_v52 }
 0x2a2   : > { %v8715_v46 = vpop.permute.xlu0 %2993 }
 0x2a3   : > { %v8720_v35 = vpop.permute.xlu2 %3185  ;;  %v3865_v53 = vrot.slane %v3857_v55, 1  ;;  %v3903_v55 = vstv %s8790_s25  ;;  %s9225_s25 = sld [smem:[#allocation2 + $0x75]] }
 0x2a4   : > { %10598 = vst [vmem:[#allocation41_spill] sm:$0xff] %v8720_v35  ;;  %v3904_v35 = vmul.f32 %v8689_v15, %v3903_v55 }
 0x2a7   : > { %3664 = vrot.lane.b32.xlu1 %v3659_v54, %s6147_s23  ;;  %v3844_v54 = vrot.slane %v3835_v26, 1 }
 0x2a8   : > { %3662 = vrot.lane.b32.xlu0 %v3658_v58, %s6147_s23 }
 0x2a9   : > { %v8725_v51 = vpop.permute.xlu1 %3021  ;;  %3676 = vrot.lane.b32.xlu2 %v3672_v48, %s6148_s29  ;;  %v3841_v48 = vrot.slane %v3833_v49, 1  ;;  %v3845_v4 = vsel %vm305_vm0, %v3843_v56, %v3844_v54  ;;  %v2919_v49 = vmul.f32 %v8640_v8, %v2918_v24  ;;  %v8832_v56 = vmul.f32 %v8600_v16, %v2922_v13 }
 0x2aa   : > { %v8727_v20 = vpop.permute.xlu0 %3019  ;;  %v8835_v54 = vmul.f32 %v8600_v16, %v2914_v10 }
 0x2ab   : > { %10599 = vst [vmem:[#allocation44_spill] sm:$0xff] %v8727_v20  ;;  %v8732_v43 = vpop.permute.xlu2 %3211  ;;  %v3842_v1 = vsel %vm305_vm0, %v3840_v11, %v3841_v48  ;;  %v3951_v20 = vstv %s8829_s28  ;;  %s9280_s28 = sld [smem:[#allocation2 + $0xc]] }
 0x2af   : > { %3690 = vrot.lane.b32.xlu1 %v3686_v61, %s6148_s29 }
 0x2b0   : > { %3678 = vrot.lane.b32.xlu0 %v3673_v6, %s6148_s29  ;;  %v8795_v6 = vstv %s5907_s18  ;;  %s9127_s18 = sld [smem:[#allocation2 + $0x51]] }
 0x2b1   : > { %v8739_v12 = vpop.permute.xlu1 %3137  ;;  %3692 = vrot.lane.b32.xlu2 %v3687_v50, %s6148_s29  ;;  %v3864_v50 = vrot.slane %v3856_v60, 1  ;;  %v3043_v36 = vmul.f32 %v8640_v8, %v8795_v6  ;;  %v3044_v38 = vmul.f32 %v8812_v27, %v8795_v6  ;;  %v3046_v34 = vmul.f32 %v8847_v47, %v8795_v6 }
 0x2b2   : > { %v8744_v23 = vpop.permute.xlu0 %3035 }
 0x2b3   : > { %v8749_v5 = vpop.permute.xlu2 %3257  ;;  %v3866_v9 = vsel %vm305_vm0, %v3864_v50, %v3865_v53  ;;  %v3051_v11 = vrot.slane %v3043_v36, 1  ;;  %v3052_v48 = vrot.slane %v3044_v38, 1  ;;  %v8841_v50 = vmul.f32 %v8640_v8, %v2914_v10 }
 0x2b4   : > { %10600 = vst [vmem:[#allocation43_spill] sm:$0xff] %v8749_v5  ;;  %v3065_v53 = vmul.f32 %v8600_v16, %v3062_v19  ;;  %v3906_v36 = vmul.f32 %v8684_v30, %v3903_v55  ;;  %v3907_v38 = vmul.f32 %v8756_v62, %v3903_v55  ;;  %v8856_v10 = vstv %s8802_s26  ;;  %s9245_s26 = sld [smem:[#allocation2 + $0x37]] }
 0x2b6   : > { %v3074_v5 = vrot.slane %v3065_v53, 1  ;;  %v3104_v53 = vmul.f32 %v8812_v27, %v8856_v10 }
 0x2b7   : > { %3706 = vrot.lane.b32.xlu1 %v3701_v7, %s6148_s29 }
 0x2b8   : > { %3704 = vrot.lane.b32.xlu0 %v3700_v3, %s6148_s29  ;;  %v3880_v3 = vmul.f32 %v8689_v15, %v3879_v59 }
 0x2b9   : > { %v8762_v0 = vpop.permute.xlu1 %3163  ;;  %3718 = vrot.lane.b32.xlu2 %v3714_v2, %s6148_s29  ;;  %v3859_v2 = vmul.f32 %v8756_v62, %v3855_v52 }
 0x2ba   : > { %10601 = vst [vmem:[#allocation47_spill] sm:$0xff] %v8762_v0  ;;  %v8764_v22 = vpop.permute.xlu0 %3161  ;;  %v3888_v26 = vrot.slane %v3880_v3, 1  ;;  %v3953_v0 = vmul.f32 %v8742_v45, %v3951_v20 }
 0x2bb   : > { %10602 = vst [vmem:[#allocation48_spill] sm:$0xff] %v8764_v22  ;;  %v8769_v14 = vpop.permute.xlu2 %3283  ;;  %v3868_v60 = vrot.slane %v3859_v2, 1 }
 0x2bf   : > { %3822 = vrot.lane.b32.xlu1 %v3818_v41, %s6147_s23  ;;  %v3882_v41 = vmul.f32 %v8684_v30, %v3879_v59 }
 0x2c0   : > { %3720 = vrot.lane.b32.xlu0 %v3715_v33, %s6148_s29  ;;  %v3883_v33 = vmul.f32 %v8756_v62, %v3879_v59 }
 0x2c1   : > { %v8788_v58 = vpop.permute.xlu1 %3209  ;;  %3824 = vrot.lane.b32.xlu2 %v3821_v28, %s6147_s23  ;;  %v3867_v28 = vrot.slane %v3858_v39, 1  ;;  %v3890_v39 = vsel %vm305_vm0, %v3888_v26, %v3889_v32  ;;  %v8868_v26 = vsel %vm305_vm0, %v3051_v11, %v3052_v48  ;;  %v3927_v32 = vstv %s8816_s27  ;;  %s9271_s27 = sld [smem:[#allocation2 + $0x5b]] }
 0x2c2   : > { %10603 = vst [vmem:[#allocation51_spill] sm:$0xff] %v8788_v58  ;;  %v8792_v61 = vpop.permute.xlu0 %3187  ;;  %v3892_v3 = vrot.slane %v3883_v33, 1  ;;  %v8862_v33 = vmul.f32 %v8640_v8, %v2922_v13  ;;  %v3915_v11 = vrot.slane %v3906_v36, 1  ;;  %v3916_v48 = vrot.slane %v3907_v38, 1 }
 0x2c3   : > { %v8798_v7 = vpop.permute.xlu2 %3409  ;;  %v3064_v36 = vmul.f32 %v8812_v27, %v3062_v19 }
 0x2c4   : > { %10604 = vst [vmem:[#allocation50_spill] sm:$0xff] %v8798_v7  ;;  %v3917_v22 = vsel %vm305_vm0, %v3915_v11, %v3916_v48 }
 0x2c7   : > { %3848 = vrot.lane.b32.xlu1 %v3845_v4, %s6147_s23  ;;  %v3891_v4 = vrot.slane %v3882_v41, 1  ;;  %v3905_v41 = vmul.f32 %v8742_v45, %v3903_v55  ;;  %v3929_v55 = vmul.f32 %v8742_v45, %v3927_v32 }
 0x2c8   : > { %3846 = vrot.lane.b32.xlu0 %v3842_v1, %s6147_s23  ;;  %v3066_v1 = vmul.f32 %v8847_v47, %v3062_v19 }
 0x2c9   : > { %v8826_v52 = vpop.permute.xlu1 %3235  ;;  %3870 = vrot.lane.b32.xlu2 %v3866_v9, %s6147_s23  ;;  %v3869_v9 = vsel %vm305_vm0, %v3867_v28, %v3868_v60  ;;  %v3893_v28 = vsel %vm305_vm0, %v3891_v4, %v3892_v3  ;;  %v3928_v60 = vmul.f32 %v8689_v15, %v3927_v32  ;;  %v3912_v4 = vrot.slane %v3904_v35, 1 }
 0x2ca   : > { %10605 = vst [vmem:[#allocation46_spill] sm:$0xff] %v8826_v52  ;;  %v8837_v59 = vpop.permute.xlu0 %3233  ;;  %v8865_v52 = vmul.f32 %v8600_v16, %v2918_v24  ;;  %v3075_v13 = vrot.slane %v3066_v1, 1  ;;  %v3103_v24 = vmul.f32 %v8640_v8, %v8856_v10  ;;  %v3913_v3 = vrot.slane %v3905_v41, 1 }
 0x2cb   : > { %v8851_v2 = vpop.permute.xlu2 %3435  ;;  %v3045_v1 = vmul.f32 %v8600_v16, %v8795_v6  ;;  %v8897_v35 = vadd.f32 %v8594_v57, %v2919_v49  ;;  %v2926_v41 = vstv %s8843_s30  ;;  %v3952_v6 = vmul.f32 %v8689_v15, %v3951_v20  ;;  %s9308_s30 = sld [smem:[#allocation2 + $0x54]] }
 0x2cc   : > { %10606 = vst [vmem:[#allocation49_spill] sm:$0xff] %v8851_v2  ;;  %v3937_v2 = vrot.slane %v3929_v55, 1  ;;  %v3111_v58 = vrot.slane %v3103_v24, 1  ;;  %v3931_v57 = vmul.f32 %v8756_v62, %v3927_v32  ;;  %v3072_v24 = vrot.slane %v3064_v36, 1 }
 0x2cd   : > { %v3054_v49 = vrot.slane %v3045_v1, 1  ;;  %v8911_v11 = vsel %vm305_vm0, %v3074_v5, %v3075_v13  ;;  %v3961_v1 = vrot.slane %v3953_v0, 1  ;;  %v3975_v36 = vstv %s8885_s4  ;;  %s9334_s4 = sld [smem:[#allocation2 + $0x14]] }
 0x2cf   : > { %3894 = vrot.lane.b32.xlu1 %v3890_v39, %s6147_s23 }
 0x2d0   : > { %3872 = vrot.lane.b32.xlu0 %v3869_v9, %s6147_s23  ;;  %v3063_v9 = vmul.f32 %v8640_v8, %v3062_v19  ;;  %v3112_v19 = vrot.slane %v3104_v53, 1  ;;  %v3954_v53 = vmul.f32 %v8684_v30, %v3951_v20 }
 0x2d1   : > { %v8882_v39 = vpop.permute.xlu1 %3281  ;;  %3896 = vrot.lane.b32.xlu2 %v3893_v28, %s6147_s23  ;;  %v3930_v28 = vmul.f32 %v8684_v30, %v3927_v32  ;;  %v8918_v32 = vmul.f32 %v8600_v16, %v2926_v41 }
 0x2d2   : > { %10607 = vst [vmem:[#allocation53_spill] sm:$0xff] %v8882_v39  ;;  %v8893_v38 = vpop.permute.xlu0 %3259  ;;  %v3936_v39 = vrot.slane %v3928_v60, 1  ;;  %v3055_v60 = vrot.slane %v3046_v34, 1  ;;  %v3071_v55 = vrot.slane %v3063_v9, 1  ;;  %v3082_v34 = vstv %s8875_s3  ;;  %s9316_s3 = sld [smem:[#allocation2 + $0x7f]] }
 0x2d3   : > { %10608 = vst [vmem:[#allocation54_spill] sm:$0xff] %v8893_v38  ;;  %v8901_v7 = vpop.permute.xlu2 %3481  ;;  %v3914_v38 = vsel %vm305_vm0, %v3912_v4, %v3913_v3  ;;  %v3955_v4 = vmul.f32 %v8756_v62, %v3951_v20  ;;  %v3960_v3 = vrot.slane %v3952_v6, 1  ;;  %v2927_v9 = vmul.f32 %v8640_v8, %v2926_v41 }
 0x2d4   : > { %10609 = vst [vmem:[#allocation57_spill] sm:$0xff] %v8901_v7  ;;  %v3938_v48 = vsel %vm305_vm0, %v3936_v39, %v3937_v2  ;;  %v3939_v13 = vrot.slane %v3930_v28, 1  ;;  %v8930_v20 = vadd.f32 %v8632_v40, %v8832_v56  ;;  %v8933_v2 = vsel %vm305_vm0, %v3054_v49, %v3055_v60 }
 0x2d5   : > { %v8936_v39 = vsel %vm305_vm0, %v3071_v55, %v3072_v24  ;;  %v8939_v0 = vsel %vm305_vm0, %v3111_v58, %v3112_v19  ;;  %v8945_v41 = vmul.f32 %v8640_v8, %v3082_v34  ;;  %v8948_v6 = vmul.f32 %v8812_v27, %v3082_v34 }
 0x2d6   : > { %v3963_v40 = vrot.slane %v3954_v53, 1  ;;  %v3964_v56 = vrot.slane %v3955_v4, 1  ;;  %v3085_v28 = vmul.f32 %v8600_v16, %v3082_v34  ;;  %v3962_v58 = vsel %vm305_vm0, %v3960_v3, %v3961_v1 }
 0x2d7   : > { %3920 = vrot.lane.b32.xlu1 %v3917_v22, %s6148_s29  ;;  %v3940_v22 = vrot.slane %v3931_v57, 1  ;;  %10610 = vst [vmem:[#allocation55_spill] sm:$0xff] %v8945_v41  ;;  %v3978_v57 = vmul.f32 %v8684_v30, %v3975_v36  ;;  %v3979_v49 = vmul.f32 %v8756_v62, %v3975_v36  ;;  %v3086_v60 = vmul.f32 %v8847_v47, %v3082_v34 }
 0x2d8   : > { %3918 = vrot.lane.b32.xlu0 %v3914_v38, %s6148_s29  ;;  %10611 = vst [vmem:[#allocation52_spill] sm:$0xff] %v8948_v6  ;;  %v3976_v24 = vmul.f32 %v8689_v15, %v3975_v36  ;;  %v8964_v53 = vadd.f32 %v8671_v18, %v8835_v54  ;;  %v2941_v4 = vadd.f32 %v8673_v63, %v8841_v50  ;;  %v4079_v1 = vstv %s8908_s5  ;;  %s9342_s5 = sld [smem:[#allocation2 + $0x30]] }
 0x2d9   : > { %v8923_v5 = vpop.permute.xlu1 %3307  ;;  %3942 = vrot.lane.b32.xlu2 %v3938_v48, %s6148_s29  ;;  %v3941_v55 = vsel %vm305_vm0, %v3939_v13, %v3940_v22  ;;  %v3977_v48 = vmul.f32 %v8742_v45, %v3975_v36  ;;  %v3105_v3 = vmul.f32 %v8600_v16, %v8856_v10  ;;  %v3965_v13 = vsel %vm305_vm0, %v3963_v40, %v3964_v56 }
 0x2da   : > { %v8941_v38 = vpop.permute.xlu0 %3305  ;;  %v4080_v22 = vmul.f32 %v8689_v15, %v4079_v1  ;;  %v4081_v36 = vmul.f32 %v8742_v45, %v4079_v1  ;;  %v3106_v63 = vmul.f32 %v8847_v47, %v8856_v10  ;;  %v3987_v54 = vrot.slane %v3978_v57, 1 }
 0x2db   : > { %v8954_v19 = vpop.permute.xlu2 %3507  ;;  %v3988_v50 = vrot.slane %v3979_v49, 1  ;;  %v2956_v34 = vadd.f32 %v8691_v37, %v8865_v52  ;;  %v3984_v40 = vrot.slane %v3976_v24, 1  ;;  %v3985_v56 = vrot.slane %v3977_v48, 1 }
 0x2dc   : > { %10612 = vst [vmem:[#allocation56_spill] sm:$0xff] %v8954_v19  ;;  %v4103_v19 = vstv %s8926_s6  ;;  %v2997_v18 = vadd.f32 %v8657_v17, %v2941_v4  ;;  %v3114_v7 = vrot.slane %v3105_v3, 1  ;;  %v3094_v41 = vrot.slane %v3085_v28, 1  ;;  %s9347_s6 = sld [smem:[#allocation2 + $0x38]] }
 0x2dd   : > { %v3095_v10 = vrot.slane %v3086_v60, 1  ;;  %v2983_v37 = vadd.f32 %v8703_v31, %v2927_v9  ;;  %v8997_v52 = vstv %s8950_s7  ;;  %v4088_v57 = vrot.slane %v4080_v22, 2  ;;  %s9350_s7 = sld [smem:[#allocation2 + $0x78]] }
 0x2de   : > { %v4089_v49 = vrot.slane %v4081_v36, 2  ;;  %v3989_v17 = vsel %vm305_vm0, %v3987_v54, %v3988_v50  ;;  %v4104_v28 = vmul.f32 %v8689_v15, %v4103_v19  ;;  %v4105_v60 = vmul.f32 %v8742_v45, %v4103_v19 }
 0x2df   : > { %3966 = vrot.lane.b32.xlu1 %v3962_v58, %s6148_s29  ;;  %v3012_v48 = vadd.f32 %v8677_v29, %v2956_v34  ;;  %v3986_v4 = vsel %vm305_vm0, %v3984_v40, %v3985_v56  ;;  %v4082_v31 = vmul.f32 %v8684_v30, %v4079_v1  ;;  %v4083_v9 = vmul.f32 %v8756_v62, %v4079_v1 }
 0x2e0   : > { %3944 = vrot.lane.b32.xlu0 %v3941_v55, %s6148_s29  ;;  %v3115_v55 = vrot.slane %v3106_v63, 1  ;;  %v9009_v3 = vadd.f32 %v8868_v26, %v2997_v18  ;;  %v9016_v22 = vmul.f32 %v8640_v8, %v8997_v52  ;;  %v9020_v36 = vmul.f32 %v8812_v27, %v8997_v52 }
 0x2e1   : > { %v8982_v58 = vpop.permute.xlu1 %3433  ;;  %3968 = vrot.lane.b32.xlu2 %v3965_v13, %s6148_s29  ;;  %v9012_v13 = vsel %vm305_vm0, %v3094_v41, %v3095_v10  ;;  %v3039_v29 = vadd.f32 %v8696_v42, %v2983_v37  ;;  %v4090_v26 = vsel %vm578_vm1, %v4088_v57, %v4089_v49  ;;  %v4106_v41 = vmul.f32 %v8684_v30, %v4103_v19 }
 0x2e2   : > { %v8988_v6 = vpop.permute.xlu0 %3411  ;;  %v4107_v1 = vmul.f32 %v8756_v62, %v4103_v19  ;;  %v9033_v34 = vadd.f32 %v8686_v44, %v8862_v33  ;;  %v9036_v18 = vsel %vm305_vm0, %v3114_v7, %v3115_v55  ;;  %v4112_v42 = vrot.slane %v4104_v28, 2 }
 0x2e3   : > { %v9000_v24 = vpop.permute.xlu2 %3553  ;;  %v4113_v63 = vrot.slane %v4105_v60, 2  ;;  %v9040_v54 = vadd.f32 %v8911_v11, %v3012_v48  ;;  %v4091_v19 = vrot.slane %v4082_v31, 2  ;;  %v4092_v40 = vrot.slane %v4083_v9, 2 }
 0x2e4   : > { %10613 = vst [vmem:[#allocation60_spill] sm:$0xff] %v9000_v24  ;;  %v4127_v56 = vstv %s8985_s8  ;;  %v2984_v44 = vadd.f32 %v8701_v21, %v8918_v32  ;;  %v9050_v10 = vstv %s8991_s11  ;;  %v9056_v11 = vadd.f32 %v8939_v0, %v3039_v29  ;;  %s9378_s8 = sld [smem:[#allocation2 + $0x5c]] }
 0x2e5   : > { %v9059_v57 = vstv %s8994_s12  ;;  %v4115_v49 = vrot.slane %v4106_v41, 2  ;;  %v4116_v55 = vrot.slane %v4107_v1, 2  ;;  %v3011_v21 = vadd.f32 %v8713_v25, %v8897_v35  ;;  %s9383_s11 = sld [smem:[#allocation2 + $0x16]] }
 0x2e6   : > { %v4114_v32 = vsel %vm578_vm1, %v4112_v42, %v4113_v63  ;;  %v4130_v28 = vmul.f32 %v8684_v30, %v4127_v56  ;;  %v4131_v60 = vmul.f32 %v8756_v62, %v4127_v56  ;;  %v3357_v0 = vmul.f32 %v8600_v16, %v9050_v10  ;;  %s9401_s12 = sld [smem:[#allocation2 + $0x80]] }
 0x2e7   : > { %3992 = vrot.lane.b32.xlu1 %v3989_v17, %s6148_s29  ;;  %v4093_v48 = vsel %vm578_vm1, %v4091_v19, %v4092_v40  ;;  %v4129_v31 = vmul.f32 %v8742_v45, %v4127_v56  ;;  %v2998_v25 = vadd.f32 %v8715_v46, %v8964_v53  ;;  %v9077_v35 = vmul.f32 %v8640_v8, %v9059_v57 }
 0x2e8   : > { %3990 = vrot.lane.b32.xlu0 %v3986_v4, %s6148_s29  ;;  %v4128_v4 = vmul.f32 %v8689_v15, %v4127_v56  ;;  %v3358_v9 = vmul.f32 %v8847_v47, %v9050_v10  ;;  %v4151_v29 = vstv %s9022_s13  ;;  %v4175_v41 = vstv %s9029_s14  ;;  %s9415_s13 = sld [smem:[#allocation2 + $0x3a]] }
 0x2e9   : > { %v9042_v50 = vpop.permute.xlu1 %3459  ;;  %4094 = vrot.lane.b32.xlu2 %v4090_v26, %s6147_s23  ;;  %v4117_v26 = vsel %vm578_vm1, %v4115_v49, %v4116_v55  ;;  %v4152_v1 = vmul.f32 %v8689_v15, %v4151_v29  ;;  %v4153_v42 = vmul.f32 %v8742_v45, %v4151_v29  ;;  %v3026_v46 = vadd.f32 %v8725_v51, %v8930_v20  ;;  %s9439_s14 = sld [smem:[#allocation2 + $0x5e]] }
 0x2ea   : > { %v9052_v37 = vpop.permute.xlu0 %3457  ;;  %v3316_v53 = vmul.f32 %v8812_v27, %v9059_v57  ;;  %v4139_v63 = vrot.slane %v4130_v28, 2  ;;  %v4140_v19 = vrot.slane %v4131_v60, 2  ;;  %v9093_v40 = vadd.f32 %v8936_v39, %v3011_v21 }
 0x2eb   : > { %10614 = vst [vmem:[#allocation63_spill] sm:$0xff] %v9052_v37  ;;  %v9064_v17 = vpop.permute.xlu2 %3579  ;;  %v3366_v56 = vrot.slane %v3357_v0, 2  ;;  %v4136_v55 = vrot.slane %v4128_v4, 2  ;;  %v3337_v51 = vmul.f32 %v8600_v16, %v8997_v52  ;;  %v3338_v20 = vmul.f32 %v8847_v47, %v8997_v52 }
 0x2ec   : > { %v3367_v28 = vrot.slane %v3358_v9, 2  ;;  %v4176_v39 = vmul.f32 %v8689_v15, %v4175_v41  ;;  %v9110_v21 = vadd.f32 %v8933_v2, %v2998_v25  ;;  %v4177_v0 = vmul.f32 %v8742_v45, %v4175_v41 }
 0x2ed   : > { %v4161_v4 = vrot.slane %v4153_v42, 2  ;;  %v3323_v52 = vrot.slane %v9077_v35, 2  ;;  %v3324_v33 = vrot.slane %v3316_v53, 2  ;;  %v4141_v9 = vsel %vm578_vm1, %v4139_v63, %v4140_v19 }
 0x2ee   : > { %v4154_v2 = vmul.f32 %v8684_v30, %v4151_v29  ;;  %v4155_v25 = vmul.f32 %v8756_v62, %v4151_v29  ;;  %v3346_v42 = vrot.slane %v3337_v51, 2  ;;  %v3347_v37 = vrot.slane %v3338_v20, 2 }
 0x2ef   : > { %4118 = vrot.lane.b32.xlu1 %v4114_v32, %s6147_s23  ;;  %v4137_v32 = vrot.slane %v4129_v31, 2  ;;  %v3100_v31 = vadd.f32 %v9012_v13, %v3026_v46  ;;  %v4184_v13 = vrot.slane %v4176_v39, 2  ;;  %v4185_v35 = vrot.slane %v4177_v0, 2 }
 0x2f0   : > { %4096 = vrot.lane.b32.xlu0 %v4093_v48, %s6147_s23  ;;  %v4160_v48 = vrot.slane %v4152_v1, 2  ;;  %v9135_v29 = vmul.f32 %v8600_v16, %v9059_v57  ;;  %v9139_v53 = vmul.f32 %v8847_v47, %v9059_v57  ;;  %v3368_v63 = vsel %vm578_vm1, %v3366_v56, %v3367_v28 }
 0x2f1   : > { %v9095_v49 = vpop.permute.xlu1 %3505  ;;  %4120 = vrot.lane.b32.xlu2 %v4117_v26, %s6147_s23  ;;  %v3040_v26 = vadd.f32 %v8744_v23, %v2984_v44  ;;  %v4138_v24 = vsel %vm578_vm1, %v4136_v55, %v4137_v32  ;;  %v3192_v1 = vadd.f32 %v8792_v61, %v3100_v31  ;;  %v4178_v23 = vmul.f32 %v8684_v30, %v4175_v41 }
 0x2f2   : > { %v9105_v60 = vpop.permute.xlu0 %3483  ;;  %v4162_v46 = vsel %vm578_vm1, %v4160_v48, %v4161_v4  ;;  %v4179_v44 = vmul.f32 %v8756_v62, %v4175_v41  ;;  %v3143_v61 = vadd.f32 %v8739_v12, %v9009_v3  ;;  %v4163_v41 = vrot.slane %v4154_v2, 2 }
 0x2f3   : > { %v9116_v7 = vpop.permute.xlu2 %3634  ;;  %v3120_v19 = vadd.f32 %v9036_v18, %v3040_v26  ;;  %v4164_v32 = vrot.slane %v4155_v25, 2  ;;  %v4199_v51 = vstv %s9097_s15  ;;  %v3288_v12 = vadd.f32 %v8769_v14, %v3192_v1  ;;  %s9446_s15 = sld [smem:[#allocation2 + $0xf]] }
 0x2f4   : > { %v3239_v3 = vadd.f32 %v8837_v59, %v3143_v61  ;;  %v3325_v57 = vsel %vm578_vm1, %v3323_v52, %v3324_v33  ;;  %v3374_v20 = vstv %s9103_s16  ;;  %v4186_v18 = vsel %vm578_vm1, %v4184_v13, %v4185_v35  ;;  %s9452_s16 = sld [smem:[#allocation2 + $0x82]] }
 0x2f5   : > { %v4187_v56 = vrot.slane %v4178_v23, 2  ;;  %v4188_v28 = vrot.slane %v4179_v44, 2  ;;  %v4202_v59 = vmul.f32 %v8684_v30, %v4199_v51  ;;  %v4203_v33 = vmul.f32 %v8756_v62, %v4199_v51 }
 0x2f6   : > { %v4200_v0 = vmul.f32 %v8689_v15, %v4199_v51  ;;  %v4201_v48 = vmul.f32 %v8742_v45, %v4199_v51  ;;  %v9165_v4 = vadd.f32 %v8732_v43, %v3120_v19  ;;  %v9171_v31 = vmul.f32 %v8812_v27, %v3374_v20 }
 0x2f7   : > { %4144 = vrot.lane.b32.xlu1 %v4141_v9, %s6147_s23  ;;  %v4165_v52 = vsel %vm578_vm1, %v4163_v41, %v4164_v32  ;;  %v10615_v9 = vld [vmem:[#allocation47_spill] sm:$0xff]  ;;  %v3331_v2 = vadd.f32 %v3325_v57, %v3239_v3  ;;  %v3372_v25 = vadd.f32 %v3368_v63, %v3288_v12  ;;  %v4223_v1 = vstv %s9123_s17  ;;  %v10616_v32 = vld [vmem:[#allocation50_spill] sm:$0xff]  ;;  %s9477_s17 = sld [smem:[#allocation2 + $0x33]] }
 0x2f8   : > { %4142 = vrot.lane.b32.xlu0 %v4138_v24, %s6147_s23  ;;  %v3348_v24 = vsel %vm578_vm1, %v3346_v42, %v3347_v37  ;;  %v9168_v37 = vmul.f32 %v8640_v8, %v3374_v20  ;;  %v3168_v26 = vadd.f32 %v10615_v9, %v9040_v54  ;;  %v3603_v43 = vstv %s9127_s18  ;;  %v10617_v12 = vld [vmem:[#allocation54_spill] sm:$0xff]  ;;  %s9481_s18 = sld [smem:[#allocation2 + $0x17]] }
 0x2f9   : > { %v9144_v55 = vpop.permute.xlu1 %3531  ;;  %4166 = vrot.lane.b32.xlu2 %v4162_v46, %s6147_s23  ;;  %v4189_v42 = vsel %vm578_vm1, %v4187_v56, %v4188_v28  ;;  %v4224_v8 = vmul.f32 %v8689_v15, %v4223_v1  ;;  %v4225_v13 = vmul.f32 %v8742_v45, %v4223_v1  ;;  %v4211_v35 = vrot.slane %v4202_v59, 2 }
 0x2fa   : > { %v9153_v39 = vpop.permute.xlu0 %3529  ;;  %v4212_v46 = vrot.slane %v4203_v33, 2  ;;  %v4208_v54 = vrot.slane %v4200_v0, 2  ;;  %v4209_v23 = vrot.slane %v4201_v48, 2  ;;  %v3464_v44 = vadd.f32 %v9042_v50, %v3372_v25 }
 0x2fb   : > { %v3651_v14 = vpop.permute.xlu2 %3650  ;;  %v3377_v61 = vmul.f32 %v8600_v16, %v3374_v20  ;;  %v3605_v19 = vmul.f32 %v8684_v30, %v3603_v43  ;;  %v4247_v41 = vstv %s9147_s19  ;;  %v3415_v51 = vadd.f32 %v10616_v32, %v3331_v2  ;;  %v10620_v32 = vld [vmem:[#allocation49_spill] sm:$0xff]  ;;  %s9498_s19 = sld [smem:[#allocation2 + $0x7b]] }
 0x2fc   : > { %v3264_v3 = vadd.f32 %v10617_v12, %v3168_v26  ;;  %v3378_v57 = vmul.f32 %v8847_v47, %v3374_v20  ;;  %v3591_v50 = vstv %s9156_s20  ;;  %v4232_v28 = vrot.slane %v4224_v8, 2  ;;  %s9500_s20 = sld [smem:[#allocation2 + $0x3b]] }
 0x2fd   : > { %v3592_v16 = vmul.f32 %v8689_v15, %v3591_v50  ;;  %v4233_v59 = vrot.slane %v4225_v13, 2  ;;  %v4213_v33 = vsel %vm578_vm1, %v4211_v35, %v4212_v46  ;;  %v4210_v0 = vsel %vm578_vm1, %v4208_v54, %v4209_v23  ;;  %v10618_v46 = vld [vmem:[#allocation48_spill] sm:$0xff] }
 0x2fe   : > { %v4249_v47 = vmul.f32 %v8742_v45, %v4247_v41  ;;  %v3511_v20 = vadd.f32 %v9095_v49, %v3415_v51  ;;  %v4226_v26 = vmul.f32 %v8684_v30, %v4223_v1  ;;  %v4227_v2 = vmul.f32 %v8756_v62, %v4223_v1 }
 0x2ff   : > { %4190 = vrot.lane.b32.xlu1 %v4186_v18, %s6148_s29  ;;  %v3352_v25 = vadd.f32 %v3348_v24, %v3264_v3  ;;  %v3386_v8 = vrot.slane %v3377_v61, 2  ;;  %v3387_v13 = vrot.slane %v3378_v57, 2  ;;  %v4250_v45 = vmul.f32 %v8684_v30, %v4247_v41 }
 0x300   : > { %4168 = vrot.lane.b32.xlu0 %v4165_v52, %s6147_s23  ;;  %v4248_v52 = vmul.f32 %v8689_v15, %v4247_v41  ;;  %v4234_v15 = vsel %vm578_vm1, %v4232_v28, %v4233_v59  ;;  %v4251_v49 = vmul.f32 %v8756_v62, %v4247_v41  ;;  %v3167_v54 = vadd.f32 %v10618_v46, %v9093_v40 }
 0x301   : > { %v9185_v63 = vpop.permute.xlu1 %3577  ;;  %4192 = vrot.lane.b32.xlu2 %v4189_v42, %s6148_s29  ;;  %v3383_v42 = vrot.slane %v9168_v37, 2  ;;  %v3384_v24 = vrot.slane %v9171_v31, 2  ;;  %v4257_v1 = vrot.slane %v4249_v47, 2  ;;  %v3594_v61 = vadd.f32 %v3592_v16, %v3511_v20 }
 0x302   : > { %v3556_v18 = vpop.permute.xlu0 %3555  ;;  %v4256_v37 = vrot.slane %v4248_v52, 2  ;;  %v4236_v41 = vrot.slane %v4227_v2, 2  ;;  %v3440_v40 = vadd.f32 %v10620_v32, %v3352_v25  ;;  %v3312_v31 = vadd.f32 %v8923_v5, %v9165_v4  ;;  %v10631_v32 = vld [vmem:[#allocation57_spill] sm:$0xff] }
 0x303   : > { %v3560_v56 = vadd.f32 %v3556_v18, %v3464_v44  ;;  %v3677_v48 = vpop.permute.xlu2 %3676  ;;  %v3388_v51 = vsel %vm578_vm1, %v3386_v8, %v3387_v13  ;;  %v3597_v12 = vstv %s9194_s21  ;;  %v4259_v18 = vrot.slane %v4250_v45, 2  ;;  %v10628_v13 = vld [vmem:[#allocation46_spill] sm:$0xff]  ;;  %s9509_s21 = sld [smem:[#allocation2 + $0x5f]] }
 0x304   : > { %v3385_v16 = vsel %vm578_vm1, %v3383_v42, %v3384_v24  ;;  %v3326_v28 = vrot.slane %v9135_v29, 2  ;;  %v3327_v59 = vrot.slane %v9139_v53, 2  ;;  %v4258_v5 = vsel %vm578_vm1, %v4256_v37, %v4257_v1  ;;  %v10621_v29 = vld [vmem:[#allocation45_spill] sm:$0xff]  ;;  %v10622_v53 = vld [vmem:[#allocation44_spill] sm:$0xff]  ;;  %v10627_v42 = vld [vmem:[#allocation43_spill] sm:$0xff] }
 0x305   : > { %v3607_v9 = vadd.f32 %v3605_v19, %v3560_v56  ;;  %v4235_v19 = vrot.slane %v4226_v26, 2  ;;  %v4260_v56 = vrot.slane %v4251_v49, 2  ;;  %v3144_v47 = vadd.f32 %v10621_v29, %v9110_v21  ;;  %v10623_v26 = vld [vmem:[#allocation52_spill] sm:$0xff]  ;;  %v9268_v24 = vld [vmem:[%s6182_s22 + $0xe0] sm:$0xff] }
 0x306   : > { %v3025_v20 = vadd.f32 %v10622_v53, %v9033_v34  ;;  %v3263_v8 = vadd.f32 %v10627_v42, %v3167_v54  ;;  %v10629_v34 = vrot.slane %v9020_v36, 2  ;;  %v10630_v45 = vrot.slane %v9016_v22, 2 }
 0x307   : > { %v9209_v35 = vadd.f32 %v3651_v14, %v3607_v9  ;;  %4216 = vrot.lane.b32.xlu1 %v4213_v33, %s6148_s29  ;;  %v10619_v14 = vld [vmem:[#allocation51_spill] sm:$0xff]  ;;  %v3536_v33 = vadd.f32 %v9144_v55, %v3440_v40  ;;  %v4237_v52 = vsel %vm578_vm1, %v4235_v19, %v4236_v41  ;;  %v3392_v9 = vadd.f32 %v3388_v51, %v3312_v31 }
 0x308   : > { %4214 = vrot.lane.b32.xlu0 %v4210_v0, %s6148_s29  ;;  %v3215_v23 = vadd.f32 %v10619_v14, %v9056_v11  ;;  %v10624_v55 = vrot.slane %v10623_v26, 1  ;;  %v4261_v21 = vsel %vm578_vm1, %v4259_v18, %v4260_v56  ;;  %v3345_v49 = vsel %vm578_vm1, %v10630_v45, %v10629_v34  ;;  %v9292_v56 = vld [vmem:[%s6182_s22 + $0xd0] sm:$0xff]  ;;  %v10633_v26 = vld [vmem:[#allocation53_spill] sm:$0xff] }
 0x309   : > { %v9223_v44 = vpop.permute.xlu1 %3622  ;;  %4238 = vrot.lane.b32.xlu2 %v4234_v15, %s6148_s29  ;;  %v3240_v15 = vadd.f32 %v10628_v13, %v3144_v47  ;;  %v3488_v46 = vadd.f32 %v9105_v60, %v3392_v9  ;;  %v4300_v54 = vstv %s9219_s24  ;;  %v3328_v37 = vsel %vm578_vm1, %v3326_v28, %v3327_v59  ;;  %v6106_v60 = vld [vmem:[%s6182_s22 + $0x80] sm:$0xff]  ;;  %v9299_v59 = vld [vmem:[%s6182_s22 + $0x90] sm:$0xff]  ;;  %s9526_s24 = sld [smem:[#allocation2 + $0x57]] }
 0x30a   : > { %v3621_v3 = vpop.permute.xlu0 %3620  ;;  %v3311_v11 = vadd.f32 %v8941_v38, %v3215_v23  ;;  %v3599_v38 = vmul.f32 %v8684_v30, %v3597_v12  ;;  %v9277_v23 = vld [vmem:[%s6182_s22 + $0xa0] sm:$0xff]  ;;  %v3609_v22 = vstv %s9225_s25  ;;  %v3356_v19 = vmul.f32 %v8812_v27, %v9050_v10  ;;  %s9544_s25 = sld [smem:[#allocation2 + $0x83]] }
 0x30b   : > { %v3626_v57 = vadd.f32 %v3621_v3, %v3594_v61  ;;  %v3693_v4 = vpop.permute.xlu2 %3692  ;;  %v3355_v61 = vmul.f32 %v6106_v60, %v9050_v10  ;;  %v3351_v31 = vadd.f32 %v3345_v49, %v3263_v8  ;;  %v4302_v3 = vmul.f32 %v9268_v24, %v4300_v54  ;;  %v10632_v47 = vld [vmem:[#allocation41_spill] sm:$0xff] }
 0x30c   : > { %v3391_v30 = vadd.f32 %v3385_v16, %v3311_v11  ;;  %v3601_v14 = vadd.f32 %v3599_v38, %v3536_v33  ;;  %v3332_v11 = vadd.f32 %v3328_v37, %v3240_v15  ;;  %v4301_v18 = vmul.f32 %v9277_v23, %v4300_v54 }
 0x30d   : > { %v9239_v0 = vadd.f32 %v3677_v48, %v3626_v57  ;;  %v10625_v48 = vld [vmem:[#allocation55_spill] sm:$0xff]  ;;  %v3584_v57 = vadd.f32 %v9064_v17, %v3488_v46  ;;  %v3611_v16 = vmul.f32 %v9292_v56, %v3609_v22  ;;  %v4314_v33 = vstv %s9245_s26  ;;  %s9567_s26 = sld [smem:[#allocation2 + $0x19]] }
 0x30e   : > { %v10626_v2 = vrot.slane %v10625_v48, 1  ;;  %v3487_v40 = vadd.f32 %v10631_v32, %v3391_v30  ;;  %v3439_v17 = vadd.f32 %v8982_v58, %v3351_v31  ;;  %v3364_v38 = vrot.slane %v3356_v19, 2  ;;  %v10634_v30 = vld [vmem:[#allocation56_spill] sm:$0xff] }
 0x30f   : > { %4262 = vrot.lane.b32.xlu1 %v4258_v5, %s6148_s29  ;;  %v3610_v5 = vmul.f32 %v9299_v59, %v3609_v22  ;;  %v4315_v29 = vmul.f32 %v9277_v23, %v4314_v33  ;;  %v3613_v58 = vadd.f32 %v3611_v16, %v3584_v57  ;;  %v4328_v9 = vstv %s9271_s27  ;;  %s9579_s27 = sld [smem:[#allocation2 + $0x3d]] }
 0x310   : > { %v3093_v25 = vsel %vm305_vm0, %v10626_v2, %v10624_v55  ;;  %4240 = vrot.lane.b32.xlu0 %v4237_v52, %s6148_s29  ;;  %v3583_v10 = vadd.f32 %v9185_v63, %v3487_v40  ;;  %v3363_v52 = vrot.slane %v3355_v61, 2  ;;  %v3535_v63 = vadd.f32 %v9153_v39, %v3439_v17 }
 0x311   : > { %v9274_v1 = vpop.permute.xlu1 %3648  ;;  %v3099_v36 = vadd.f32 %v3093_v25, %v3025_v20  ;;  %4264 = vrot.lane.b32.xlu2 %v4261_v21, %s6148_s29  ;;  %v3416_v20 = vadd.f32 %v8988_v6, %v3332_v11  ;;  %v3727_v2 = vstv %s9280_s28  ;;  %v3593_v13 = vmul.f32 %v9292_v56, %v3591_v50  ;;  %v9359_v11 = vld [vmem:[%s6182_s22 + $0x98] sm:$0x3]  ;;  %s9608_s28 = sld [smem:[#allocation2 + $0x61]] }
 0x312   : > { %v3637_v41 = vpop.permute.xlu0 %3636  ;;  %v3612_v6 = vadd.f32 %v3610_v5, %v3583_v10  ;;  %v3365_v25 = vsel %vm578_vm1, %v3363_v52, %v3364_v38  ;;  %v3731_v8 = vmul.f32 %v8756_v62, %v3727_v2  ;;  %v4329_v34 = vmul.f32 %v9277_v23, %v4328_v9 }
 0x313   : > { %v3641_v51 = vadd.f32 %v3637_v41, %v3601_v14  ;;  %v3719_v27 = vpop.permute.xlu2 %3718  ;;  %v3191_v53 = vadd.f32 %v10632_v47, %v3099_v36  ;;  %v3512_v21 = vadd.f32 %v10634_v30, %v3416_v20  ;;  %v4316_v49 = vmul.f32 %v9268_v24, %v4314_v33  ;;  %v10635_v36 = vld [vmem:[#allocation63_spill] sm:$0xff] }
 0x314   : > { %v3740_v14 = vrot.slane %v3731_v8, 1  ;;  %v4330_v22 = vmul.f32 %v9268_v24, %v4328_v9  ;;  %v9340_v61 = vstv %s9308_s30  ;;  %v4342_v41 = vstv %s9316_s3  ;;  %v9392_v8 = vld [vmem:[%s6182_s22 + $0xd8] sm:$0x3]  ;;  %s9627_s30 = sld [smem:[#allocation2 + $0x85]] }
 0x315   : > { %v9296_v28 = vadd.f32 %v3693_v4, %v3641_v51  ;;  %v3598_v4 = vmul.f32 %v9299_v59, %v3597_v12  ;;  %v3287_v55 = vadd.f32 %v10633_v26, %v3191_v53  ;;  %v3730_v12 = vmul.f32 %v9292_v56, %v3727_v2  ;;  %s9637_s3 = sld [smem:[#allocation2 + $0x1a]] }
 0x316   : > { %v3595_v50 = vadd.f32 %v3593_v13, %v3512_v21  ;;  %v3769_v57 = vmul.f32 %v9359_v11, %v9340_v61  ;;  %v3604_v16 = vmul.f32 %v9299_v59, %v3603_v43  ;;  %v4344_v10 = vmul.f32 %v9268_v24, %v4342_v41 }
 0x317   : > { %4307 = vrot.lane.b32.xlu1 %v4302_v3, %s6147_s23  ;;  %v3600_v45 = vadd.f32 %v3598_v4, %v3535_v63  ;;  %v3371_v54 = vadd.f32 %v3365_v25, %v3287_v55  ;;  %v3739_v62 = vrot.slane %v3730_v12, 1  ;;  %v4343_v5 = vmul.f32 %v9277_v23, %v4342_v41 }
 0x318   : > { %4305 = vrot.lane.b32.xlu0 %v4301_v18, %s6147_s23  ;;  %v3627_v32 = vadd.f32 %v9223_v44, %v3595_v50  ;;  %v10636_v44 = vld [vmem:[#allocation60_spill] sm:$0xff]  ;;  %v3728_v17 = vmul.f32 %v9299_v59, %v3727_v2  ;;  %v4356_v38 = vstv %s9334_s4  ;;  %v3777_v53 = vrot.slane %v3769_v57, 1  ;;  %s9651_s4 = sld [smem:[#allocation2 + $0x36]] }
 0x319   : > { %v3665_v48 = vpop.permute.xlu1 %3664  ;;  %4319 = vrot.lane.b32.xlu2 %v4315_v29, %s6147_s23  ;;  %v3463_v60 = vadd.f32 %v10635_v36, %v3371_v54  ;;  %v3640_v19 = vadd.f32 %v9116_v7, %v3600_v45  ;;  %v3741_v3 = vsel %vm305_vm0, %v3739_v62, %v3740_v14  ;;  %v3768_v7 = vmul.f32 %v9299_v59, %v9340_v61 }
 0x31a   : > { %v9321_v42 = vadd.f32 %v3665_v48, %v3613_v58  ;;  %v3663_v39 = vpop.permute.xlu0 %3662  ;;  %v3729_v29 = vmul.f32 %v9359_v11, %v3727_v2  ;;  %v4357_v20 = vmul.f32 %v9277_v23, %v4356_v38  ;;  %v4370_v4 = vstv %s9347_s6  ;;  %s6009_s6 = sld [smem:[#allocation2 + $0x62]] }
 0x31b   : > { %v3668_v15 = vadd.f32 %v3663_v39, %v3612_v6  ;;  %v3825_v46 = vpop.permute.xlu2 %3824  ;;  %v3559_v18 = vadd.f32 %v10636_v44, %v3463_v60  ;;  %v3776_v47 = vrot.slane %v3768_v7, 1  ;;  %v3736_v58 = vrot.slane %v3728_v17, 1 }
 0x31c   : > { %v3737_v55 = vrot.slane %v3729_v29, 1  ;;  %v3787_v48 = vstv %s9350_s7  ;;  %v3747_v6 = vstv %s9342_s5  ;;  %v4371_v21 = vmul.f32 %v9277_v23, %v4370_v4  ;;  %s6008_s5 = sld [smem:[#allocation2 + $0x3e]] }
 0x31d   : > { %v9332_v37 = vadd.f32 %v3719_v27, %v3668_v15  ;;  %v3606_v43 = vadd.f32 %v3604_v16, %v3559_v18  ;;  %v3778_v39 = vsel %vm305_vm0, %v3776_v47, %v3777_v53  ;;  %v3790_v12 = vmul.f32 %v9292_v56, %v3787_v48  ;;  %s9678_s7 = sld [smem:[#allocation2 + $0x12]] }
 0x31e   : > { %v4358_v13 = vmul.f32 %v9268_v24, %v4356_v38  ;;  %v4372_v14 = vmul.f32 %v9268_v24, %v4370_v4  ;;  %v4384_v50 = vstv %s9378_s8  ;;  %v4398_v38 = vstv %s9401_s12  ;;  %v9437_v4 = vld [vmem:[%s6182_s22 + $0xe8] sm:$0x3]  ;;  %s9681_s8 = sld [smem:[#allocation2 + $0x5a]] }
 0x31f   : > { %4333 = vrot.lane.b32.xlu1 %v4329_v34, %s6147_s23  ;;  %v3654_v9 = vadd.f32 %v9274_v1, %v3606_v43  ;;  %v3791_v1 = vmul.f32 %v9392_v8, %v3787_v48  ;;  %v3751_v34 = vmul.f32 %v9392_v8, %v3747_v6  ;;  %v3799_v54 = vrot.slane %v3790_v12, 1  ;;  %s9728_s12 = sld [smem:[#allocation2 + $0x1c]] }
 0x320   : > { %4321 = vrot.lane.b32.xlu0 %v4316_v49, %s6147_s23  ;;  %v3738_v49 = vsel %vm305_vm0, %v3736_v58, %v3737_v55  ;;  %v4386_v16 = vmul.f32 %v9268_v24, %v4384_v50  ;;  %v3788_v29 = vmul.f32 %v9299_v59, %v3787_v48  ;;  %v3789_v47 = vmul.f32 %v9359_v11, %v3787_v48 }
 0x321   : > { %v3691_v40 = vpop.permute.xlu1 %3690  ;;  %4335 = vrot.lane.b32.xlu2 %v4330_v22, %s6147_s23  ;;  %v3800_v62 = vrot.slane %v3791_v1, 1  ;;  %v3749_v22 = vmul.f32 %v9359_v11, %v3747_v6  ;;  %v3744_v60 = vadd.f32 %v3738_v49, %v9239_v0  ;;  %v3760_v41 = vrot.slane %v3751_v34, 1 }
 0x322   : > { %v9352_v31 = vadd.f32 %v3691_v40, %v3640_v19  ;;  %v3679_v51 = vpop.permute.xlu0 %3678  ;;  %v9412_v40 = vld [vmem:[%s6182_s22 + $0xa8] sm:$0x3]  ;;  %v3771_v43 = vmul.f32 %v9392_v8, %v9340_v61  ;;  %v3797_v12 = vrot.slane %v3789_v47, 1  ;;  %v4516_v1 = vstv %s9415_s13  ;;  %s9731_s13 = sld [smem:[#allocation2 + $0x7e]] }
 0x323   : > { %v3683_v27 = vadd.f32 %v3679_v51, %v3627_v32  ;;  %v3871_v33 = vpop.permute.xlu2 %3870  ;;  %v4492_v51 = vstv %s9383_s11  ;;  %v3801_v57 = vsel %vm305_vm0, %v3799_v54, %v3800_v62  ;;  %v3757_v18 = vrot.slane %v3749_v22, 1  ;;  %s6010_s11 = sld [smem:[#allocation2 + $0x86]] }
 0x324   : > { %v4494_v17 = vmul.f32 %v9412_v40, %v4492_v51  ;;  %v4520_v54 = vmul.f32 %v9437_v4, %v4516_v1  ;;  %v4517_v22 = vmul.f32 %v9277_v23, %v4516_v1 }
 0x325   : > { %v3745_v52 = vadd.f32 %v3741_v3, %v3683_v27  ;;  %v4385_v27 = vmul.f32 %v9277_v23, %v4384_v50 }
 0x326   : > { %v4502_v48 = vrot.slane %v4494_v17, 1 }
 0x327   : > { %v9373_v63 = vadd.f32 %v3825_v46, %v3745_v52  ;;  %4349 = vrot.lane.b32.xlu1 %v4344_v10, %s6147_s23  ;;  %v3748_v46 = vmul.f32 %v9299_v59, %v3747_v6 }
 0x328   : > { %4347 = vrot.lane.b32.xlu0 %v4343_v5, %s6147_s23 }
 0x329   : > { %v3707_v26 = vpop.permute.xlu1 %3706  ;;  %4361 = vrot.lane.b32.xlu2 %v4357_v20, %s6148_s29  ;;  %v3756_v44 = vrot.slane %v3748_v46, 1  ;;  %v3770_v20 = vmul.f32 %v9292_v56, %v9340_v61  ;;  %v4519_v46 = vmul.f32 %v9268_v24, %v4516_v1 }
 0x32a   : > { %v9386_v2 = vadd.f32 %v3707_v26, %v9209_v35  ;;  %v3705_v25 = vpop.permute.xlu0 %3704  ;;  %v3750_v35 = vmul.f32 %v9292_v56, %v3747_v6  ;;  %v4496_v26 = vmul.f32 %v9437_v4, %v4492_v51 }
 0x32b   : > { %v3710_v30 = vadd.f32 %v3705_v25, %v3654_v9  ;;  %v3897_v15 = vpop.permute.xlu2 %3896  ;;  %v3758_v53 = vsel %vm305_vm0, %v3756_v44, %v3757_v18  ;;  %v4495_v9 = vmul.f32 %v9268_v24, %v4492_v51  ;;  %v4528_v44 = vrot.slane %v4519_v46, 1 }
 0x32c   : > { %v3759_v19 = vrot.slane %v3750_v35, 1  ;;  %v3764_v25 = vadd.f32 %v3758_v53, %v9352_v31  ;;  %v4505_v34 = vrot.slane %v4496_v26, 1  ;;  %v4400_v31 = vmul.f32 %v9268_v24, %v4398_v38 }
 0x32d   : > { %v3784_v45 = vadd.f32 %v3778_v39, %v3710_v30  ;;  %v3796_v39 = vrot.slane %v3788_v29, 1  ;;  %v4529_v18 = vrot.slane %v4520_v54, 1 }
 0x32e   : > { %v3761_v10 = vsel %vm305_vm0, %v3759_v19, %v3760_v41  ;;  %v4540_v19 = vstv %s9439_s14  ;;  %s9750_s14 = sld [smem:[#allocation2 + $0x40]] }
 0x32f   : > { %v9405_v36 = vadd.f32 %v3871_v33, %v3784_v45  ;;  %4375 = vrot.lane.b32.xlu1 %v4371_v21, %s6148_s29  ;;  %v4493_v33 = vmul.f32 %v9277_v23, %v4492_v51  ;;  %v3765_v55 = vadd.f32 %v3761_v10, %v9296_v28  ;;  %v4504_v28 = vrot.slane %v4495_v9, 1 }
 0x330   : > { %4363 = vrot.lane.b32.xlu0 %v4358_v13, %s6148_s29  ;;  %v3779_v13 = vrot.slane %v3770_v20, 1  ;;  %v4541_v51 = vmul.f32 %v9277_v23, %v4540_v19  ;;  %v4543_v26 = vmul.f32 %v9268_v24, %v4540_v19 }
 0x331   : > { %v3823_v32 = vpop.permute.xlu1 %3822  ;;  %4377 = vrot.lane.b32.xlu2 %v4372_v14, %s6148_s29  ;;  %v4501_v61 = vrot.slane %v4493_v33, 1  ;;  %v3798_v14 = vsel %vm305_vm0, %v3796_v39, %v3797_v12  ;;  %v4506_v41 = vsel %vm305_vm0, %v4504_v28, %v4505_v34  ;;  %v4588_v28 = vstv %s9481_s18  ;;  %s9782_s18 = sld [smem:[#allocation2 + $0x88]] }
 0x332   : > { %v9417_v3 = vadd.f32 %v3823_v32, %v3744_v60  ;;  %v3721_v7 = vpop.permute.xlu0 %3720  ;;  %v4518_v60 = vmul.f32 %v9412_v40, %v4516_v1  ;;  %v9471_v32 = vstv %s9446_s15  ;;  %v4549_v29 = vrot.slane %v4541_v51, 1  ;;  %s9760_s15 = sld [smem:[#allocation2 + $0x64]] }
 0x333   : > { %v3725_v0 = vadd.f32 %v3721_v7, %v9321_v42  ;;  %v3943_v5 = vpop.permute.xlu2 %3942  ;;  %v4399_v42 = vmul.f32 %v9277_v23, %v4398_v38  ;;  %v4503_v45 = vsel %vm305_vm0, %v4501_v61, %v4502_v48  ;;  %v4542_v7 = vmul.f32 %v9412_v40, %v4540_v19 }
 0x334   : > { %v4526_v10 = vrot.slane %v4518_v60, 1 }
 0x335   : > { %v3805_v52 = vadd.f32 %v3801_v57, %v3725_v0  ;;  %v3804_v57 = vadd.f32 %v3798_v14, %v9332_v37  ;;  %v4000_v37 = vmul.f32 %v9299_v59, %v9471_v32  ;;  %v4550_v47 = vrot.slane %v4542_v7, 1 }
 0x337   : > { %v9441_v58 = vadd.f32 %v3897_v15, %v3805_v52  ;;  %4391 = vrot.lane.b32.xlu1 %v4386_v16, %s6148_s29  ;;  %v3780_v15 = vrot.slane %v3771_v43, 1  ;;  %v4001_v52 = vmul.f32 %v9359_v11, %v9471_v32  ;;  %v4008_v61 = vrot.slane %v4000_v37, 2 }
 0x338   : > { %4389 = vrot.lane.b32.xlu0 %v4385_v27, %s6148_s29  ;;  %v4525_v27 = vrot.slane %v4517_v22, 1 }
 0x339   : > { %v3849_v6 = vpop.permute.xlu1 %3848  ;;  %4403 = vrot.lane.b32.xlu2 %v4399_v42, %s6148_s29  ;;  %v3781_v50 = vsel %vm305_vm0, %v3779_v13, %v3780_v15  ;;  %v4009_v48 = vrot.slane %v4001_v52, 2  ;;  %v4552_v15 = vrot.slane %v4543_v26, 1 }
 0x33a   : > { %v9454_v30 = vadd.f32 %v3849_v6, %v3765_v55  ;;  %v3847_v21 = vpop.permute.xlu0 %3846  ;;  %v3785_v16 = vadd.f32 %v3781_v50, %v9386_v2  ;;  %v4530_v2 = vsel %vm305_vm0, %v4528_v44, %v4529_v18  ;;  %v4527_v9 = vsel %vm305_vm0, %v4525_v27, %v4526_v10 }
 0x33b   : > { %v3852_v35 = vadd.f32 %v3847_v21, %v3764_v25  ;;  %v3969_v49 = vpop.permute.xlu2 %3968  ;;  %v4544_v55 = vmul.f32 %v9437_v4, %v4540_v19  ;;  %v4551_v6 = vsel %vm305_vm0, %v4549_v29, %v4550_v47  ;;  %v4019_v21 = vstv %s9477_s17  ;;  %s5989_s17 = sld [smem:[#allocation2 + $0x5d]] }
 0x33c   : > { %v4023_v46 = vmul.f32 %v9392_v8, %v4019_v21  ;;  %v9520_v60 = vmul.f32 %v9299_v59, %v4019_v21  ;;  %v4591_v19 = vmul.f32 %v9268_v24, %v4588_v28  ;;  %v4021_v51 = vmul.f32 %v9359_v11, %v4019_v21 }
 0x33d   : > { %v9461_v62 = vadd.f32 %v3943_v5, %v3852_v35  ;;  %v4564_v5 = vstv %s9452_s16  ;;  %v4553_v35 = vrot.slane %v4544_v55, 1  ;;  %v4590_v44 = vmul.f32 %v9412_v40, %v4588_v28  ;;  %s5987_s16 = sld [smem:[#allocation2 + $0x15]] }
 0x33e   : > { %v4565_v42 = vmul.f32 %v9277_v23, %v4564_v5  ;;  %v4566_v20 = vmul.f32 %v9412_v40, %v4564_v5  ;;  %v4567_v25 = vmul.f32 %v9268_v24, %v4564_v5  ;;  %v4568_v39 = vmul.f32 %v9437_v4, %v4564_v5 }
 0x33f   : > { %4507 = vrot.lane.b32.xlu1 %v4503_v45, %s6147_s23  ;;  %v4612_v27 = vstv %s9500_s20  ;;  %v4600_v52 = vrot.slane %v4591_v19, 1  ;;  %s9800_s20 = sld [smem:[#allocation2 + $0x39]] }
 0x340   : > { %4405 = vrot.lane.b32.xlu0 %v4400_v31, %s6148_s29  ;;  %v4573_v12 = vrot.slane %v4565_v42, 1  ;;  %v4574_v1 = vrot.slane %v4566_v20, 1  ;;  %v4010_v31 = vsel %vm578_vm1, %v4008_v61, %v4009_v48  ;;  %v4576_v14 = vrot.slane %v4567_v25, 1 }
 0x341   : > { %v3895_v0 = vpop.permute.xlu1 %3894  ;;  %4509 = vrot.lane.b32.xlu2 %v4506_v41, %s6147_s23  ;;  %v4577_v22 = vrot.slane %v4568_v39, 1  ;;  %v4592_v41 = vmul.f32 %v9437_v4, %v4588_v28  ;;  %v4614_v37 = vmul.f32 %v9412_v40, %v4612_v27  ;;  %v4636_v42 = vstv %s9509_s21  ;;  %s9804_s21 = sld [smem:[#allocation2 + $0x41]] }
 0x342   : > { %v9483_v33 = vadd.f32 %v3895_v0, %v3804_v57  ;;  %v3873_v17 = vpop.permute.xlu0 %3872  ;;  %v4589_v57 = vmul.f32 %v9277_v23, %v4588_v28  ;;  %v4032_v0 = vrot.slane %v4023_v46, 2  ;;  %v4028_v20 = vrot.slane %v9520_v60, 2 }
 0x343   : > { %v3877_v38 = vadd.f32 %v3873_v17, %v3785_v16  ;;  %v4095_v53 = vpop.permute.xlu2 %4094  ;;  %v9532_v16 = vstv %s9498_s19  ;;  %v4578_v5 = vsel %vm305_vm0, %v4576_v14, %v4577_v22  ;;  %v4613_v17 = vmul.f32 %v9277_v23, %v4612_v27  ;;  %s9794_s19 = sld [smem:[#allocation2 + $0x1d]] }
 0x344   : > { %v4597_v47 = vrot.slane %v4589_v57, 1  ;;  %v4060_v55 = vmul.f32 %v9299_v59, %v9532_v16  ;;  %v4061_v61 = vmul.f32 %v9359_v11, %v9532_v16  ;;  %v4622_v25 = vrot.slane %v4614_v37, 1 }
 0x345   : > { %v9493_v43 = vadd.f32 %v3969_v49, %v3877_v38  ;;  %v4022_v49 = vmul.f32 %v9292_v56, %v4019_v21  ;;  %v4601_v38 = vrot.slane %v4592_v41, 1  ;;  %v4029_v39 = vrot.slane %v4021_v51, 2 }
 0x346   : > { %v4638_v21 = vmul.f32 %v9412_v40, %v4636_v42  ;;  %v4615_v28 = vmul.f32 %v9268_v24, %v4612_v27  ;;  %v4003_v46 = vmul.f32 %v9392_v8, %v9471_v32  ;;  %v4639_v22 = vmul.f32 %v9268_v24, %v4636_v42 }
 0x347   : > { %4533 = vrot.lane.b32.xlu1 %v4530_v2, %s6147_s23  ;;  %v4031_v18 = vrot.slane %v4022_v49, 2  ;;  %v4598_v2 = vrot.slane %v4590_v44, 1  ;;  %v4002_v49 = vmul.f32 %v9292_v56, %v9471_v32  ;;  %v4640_v60 = vmul.f32 %v9437_v4, %v4636_v42 }
 0x348   : > { %4531 = vrot.lane.b32.xlu0 %v4527_v9, %s6147_s23  ;;  %v4646_v19 = vrot.slane %v4638_v21, 1  ;;  %v4624_v32 = vrot.slane %v4615_v28, 1  ;;  %v4788_v28 = vstv %s9579_s27  ;;  %s9846_s27 = sld [smem:[#allocation2 + $0x89]] }
 0x349   : > { %v3921_v13 = vpop.permute.xlu1 %3920  ;;  %4555 = vrot.lane.b32.xlu2 %v4551_v6, %s6147_s23  ;;  %v4033_v26 = vsel %vm578_vm1, %v4031_v18, %v4032_v0  ;;  %v4621_v6 = vrot.slane %v4613_v17, 1  ;;  %v4011_v0 = vrot.slane %v4002_v49, 2  ;;  %v4648_v17 = vrot.slane %v4639_v22, 1 }
 0x34a   : > { %v9512_v34 = vadd.f32 %v3921_v13, %v9373_v63  ;;  %v3919_v45 = vpop.permute.xlu0 %3918  ;;  %v4575_v63 = vsel %vm305_vm0, %v4573_v12, %v4574_v1  ;;  %v4602_v12 = vsel %vm305_vm0, %v4600_v52, %v4601_v38  ;;  %v4637_v1 = vmul.f32 %v9277_v23, %v4636_v42 }
 0x34b   : > { %v3924_v54 = vadd.f32 %v3919_v45, %v9417_v3  ;;  %v4121_v50 = vpop.permute.xlu2 %4120  ;;  %v4554_v3 = vsel %vm305_vm0, %v4552_v15, %v4553_v35  ;;  %v4039_v13 = vstv %s9526_s24  ;;  %v4599_v35 = vsel %vm305_vm0, %v4597_v47, %v4598_v2  ;;  %s5990_s24 = sld [smem:[#allocation2 + $0x81]] }
 0x34c   : > { %v4616_v45 = vmul.f32 %v9437_v4, %v4612_v27  ;;  %v4623_v14 = vsel %vm305_vm0, %v4621_v6, %v4622_v25  ;;  %v4042_v41 = vmul.f32 %v9292_v56, %v4039_v13  ;;  %v4012_v27 = vrot.slane %v4003_v46, 2 }
 0x34d   : > { %v4016_v7 = vadd.f32 %v4010_v31, %v3924_v54  ;;  %v4068_v31 = vrot.slane %v4060_v55, 2  ;;  %v4649_v37 = vrot.slane %v4640_v60, 1  ;;  %v4043_v52 = vmul.f32 %v9392_v8, %v4039_v13 }
 0x34e   : > { %v4051_v2 = vrot.slane %v4042_v41, 2  ;;  %v4040_v55 = vmul.f32 %v9299_v59, %v4039_v13 }
 0x34f   : > { %v9535_v10 = vadd.f32 %v4095_v53, %v4016_v7  ;;  %4579 = vrot.lane.b32.xlu1 %v4575_v63, %s6147_s23  ;;  %v4645_v63 = vrot.slane %v4637_v1, 1  ;;  %v4625_v7 = vrot.slane %v4616_v45, 1  ;;  %v4650_v25 = vsel %vm305_vm0, %v4648_v17, %v4649_v37 }
 0x350   : > { %4557 = vrot.lane.b32.xlu0 %v4554_v3, %s6147_s23  ;;  %v4660_v3 = vstv %s9544_s25  ;;  %s9827_s25 = sld [smem:[#allocation2 + $0x65]] }
 0x351   : > { %v3967_v29 = vpop.permute.xlu1 %3966  ;;  %4581 = vrot.lane.b32.xlu2 %v4578_v5, %s6147_s23  ;;  %v4647_v38 = vsel %vm305_vm0, %v4645_v63, %v4646_v19  ;;  %v4664_v47 = vmul.f32 %v9437_v4, %v4660_v3  ;;  %v4789_v63 = vmul.f32 %v9277_v23, %v4788_v28  ;;  %v4790_v19 = vmul.f32 %v9412_v40, %v4788_v28 }
 0x352   : > { %v9547_v53 = vadd.f32 %v3967_v29, %v9405_v36  ;;  %v3945_v9 = vpop.permute.xlu0 %3944 }
 0x353   : > { %v3949_v48 = vadd.f32 %v3945_v9, %v9454_v30  ;;  %v4167_v36 = vpop.permute.xlu2 %4166  ;;  %v4069_v30 = vrot.slane %v4061_v61, 2  ;;  %v4661_v9 = vmul.f32 %v9277_v23, %v4660_v3  ;;  %v4041_v61 = vmul.f32 %v9359_v11, %v4039_v13 }
 0x354   : > { %v4673_v59 = vrot.slane %v4664_v47, 1  ;;  %v4797_v17 = vrot.slane %v4789_v63, 2  ;;  %v4798_v37 = vrot.slane %v4790_v19, 2 }
 0x355   : > { %v4037_v15 = vadd.f32 %v4033_v26, %v3949_v48  ;;  %v4070_v18 = vsel %vm578_vm1, %v4068_v31, %v4069_v30  ;;  %v4013_v26 = vsel %vm578_vm1, %v4011_v0, %v4012_v27  ;;  %v4764_v48 = vstv %s9567_s26  ;;  %s9830_s26 = sld [smem:[#allocation2 + $0x1f]] }
 0x356   : > { %v4017_v13 = vadd.f32 %v4013_v26, %v9512_v34  ;;  %v4048_v30 = vrot.slane %v4040_v55, 2  ;;  %v4049_v49 = vrot.slane %v4041_v61, 2  ;;  %v4791_v0 = vmul.f32 %v9268_v24, %v4788_v28 }
 0x357   : > { %v9569_v54 = vadd.f32 %v4121_v50, %v4037_v15  ;;  %4605 = vrot.lane.b32.xlu1 %v4602_v12, %s6148_s29  ;;  %v4030_v50 = vsel %vm578_vm1, %v4028_v20, %v4029_v39  ;;  %v4626_v20 = vsel %vm305_vm0, %v4624_v32, %v4625_v7  ;;  %v4765_v39 = vmul.f32 %v9277_v23, %v4764_v48 }
 0x358   : > { %4603 = vrot.lane.b32.xlu0 %v4599_v35, %s6148_s29  ;;  %v4766_v12 = vmul.f32 %v9412_v40, %v4764_v48  ;;  %v4036_v1 = vadd.f32 %v4030_v50, %v9461_v62  ;;  %v4052_v15 = vrot.slane %v4043_v52, 2  ;;  %v4767_v32 = vmul.f32 %v9268_v24, %v4764_v48 }
 0x359   : > { %v3993_v51 = vpop.permute.xlu1 %3992  ;;  %4627 = vrot.lane.b32.xlu2 %v4623_v14, %s6148_s29  ;;  %v4773_v62 = vrot.slane %v4765_v39, 2  ;;  %v4768_v7 = vmul.f32 %v9437_v4, %v4764_v48  ;;  %v4050_v50 = vsel %vm578_vm1, %v4048_v30, %v4049_v49  ;;  %v4792_v27 = vmul.f32 %v9437_v4, %v4788_v28 }
 0x35a   : > { %v9582_v57 = vadd.f32 %v3993_v51, %v9441_v58  ;;  %v3991_v44 = vpop.permute.xlu0 %3990  ;;  %v4663_v58 = vmul.f32 %v9268_v24, %v4660_v3  ;;  %v4774_v14 = vrot.slane %v4766_v12, 2  ;;  %v4053_v60 = vsel %vm578_vm1, %v4051_v2, %v4052_v15 }
 0x35b   : > { %v3996_v5 = vadd.f32 %v3991_v44, %v9483_v33  ;;  %v4193_v29 = vpop.permute.xlu2 %4192  ;;  %v4662_v33 = vmul.f32 %v9412_v40, %v4660_v3  ;;  %v4062_v3 = vmul.f32 %v9292_v56, %v9532_v16  ;;  %v4063_v44 = vmul.f32 %v9392_v8, %v9532_v16 }
 0x35c   : > { %v4672_v21 = vrot.slane %v4663_v58, 1  ;;  %v4056_v52 = vadd.f32 %v4050_v50, %v9547_v53  ;;  %v4776_v8 = vrot.slane %v4767_v32, 2  ;;  %v4777_v16 = vrot.slane %v4768_v7, 2 }
 0x35d   : > { %v4076_v42 = vadd.f32 %v4070_v18, %v3996_v5  ;;  %v4670_v35 = vrot.slane %v4662_v33, 1  ;;  %v4775_v18 = vsel %vm578_vm1, %v4773_v62, %v4774_v14  ;;  %v4057_v5 = vadd.f32 %v4053_v60, %v9493_v43 }
 0x35e   : > { %v4674_v22 = vsel %vm305_vm0, %v4672_v21, %v4673_v59  ;;  %v4071_v47 = vrot.slane %v4062_v3, 2  ;;  %v4072_v2 = vrot.slane %v4063_v44, 2  ;;  %v4800_v43 = vrot.slane %v4791_v0, 2 }
 0x35f   : > { %v9598_v6 = vadd.f32 %v4167_v36, %v4076_v42  ;;  %4651 = vrot.lane.b32.xlu1 %v4647_v38, %s6148_s29  ;;  %v4669_v36 = vrot.slane %v4661_v9, 1  ;;  %v4812_v38 = vstv %s9608_s28  ;;  %v4799_v9 = vsel %vm578_vm1, %v4797_v17, %v4798_v37  ;;  %s9860_s28 = sld [smem:[#allocation2 + $0x43]] }
 0x360   : > { %4629 = vrot.lane.b32.xlu0 %v4626_v20, %s6148_s29  ;;  %v4801_v20 = vrot.slane %v4792_v27, 2  ;;  %v4815_v53 = vmul.f32 %v9268_v24, %v4812_v38  ;;  %v4816_v26 = vmul.f32 %v9437_v4, %v4812_v38  ;;  %v4778_v61 = vsel %vm578_vm1, %v4776_v8, %v4777_v16 }
 0x361   : > { %v4119_v11 = vpop.permute.xlu1 %4118  ;;  %4653 = vrot.lane.b32.xlu2 %v4650_v25, %s6148_s29  ;;  %v4671_v51 = vsel %vm305_vm0, %v4669_v36, %v4670_v35  ;;  %v4813_v48 = vmul.f32 %v9277_v23, %v4812_v38  ;;  %v4814_v25 = vmul.f32 %v9412_v40, %v4812_v38  ;;  %v4073_v39 = vsel %vm578_vm1, %v4071_v47, %v4072_v2 }
 0x362   : > { %v9610_v45 = vadd.f32 %v4119_v11, %v4036_v1  ;;  %v4097_v31 = vpop.permute.xlu0 %4096  ;;  %v4836_v12 = vstv %s9627_s30  ;;  %v4802_v1 = vsel %vm578_vm1, %v4800_v43, %v4801_v20  ;;  %v4824_v15 = vrot.slane %v4815_v53, 2  ;;  %s9887_s30 = sld [smem:[#allocation2 + $0x67]] }
 0x363   : > { %v4101_v46 = vadd.f32 %v4097_v31, %v4017_v13  ;;  %v4239_v34 = vpop.permute.xlu2 %4238  ;;  %v4837_v21 = vmul.f32 %v9277_v23, %v4836_v12  ;;  %v4838_v59 = vmul.f32 %v9412_v40, %v4836_v12  ;;  %v4825_v11 = vrot.slane %v4816_v26, 2 }
 0x364   : > { %v4077_v36 = vadd.f32 %v4073_v39, %v9582_v57  ;;  %v4821_v35 = vrot.slane %v4813_v48, 2  ;;  %v4822_v28 = vrot.slane %v4814_v25, 2  ;;  %v4860_v31 = vstv %s9637_s3  ;;  %s9894_s3 = sld [smem:[#allocation2 + $0x18]] }
 0x365   : > { %v9617_v41 = vadd.f32 %v4193_v29, %v4101_v46  ;;  %v4845_v62 = vrot.slane %v4837_v21, 2  ;;  %v4846_v14 = vrot.slane %v4838_v59, 2  ;;  %v4862_v57 = vmul.f32 %v9412_v40, %v4860_v31 }
 0x366   : > { %v4823_v19 = vsel %vm578_vm1, %v4821_v35, %v4822_v28  ;;  %v4282_v32 = vstv %s9651_s4  ;;  %v4863_v50 = vmul.f32 %v9268_v24, %v4860_v31  ;;  %v4864_v3 = vmul.f32 %v9437_v4, %v4860_v31  ;;  %s9900_s4 = sld [smem:[#allocation2 + $0x8b]] }
 0x367   : > { %4677 = vrot.lane.b32.xlu1 %v4674_v22, %s6148_s29  ;;  %v4826_v22 = vsel %vm578_vm1, %v4824_v15, %v4825_v11  ;;  %v4847_v7 = vsel %vm578_vm1, %v4845_v62, %v4846_v14  ;;  %v4283_v27 = vmul.f32 %v9277_v23, %v4282_v32  ;;  %v4884_v37 = vstv %s6008_s5  ;;  %s9925_s5 = sld [smem:[#allocation2 + $0x3c]] }
 0x368   : > { %4675 = vrot.lane.b32.xlu0 %v4671_v51, %s6148_s29  ;;  %v4840_v51 = vmul.f32 %v9437_v4, %v4836_v12  ;;  %v4872_v16 = vrot.slane %v4863_v50, 2  ;;  %v4873_v38 = vrot.slane %v4864_v3, 2  ;;  %v4887_v2 = vmul.f32 %v9268_v24, %v4884_v37 }
 0x369   : > { %v4145_v56 = vpop.permute.xlu1 %4144  ;;  %4779 = vrot.lane.b32.xlu2 %v4775_v18, %s6147_s23  ;;  %v4870_v18 = vrot.slane %v4862_v57, 2  ;;  %v4885_v20 = vmul.f32 %v9277_v23, %v4884_v37  ;;  %v4288_v48 = vstv %s9681_s8  ;;  %v4932_v11 = vstv %s6010_s11  ;;  %s9948_s8 = sld [smem:[#allocation2 + $0x44]] }
 0x36a   : > { %v9639_v29 = vadd.f32 %v4145_v56, %v4057_v5  ;;  %v4143_v58 = vpop.permute.xlu0 %4142  ;;  %v4849_v17 = vrot.slane %v4840_v51, 2  ;;  %v4874_v53 = vsel %vm578_vm1, %v4872_v16, %v4873_v38  ;;  %v4896_v25 = vrot.slane %v4887_v2, 2  ;;  %s9957_s11 = sld [smem:[#allocation2 + $0x68]] }
 0x36b   : > { %v4148_v42 = vadd.f32 %v4143_v58, %v4056_v52  ;;  %v4265_v33 = vpop.permute.xlu2 %4264  ;;  %v4290_v21 = vmul.f32 %v9268_v24, %v4288_v48  ;;  %v4893_v59 = vrot.slane %v4885_v20, 2  ;;  %v4935_v51 = vmul.f32 %v9268_v24, %v4932_v11 }
 0x36c   : > { %v4985_v20 = vstv %s9728_s12  ;;  %s9977_s12 = sld [smem:[#allocation2 + $0x60]] }
 0x36d   : > { %v9645_v55 = vadd.f32 %v4239_v34, %v4148_v42  ;;  %v4861_v34 = vmul.f32 %v9277_v23, %v4860_v31  ;;  %v4888_v42 = vmul.f32 %v9437_v4, %v4884_v37 }
 0x36f   : > { %4803 = vrot.lane.b32.xlu1 %v4799_v9, %s6147_s23  ;;  %v4869_v44 = vrot.slane %v4861_v34, 2  ;;  %v4886_v9 = vmul.f32 %v9412_v40, %v4884_v37  ;;  %v4897_v39 = vrot.slane %v4888_v42, 2 }
 0x370   : > { %4781 = vrot.lane.b32.xlu0 %v4778_v61, %s6147_s23 }
 0x371   : > { %v4191_v13 = vpop.permute.xlu1 %4190  ;;  %4805 = vrot.lane.b32.xlu2 %v4802_v1, %s6147_s23  ;;  %v4871_v58 = vsel %vm578_vm1, %v4869_v44, %v4870_v18  ;;  %v4894_v15 = vrot.slane %v4886_v9, 2 }
 0x372   : > { %v9662_v30 = vadd.f32 %v4191_v13, %v9535_v10  ;;  %v4169_v49 = vpop.permute.xlu0 %4168  ;;  %v4839_v10 = vmul.f32 %v9268_v24, %v4836_v12  ;;  %v4276_v12 = vstv %s9678_s7  ;;  %s9946_s7 = sld [smem:[#allocation2 + $0x84]] }
 0x373   : > { %v4173_v46 = vadd.f32 %v4169_v49, %v4077_v36  ;;  %v4320_v60 = vpop.permute.xlu2 %4319  ;;  %v4278_v28 = vmul.f32 %v9268_v24, %v4276_v12  ;;  %v4277_v62 = vmul.f32 %v9277_v23, %v4276_v12  ;;  %v4895_v34 = vsel %vm578_vm1, %v4893_v59, %v4894_v15 }
 0x374   : > { %v4848_v5 = vrot.slane %v4839_v10, 2 }
 0x375   : > { %v9668_v63 = vadd.f32 %v4265_v33, %v4173_v46  ;;  %v4908_v33 = vstv %s6009_s6  ;;  %v4898_v46 = vsel %vm578_vm1, %v4896_v25, %v4897_v39  ;;  %v4279_v18 = vadd.f32 %v4277_v62, %v9662_v30  ;;  %s9929_s6 = sld [smem:[#allocation2 + $0x20]] }
 0x376   : > { %v4909_v26 = vmul.f32 %v9277_v23, %v4908_v33  ;;  %v4910_v61 = vmul.f32 %v9412_v40, %v4908_v33  ;;  %v4911_v57 = vmul.f32 %v9268_v24, %v4908_v33 }
 0x377   : > { %4829 = vrot.lane.b32.xlu1 %v4826_v22, %s6147_s23  ;;  %v4933_v22 = vmul.f32 %v9277_v23, %v4932_v11  ;;  %v4280_v23 = vadd.f32 %v4278_v28, %v9617_v41  ;;  %v4412_v28 = vstv %s5987_s16  ;;  %s10059_s16 = sld [smem:[#allocation2 + $0x6a]] }
 0x378   : > { %4827 = vrot.lane.b32.xlu0 %v4823_v19, %s6147_s23  ;;  %v4917_v31 = vrot.slane %v4909_v26, 2  ;;  %v4918_v49 = vrot.slane %v4910_v61, 2  ;;  %v4416_v62 = vmul.f32 %v9437_v4, %v4412_v28 }
 0x379   : > { %v4217_v0 = vpop.permute.xlu1 %4216  ;;  %4851 = vrot.lane.b32.xlu2 %v4847_v7, %s6147_s23  ;;  %v4936_v7 = vmul.f32 %v9437_v4, %v4932_v11  ;;  %v4941_v50 = vrot.slane %v4933_v22, 2 }
 0x37a   : > { %v9687_v56 = vadd.f32 %v4217_v0, %v9569_v54  ;;  %v4215_v52 = vpop.permute.xlu0 %4214  ;;  %v4850_v54 = vsel %vm578_vm1, %v4848_v5, %v4849_v17  ;;  %v4919_v10 = vsel %vm578_vm1, %v4917_v31, %v4918_v49  ;;  %v4920_v0 = vrot.slane %v4911_v57, 2 }
 0x37b   : > { %v4220_v8 = vadd.f32 %v4215_v52, %v9610_v45  ;;  %v4336_v47 = vpop.permute.xlu2 %4335  ;;  %v4944_v17 = vrot.slane %v4935_v51, 2  ;;  %v4945_v37 = vrot.slane %v4936_v7, 2 }
 0x37d   : > { %v4285_v43 = vadd.f32 %v4283_v27, %v4220_v8  ;;  %v9738_v8 = vld [vmem:[%s6182_s22 + $0xa0] sm:$0xff]  ;;  %v4946_v42 = vsel %vm578_vm1, %v4944_v17, %v4945_v37  ;;  %v4414_v37 = vmul.f32 %v9412_v40, %v4412_v28 }
 0x37e   : > { %v4289_v30 = vmul.f32 %v9738_v8, %v4288_v48  ;;  %v4413_v17 = vmul.f32 %v9738_v8, %v4412_v28 }
 0x37f   : > { %v9697_v45 = vadd.f32 %v4320_v60, %v4285_v43  ;;  %4875 = vrot.lane.b32.xlu1 %v4871_v58, %s6148_s29  ;;  %v4934_v60 = vmul.f32 %v9412_v40, %v4932_v11  ;;  %v5013_v11 = vstv %s9760_s15  ;;  %s10030_s15 = sld [smem:[#allocation2 + $0x46]] }
 0x380   : > { %4853 = vrot.lane.b32.xlu0 %v4850_v54, %s6147_s23  ;;  %v4291_v43 = vadd.f32 %v4289_v30, %v9645_v55  ;;  %v9757_v54 = vld [vmem:[%s6182_s22 + $0xf0] sm:$0xff] }
 0x381   : > { %v4263_v1 = vpop.permute.xlu1 %4262  ;;  %4877 = vrot.lane.b32.xlu2 %v4874_v53, %s6148_s29  ;;  %v4942_v3 = vrot.slane %v4934_v60, 2  ;;  %v4294_v53 = vstv %s9731_s13  ;;  %v4987_v48 = vmul.f32 %v9757_v54, %v4985_v20  ;;  %v5015_v57 = vmul.f32 %v9757_v54, %v5013_v11  ;;  %s9995_s13 = sld [smem:[#allocation2 + $0x8c]] }
 0x382   : > { %v9708_v13 = vadd.f32 %v4263_v1, %v9598_v6  ;;  %v4241_v36 = vpop.permute.xlu0 %4240 }
 0x383   : > { %v4245_v35 = vadd.f32 %v4241_v36, %v9639_v29  ;;  %v4362_v14 = vpop.permute.xlu2 %4361  ;;  %v4912_v29 = vmul.f32 %v9437_v4, %v4908_v33  ;;  %v4943_v52 = vsel %vm578_vm1, %v4941_v50, %v4942_v3 }
 0x385   : > { %v4292_v6 = vadd.f32 %v4290_v21, %v4245_v35  ;;  %v4921_v27 = vrot.slane %v4912_v29, 2  ;;  %v4999_v21 = vstv %s9750_s14  ;;  %v9798_v29 = vstv %s5989_s17  ;;  %s10018_s14 = sld [smem:[#allocation2 + $0x22]] }
 0x386   : > { %v5001_v22 = vmul.f32 %v9757_v54, %v4999_v21  ;;  %v4453_v3 = vmul.f32 %v9738_v8, %v9798_v29  ;;  %s10078_s17 = sld [smem:[#allocation2 + $0x8e]] }
 0x387   : > { %v9720_v19 = vadd.f32 %v4336_v47, %v4292_v6  ;;  %4901 = vrot.lane.b32.xlu1 %v4898_v46, %s6148_s29  ;;  %v4922_v58 = vsel %vm578_vm1, %v4920_v0, %v4921_v27  ;;  %v9745_v47 = vld [vmem:[%s6182_s22 + $0xe0] sm:$0xff] }
 0x388   : > { %4899 = vrot.lane.b32.xlu0 %v4895_v34, %s6148_s29  ;;  %v4284_v2 = vmul.f32 %v9745_v47, %v4282_v32  ;;  %v9764_v32 = vld [vmem:[%s6182_s22 + $0xb0] sm:$0xff]  ;;  %v4296_v39 = vmul.f32 %v9745_v47, %v4294_v53  ;;  %v4415_v46 = vmul.f32 %v9745_v47, %v4412_v28  ;;  %v4425_v34 = vrot.slane %v4416_v62, 1 }
 0x389   : > { %v4308_v44 = vpop.permute.xlu1 %4307  ;;  %4923 = vrot.lane.b32.xlu2 %v4919_v10, %s6148_s29  ;;  %v4986_v25 = vmul.f32 %v9764_v32, %v4985_v20  ;;  %v5000_v59 = vmul.f32 %v9764_v32, %v4999_v21  ;;  %v5027_v10 = vstv %s9782_s18  ;;  %v4472_v20 = vstv %s5990_s24  ;;  %s10088_s18 = sld [smem:[#allocation2 + $0x23]] }
 0x38a   : > { %v9733_v24 = vadd.f32 %v4308_v44, %v4280_v23  ;;  %v4306_v5 = vpop.permute.xlu0 %4305  ;;  %v4286_v33 = vadd.f32 %v4284_v2, %v9687_v56  ;;  %v4295_v56 = vmul.f32 %v9738_v8, %v4294_v53  ;;  %v4298_v15 = vadd.f32 %v4296_v39, %v9668_v63  ;;  %s10129_s24 = sld [smem:[#allocation2 + $0x1b]] }
 0x38b   : > { %v4311_v41 = vadd.f32 %v4306_v5, %v4279_v18  ;;  %v4378_v16 = vpop.permute.xlu2 %4377  ;;  %v5014_v63 = vmul.f32 %v9764_v32, %v5013_v11  ;;  %v4454_v44 = vmul.f32 %v9412_v40, %v9798_v29  ;;  %v5029_v0 = vmul.f32 %v9757_v54, %v5027_v10 }
 0x38c   : > { %v4297_v35 = vadd.f32 %v4295_v56, %v9708_v13  ;;  %v4424_v13 = vrot.slane %v4415_v46, 1  ;;  %v5028_v27 = vmul.f32 %v9764_v32, %v5027_v10  ;;  %v5069_v62 = vstv %s9827_s25  ;;  %s10132_s25 = sld [smem:[#allocation2 + $0x63]] }
 0x38d   : > { %v9741_v38 = vadd.f32 %v4362_v14, %v4311_v41  ;;  %v5041_v41 = vstv %s9794_s19  ;;  %v4462_v30 = vrot.slane %v4454_v44, 1  ;;  %s10102_s19 = sld [smem:[#allocation2 + $0x3f]] }
 0x38e   : > { %v4426_v50 = vsel %vm305_vm0, %v4424_v13, %v4425_v34  ;;  %v5177_v13 = vstv %s9830_s26  ;;  %s6050_s26 = sld [smem:[#allocation2 + $0x8f]] }
 0x38f   : > { %4947 = vrot.lane.b32.xlu1 %v4943_v52, %s6148_s29  ;;  %v4461_v52 = vrot.slane %v4453_v3, 1 }
 0x390   : > { %4925 = vrot.lane.b32.xlu0 %v4922_v58, %s6148_s29 }
 0x391   : > { %v4334_v9 = vpop.permute.xlu1 %4333  ;;  %4949 = vrot.lane.b32.xlu2 %v4946_v42, %s6148_s29  ;;  %v4421_v42 = vrot.slane %v4413_v17, 1 }
 0x392   : > { %v9767_v26 = vadd.f32 %v4334_v9, %v4291_v43  ;;  %v4322_v61 = vpop.permute.xlu0 %4321  ;;  %v4422_v43 = vrot.slane %v4414_v37, 1  ;;  %v4432_v9 = vstv %s9800_s20  ;;  %s6048_s20 = sld [smem:[#allocation2 + $0x47]] }
 0x393   : > { %v4326_v55 = vadd.f32 %v4322_v61, %v4286_v33  ;;  %v4404_v12 = vpop.permute.xlu2 %4403  ;;  %v4463_v61 = vsel %vm305_vm0, %v4461_v52, %v4462_v30  ;;  %v4436_v21 = vmul.f32 %v9437_v4, %v4432_v9  ;;  %v4433_v11 = vmul.f32 %v9738_v8, %v4432_v9 }
 0x394   : > { %v4434_v28 = vmul.f32 %v9412_v40, %v4432_v9  ;;  %v4455_v52 = vmul.f32 %v9745_v47, %v9798_v29  ;;  %v4456_v30 = vmul.f32 %v9437_v4, %v9798_v29 }
 0x395   : > { %v9773_v1 = vadd.f32 %v4378_v16, %v4326_v55  ;;  %v5042_v16 = vmul.f32 %v9764_v32, %v5041_v41  ;;  %v4475_v55 = vmul.f32 %v9745_v47, %v4472_v20  ;;  %v4441_v10 = vrot.slane %v4433_v11, 1 }
 0x397   : > { %4992 = vrot.lane.b32.xlu1 %v4987_v48, %s6147_s23  ;;  %v4476_v48 = vmul.f32 %v9437_v4, %v4472_v20 }
 0x398   : > { %4990 = vrot.lane.b32.xlu0 %v4986_v25, %s6147_s23 }
 0x399   : > { %v4350_v36 = vpop.permute.xlu1 %4349  ;;  %5004 = vrot.lane.b32.xlu2 %v5000_v59, %s6147_s23 }
 0x39a   : > { %v9785_v31 = vadd.f32 %v4350_v36, %v4298_v15  ;;  %v4348_v49 = vpop.permute.xlu0 %4347  ;;  %v4423_v15 = vsel %vm305_vm0, %v4421_v42, %v4422_v43  ;;  %v4485_v36 = vrot.slane %v4476_v48, 1 }
 0x39b   : > { %v4353_v14 = vadd.f32 %v4348_v49, %v4297_v35  ;;  %v4510_v60 = vpop.permute.xlu2 %4509  ;;  %v4429_v46 = vadd.f32 %v4423_v15, %v9741_v38  ;;  %v4442_v38 = vrot.slane %v4434_v28, 1 }
 0x39d   : > { %v9792_v6 = vadd.f32 %v4404_v12, %v4353_v14  ;;  %v5043_v12 = vmul.f32 %v9757_v54, %v5041_v41  ;;  %v9875_v41 = vld [vmem:[%s6182_s22 + $0xa8] sm:$0x3]  ;;  %v4443_v17 = vsel %vm305_vm0, %v4441_v10, %v4442_v38 }
 0x39f   : > { %5018 = vrot.lane.b32.xlu1 %v5014_v63, %s6147_s23  ;;  %v4445_v63 = vrot.slane %v4436_v21, 1 }
 0x3a0   : > { %5006 = vrot.lane.b32.xlu0 %v5001_v22, %s6147_s23 }
 0x3a1   : > { %v4376_v51 = vpop.permute.xlu1 %4375  ;;  %5020 = vrot.lane.b32.xlu2 %v5015_v57, %s6147_s23 }
 0x3a2   : > { %v9807_v7 = vadd.f32 %v4376_v51, %v9697_v45  ;;  %v4364_v23 = vpop.permute.xlu0 %4363 }
 0x3a3   : > { %v4368_v18 = vadd.f32 %v4364_v23, %v9733_v24  ;;  %v4556_v45 = vpop.permute.xlu2 %4555  ;;  %v5055_v24 = vstv %s9804_s21  ;;  %v5071_v23 = vmul.f32 %v9757_v54, %v5069_v62  ;;  %s6049_s21 = sld [smem:[#allocation2 + $0x6b]] }
 0x3a4   : > { %v5056_v39 = vmul.f32 %v9764_v32, %v5055_v24  ;;  %v5057_v35 = vmul.f32 %v9757_v54, %v5055_v24 }
 0x3a5   : > { %v4430_v5 = vadd.f32 %v4426_v50, %v4368_v18  ;;  %v5070_v50 = vmul.f32 %v9764_v32, %v5069_v62  ;;  %v5178_v18 = vmul.f32 %v9764_v32, %v5177_v13  ;;  %v5225_v62 = vstv %s9887_s30  ;;  %s6028_s30 = sld [smem:[#allocation2 + $0x42]] }
 0x3a7   : > { %v9822_v58 = vadd.f32 %v4510_v60, %v4430_v5  ;;  %5034 = vrot.lane.b32.xlu1 %v5029_v0, %s6147_s23  ;;  %v9857_v60 = vld [vmem:[%s6182_s22 + $0xb8] sm:$0x3]  ;;  %v4473_v5 = vmul.f32 %v9738_v8, %v4472_v20  ;;  %v5186_v4 = vrot.slane %v5178_v18, 1 }
 0x3a8   : > { %5032 = vrot.lane.b32.xlu0 %v5028_v27, %s6147_s23  ;;  %v5179_v0 = vmul.f32 %v9857_v60, %v5177_v13 }
 0x3a9   : > { %v4392_v2 = vpop.permute.xlu1 %4391  ;;  %5046 = vrot.lane.b32.xlu2 %v5042_v16, %s6148_s29  ;;  %v9885_v16 = vld [vmem:[%s6182_s22 + $0xf8] sm:$0x3] }
 0x3aa   : > { %v9833_v33 = vadd.f32 %v4392_v2, %v9720_v19  ;;  %v4390_v53 = vpop.permute.xlu0 %4389  ;;  %v4435_v19 = vmul.f32 %v9745_v47, %v4432_v9  ;;  %v5180_v2 = vmul.f32 %v9757_v54, %v5177_v13  ;;  %v5181_v42 = vmul.f32 %v9885_v16, %v5177_v13 }
 0x3ab   : > { %v4395_v25 = vadd.f32 %v4390_v53, %v9767_v26  ;;  %v4582_v56 = vpop.permute.xlu2 %4581  ;;  %v4484_v26 = vrot.slane %v4475_v55, 1  ;;  %v5187_v29 = vrot.slane %v5179_v0, 1  ;;  %v4449_v9 = vadd.f32 %v4443_v17, %v9807_v7 }
 0x3ac   : > { %v4444_v14 = vrot.slane %v4435_v19, 1  ;;  %v4481_v53 = vrot.slane %v4473_v5, 1  ;;  %v5201_v55 = vstv %s9860_s28  ;;  %v5190_v19 = vrot.slane %v5181_v42, 1  ;;  %s6039_s28 = sld [smem:[#allocation2 + $0x21]] }
 0x3ad   : > { %v4469_v59 = vadd.f32 %v4463_v61, %v4395_v25  ;;  %v4486_v57 = vsel %vm305_vm0, %v4484_v26, %v4485_v36  ;;  %v5188_v21 = vsel %vm305_vm0, %v5186_v4, %v5187_v29  ;;  %v5204_v15 = vmul.f32 %v9757_v54, %v5201_v55 }
 0x3ae   : > { %v4446_v3 = vsel %vm305_vm0, %v4444_v14, %v4445_v63  ;;  %v5205_v11 = vmul.f32 %v9885_v16, %v5201_v55  ;;  %v5203_v28 = vmul.f32 %v9857_v60, %v5201_v55  ;;  %v9919_v63 = vstv %s9894_s3  ;;  %s6030_s3 = sld [smem:[#allocation2 + $0x8a]] }
 0x3af   : > { %v9850_v49 = vadd.f32 %v4556_v45, %v4469_v59  ;;  %5060 = vrot.lane.b32.xlu1 %v5056_v39, %s6148_s29  ;;  %v5083_v45 = vstv %s9846_s27  ;;  %v4450_v43 = vadd.f32 %v4446_v3, %v9773_v1  ;;  %v4464_v39 = vrot.slane %v4455_v52, 1  ;;  %s6029_s27 = sld [smem:[#allocation2 + $0x66]] }
 0x3b0   : > { %5048 = vrot.lane.b32.xlu0 %v5043_v12, %s6148_s29  ;;  %v5084_v37 = vmul.f32 %v9764_v32, %v5083_v45  ;;  %v4465_v12 = vrot.slane %v4456_v30, 1  ;;  %v5189_v1 = vrot.slane %v5180_v2, 1  ;;  %v5085_v7 = vmul.f32 %v9757_v54, %v5083_v45 }
 0x3b1   : > { %v4508_v22 = vpop.permute.xlu1 %4507  ;;  %5062 = vrot.lane.b32.xlu2 %v5057_v35, %s6148_s29  ;;  %v5202_v35 = vmul.f32 %v9764_v32, %v5201_v55  ;;  %v5227_v13 = vmul.f32 %v9857_v60, %v5225_v62  ;;  %v5214_v10 = vrot.slane %v5205_v11, 1  ;;  %v5249_v3 = vstv %s9900_s4  ;;  %s6041_s4 = sld [smem:[#allocation2 + $0x69]] }
 0x3b2   : > { %v9862_v34 = vadd.f32 %v4508_v22, %v4429_v46  ;;  %v4406_v40 = vpop.permute.xlu0 %4405  ;;  %v4466_v46 = vsel %vm305_vm0, %v4464_v39, %v4465_v12  ;;  %v5191_v14 = vsel %vm305_vm0, %v5189_v1, %v5190_v19  ;;  %v5226_v22 = vmul.f32 %v9764_v32, %v5225_v62 }
 0x3b3   : > { %v4410_v51 = vadd.f32 %v4406_v40, %v9785_v31  ;;  %v4628_v44 = vpop.permute.xlu2 %4627  ;;  %v4474_v31 = vmul.f32 %v9875_v41, %v4472_v20  ;;  %v4686_v0 = vmul.f32 %v9875_v41, %v9919_v63  ;;  %v5235_v5 = vrot.slane %v5227_v13, 1 }
 0x3b4   : > { %v5234_v45 = vrot.slane %v5226_v22, 1  ;;  %v5250_v17 = vmul.f32 %v9764_v32, %v5249_v3  ;;  %v5228_v2 = vmul.f32 %v9757_v54, %v5225_v62  ;;  %v5229_v42 = vmul.f32 %v9885_v16, %v5225_v62 }
 0x3b5   : > { %v4490_v27 = vadd.f32 %v4486_v57, %v4410_v51  ;;  %v4482_v61 = vrot.slane %v4474_v31, 1  ;;  %v5213_v57 = vrot.slane %v5204_v15, 1  ;;  %v4470_v51 = vadd.f32 %v4466_v46, %v9833_v33 }
 0x3b6   : > { %v4694_v4 = vrot.slane %v4686_v0, 2  ;;  %v5236_v29 = vsel %vm305_vm0, %v5234_v45, %v5235_v5  ;;  %v4704_v55 = vstv %s9925_s5  ;;  %v5237_v39 = vrot.slane %v5228_v2, 1  ;;  %s10266_s5 = sld [smem:[#allocation2 + $0x8d]] }
 0x3b7   : > { %v9889_v24 = vadd.f32 %v4582_v56, %v4490_v27  ;;  %5076 = vrot.lane.b32.xlu1 %v5071_v23, %s6148_s29  ;;  %v4483_v36 = vsel %vm305_vm0, %v4481_v53, %v4482_v61  ;;  %v5210_v23 = vrot.slane %v5202_v35, 1  ;;  %v5215_v33 = vsel %vm305_vm0, %v5213_v57, %v5214_v10 }
 0x3b8   : > { %5074 = vrot.lane.b32.xlu0 %v5070_v50, %s6148_s29  ;;  %v4489_v40 = vadd.f32 %v4483_v36, %v9792_v6  ;;  %v5211_v50 = vrot.slane %v5203_v28, 1  ;;  %v4685_v6 = vmul.f32 %v9738_v8, %v9919_v63  ;;  %v5258_v53 = vrot.slane %v5250_v17, 1 }
 0x3b9   : > { %v4534_v20 = vpop.permute.xlu1 %4533  ;;  %5088 = vrot.lane.b32.xlu2 %v5084_v37, %s6148_s29  ;;  %v5251_v37 = vmul.f32 %v9857_v60, %v5249_v3  ;;  %v5238_v12 = vrot.slane %v5229_v42, 1  ;;  %v4706_v22 = vmul.f32 %v9875_v41, %v4704_v55  ;;  %v5321_v17 = vstv %s9957_s11 }
 0x3ba   : > { %v9902_v48 = vadd.f32 %v4534_v20, %v4450_v43  ;;  %v4532_v25 = vpop.permute.xlu0 %4531  ;;  %v5212_v30 = vsel %vm305_vm0, %v5210_v23, %v5211_v50  ;;  %v4693_v43 = vrot.slane %v4685_v6, 2  ;;  %v5252_v20 = vmul.f32 %v9757_v54, %v5249_v3 }
 0x3bb   : > { %v4537_v56 = vadd.f32 %v4532_v25, %v4449_v9  ;;  %v4654_v59 = vpop.permute.xlu2 %4653  ;;  %v5253_v9 = vmul.f32 %v9885_v16, %v5249_v3  ;;  %v5259_v61 = vrot.slane %v5251_v37, 1  ;;  %v5297_v23 = vstv %s9948_s8 }
 0x3bc   : > { %v5261_v36 = vrot.slane %v5252_v20, 1  ;;  %v5299_v6 = vmul.f32 %v9857_v60, %v5297_v23 }
 0x3bd   : > { %v9909_v26 = vadd.f32 %v4628_v44, %v4537_v56  ;;  %v5273_v56 = vstv %s9929_s6  ;;  %v5262_v35 = vrot.slane %v5253_v9, 1  ;;  %v5260_v28 = vsel %vm305_vm0, %v5258_v53, %v5259_v61  ;;  %s10283_s6 = sld [smem:[#allocation2 + $0x45]] }
 0x3be   : > { %v5276_v62 = vmul.f32 %v9757_v54, %v5273_v56  ;;  %v5275_v57 = vmul.f32 %v9857_v60, %v5273_v56  ;;  %v5307_v20 = vrot.slane %v5299_v6, 1  ;;  %v4714_v9 = vrot.slane %v4706_v22, 2 }
 0x3bf   : > { %5192 = vrot.lane.b32.xlu1 %v5188_v21, %s6147_s23  ;;  %v4695_v21 = vsel %vm578_vm1, %v4693_v43, %v4694_v4  ;;  %v5263_v3 = vsel %vm305_vm0, %v5261_v36, %v5262_v35  ;;  %v5322_v61 = vmul.f32 %v9764_v32, %v5321_v17  ;;  %v5324_v35 = vmul.f32 %v9757_v54, %v5321_v17 }
 0x3c0   : > { %5090 = vrot.lane.b32.xlu0 %v5085_v7, %s6148_s29  ;;  %v4707_v7 = vmul.f32 %v9745_v47, %v4704_v55  ;;  %v5285_v0 = vrot.slane %v5276_v62, 1 }
 0x3c1   : > { %v4580_v38 = vpop.permute.xlu1 %4579  ;;  %5194 = vrot.lane.b32.xlu2 %v5191_v14, %s6147_s23  ;;  %v5277_v14 = vmul.f32 %v9885_v16, %v5273_v56 }
 0x3c2   : > { %v9931_v44 = vadd.f32 %v4580_v38, %v4489_v40  ;;  %v4558_v18 = vpop.permute.xlu0 %4557  ;;  %v5274_v40 = vmul.f32 %v9764_v32, %v5273_v56  ;;  %v4716_v10 = vrot.slane %v4707_v7, 2  ;;  %v5300_v56 = vmul.f32 %v9757_v54, %v5297_v23 }
 0x3c3   : > { %v4562_v27 = vadd.f32 %v4558_v18, %v4470_v51  ;;  %v4780_v31 = vpop.permute.xlu2 %4779  ;;  %v9983_v51 = vstv %s9946_s7  ;;  %v5298_v18 = vmul.f32 %v9764_v32, %v5297_v23  ;;  %v4687_v7 = vmul.f32 %v9745_v47, %v9919_v63 }
 0x3c4   : > { %v5282_v5 = vrot.slane %v5274_v40, 1  ;;  %v4745_v42 = vmul.f32 %v9738_v8, %v9983_v51  ;;  %v4746_v43 = vmul.f32 %v9875_v41, %v9983_v51 }
 0x3c5   : > { %v9941_v52 = vadd.f32 %v4654_v59, %v4562_v27  ;;  %v9966_v59 = vld [vmem:[%s6182_s22 + $0xe8] sm:$0x3]  ;;  %v5286_v27 = vrot.slane %v5277_v14, 1 }
 0x3c6   : > { %v4708_v15 = vmul.f32 %v9966_v59, %v4704_v55 }
 0x3c7   : > { %5218 = vrot.lane.b32.xlu1 %v5215_v33, %s6147_s23  ;;  %v5283_v33 = vrot.slane %v5275_v57, 1  ;;  %v5287_v53 = vsel %vm305_vm0, %v5285_v0, %v5286_v27 }
 0x3c8   : > { %5216 = vrot.lane.b32.xlu0 %v5212_v30, %s6147_s23  ;;  %v4717_v38 = vrot.slane %v4708_v15, 2  ;;  %v4688_v15 = vmul.f32 %v9966_v59, %v9919_v63  ;;  %v5309_v63 = vrot.slane %v5300_v56, 1  ;;  %v5473_v56 = vstv %s10030_s15 }
 0x3c9   : > { %v4606_v25 = vpop.permute.xlu1 %4605  ;;  %5240 = vrot.lane.b32.xlu2 %v5236_v29, %s6147_s23  ;;  %v5306_v29 = vrot.slane %v5298_v18, 1  ;;  %v5333_v18 = vrot.slane %v5324_v35, 1 }
 0x3ca   : > { %v9960_v1 = vadd.f32 %v4606_v25, %v9822_v58  ;;  %v4604_v19 = vpop.permute.xlu0 %4603  ;;  %v9971_v58 = vmul.f32 %v9738_v8, %v4704_v55  ;;  %v4718_v2 = vsel %vm578_vm1, %v4716_v10, %v4717_v38  ;;  %v5323_v55 = vmul.f32 %v9857_v60, %v5321_v17 }
 0x3cb   : > { %v4609_v11 = vadd.f32 %v4604_v19, %v9862_v34  ;;  %v4806_v46 = vpop.permute.xlu2 %4805  ;;  %v5239_v34 = vsel %vm305_vm0, %v5237_v39, %v5238_v12  ;;  %v4724_v25 = vstv %s9977_s12  ;;  %v5284_v12 = vsel %vm305_vm0, %v5282_v5, %v5283_v33 }
 0x3cc   : > { %v4713_v37 = vrot.slane %v9971_v58, 2  ;;  %v5301_v19 = vmul.f32 %v9885_v16, %v5297_v23  ;;  %v5308_v36 = vsel %vm305_vm0, %v5306_v29, %v5307_v20  ;;  %v5325_v58 = vmul.f32 %v9885_v16, %v5321_v17 }
 0x3cd   : > { %v4701_v13 = vadd.f32 %v4695_v21, %v4609_v11  ;;  %v4753_v21 = vrot.slane %v4745_v42, 2  ;;  %v5331_v62 = vrot.slane %v5323_v55, 1  ;;  %v4727_v14 = vmul.f32 %v9745_v47, %v4724_v25 }
 0x3ce   : > { %v4696_v38 = vrot.slane %v4687_v7, 2  ;;  %v4697_v23 = vrot.slane %v4688_v15, 2  ;;  %v5334_v6 = vrot.slane %v5325_v58, 1  ;;  %v4728_v0 = vmul.f32 %v9966_v59, %v4724_v25 }
 0x3cf   : > { %v9986_v50 = vadd.f32 %v4780_v31, %v4701_v13  ;;  %5264 = vrot.lane.b32.xlu1 %v5260_v28, %s6147_s23  ;;  %v5330_v28 = vrot.slane %v5322_v61, 1  ;;  %v5310_v13 = vrot.slane %v5301_v19, 1  ;;  %v4736_v33 = vrot.slane %v4727_v14, 2 }
 0x3d0   : > { %5242 = vrot.lane.b32.xlu0 %v5239_v34, %s6147_s23  ;;  %v5345_v34 = vstv %s9995_s13  ;;  %v4725_v42 = vmul.f32 %v9738_v8, %v4724_v25  ;;  %v5335_v20 = vsel %vm305_vm0, %v5333_v18, %v5334_v6 }
 0x3d1   : > { %v4652_v45 = vpop.permute.xlu1 %4651  ;;  %5266 = vrot.lane.b32.xlu2 %v5263_v3, %s6147_s23  ;;  %v5332_v27 = vsel %vm305_vm0, %v5330_v28, %v5331_v62  ;;  %v5349_v5 = vmul.f32 %v9885_v16, %v5345_v34  ;;  %v5474_v28 = vmul.f32 %v9764_v32, %v5473_v56  ;;  %v5475_v62 = vmul.f32 %v9857_v60, %v5473_v56 }
 0x3d2   : > { %v9998_v31 = vadd.f32 %v4652_v45, %v9850_v49  ;;  %v4630_v30 = vpop.permute.xlu0 %4629 }
 0x3d3   : > { %v4634_v4 = vadd.f32 %v4630_v30, %v9902_v48  ;;  %v4852_v49 = vpop.permute.xlu2 %4851  ;;  %v4754_v48 = vrot.slane %v4746_v43, 2  ;;  %v5346_v30 = vmul.f32 %v9764_v32, %v5345_v34  ;;  %v4726_v43 = vmul.f32 %v9875_v41, %v4724_v25 }
 0x3d4   : > { %v5358_v8 = vrot.slane %v5349_v5, 1  ;;  %v5482_v18 = vrot.slane %v5474_v28, 2  ;;  %v5483_v6 = vrot.slane %v5475_v62, 2 }
 0x3d5   : > { %v4722_v39 = vadd.f32 %v4718_v2, %v4634_v4  ;;  %v4755_v10 = vsel %vm578_vm1, %v4753_v21, %v4754_v48  ;;  %v4698_v2 = vsel %vm578_vm1, %v4696_v38, %v4697_v23  ;;  %v5449_v4 = vstv %s10018_s14 }
 0x3d6   : > { %v4702_v25 = vadd.f32 %v4698_v2, %v9960_v1  ;;  %v4733_v48 = vrot.slane %v4725_v42, 2  ;;  %v4734_v7 = vrot.slane %v4726_v43, 2  ;;  %v5476_v38 = vmul.f32 %v9757_v54, %v5473_v56 }
 0x3d7   : > { %v10020_v11 = vadd.f32 %v4806_v46, %v4722_v39  ;;  %5290 = vrot.lane.b32.xlu1 %v5287_v53, %s6148_s29  ;;  %v4715_v46 = vsel %vm578_vm1, %v4713_v37, %v4714_v9  ;;  %v5311_v37 = vsel %vm305_vm0, %v5309_v63, %v5310_v13  ;;  %v5450_v9 = vmul.f32 %v9764_v32, %v5449_v4 }
 0x3d8   : > { %5288 = vrot.lane.b32.xlu0 %v5284_v12, %s6148_s29  ;;  %v5451_v53 = vmul.f32 %v9857_v60, %v5449_v4  ;;  %v4721_v61 = vadd.f32 %v4715_v46, %v9909_v26  ;;  %v4737_v39 = vrot.slane %v4728_v0, 2  ;;  %v5452_v63 = vmul.f32 %v9757_v54, %v5449_v4 }
 0x3d9   : > { %v4678_v22 = vpop.permute.xlu1 %4677  ;;  %5312 = vrot.lane.b32.xlu2 %v5308_v36, %s6148_s29  ;;  %v5458_v26 = vrot.slane %v5450_v9, 2  ;;  %v5453_v13 = vmul.f32 %v9885_v16, %v5449_v4  ;;  %v4735_v46 = vsel %vm578_vm1, %v4733_v48, %v4734_v7  ;;  %v5477_v23 = vmul.f32 %v9885_v16, %v5473_v56 }
 0x3da   : > { %v10033_v40 = vadd.f32 %v4678_v22, %v9889_v24  ;;  %v4676_v57 = vpop.permute.xlu0 %4675  ;;  %v5348_v24 = vmul.f32 %v9757_v54, %v5345_v34  ;;  %v5459_v36 = vrot.slane %v5451_v53, 2  ;;  %v4738_v58 = vsel %vm578_vm1, %v4736_v33, %v4737_v39 }
 0x3db   : > { %v4681_v3 = vadd.f32 %v4676_v57, %v9931_v44  ;;  %v4878_v45 = vpop.permute.xlu2 %4877  ;;  %v5347_v44 = vmul.f32 %v9857_v60, %v5345_v34  ;;  %v4747_v34 = vmul.f32 %v9745_v47, %v9983_v51  ;;  %v4748_v57 = vmul.f32 %v9966_v59, %v9983_v51 }
 0x3dc   : > { %v5357_v55 = vrot.slane %v5348_v24, 1  ;;  %v4741_v0 = vadd.f32 %v4735_v46, %v9998_v31  ;;  %v5461_v59 = vrot.slane %v5452_v63, 2  ;;  %v5462_v51 = vrot.slane %v5453_v13, 2 }
 0x3dd   : > { %v4761_v17 = vadd.f32 %v4755_v10, %v4681_v3  ;;  %v5355_v12 = vrot.slane %v5347_v44, 1  ;;  %v5460_v10 = vsel %vm578_vm1, %v5458_v26, %v5459_v36  ;;  %v4742_v3 = vadd.f32 %v4738_v58, %v9941_v52 }
 0x3de   : > { %v5359_v35 = vsel %vm305_vm0, %v5357_v55, %v5358_v8  ;;  %v4756_v5 = vrot.slane %v4747_v34, 2  ;;  %v4757_v33 = vrot.slane %v4748_v57, 2  ;;  %v5485_v52 = vrot.slane %v5476_v38, 2 }
 0x3df   : > { %v10049_v29 = vadd.f32 %v4852_v49, %v4761_v17  ;;  %5336 = vrot.lane.b32.xlu1 %v5332_v27, %s6148_s29  ;;  %v5354_v49 = vrot.slane %v5346_v30, 1  ;;  %v5497_v27 = vstv %s10059_s16  ;;  %v5484_v30 = vsel %vm578_vm1, %v5482_v18, %v5483_v6 }
 0x3e0   : > { %5314 = vrot.lane.b32.xlu0 %v5311_v37, %s6148_s29  ;;  %v5486_v37 = vrot.slane %v5477_v23, 2  ;;  %v5500_v31 = vmul.f32 %v9757_v54, %v5497_v27  ;;  %v5501_v2 = vmul.f32 %v9885_v16, %v5497_v27  ;;  %v5463_v43 = vsel %vm578_vm1, %v5461_v59, %v5462_v51 }
 0x3e1   : > { %v4804_v41 = vpop.permute.xlu1 %4803  ;;  %5338 = vrot.lane.b32.xlu2 %v5335_v20, %s6148_s29  ;;  %v5356_v22 = vsel %vm305_vm0, %v5354_v49, %v5355_v12  ;;  %v5498_v4 = vmul.f32 %v9764_v32, %v5497_v27  ;;  %v5499_v20 = vmul.f32 %v9857_v60, %v5497_v27  ;;  %v4758_v9 = vsel %vm578_vm1, %v4756_v5, %v4757_v33 }
 0x3e2   : > { %v10061_v19 = vadd.f32 %v4804_v41, %v4721_v61  ;;  %v4782_v21 = vpop.permute.xlu0 %4781  ;;  %v5521_v53 = vstv %s10078_s17  ;;  %v5487_v61 = vsel %vm578_vm1, %v5485_v52, %v5486_v37  ;;  %v5509_v39 = vrot.slane %v5500_v31, 2 }
 0x3e3   : > { %v4786_v15 = vadd.f32 %v4782_v21, %v4702_v25  ;;  %v4924_v1 = vpop.permute.xlu2 %4923  ;;  %v5522_v55 = vmul.f32 %v9764_v32, %v5521_v53  ;;  %v5523_v8 = vmul.f32 %v9857_v60, %v5521_v53  ;;  %v5510_v41 = vrot.slane %v5501_v2, 2 }
 0x3e4   : > { %v4762_v49 = vadd.f32 %v4758_v9, %v10033_v40  ;;  %v5506_v12 = vrot.slane %v5498_v4, 2  ;;  %v5507_v56 = vrot.slane %v5499_v20, 2  ;;  %v5545_v21 = vstv %s10088_s18 }
 0x3e5   : > { %v10068_v14 = vadd.f32 %v4878_v45, %v4786_v15  ;;  %v5530_v26 = vrot.slane %v5522_v55, 2  ;;  %v5531_v36 = vrot.slane %v5523_v8, 2  ;;  %v5547_v40 = vmul.f32 %v9857_v60, %v5545_v21 }
 0x3e6   : > { %v5508_v62 = vsel %vm578_vm1, %v5506_v12, %v5507_v56  ;;  %v4967_v63 = vstv %s10102_s19  ;;  %v5548_v46 = vmul.f32 %v9757_v54, %v5545_v21  ;;  %v5549_v34 = vmul.f32 %v9885_v16, %v5545_v21 }
 0x3e7   : > { %5362 = vrot.lane.b32.xlu1 %v5359_v35, %s6148_s29  ;;  %v5511_v35 = vsel %vm578_vm1, %v5509_v39, %v5510_v41  ;;  %v5532_v13 = vsel %vm578_vm1, %v5530_v26, %v5531_v36  ;;  %v4968_v23 = vmul.f32 %v9764_v32, %v4967_v63  ;;  %v5569_v6 = vstv %s6048_s20 }
 0x3e8   : > { %5360 = vrot.lane.b32.xlu0 %v5356_v22, %s6148_s29  ;;  %v5525_v22 = vmul.f32 %v9885_v16, %v5521_v53  ;;  %v5557_v51 = vrot.slane %v5548_v46, 2  ;;  %v5558_v27 = vrot.slane %v5549_v34, 2  ;;  %v5572_v33 = vmul.f32 %v9757_v54, %v5569_v6 }
 0x3e9   : > { %v4830_v47 = vpop.permute.xlu1 %4829  ;;  %5464 = vrot.lane.b32.xlu2 %v5460_v10, %s6147_s23  ;;  %v5555_v10 = vrot.slane %v5547_v40, 2  ;;  %v5570_v37 = vmul.f32 %v9764_v32, %v5569_v6  ;;  %v4973_v4 = vstv %s10132_s25  ;;  %v5617_v41 = vstv %s6050_s26 }
 0x3ea   : > { %v10090_v45 = vadd.f32 %v4830_v47, %v4742_v3  ;;  %v4828_v24 = vpop.permute.xlu0 %4827  ;;  %v5534_v18 = vrot.slane %v5525_v22, 2  ;;  %v5559_v31 = vsel %vm578_vm1, %v5557_v51, %v5558_v27  ;;  %v5581_v20 = vrot.slane %v5572_v33, 2 }
 0x3eb   : > { %v4833_v17 = vadd.f32 %v4828_v24, %v4741_v0  ;;  %v4950_v44 = vpop.permute.xlu2 %4949  ;;  %v4975_v55 = vmul.f32 %v9757_v54, %v4973_v4  ;;  %v5578_v8 = vrot.slane %v5570_v37, 2  ;;  %v5620_v22 = vmul.f32 %v9757_v54, %v5617_v41 }
 0x3ec   : > { %v4969_v33 = vmul.f32 %v9757_v54, %v4967_v63 }
 0x3ed   : > { %v10096_v42 = vadd.f32 %v4924_v1, %v4833_v17  ;;  %v5546_v1 = vmul.f32 %v9764_v32, %v5545_v21  ;;  %v5573_v17 = vmul.f32 %v9885_v16, %v5569_v6 }
 0x3ef   : > { %5488 = vrot.lane.b32.xlu1 %v5484_v30, %s6147_s23  ;;  %v5554_v57 = vrot.slane %v5546_v1, 2  ;;  %v5571_v30 = vmul.f32 %v9857_v60, %v5569_v6  ;;  %v5582_v9 = vrot.slane %v5573_v17, 2 }
 0x3f0   : > { %5466 = vrot.lane.b32.xlu0 %v5463_v43, %s6147_s23 }
 0x3f1   : > { %v4876_v25 = vpop.permute.xlu1 %4875  ;;  %5490 = vrot.lane.b32.xlu2 %v5487_v61, %s6147_s23  ;;  %v5556_v24 = vsel %vm578_vm1, %v5554_v57, %v5555_v10  ;;  %v5579_v39 = vrot.slane %v5571_v30, 2 }
 0x3f2   : > { %v10113_v48 = vadd.f32 %v4876_v25, %v9986_v50  ;;  %v4854_v7 = vpop.permute.xlu0 %4853  ;;  %v5524_v50 = vmul.f32 %v9757_v54, %v5521_v53  ;;  %v4961_v53 = vstv %s10129_s24 }
 0x3f3   : > { %v4858_v15 = vadd.f32 %v4854_v7, %v4762_v49  ;;  %v5005_v58 = vpop.permute.xlu2 %5004  ;;  %v4963_v56 = vmul.f32 %v9757_v54, %v4961_v53  ;;  %v4962_v26 = vmul.f32 %v9764_v32, %v4961_v53 }
 0x3f4   : > { %v5533_v3 = vrot.slane %v5524_v50, 2 }
 0x3f5   : > { %v10119_v28 = vadd.f32 %v4950_v44, %v4858_v15  ;;  %v5593_v44 = vstv %s6049_s21  ;;  %v5583_v15 = vsel %vm578_vm1, %v5581_v20, %v5582_v9  ;;  %v4965_v46 = vadd.f32 %v4963_v56, %v10068_v14 }
 0x3f6   : > { %v5594_v2 = vmul.f32 %v9764_v32, %v5593_v44  ;;  %v5595_v43 = vmul.f32 %v9857_v60, %v5593_v44  ;;  %v5596_v40 = vmul.f32 %v9757_v54, %v5593_v44  ;;  %v4974_v14 = vmul.f32 %v9764_v32, %v4973_v4 }
 0x3f7   : > { %5514 = vrot.lane.b32.xlu1 %v5511_v35, %s6147_s23  ;;  %v5618_v35 = vmul.f32 %v9764_v32, %v5617_v41 }
 0x3f8   : > { %5512 = vrot.lane.b32.xlu0 %v5508_v62, %s6147_s23  ;;  %v5602_v21 = vrot.slane %v5594_v2, 2  ;;  %v5603_v7 = vrot.slane %v5595_v43, 2  ;;  %v10196_v43 = vld [vmem:[%s6182_s22 + $0xf0] sm:$0xff] }
 0x3f9   : > { %v4902_v38 = vpop.permute.xlu1 %4901  ;;  %5536 = vrot.lane.b32.xlu2 %v5532_v13, %s6147_s23  ;;  %v5621_v13 = vmul.f32 %v9885_v16, %v5617_v41  ;;  %v5626_v34 = vrot.slane %v5618_v35, 2 }
 0x3fa   : > { %v10138_v47 = vadd.f32 %v4902_v38, %v10020_v11  ;;  %v4900_v0 = vpop.permute.xlu0 %4899  ;;  %v5535_v11 = vsel %vm578_vm1, %v5533_v3, %v5534_v18  ;;  %v5604_v50 = vsel %vm578_vm1, %v5602_v21, %v5603_v7  ;;  %v4964_v38 = vadd.f32 %v4962_v26, %v10113_v48 }
 0x3fb   : > { %v4905_v59 = vadd.f32 %v4900_v0, %v10061_v19  ;;  %v5021_v5 = vpop.permute.xlu2 %5020  ;;  %v5630_v51 = vrot.slane %v5621_v13, 2 }
 0x3fc   : > { %v4971_v37 = vadd.f32 %v4969_v33, %v10138_v47 }
 0x3fd   : > { %v4970_v52 = vadd.f32 %v4968_v23, %v4905_v59  ;;  %v5605_v23 = vrot.slane %v5596_v40, 2  ;;  %v5629_v59 = vrot.slane %v5620_v22, 2 }
 0x3ff   : > { %v10148_v19 = vadd.f32 %v5005_v58, %v4970_v52  ;;  %5560 = vrot.lane.b32.xlu1 %v5556_v24, %s6148_s29  ;;  %v5619_v58 = vmul.f32 %v9857_v60, %v5617_v41  ;;  %v5631_v17 = vsel %vm578_vm1, %v5629_v59, %v5630_v51  ;;  %v4976_v52 = vadd.f32 %v4974_v14, %v10096_v42 }
 0x400   : > { %5538 = vrot.lane.b32.xlu0 %v5535_v11, %s6147_s23  ;;  %s6018_s23 = sld [smem:[#allocation2 + $0x87]] }
 0x401   : > { %v4948_v61 = vpop.permute.xlu1 %4947  ;;  %5562 = vrot.lane.b32.xlu2 %v5559_v31, %s6148_s29  ;;  %v5627_v57 = vrot.slane %v5619_v58, 2 }
 0x402   : > { %v4953_v25 = vadd.f32 %v4948_v61, %v10049_v29  ;;  %v4926_v49 = vpop.permute.xlu0 %4925  ;;  %v5580_v29 = vsel %vm578_vm1, %v5578_v8, %v5579_v39 }
 0x403   : > { %v4930_v12 = vadd.f32 %v4926_v49, %v10090_v45  ;;  %v5047_v36 = vpop.permute.xlu2 %5046  ;;  %v5597_v45 = vmul.f32 %v9885_v16, %v5593_v44  ;;  %v5628_v27 = vsel %vm578_vm1, %v5626_v34, %v5627_v57  ;;  %v10240_v57 = vstv %s6029_s27 }
 0x404   : > { %v5139_v51 = vmul.f32 %v9857_v60, %v10240_v57 }
 0x405   : > { %v4977_v1 = vadd.f32 %v4975_v55, %v4930_v12  ;;  %v5606_v3 = vrot.slane %v5597_v45, 2 }
 0x406   : > { %v4979_v30 = vstv %s6018_s23 }
 0x407   : > { %v5025_v62 = vadd.f32 %v5021_v5, %v4977_v1  ;;  %5586 = vrot.lane.b32.xlu1 %v5583_v15, %s6148_s29  ;;  %v5607_v48 = vsel %vm578_vm1, %v5605_v23, %v5606_v3  ;;  %v4981_v54 = vmul.f32 %v10196_v43, %v4979_v30  ;;  %v4980_v20 = vmul.f32 %v9764_v32, %v4979_v30 }
 0x408   : > { %5584 = vrot.lane.b32.xlu0 %v5580_v29, %s6148_s29  ;;  %v5369_v3 = vstv %s6039_s28  ;;  %v5117_v30 = vstv %s6028_s30 }
 0x409   : > { %v4993_v10 = vpop.permute.xlu1 %4992  ;;  %5608 = vrot.lane.b32.xlu2 %v5604_v50, %s6148_s29  ;;  %v4983_v42 = vadd.f32 %v4981_v54, %v10119_v28  ;;  %v4982_v47 = vadd.f32 %v4980_v20, %v4953_v25 }
 0x40a   : > { %v10176_v18 = vadd.f32 %v4993_v10, %v4965_v46  ;;  %v4991_v6 = vpop.permute.xlu0 %4990 }
 0x40b   : > { %v4996_v0 = vadd.f32 %v4991_v6, %v4964_v38  ;;  %v5063_v24 = vpop.permute.xlu2 %5062 }
 0x40d   : > { %v10181_v5 = vadd.f32 %v5047_v36, %v4996_v0  ;;  %v10249_v0 = vld [vmem:[%s6182_s22 + $0xb0] sm:$0xff] }
 0x40e   : > { %v5138_v59 = vmul.f32 %v10249_v0, %v10240_v57 }
 0x40f   : > { %5632 = vrot.lane.b32.xlu1 %v5628_v27, %s6148_s29 }
 0x410   : > { %5610 = vrot.lane.b32.xlu0 %v5607_v48, %s6148_s29 }
 0x411   : > { %v5019_v11 = vpop.permute.xlu1 %5018  ;;  %5634 = vrot.lane.b32.xlu2 %v5631_v17, %s6148_s29  ;;  %s6027_s29 = sld [smem:[#allocation2 + $0x1e]]  ;;  %v5146_v17 = vrot.slane %v5138_v59, 1 }
 0x412   : > { %v10192_v44 = vadd.f32 %v5019_v11, %v4976_v52  ;;  %v5007_v31 = vpop.permute.xlu0 %5006  ;;  %v5147_v52 = vrot.slane %v5139_v51, 1  ;;  %v5370_v51 = vmul.f32 %v10249_v0, %v5369_v3 }
 0x413   : > { %v5011_v2 = vadd.f32 %v5007_v31, %v4971_v37  ;;  %v5089_v63 = vpop.permute.xlu2 %5088 }
 0x415   : > { %v10199_v4 = vadd.f32 %v5063_v24, %v5011_v2  ;;  %v5372_v24 = vmul.f32 %v10196_v43, %v5369_v3 }
 0x417   : > { %v5381_v2 = vrot.slane %v5372_v24, 2 }
 0x419   : > { %v5035_v9 = vpop.permute.xlu1 %5034 }
 0x41a   : > { %v10203_v53 = vadd.f32 %v5035_v9, %v4983_v42  ;;  %v5033_v61 = vpop.permute.xlu0 %5032  ;;  %v5157_v9 = vstv %s6030_s3 }
 0x41b   : > { %v5038_v55 = vadd.f32 %v5033_v61, %v4982_v47  ;;  %v5195_v8 = vpop.permute.xlu2 %5194  ;;  %v5148_v47 = vsel %vm305_vm0, %v5146_v17, %v5147_v52  ;;  %v5160_v61 = vmul.f32 %v10196_v43, %v5157_v9 }
 0x41d   : > { %v10205_v39 = vadd.f32 %v5089_v63, %v5038_v55  ;;  %v5161_v55 = vmul.f32 %v9885_v16, %v5157_v9 }
 0x421   : > { %v5061_v41 = vpop.permute.xlu1 %5060 }
 0x422   : > { %v10208_v49 = vadd.f32 %v5061_v41, %v10148_v19  ;;  %v5049_v12 = vpop.permute.xlu0 %5048  ;;  %v5120_v41 = vmul.f32 %v10196_v43, %v5117_v30 }
 0x423   : > { %v10210_v56 = vpop.permute.xlu2 %5240  ;;  %v5053_v23 = vadd.f32 %v5049_v12, %v10176_v18  ;;  %v5373_v18 = vmul.f32 %v9885_v16, %v5369_v3 }
 0x424   : > { %v5129_v59 = vrot.slane %v5120_v41, 1 }
 0x425   : > { %v5382_v54 = vrot.slane %v5373_v18, 2 }
 0x429   : > { %v5077_v21 = vpop.permute.xlu1 %5076 }
 0x42a   : > { %v10212_v32 = vadd.f32 %v5077_v21, %v5025_v62  ;;  %v5075_v28 = vpop.permute.xlu0 %5074  ;;  %v5097_v62 = vstv %s6027_s29  ;;  %v10272_v21 = vstv %s6041_s4 }
 0x42b   : > { %v10214_v7 = vpop.permute.xlu2 %5266  ;;  %v5100_v50 = vmul.f32 %v10196_v43, %v5097_v62  ;;  %v5101_v22 = vmul.f32 %v9885_v16, %v5097_v62  ;;  %v5098_v14 = vmul.f32 %v10249_v0, %v5097_v62  ;;  %v5099_v33 = vmul.f32 %v9857_v60, %v5097_v62 }
 0x42c   : > { %v5080_v20 = vadd.f32 %v5075_v28, %v10192_v44  ;;  %v5121_v62 = vmul.f32 %v9885_v16, %v5117_v30  ;;  %v5410_v28 = vmul.f32 %v10249_v0, %v10272_v21 }
 0x42d   : > { %v5109_v46 = vrot.slane %v5100_v50, 1  ;;  %v5110_v34 = vrot.slane %v5101_v22, 1  ;;  %v5106_v37 = vrot.slane %v5098_v14, 1  ;;  %v5107_v42 = vrot.slane %v5099_v33, 1 }
 0x42e   : > { %v5411_v50 = vmul.f32 %v9857_v60, %v10272_v21  ;;  %v5154_v22 = vadd.f32 %v5148_v47, %v5080_v20  ;;  %v5371_v14 = vmul.f32 %v9857_v60, %v5369_v3  ;;  %v5158_v33 = vmul.f32 %v10249_v0, %v5157_v9 }
 0x42f   : > { %v5111_v6 = vsel %vm305_vm0, %v5109_v46, %v5110_v34  ;;  %v5108_v46 = vsel %vm305_vm0, %v5106_v37, %v5107_v42  ;;  %v5169_v34 = vrot.slane %v5160_v61, 1  ;;  %v5418_v52 = vrot.slane %v5410_v28, 2 }
 0x430   : > { %v5115_v48 = vadd.f32 %v5111_v6, %v5053_v23  ;;  %v5170_v23 = vrot.slane %v5161_v55, 1  ;;  %v5119_v6 = vmul.f32 %v9857_v60, %v5117_v30  ;;  %v5419_v37 = vrot.slane %v5411_v50, 2 }
 0x431   : > { %v10216_v25 = vpop.permute.xlu1 %5192  ;;  %v5114_v20 = vadd.f32 %v5108_v46, %v10181_v5  ;;  %v5378_v47 = vrot.slane %v5370_v51, 2  ;;  %v5379_v61 = vrot.slane %v5371_v14, 2 }
 0x432   : > { %v10218_v15 = vpop.permute.xlu0 %5090  ;;  %v5199_v63 = vadd.f32 %v5195_v8, %v5115_v48  ;;  %v5383_v8 = vsel %vm578_vm1, %v5381_v2, %v5382_v54  ;;  %v5130_v48 = vrot.slane %v5121_v62, 1  ;;  %v5246_v2 = vadd.f32 %v10210_v56, %v5154_v22 }
 0x433   : > { %v10220_v26 = vpop.permute.xlu2 %5312  ;;  %v5429_v54 = vstv %s10266_s5  ;;  %v5171_v60 = vsel %vm305_vm0, %v5169_v34, %v5170_v23  ;;  %v5127_v42 = vrot.slane %v5119_v6, 1  ;;  %v5198_v56 = vadd.f32 %v10216_v25, %v5114_v20 }
 0x434   : > { %v5131_v62 = vsel %vm305_vm0, %v5129_v59, %v5130_v48  ;;  %v5166_v22 = vrot.slane %v5158_v33, 1  ;;  %v5380_v46 = vsel %vm578_vm1, %v5378_v47, %v5379_v61  ;;  %v5141_v59 = vmul.f32 %v9885_v16, %v10240_v57 }
 0x439   : > { %v10222_v36 = vpop.permute.xlu1 %5218 }
 0x43a   : > { %v10224_v35 = vpop.permute.xlu0 %5216 }
 0x43b   : > { %v10226_v19 = vpop.permute.xlu2 %5338 }
 0x441   : > { %v10228_v58 = vpop.permute.xlu1 %5264 }
 0x442   : > { %v10230_v1 = vpop.permute.xlu0 %5242 }
 0x443   : > { %v10232_v29 = vpop.permute.xlu2 %5464 }
 0x449   : > { %v5291_v40 = vpop.permute.xlu1 %5290 }
 0x44a   : > { %v10234_v45 = vpop.permute.xlu0 %5288  ;;  %v5295_v12 = vadd.f32 %v5291_v40, %v5199_v63  ;;  %v5118_v40 = vmul.f32 %v10249_v0, %v5117_v30  ;;  %v5095_v30 = vadd.f32 %v10218_v15, %v10203_v53  ;;  %v5420_v53 = vsel %vm578_vm1, %v5418_v52, %v5419_v37 }
 0x44b   : > { %v10238_v13 = vpop.permute.xlu2 %5490  ;;  %v5432_v15 = vmul.f32 %v10196_v43, %v5429_v54  ;;  %v5135_v52 = vadd.f32 %v5131_v62, %v10199_v4 }
 0x44c   : > { %v5387_v18 = vadd.f32 %v5383_v8, %v5295_v12  ;;  %v5126_v3 = vrot.slane %v5118_v40, 1  ;;  %v5433_v12 = vmul.f32 %v9885_v16, %v5429_v54  ;;  %v5175_v5 = vadd.f32 %v5171_v60, %v5095_v30  ;;  %v6117_v8 = vld [vmem:[%s6182_s22 + $0xb8] sm:$0x3] }
 0x44d   : > { %v5159_v28 = vmul.f32 %v6117_v8, %v5157_v9  ;;  %v5140_v9 = vmul.f32 %v10196_v43, %v10240_v57  ;;  %v5441_v14 = vrot.slane %v5432_v15, 2  ;;  %v5223_v60 = vadd.f32 %v10222_v36, %v5135_v52 }
 0x44e   : > { %v5128_v50 = vsel %vm305_vm0, %v5126_v3, %v5127_v42  ;;  %v5430_v36 = vmul.f32 %v10249_v0, %v5429_v54 }
 0x44f   : > { %v5134_v37 = vadd.f32 %v5128_v50, %v10208_v49  ;;  %v5149_v3 = vrot.slane %v5140_v9, 1 }
 0x451   : > { %v10242_v10 = vpop.permute.xlu1 %5336  ;;  %v5222_v47 = vadd.f32 %v10224_v35, %v5134_v37 }
 0x452   : > { %v10244_v38 = vpop.permute.xlu0 %5314  ;;  %v5342_v55 = vadd.f32 %v10242_v10, %v5246_v2  ;;  %v5294_v10 = vadd.f32 %v10234_v45, %v5198_v56  ;;  %v5442_v45 = vrot.slane %v5433_v12, 2  ;;  %v5167_v2 = vrot.slane %v5159_v28, 1 }
 0x453   : > { %v10255_v27 = vpop.permute.xlu2 %5536  ;;  %v5431_v56 = vmul.f32 %v6117_v8, %v5429_v54  ;;  %v5318_v28 = vadd.f32 %v10220_v26, %v5222_v47  ;;  %v6118_v54 = vld [vmem:[%s6182_s22 + $0xf8] sm:$0x3] }
 0x454   : > { %v5426_v6 = vadd.f32 %v5420_v53, %v5342_v55  ;;  %v5386_v30 = vadd.f32 %v5380_v46, %v5294_v10  ;;  %v5443_v42 = vsel %vm578_vm1, %v5441_v14, %v5442_v45  ;;  %v5168_v4 = vsel %vm305_vm0, %v5166_v22, %v5167_v2 }
 0x455   : > { %v5174_v50 = vadd.f32 %v5168_v4, %v10205_v39 }
 0x456   : > { %v5470_v49 = vadd.f32 %v10232_v29, %v5386_v30 }
 0x457   : > { %v5270_v46 = vadd.f32 %v10228_v58, %v5174_v50 }
 0x459   : > { %v10261_v11 = vpop.permute.xlu1 %5362 }
 0x45a   : > { %v10263_v31 = vpop.permute.xlu0 %5360 }
 0x45b   : > { %v5563_v44 = vpop.permute.xlu2 %5562 }
 0x461   : > { %v10287_v24 = vpop.permute.xlu1 %5488 }
 0x462   : > { %v5467_v17 = vpop.permute.xlu0 %5466 }
 0x463   : > { %v5471_v63 = vadd.f32 %v5467_v17, %v5387_v18  ;;  %v5609_v25 = vpop.permute.xlu2 %5608  ;;  %v5271_v18 = vadd.f32 %v10214_v7, %v5175_v5  ;;  %v5150_v7 = vrot.slane %v5141_v59, 1 }
 0x465   : > { %v5567_v41 = vadd.f32 %v5563_v44, %v5471_v63  ;;  %v5389_v44 = vstv %s10283_s6  ;;  %v5151_v35 = vsel %vm305_vm0, %v5149_v3, %v5150_v7 }
 0x466   : > { %v5392_v34 = vmul.f32 %v10196_v43, %v5389_v44  ;;  %v5393_v23 = vmul.f32 %v9885_v16, %v5389_v44  ;;  %v5390_v48 = vmul.f32 %v10249_v0, %v5389_v44  ;;  %v5391_v33 = vmul.f32 %v6117_v8, %v5389_v44 }
 0x467   : > { %6052 = vst.msk [vmem:[%s8522_s10 + $0x48] sm:$0xff] %vm2896_vm2, %v5567_v41  ;;  %v5367_v16 = vadd.f32 %v10261_v11, %v5271_v18  ;;  %v5319_v41 = vadd.f32 %v10244_v38, %v5223_v60  ;;  %v5412_v0 = vmul.f32 %v10196_v43, %v10272_v21  ;;  %v5413_v8 = vmul.f32 %v6118_v54, %v10272_v21 }
 0x468   : > { %v5401_v63 = vrot.slane %v5392_v34, 2  ;;  %v5402_v20 = vrot.slane %v5393_v23, 2  ;;  %v5398_v61 = vrot.slane %v5390_v48, 2  ;;  %v5399_v55 = vrot.slane %v5391_v33, 2 }
 0x469   : > { %v10311_v40 = vpop.permute.xlu1 %5514  ;;  %v5447_v15 = vadd.f32 %v5443_v42, %v5367_v16  ;;  %v5155_v10 = vadd.f32 %v5151_v35, %v10212_v32  ;;  %v5438_v44 = vrot.slane %v5430_v36, 2  ;;  %v5366_v21 = vadd.f32 %v10263_v31, %v5270_v46 }
 0x46a   : > { %v5513_v51 = vpop.permute.xlu0 %5512  ;;  %v5403_v11 = vsel %vm578_vm1, %v5401_v63, %v5402_v20  ;;  %v5400_v29 = vsel %vm578_vm1, %v5398_v61, %v5399_v55  ;;  %v5421_v23 = vrot.slane %v5412_v0, 2 }
 0x46b   : > { %v5518_v17 = vadd.f32 %v5513_v51, %v5426_v6  ;;  %v5635_v62 = vpop.permute.xlu2 %5634  ;;  %v5407_v22 = vadd.f32 %v5403_v11, %v5319_v41  ;;  %v5247_v34 = vadd.f32 %v10230_v1, %v5155_v10  ;;  %v5406_v39 = vadd.f32 %v5400_v29, %v5318_v28 }
 0x46c   : > { %v5422_v6 = vrot.slane %v5413_v8, 2 }
 0x46d   : > { %v5614_v57 = vadd.f32 %v5609_v25, %v5518_v17  ;;  %v5439_v25 = vrot.slane %v5431_v56, 2  ;;  %v5495_v43 = vadd.f32 %v10238_v13, %v5407_v22  ;;  %v5494_v9 = vadd.f32 %v10287_v24, %v5406_v39 }
 0x46e   : > { %v5343_v51 = vadd.f32 %v10226_v19, %v5247_v34  ;;  %v5423_v18 = vsel %vm578_vm1, %v5421_v23, %v5422_v6 }
 0x46f   : > { %6055 = vst.msk [vmem:[%s8522_s10 + $0x60] sm:$0xff] %vm2896_vm2, %v5614_v57  ;;  %v5440_v32 = vsel %vm578_vm1, %v5438_v44, %v5439_v25 }
 0x470   : > { %v5446_v45 = vadd.f32 %v5440_v32, %v5366_v21  ;;  %v5427_v13 = vadd.f32 %v5423_v18, %v5343_v51 }
 0x471   : > { %v5561_v53 = vpop.permute.xlu1 %5560 }
 0x472   : > { %v5566_v12 = vadd.f32 %v5561_v53, %v5470_v49  ;;  %v5539_v5 = vpop.permute.xlu0 %5538  ;;  %v5542_v31 = vadd.f32 %v10255_v27, %v5446_v45  ;;  %v5519_v24 = vadd.f32 %v10311_v40, %v5427_v13 }
 0x473   : > { %v5543_v38 = vadd.f32 %v5539_v5, %v5447_v15 }
 0x474   : > { %6051 = vst.msk [vmem:[%s8522_s10 + $0x40] sm:$0xff] %vm2896_vm2, %v5566_v12 }
 0x475   : > { %v5639_v26 = vadd.f32 %v5635_v62, %v5543_v38 }
 0x477   : > { %6058 = vst.msk [vmem:[%s8522_s10 + $0x78] sm:$0xff] %vm2896_vm2, %v5639_v26 }
 0x479   : > { %v5587_v59 = vpop.permute.xlu1 %5586 }
 0x47a   : > { %v5591_v58 = vadd.f32 %v5587_v59, %v5495_v43  ;;  %v5585_v1 = vpop.permute.xlu0 %5584 }
 0x47b   : > { %v5590_v14 = vadd.f32 %v5585_v1, %v5494_v9 }
 0x47c   : > { %6054 = vst.msk [vmem:[%s8522_s10 + $0x58] sm:$0xff] %vm2896_vm2, %v5591_v58 }
 0x47d   : > { %6053 = vst.msk [vmem:[%s8522_s10 + $0x50] sm:$0xff] %vm2896_vm2, %v5590_v14 }
 0x481   : > { %v5633_v48 = vpop.permute.xlu1 %5632 }
 0x482   : > { %v5638_v33 = vadd.f32 %v5633_v48, %v5542_v31  ;;  %v5611_v17 = vpop.permute.xlu0 %5610 }
 0x483   : > { %v5615_v52 = vadd.f32 %v5611_v17, %v5519_v24 }
 0x484   : > { %6057 = vst.msk [vmem:[%s8522_s10 + $0x70] sm:$0xff] %vm2896_vm2, %v5638_v33 }
 0x485   : > { %6056 = vst.msk [vmem:[%s8522_s10 + $0x68] sm:$0xff] %vm2896_vm2, %v5615_v52 }
 0x486 PF: > { %s13_s9 = sadd.s32 1, %s6144_s9  }
 0x487   : > { %p10_p8 = scmp.ge.s32.totalorder %s13_s9, 4  }
 0x489   :  { %12 = sbr.rel (!%p10_p8) target bundleno = 1 (0x1), region = 77 }
 0x48e   :  { %5673 = vsyncpa [#allocation3], 1 }
 0x48f   :  { %5675 = vsyncpa [#allocation3 + $0x1], 1 }

</bundles_post_ra>
